<compile_context>
chip_gen: v6e
topology: v6e:2x2x1
jax: 0.10.0
libtpu: 0.0.40
codegen_flags: <defaults>
</compile_context>

<pallas_src>
import math

import jax
import jax.numpy as jnp
from jax.experimental import pallas as pl
from jax.experimental.pallas import tpu as pltpu


def _make_kernel(H, W, Cin, Cout, NB, eps, mxu_dtype):
    HW = H * W

    def kernel(cols_ref, w1_ref, b1_ref, gamma_ref, beta_ref, gmat_ref,
               w2_ref, b2_ref, o_ref, tpad_ref):
        # cols_ref : (NB*HW, 9*Cin)  im2col'd activations for NB images (mxu_dtype)
        # w1_ref   : (9*Cin, Cout)   conv1 weights, row = (kh*3+kw)*Cin + ci (mxu_dtype)
        # b1_ref   : (1, Cout) f32
        # gamma_ref/beta_ref : (1, Cout) f32   GroupNorm affine
        # gmat_ref : (Cout, Cout) f32          group-averaging matrix
        # w2_ref   : (Cout, 9)  conv2 weights, col = kh*3+kw (mxu_dtype)
        # b2_ref   : (1,) f32 in SMEM
        # o_ref    : (1, H, W, NB*Cout) f32    lane-dense packed output
        # tpad_ref : (H+2, W+2, 9) f32 VMEM scratch (padded conv2 tap values)

        # ---------------- conv1: single fused im2col matmul --------------------
        # (zero-offset deformable conv == plain 3x3 conv)
        y = jnp.dot(cols_ref[...], w1_ref[...],
                    preferred_element_type=jnp.float32)          # (NB*HW, Cout)
        y = y + b1_ref[...]

        # Zero the tiny conv2 pad scratch. Only the 1-px border must be zero
        # (interior is fully overwritten per image), but zeroing the whole
        # 9-lane buffer is a few vector stores and stays correct if the batch
        # grid axis is split across TensorCores (megacore).
        tpad_ref[...] = jnp.zeros(tpad_ref.shape, tpad_ref.dtype)

        inv_hw = 1.0 / float(HW)
        b2 = b2_ref[0]

        for n in range(NB):                      # NB is small & static: unrolled
            yn = y[n * HW:(n + 1) * HW, :]                        # (HW, Cout)

            # ---------------- GroupNorm(32, Cout) for image n ------------------
            ch_mean = jnp.sum(yn, axis=0, keepdims=True) * inv_hw       # (1, Cout)
            ch_msq = jnp.sum(yn * yn, axis=0, keepdims=True) * inv_hw   # (1, Cout)
            g_mean = jnp.dot(ch_mean, gmat_ref[...],
                             preferred_element_type=jnp.float32)        # (1, Cout)
            g_msq = jnp.dot(ch_msq, gmat_ref[...],
                            preferred_element_type=jnp.float32)
            # E[x^2] - mean^2 can go marginally negative in low precision: guard.
            var = jnp.maximum(g_msq - g_mean * g_mean, 0.0)
            inv = jax.lax.rsqrt(var + eps)
            scale = inv * gamma_ref[...]
            shift = beta_ref[...] - g_mean * scale
            x1 = yn * scale + shift                               # (HW, Cout) f32

            # ---------------- conv2: one (HW,Cout)x(Cout,9) matmul -------------
            taps = jnp.dot(x1.astype(mxu_dtype), w2_ref[...],
                           preferred_element_type=jnp.float32)    # (HW, 9)
            tpad_ref[pl.ds(1, H), pl.ds(1, W), :] = jnp.reshape(taps, (H, W, 9))

            # nine shifted VPU adds on the 9-lane padded buffer
            s = jnp.zeros((H, W, 1), jnp.float32)
            for kh in range(3):
                for kw in range(3):
                    t = kh * 3 + kw
                    s = s + tpad_ref[pl.ds(kh, H), pl.ds(kw, W), pl.ds(t, 1)]
            gate = jax.nn.sigmoid(s + b2)                         # (H, W, 1)

            # ---------------- gated output, packed lane-dense ------------------
            x1_sp = jnp.reshape(x1, (H, W, Cout))
            o_ref[0, :, :, n * Cout:(n + 1) * Cout] = x1_sp * gate

    return kernel


def deformable_mask_forward(x_nchw, params, *, groups=32, eps=1e-5,
                            mxu_dtype=jnp.float32):
    """Pallas implementation of DeformableMask.forward.  x_nchw: (B, Cin, H, W).

    mxu_dtype: dtype of the MXU matmul operands (jnp.float32 or jnp.bfloat16);
    accumulation and all GroupNorm / sigmoid math stay in float32.
    """
    w1 = params["w1"]          # (3, 3, Cin, Cout)  HWIO
    b1 = params["b1"]          # (Cout,)
    gamma = params["gamma"]    # (Cout,)
    beta = params["beta"]      # (Cout,)
    w2 = params["w2"]          # (3, 3, Cout, 1)    HWIO
    b2 = params["b2"]          # (1,)

    B, Cin, H, W = x_nchw.shape
    Cout = w1.shape[-1]
    Cpg = Cout // groups
    HW = H * W

    # Images per grid step: grows the MXU M dimension and makes the output
    # block NB*Cout (=128 for Cout=64, NB=2) lanes wide -> dense HBM writeback.
    NB = 4 if B % 4 == 0 else (2 if B % 2 == 0 else 1)
    G = B // NB

    # ---- glue (plain JAX): NHWC, im2col, parameter packing ----
    x = jnp.transpose(x_nchw, (0, 2, 3, 1)).astype(jnp.float32)        # NHWC
    xp = jnp.pad(x, ((0, 0), (1, 1), (1, 1), (0, 0)))                  # (B,H+2,W+2,Cin)
    patches = [xp[:, kh:kh + H, kw:kw + W, :]
               for kh in range(3) for kw in range(3)]                  # 9 x (B,H,W,Cin)
    cols = jnp.concatenate(patches, axis=-1)                           # (B,H,W,9*Cin)
    cols = jnp.reshape(cols, (B * HW, 9 * Cin)).astype(mxu_dtype)

    w1_flat = jnp.reshape(w1.astype(jnp.float32),
                          (9 * Cin, Cout)).astype(mxu_dtype)
    b1_r = jnp.reshape(b1.astype(jnp.float32), (1, Cout))
    gamma_r = jnp.reshape(gamma.astype(jnp.float32), (1, Cout))
    beta_r = jnp.reshape(beta.astype(jnp.float32), (1, Cout))
    gid = jnp.arange(Cout) // Cpg
    gmat = (gid[:, None] == gid[None, :]).astype(jnp.float32) / float(Cpg)
    w2_flat = jnp.reshape(jnp.transpose(w2[:, :, :, 0].astype(jnp.float32),
                                        (2, 0, 1)), (Cout, 9)).astype(mxu_dtype)
    b2_r = jnp.reshape(b2.astype(jnp.float32), (1,))

    kernel = _make_kernel(H, W, Cin, Cout, NB, eps, mxu_dtype)

    out = pl.pallas_call(
        kernel,
        out_shape=jax.ShapeDtypeStruct((G, H, W, NB * Cout), jnp.float32),
        grid_spec=pltpu.PrefetchScalarGridSpec(
            num_scalar_prefetch=0,
            grid=(G,),
            in_specs=[
                pl.BlockSpec((NB * HW, 9 * Cin), lambda g: (g, 0)),
                pl.BlockSpec((9 * Cin, Cout), lambda g: (0, 0)),
                pl.BlockSpec((1, Cout), lambda g: (0, 0)),
                pl.BlockSpec((1, Cout), lambda g: (0, 0)),
                pl.BlockSpec((1, Cout), lambda g: (0, 0)),
                pl.BlockSpec((Cout, Cout), lambda g: (0, 0)),
                pl.BlockSpec((Cout, 9), lambda g: (0, 0)),
                pl.BlockSpec(memory_space=pltpu.MemorySpace.SMEM),
            ],
            out_specs=pl.BlockSpec((1, H, W, NB * Cout),
                                   lambda g: (g, 0, 0, 0)),
            scratch_shapes=[pltpu.VMEM((H + 2, W + 2, 9), jnp.float32)],
        ),
        compiler_params=pltpu.CompilerParams(
            dimension_semantics=("parallel",)),
    )(cols, w1_flat, b1_r, gamma_r, beta_r, gmat, w2_flat, b2_r)

    # (G, H, W, NB*Cout) -> (B, Cout, H, W)
    out = jnp.reshape(out, (G, H, W, NB, Cout))
    out = jnp.transpose(out, (0, 3, 4, 1, 2))
    return jnp.reshape(out, (B, Cout, H, W))


def reference_forward(x_nchw, params, *, groups=32, eps=1e-5):
    """Pure-JAX reference of the PyTorch forward (for correctness check)."""
    w1, b1, gamma, beta, w2, b2 = (params[k] for k in
                                   ("w1", "b1", "gamma", "beta", "w2", "b2"))
    x = jnp.transpose(x_nchw, (0, 2, 3, 1)).astype(jnp.float32)
    y = jax.lax.conv_general_dilated(
        x, w1, (1, 1), ((1, 1), (1, 1)),
        dimension_numbers=("NHWC", "HWIO", "NHWC"),
        precision=jax.lax.Precision.HIGHEST) + b1
    B, H, W, C = y.shape
    Cpg = C // groups
    yg = jnp.reshape(y, (B, H, W, groups, Cpg))
    mean = jnp.mean(yg, axis=(1, 2, 4), keepdims=True)
    var = jnp.var(yg, axis=(1, 2, 4), keepdims=True)
    x1 = jnp.reshape((yg - mean) * jax.lax.rsqrt(var + eps), (B, H, W, C))
    x1 = x1 * gamma + beta
    s = jax.lax.conv_general_dilated(
        x1, w2, (1, 1), ((1, 1), (1, 1)),
        dimension_numbers=("NHWC", "HWIO", "NHWC"),
        precision=jax.lax.Precision.HIGHEST) + b2
    out = x1 * jax.nn.sigmoid(s)
    return jnp.transpose(out, (0, 3, 1, 2))


if __name__ == "__main__":
    # GroupNorm(32, out_channels) requires out_channels % 32 == 0.
    B, Cin, H, W = 2, 4, 16, 16
    Cout, K = 64, 3

    key = jax.random.PRNGKey(0)
    ks = jax.random.split(key, 7)
    x = jax.random.normal(ks[0], (B, Cin, H, W), jnp.float32)
    params = dict(
        w1=jax.random.normal(ks[1], (K, K, Cin, Cout), jnp.float32)
        * (1.0 / math.sqrt(K * K * Cin)),
        b1=0.1 * jax.random.normal(ks[2], (Cout,), jnp.float32),
        gamma=1.0 + 0.1 * jax.random.normal(ks[3], (Cout,), jnp.float32),
        beta=0.1 * jax.random.normal(ks[4], (Cout,), jnp.float32),
        w2=jax.random.normal(ks[5], (K, K, Cout, 1), jnp.float32)
        * (1.0 / math.sqrt(K * K * Cout)),
        b2=0.1 * jax.random.normal(ks[6], (1,), jnp.float32),
    )

    ref = reference_forward(x, params)

    # f32 MXU operands: tight tolerance.
    out = jax.block_until_ready(deformable_mask_forward(x, params))
    assert out.shape == (B, Cout, H, W), out.shape
    err = float(jnp.max(jnp.abs(out - ref)))
    assert jnp.allclose(out, ref, atol=2e-3, rtol=2e-3), err

    # bf16 MXU operands (f32 accumulation, f32 GroupNorm math): looser tolerance.
    out_bf16 = jax.block_until_ready(
        deformable_mask_forward(x, params, mxu_dtype=jnp.bfloat16))
    err_bf16 = float(jnp.max(jnp.abs(out_bf16 - ref)))
    assert jnp.allclose(out_bf16, ref, atol=6e-2, rtol=6e-2), err_bf16

    print("KERNEL_OK")
</pallas_src>

<mosaic_0001>
module attributes {stable_mosaic.version = 11 : i64} {
  func.func @kernel(%arg0: i32, %arg1: memref<512x36xf32, #tpu.memory_space<vmem>>, %arg2: memref<36x64xf32, #tpu.memory_space<vmem>>, %arg3: memref<1x64xf32, #tpu.memory_space<vmem>>, %arg4: memref<1x64xf32, #tpu.memory_space<vmem>>, %arg5: memref<1x64xf32, #tpu.memory_space<vmem>>, %arg6: memref<64x64xf32, #tpu.memory_space<vmem>>, %arg7: memref<64x9xf32, #tpu.memory_space<vmem>>, %arg8: memref<1xf32, #tpu.memory_space<smem>>, %arg9: memref<1x16x16x128xf32, #tpu.memory_space<vmem>>, %arg10: memref<18x18x9xf32, #tpu.memory_space<vmem>>) attributes {dimension_semantics = [#tpu.dimension_semantics<parallel>], iteration_bounds = array<i64: 1>, scalar_prefetch = 0 : i64, scratch_operands = 1 : i64, tpu.core_type = #tpu.core_type<tc>, window_params = [{transform_indices = @transform_0, window_bounds = array<i64: 512, 36>}, {pipeline_mode = #tpu.pipeline_mode<synchronous>, transform_indices = @transform_1, window_bounds = array<i64: 36, 64>}, {pipeline_mode = #tpu.pipeline_mode<synchronous>, transform_indices = @transform_2, window_bounds = array<i64: 1, 64>}, {pipeline_mode = #tpu.pipeline_mode<synchronous>, transform_indices = @transform_3, window_bounds = array<i64: 1, 64>}, {pipeline_mode = #tpu.pipeline_mode<synchronous>, transform_indices = @transform_4, window_bounds = array<i64: 1, 64>}, {pipeline_mode = #tpu.pipeline_mode<synchronous>, transform_indices = @transform_5, window_bounds = array<i64: 64, 64>}, {pipeline_mode = #tpu.pipeline_mode<synchronous>, transform_indices = @transform_6, window_bounds = array<i64: 64, 9>}, {transform_indices = @transform_7, window_bounds = array<i64: 1>}, {transform_indices = @transform_8, window_bounds = array<i64: 1, 16, 16, 128>}]} {
    %c0 = arith.constant 0 : index
    %c0_0 = arith.constant 0 : index
    %0 = vector.load %arg1[%c0, %c0_0] : memref<512x36xf32, #tpu.memory_space<vmem>>, vector<512x36xf32>
    %c0_1 = arith.constant 0 : index
    %c0_2 = arith.constant 0 : index
    %1 = vector.load %arg2[%c0_1, %c0_2] : memref<36x64xf32, #tpu.memory_space<vmem>>, vector<36x64xf32>
    %cst = arith.constant dense<0.000000e+00> : vector<512x64xf32>
    %2 = tpu.matmul %0, %1, %cst {dimension_numbers = #tpu.dot_dimension_numbers<[1], [0], [0], [1], [0, 0, 1, 1], [], []>} : vector<512x36xf32>, vector<36x64xf32>, vector<512x64xf32> -> vector<512x64xf32>
    %c0_3 = arith.constant 0 : index
    %c0_4 = arith.constant 0 : index
    %3 = vector.load %arg3[%c0_3, %c0_4] : memref<1x64xf32, #tpu.memory_space<vmem>>, vector<1x64xf32>
    %4 = vector.broadcast %3 : vector<1x64xf32> to vector<512x64xf32>
    %5 = arith.addf %2, %4 : vector<512x64xf32>
    %cst_5 = arith.constant 0.000000e+00 : f32
    %6 = vector.broadcast %cst_5 : f32 to vector<18x18x9xf32>
    %c0_6 = arith.constant 0 : index
    %c0_7 = arith.constant 0 : index
    %c0_8 = arith.constant 0 : index
    %7 = vector.load %arg10[%c0_6, %c0_7, %c0_8] : memref<18x18x9xf32, #tpu.memory_space<vmem>>, vector<18x18x9xf32>
    tpu.vector_store %arg10[%c0_6, %c0_7, %c0_8], %6 {strides = array<i32>} : memref<18x18x9xf32, #tpu.memory_space<vmem>>, vector<18x18x9xf32>,
    %c0_9 = arith.constant 0 : index
    %8 = memref.load %arg8[%c0_9] : memref<1xf32, #tpu.memory_space<smem>>
    %9 = vector.extract_strided_slice %5 {offsets = [0, 0], sizes = [256, 64], strides = [1, 1]} : vector<512x64xf32> to vector<256x64xf32>
    %cst_10 = arith.constant dense<0.000000e+00> : vector<64xf32>
    %10 = vector.multi_reduction <add>, %9, %cst_10 [0] : vector<256x64xf32> to vector<64xf32>
    %11 = vector.shape_cast %10 : vector<64xf32> to vector<1x64xf32>
    %cst_11 = arith.constant 3.906250e-03 : f32
    %12 = vector.broadcast %cst_11 : f32 to vector<1x64xf32>
    %13 = arith.mulf %11, %12 : vector<1x64xf32>
    %14 = arith.mulf %9, %9 : vector<256x64xf32>
    %cst_12 = arith.constant dense<0.000000e+00> : vector<64xf32>
    %15 = vector.multi_reduction <add>, %14, %cst_12 [0] : vector<256x64xf32> to vector<64xf32>
    %16 = vector.shape_cast %15 : vector<64xf32> to vector<1x64xf32>
    %cst_13 = arith.constant 3.906250e-03 : f32
    %17 = vector.broadcast %cst_13 : f32 to vector<1x64xf32>
    %18 = arith.mulf %16, %17 : vector<1x64xf32>
    %c0_14 = arith.constant 0 : index
    %c0_15 = arith.constant 0 : index
    %19 = vector.load %arg6[%c0_14, %c0_15] : memref<64x64xf32, #tpu.memory_space<vmem>>, vector<64x64xf32>
    %cst_16 = arith.constant dense<0.000000e+00> : vector<1x64xf32>
    %20 = tpu.matmul %13, %19, %cst_16 {dimension_numbers = #tpu.dot_dimension_numbers<[1], [0], [0], [1], [0, 0, 1, 1], [], []>} : vector<1x64xf32>, vector<64x64xf32>, vector<1x64xf32> -> vector<1x64xf32>
    %c0_17 = arith.constant 0 : index
    %c0_18 = arith.constant 0 : index
    %21 = vector.load %arg6[%c0_17, %c0_18] : memref<64x64xf32, #tpu.memory_space<vmem>>, vector<64x64xf32>
    %cst_19 = arith.constant dense<0.000000e+00> : vector<1x64xf32>
    %22 = tpu.matmul %18, %21, %cst_19 {dimension_numbers = #tpu.dot_dimension_numbers<[1], [0], [0], [1], [0, 0, 1, 1], [], []>} : vector<1x64xf32>, vector<64x64xf32>, vector<1x64xf32> -> vector<1x64xf32>
    %23 = arith.mulf %20, %20 : vector<1x64xf32>
    %24 = arith.subf %22, %23 : vector<1x64xf32>
    %cst_20 = arith.constant 0.000000e+00 : f32
    %25 = vector.broadcast %cst_20 : f32 to vector<1x64xf32>
    %26 = arith.maximumf %24, %25 : vector<1x64xf32>
    %cst_21 = arith.constant 9.99999974E-6 : f32
    %27 = vector.broadcast %cst_21 : f32 to vector<1x64xf32>
    %28 = arith.addf %26, %27 : vector<1x64xf32>
    %29 = math.rsqrt %28 : vector<1x64xf32>
    %c0_22 = arith.constant 0 : index
    %c0_23 = arith.constant 0 : index
    %30 = vector.load %arg4[%c0_22, %c0_23] : memref<1x64xf32, #tpu.memory_space<vmem>>, vector<1x64xf32>
    %31 = arith.mulf %29, %30 : vector<1x64xf32>
    %c0_24 = arith.constant 0 : index
    %c0_25 = arith.constant 0 : index
    %32 = vector.load %arg5[%c0_24, %c0_25] : memref<1x64xf32, #tpu.memory_space<vmem>>, vector<1x64xf32>
    %33 = arith.mulf %20, %31 : vector<1x64xf32>
    %34 = arith.subf %32, %33 : vector<1x64xf32>
    %35 = vector.broadcast %31 : vector<1x64xf32> to vector<256x64xf32>
    %36 = arith.mulf %9, %35 : vector<256x64xf32>
    %37 = vector.broadcast %34 : vector<1x64xf32> to vector<256x64xf32>
    %38 = arith.addf %36, %37 : vector<256x64xf32>
    %c0_26 = arith.constant 0 : index
    %c0_27 = arith.constant 0 : index
    %39 = vector.load %arg7[%c0_26, %c0_27] : memref<64x9xf32, #tpu.memory_space<vmem>>, vector<64x9xf32>
    %cst_28 = arith.constant dense<0.000000e+00> : vector<256x9xf32>
    %40 = tpu.matmul %38, %39, %cst_28 {dimension_numbers = #tpu.dot_dimension_numbers<[1], [0], [0], [1], [0, 0, 1, 1], [], []>} : vector<256x64xf32>, vector<64x9xf32>, vector<256x9xf32> -> vector<256x9xf32>
    %41 = vector.shape_cast %40 : vector<256x9xf32> to vector<16x16x9xf32>
    %c1 = arith.constant 1 : index
    %c1_29 = arith.constant 1 : index
    %c0_30 = arith.constant 0 : index
    %42 = vector.load %arg10[%c1, %c1_29, %c0_30] : memref<18x18x9xf32, #tpu.memory_space<vmem>>, vector<16x16x9xf32>
    tpu.vector_store %arg10[%c1, %c1_29, %c0_30], %41 {strides = array<i32>} : memref<18x18x9xf32, #tpu.memory_space<vmem>>, vector<16x16x9xf32>,
    %cst_31 = arith.constant 0.000000e+00 : f32
    %43 = vector.broadcast %cst_31 : f32 to vector<16x16x1xf32>
    %c0_32 = arith.constant 0 : index
    %c0_33 = arith.constant 0 : index
    %c0_34 = arith.constant 0 : index
    %44 = vector.load %arg10[%c0_32, %c0_33, %c0_34] : memref<18x18x9xf32, #tpu.memory_space<vmem>>, vector<16x16x1xf32>
    %45 = arith.addf %43, %44 : vector<16x16x1xf32>
    %c0_35 = arith.constant 0 : index
    %c1_36 = arith.constant 1 : index
    %c1_37 = arith.constant 1 : index
    %46 = vector.load %arg10[%c0_35, %c1_36, %c1_37] : memref<18x18x9xf32, #tpu.memory_space<vmem>>, vector<16x16x1xf32>
    %47 = arith.addf %45, %46 : vector<16x16x1xf32>
    %c0_38 = arith.constant 0 : index
    %c2 = arith.constant 2 : index
    %c2_39 = arith.constant 2 : index
    %48 = vector.load %arg10[%c0_38, %c2, %c2_39] : memref<18x18x9xf32, #tpu.memory_space<vmem>>, vector<16x16x1xf32>
    %49 = arith.addf %47, %48 : vector<16x16x1xf32>
    %c1_40 = arith.constant 1 : index
    %c0_41 = arith.constant 0 : index
    %c3 = arith.constant 3 : index
    %50 = vector.load %arg10[%c1_40, %c0_41, %c3] : memref<18x18x9xf32, #tpu.memory_space<vmem>>, vector<16x16x1xf32>
    %51 = arith.addf %49, %50 : vector<16x16x1xf32>
    %c1_42 = arith.constant 1 : index
    %c1_43 = arith.constant 1 : index
    %c4 = arith.constant 4 : index
    %52 = vector.load %arg10[%c1_42, %c1_43, %c4] : memref<18x18x9xf32, #tpu.memory_space<vmem>>, vector<16x16x1xf32>
    %53 = arith.addf %51, %52 : vector<16x16x1xf32>
    %c1_44 = arith.constant 1 : index
    %c2_45 = arith.constant 2 : index
    %c5 = arith.constant 5 : index
    %54 = vector.load %arg10[%c1_44, %c2_45, %c5] : memref<18x18x9xf32, #tpu.memory_space<vmem>>, vector<16x16x1xf32>
    %55 = arith.addf %53, %54 : vector<16x16x1xf32>
    %c2_46 = arith.constant 2 : index
    %c0_47 = arith.constant 0 : index
    %c6 = arith.constant 6 : index
    %56 = vector.load %arg10[%c2_46, %c0_47, %c6] : memref<18x18x9xf32, #tpu.memory_space<vmem>>, vector<16x16x1xf32>
    %57 = arith.addf %55, %56 : vector<16x16x1xf32>
    %c2_48 = arith.constant 2 : index
    %c1_49 = arith.constant 1 : index
    %c7 = arith.constant 7 : index
    %58 = vector.load %arg10[%c2_48, %c1_49, %c7] : memref<18x18x9xf32, #tpu.memory_space<vmem>>, vector<16x16x1xf32>
    %59 = arith.addf %57, %58 : vector<16x16x1xf32>
    %c2_50 = arith.constant 2 : index
    %c2_51 = arith.constant 2 : index
    %c8 = arith.constant 8 : index
    %60 = vector.load %arg10[%c2_50, %c2_51, %c8] : memref<18x18x9xf32, #tpu.memory_space<vmem>>, vector<16x16x1xf32>
    %61 = arith.addf %59, %60 : vector<16x16x1xf32>
    %62 = vector.broadcast %8 : f32 to vector<16x16x1xf32>
    %63 = arith.addf %61, %62 : vector<16x16x1xf32>
    %64 = arith.negf %63 : vector<16x16x1xf32>
    %65 = math.exp %64 : vector<16x16x1xf32>
    %cst_52 = arith.constant 1.000000e+00 : f32
    %66 = vector.broadcast %cst_52 : f32 to vector<16x16x1xf32>
    %67 = arith.addf %66, %65 : vector<16x16x1xf32>
    %68 = arith.divf %66, %67 : vector<16x16x1xf32>
    %69 = vector.shape_cast %38 : vector<256x64xf32> to vector<16x16x64xf32>
    %70 = vector.broadcast %68 : vector<16x16x1xf32> to vector<16x16x64xf32>
    %71 = arith.mulf %69, %70 : vector<16x16x64xf32>
    %c0_53 = arith.constant 0 : index
    %c0_54 = arith.constant 0 : index
    %c0_55 = arith.constant 0 : index
    %c0_56 = arith.constant 0 : index
    %72 = vector.load %arg9[%c0_53, %c0_54, %c0_55, %c0_56] : memref<1x16x16x128xf32, #tpu.memory_space<vmem>>, vector<1x16x16x64xf32>
    %73 = vector.shape_cast %72 : vector<1x16x16x64xf32> to vector<16x16x64xf32>
    %74 = vector.shape_cast %71 : vector<16x16x64xf32> to vector<1x16x16x64xf32>
    tpu.vector_store %arg9[%c0_53, %c0_54, %c0_55, %c0_56], %74 {strides = array<i32>} : memref<1x16x16x128xf32, #tpu.memory_space<vmem>>, vector<1x16x16x64xf32>,
    %75 = vector.extract_strided_slice %5 {offsets = [256, 0], sizes = [256, 64], strides = [1, 1]} : vector<512x64xf32> to vector<256x64xf32>
    %cst_57 = arith.constant dense<0.000000e+00> : vector<64xf32>
    %76 = vector.multi_reduction <add>, %75, %cst_57 [0] : vector<256x64xf32> to vector<64xf32>
    %77 = vector.shape_cast %76 : vector<64xf32> to vector<1x64xf32>
    %cst_58 = arith.constant 3.906250e-03 : f32
    %78 = vector.broadcast %cst_58 : f32 to vector<1x64xf32>
    %79 = arith.mulf %77, %78 : vector<1x64xf32>
    %80 = arith.mulf %75, %75 : vector<256x64xf32>
    %cst_59 = arith.constant dense<0.000000e+00> : vector<64xf32>
    %81 = vector.multi_reduction <add>, %80, %cst_59 [0] : vector<256x64xf32> to vector<64xf32>
    %82 = vector.shape_cast %81 : vector<64xf32> to vector<1x64xf32>
    %cst_60 = arith.constant 3.906250e-03 : f32
    %83 = vector.broadcast %cst_60 : f32 to vector<1x64xf32>
    %84 = arith.mulf %82, %83 : vector<1x64xf32>
    %c0_61 = arith.constant 0 : index
    %c0_62 = arith.constant 0 : index
    %85 = vector.load %arg6[%c0_61, %c0_62] : memref<64x64xf32, #tpu.memory_space<vmem>>, vector<64x64xf32>
    %cst_63 = arith.constant dense<0.000000e+00> : vector<1x64xf32>
    %86 = tpu.matmul %79, %85, %cst_63 {dimension_numbers = #tpu.dot_dimension_numbers<[1], [0], [0], [1], [0, 0, 1, 1], [], []>} : vector<1x64xf32>, vector<64x64xf32>, vector<1x64xf32> -> vector<1x64xf32>
    %c0_64 = arith.constant 0 : index
    %c0_65 = arith.constant 0 : index
    %87 = vector.load %arg6[%c0_64, %c0_65] : memref<64x64xf32, #tpu.memory_space<vmem>>, vector<64x64xf32>
    %cst_66 = arith.constant dense<0.000000e+00> : vector<1x64xf32>
    %88 = tpu.matmul %84, %87, %cst_66 {dimension_numbers = #tpu.dot_dimension_numbers<[1], [0], [0], [1], [0, 0, 1, 1], [], []>} : vector<1x64xf32>, vector<64x64xf32>, vector<1x64xf32> -> vector<1x64xf32>
    %89 = arith.mulf %86, %86 : vector<1x64xf32>
    %90 = arith.subf %88, %89 : vector<1x64xf32>
    %cst_67 = arith.constant 0.000000e+00 : f32
    %91 = vector.broadcast %cst_67 : f32 to vector<1x64xf32>
    %92 = arith.maximumf %90, %91 : vector<1x64xf32>
    %cst_68 = arith.constant 9.99999974E-6 : f32
    %93 = vector.broadcast %cst_68 : f32 to vector<1x64xf32>
    %94 = arith.addf %92, %93 : vector<1x64xf32>
    %95 = math.rsqrt %94 : vector<1x64xf32>
    %c0_69 = arith.constant 0 : index
    %c0_70 = arith.constant 0 : index
    %96 = vector.load %arg4[%c0_69, %c0_70] : memref<1x64xf32, #tpu.memory_space<vmem>>, vector<1x64xf32>
    %97 = arith.mulf %95, %96 : vector<1x64xf32>
    %c0_71 = arith.constant 0 : index
    %c0_72 = arith.constant 0 : index
    %98 = vector.load %arg5[%c0_71, %c0_72] : memref<1x64xf32, #tpu.memory_space<vmem>>, vector<1x64xf32>
    %99 = arith.mulf %86, %97 : vector<1x64xf32>
    %100 = arith.subf %98, %99 : vector<1x64xf32>
    %101 = vector.broadcast %97 : vector<1x64xf32> to vector<256x64xf32>
    %102 = arith.mulf %75, %101 : vector<256x64xf32>
    %103 = vector.broadcast %100 : vector<1x64xf32> to vector<256x64xf32>
    %104 = arith.addf %102, %103 : vector<256x64xf32>
    %c0_73 = arith.constant 0 : index
    %c0_74 = arith.constant 0 : index
    %105 = vector.load %arg7[%c0_73, %c0_74] : memref<64x9xf32, #tpu.memory_space<vmem>>, vector<64x9xf32>
    %cst_75 = arith.constant dense<0.000000e+00> : vector<256x9xf32>
    %106 = tpu.matmul %104, %105, %cst_75 {dimension_numbers = #tpu.dot_dimension_numbers<[1], [0], [0], [1], [0, 0, 1, 1], [], []>} : vector<256x64xf32>, vector<64x9xf32>, vector<256x9xf32> -> vector<256x9xf32>
    %107 = vector.shape_cast %106 : vector<256x9xf32> to vector<16x16x9xf32>
    %c1_76 = arith.constant 1 : index
    %c1_77 = arith.constant 1 : index
    %c0_78 = arith.constant 0 : index
    %108 = vector.load %arg10[%c1_76, %c1_77, %c0_78] : memref<18x18x9xf32, #tpu.memory_space<vmem>>, vector<16x16x9xf32>
    tpu.vector_store %arg10[%c1_76, %c1_77, %c0_78], %107 {strides = array<i32>} : memref<18x18x9xf32, #tpu.memory_space<vmem>>, vector<16x16x9xf32>,
    %cst_79 = arith.constant 0.000000e+00 : f32
    %109 = vector.broadcast %cst_79 : f32 to vector<16x16x1xf32>
    %c0_80 = arith.constant 0 : index
    %c0_81 = arith.constant 0 : index
    %c0_82 = arith.constant 0 : index
    %110 = vector.load %arg10[%c0_80, %c0_81, %c0_82] : memref<18x18x9xf32, #tpu.memory_space<vmem>>, vector<16x16x1xf32>
    %111 = arith.addf %109, %110 : vector<16x16x1xf32>
    %c0_83 = arith.constant 0 : index
    %c1_84 = arith.constant 1 : index
    %c1_85 = arith.constant 1 : index
    %112 = vector.load %arg10[%c0_83, %c1_84, %c1_85] : memref<18x18x9xf32, #tpu.memory_space<vmem>>, vector<16x16x1xf32>
    %113 = arith.addf %111, %112 : vector<16x16x1xf32>
    %c0_86 = arith.constant 0 : index
    %c2_87 = arith.constant 2 : index
    %c2_88 = arith.constant 2 : index
    %114 = vector.load %arg10[%c0_86, %c2_87, %c2_88] : memref<18x18x9xf32, #tpu.memory_space<vmem>>, vector<16x16x1xf32>
    %115 = arith.addf %113, %114 : vector<16x16x1xf32>
    %c1_89 = arith.constant 1 : index
    %c0_90 = arith.constant 0 : index
    %c3_91 = arith.constant 3 : index
    %116 = vector.load %arg10[%c1_89, %c0_90, %c3_91] : memref<18x18x9xf32, #tpu.memory_space<vmem>>, vector<16x16x1xf32>
    %117 = arith.addf %115, %116 : vector<16x16x1xf32>
    %c1_92 = arith.constant 1 : index
    %c1_93 = arith.constant 1 : index
    %c4_94 = arith.constant 4 : index
    %118 = vector.load %arg10[%c1_92, %c1_93, %c4_94] : memref<18x18x9xf32, #tpu.memory_space<vmem>>, vector<16x16x1xf32>
    %119 = arith.addf %117, %118 : vector<16x16x1xf32>
    %c1_95 = arith.constant 1 : index
    %c2_96 = arith.constant 2 : index
    %c5_97 = arith.constant 5 : index
    %120 = vector.load %arg10[%c1_95, %c2_96, %c5_97] : memref<18x18x9xf32, #tpu.memory_space<vmem>>, vector<16x16x1xf32>
    %121 = arith.addf %119, %120 : vector<16x16x1xf32>
    %c2_98 = arith.constant 2 : index
    %c0_99 = arith.constant 0 : index
    %c6_100 = arith.constant 6 : index
    %122 = vector.load %arg10[%c2_98, %c0_99, %c6_100] : memref<18x18x9xf32, #tpu.memory_space<vmem>>, vector<16x16x1xf32>
    %123 = arith.addf %121, %122 : vector<16x16x1xf32>
    %c2_101 = arith.constant 2 : index
    %c1_102 = arith.constant 1 : index
    %c7_103 = arith.constant 7 : index
    %124 = vector.load %arg10[%c2_101, %c1_102, %c7_103] : memref<18x18x9xf32, #tpu.memory_space<vmem>>, vector<16x16x1xf32>
    %125 = arith.addf %123, %124 : vector<16x16x1xf32>
    %c2_104 = arith.constant 2 : index
    %c2_105 = arith.constant 2 : index
    %c8_106 = arith.constant 8 : index
    %126 = vector.load %arg10[%c2_104, %c2_105, %c8_106] : memref<18x18x9xf32, #tpu.memory_space<vmem>>, vector<16x16x1xf32>
    %127 = arith.addf %125, %126 : vector<16x16x1xf32>
    %128 = vector.broadcast %8 : f32 to vector<16x16x1xf32>
    %129 = arith.addf %127, %128 : vector<16x16x1xf32>
    %130 = arith.negf %129 : vector<16x16x1xf32>
    %131 = math.exp %130 : vector<16x16x1xf32>
    %cst_107 = arith.constant 1.000000e+00 : f32
    %132 = vector.broadcast %cst_107 : f32 to vector<16x16x1xf32>
    %133 = arith.addf %132, %131 : vector<16x16x1xf32>
    %134 = arith.divf %132, %133 : vector<16x16x1xf32>
    %135 = vector.shape_cast %104 : vector<256x64xf32> to vector<16x16x64xf32>
    %136 = vector.broadcast %134 : vector<16x16x1xf32> to vector<16x16x64xf32>
    %137 = arith.mulf %135, %136 : vector<16x16x64xf32>
    %c0_108 = arith.constant 0 : index
    %c0_109 = arith.constant 0 : index
    %c0_110 = arith.constant 0 : index
    %c64 = arith.constant 64 : index
    %138 = vector.load %arg9[%c0_108, %c0_109, %c0_110, %c64] : memref<1x16x16x128xf32, #tpu.memory_space<vmem>>, vector<1x16x16x64xf32>
    %139 = vector.shape_cast %138 : vector<1x16x16x64xf32> to vector<16x16x64xf32>
    %140 = vector.shape_cast %137 : vector<16x16x64xf32> to vector<1x16x16x64xf32>
    tpu.vector_store %arg9[%c0_108, %c0_109, %c0_110, %c64], %140 {strides = array<i32>} : memref<1x16x16x128xf32, #tpu.memory_space<vmem>>, vector<1x16x16x64xf32>,
    return
  }
  func.func @transform_0(%arg0: i32) -> (i32, i32) {
    %c0_i32 = arith.constant 0 : i32
    %c0_i32_0 = arith.constant 0 : i32
    return %arg0, %c0_i32 : i32, i32
  }
  func.func @transform_1(%arg0: i32) -> (i32, i32) {
    %c0_i32 = arith.constant 0 : i32
    %c0_i32_0 = arith.constant 0 : i32
    %c0_i32_1 = arith.constant 0 : i32
    return %c0_i32, %c0_i32_0 : i32, i32
  }
  func.func @transform_2(%arg0: i32) -> (i32, i32) {
    %c0_i32 = arith.constant 0 : i32
    %c0_i32_0 = arith.constant 0 : i32
    %c0_i32_1 = arith.constant 0 : i32
    return %c0_i32, %c0_i32_0 : i32, i32
  }
  func.func @transform_3(%arg0: i32) -> (i32, i32) {
    %c0_i32 = arith.constant 0 : i32
    %c0_i32_0 = arith.constant 0 : i32
    %c0_i32_1 = arith.constant 0 : i32
    return %c0_i32, %c0_i32_0 : i32, i32
  }
  func.func @transform_4(%arg0: i32) -> (i32, i32) {
    %c0_i32 = arith.constant 0 : i32
    %c0_i32_0 = arith.constant 0 : i32
    %c0_i32_1 = arith.constant 0 : i32
    return %c0_i32, %c0_i32_0 : i32, i32
  }
  func.func @transform_5(%arg0: i32) -> (i32, i32) {
    %c0_i32 = arith.constant 0 : i32
    %c0_i32_0 = arith.constant 0 : i32
    %c0_i32_1 = arith.constant 0 : i32
    return %c0_i32, %c0_i32_0 : i32, i32
  }
  func.func @transform_6(%arg0: i32) -> (i32, i32) {
    %c0_i32 = arith.constant 0 : i32
    %c0_i32_0 = arith.constant 0 : i32
    %c0_i32_1 = arith.constant 0 : i32
    return %c0_i32, %c0_i32_0 : i32, i32
  }
  func.func @transform_7(%arg0: i32) -> i32 {
    %c0_i32 = arith.constant 0 : i32
    %c0_i32_0 = arith.constant 0 : i32
    return %c0_i32 : i32
  }
  func.func @transform_8(%arg0: i32) -> (i32, i32, i32, i32) {
    %c0_i32 = arith.constant 0 : i32
    %c0_i32_0 = arith.constant 0 : i32
    %c0_i32_1 = arith.constant 0 : i32
    %c0_i32_2 = arith.constant 0 : i32
    return %arg0, %c0_i32, %c0_i32_0, %c0_i32_1 : i32, i32, i32, i32
  }
}

</mosaic_0001>

<bundles_post_ra>
// kernel: tpu_custom_call.1
= control target key start
LH: loop header
LB: loop body
LE: loop exit
PB: predicated region body
PF: predicated region fallthrough
CT: control target
= control target key end

     0   :  { %vm300_vm0 = vcmask 1043456   ;;  %vm107_vm1 = vcmask 293888   ;;  %s11763_s0 = inlined_call_operand.vmem [shape: f32[512,36], index: 0, kind: input, shape index: {}]   ;;  %s11764_s1 = inlined_call_operand.vmem [shape: f32[36,64], index: 1, kind: input, shape index: {}]   ;;  %s11765_s2 = inlined_call_operand.vmem [shape: f32[1,64], index: 2, kind: input, shape index: {}]   ;;  %s11766_s3 = inlined_call_operand.vmem [shape: f32[1,64], index: 3, kind: input, shape index: {}]   ;;  %s11767_s4 = inlined_call_operand.vmem [shape: f32[1,64], index: 4, kind: input, shape index: {}]   ;;  %s11768_s5 = inlined_call_operand.vmem [shape: f32[64,64], index: 5, kind: input, shape index: {}]   ;;  %s11769_s6 = inlined_call_operand.vmem [shape: f32[64,9], index: 6, kind: input, shape index: {}]   ;;  %s11770_s7 = inlined_call_operand.<no memory space> [shape: f32[1], index: 7, kind: input, shape index: {}]   ;;  %s11771_s8 = inlined_call_operand.hbm [shape: f32[1,16,16,128], index: 8, kind: output, shape index: {}]  }
   0x1   :  { %v99_v0 = vld [vmem:[%s11764_s1 + $0x20] sm:$0xf]  ;;  %v98_v1 = vld [vmem:[%s11764_s1 + $0x18] sm:$0xff]  ;;  %v97_v3 = vld [vmem:[%s11764_s1 + $0x10] sm:$0xff] }
   0x2   :  { %6916 = vmatprep.subr.msk.mxu0 %vm300_vm0, %v99_v0  ;;  %v31_v2 = vld [vmem:[%s11763_s0] sm:$0xff]  ;;  %7226 = vmatprep.subr.msk.mxu1 %vm300_vm0, %v99_v0  ;;  %v96_v4 = vld [vmem:[%s11764_s1 + $0x8] sm:$0xff]  ;;  %v33_v7 = vld [vmem:[%s11763_s0 + $0x10] sm:$0xff] }
   0x3   :  { %6917 = vmatpush3.msk.msra.mxu0 %vm300_vm0, %v99_v0  ;;  %6926 = vmatprep.mubr.msk.f32.mxu0 %vm107_vm1, %v31_v2  ;;  %v95_v5 = vld [vmem:[%s11764_s1] sm:$0xff]  ;;  %v32_v6 = vld [vmem:[%s11763_s0 + $0x8] sm:$0xff]  ;;  %v34_v8 = vld [vmem:[%s11763_s0 + $0x18] sm:$0xff] }
   0x4   :  { %6918 = vmatprep.subr.mxu0 %v98_v1  ;;  %7231 = vmatpush3.msk.msra.mxu1 %vm300_vm0, %v99_v0 }
   0x5   :  { %6919 = vmatpush3.msra.mxu0 %v98_v1  ;;  %7227 = vmatprep.subr.mxu1 %v98_v1 }
   0x6   :  { %6920 = vmatprep.subr.mxu0 %v97_v3  ;;  %7232 = vmatpush3.msra.mxu1 %v98_v1 }
   0x7   :  { %6921 = vmatpush3.msra.mxu0 %v97_v3  ;;  %7228 = vmatprep.subr.mxu1 %v97_v3 }
   0x8   :  { %6922 = vmatprep.subr.mxu0 %v96_v4  ;;  %7233 = vmatpush3.msra.mxu1 %v97_v3 }
   0x9   :  { %6923 = vmatpush3.msra.mxu0 %v96_v4  ;;  %7229 = vmatprep.subr.mxu1 %v96_v4 }
   0xa   :  { %6924 = vmatprep.subr.mxu0 %v95_v5  ;;  %7234 = vmatpush3.msra.mxu1 %v96_v4 }
   0xb   :  { %6925 = vmatpush3.msra.mxu0 %v95_v5  ;;  %7230 = vmatprep.subr.mxu1 %v95_v5 }
   0xc   :  { %6927 = vmatmul.mubr.msk.f32.vlgmr.msra.gmra.mxu0 %vm107_vm1, %v32_v6  ;;  %7235 = vmatpush3.msra.mxu1 %v95_v5 }
   0xd   :  { %6929 = vmatprep.mubr.msk.f32.mxu0 %vm107_vm1, %v33_v7 }
   0xe   :  { %14 = vsyncpa [#allocation5], 0  ;;  %v35_v9 = vld [vmem:[%s11763_s0 + $0x20] sm:$0xff]  ;;  %v36_v10 = vld [vmem:[%s11763_s0 + $0x28] sm:$0xff]  ;;  %v11772_v60 = vmov 0.0   ;;  %vm7555_vm2 = vmmov 0  }
   0xf   :  { %v37_v11 = vld [vmem:[%s11763_s0 + $0x30] sm:$0xff]  ;;  %v38_v12 = vld [vmem:[%s11763_s0 + $0x38] sm:$0xff]  ;;  %v39_v13 = vld [vmem:[%s11763_s0 + $0x40] sm:$0xff]  ;;  %7022 = vmatprep.subr.mxu1 %v11772_v60  ;;  %vm746_vm3 = vcmask 523264   ;;  %vm689_vm4 = vcmask 72704   ;;  %vm692_vm5 = vcmask 66560  }
  0x10   :  { %6930 = vmatmul.mubr.msk.f32.gmra.mxu0 %vm107_vm1, %v34_v8  ;;  %v40_v14 = vld [vmem:[%s11763_s0 + $0x48] sm:$0xff]  ;;  %v41_v15 = vld [vmem:[%s11763_s0 + $0x50] sm:$0xff]  ;;  %v42_v16 = vld [vmem:[%s11763_s0 + $0x58] sm:$0xff]  ;;  %s7558_s15 = smov 122   ;;  %s7559_s16 = smov 121   ;;  %vm6484_vm6 = vcmask 1048064  }
  0x11   :  { %6932 = vmatprep.mubr.msk.f32.mxu0 %vm107_vm1, %v35_v9  ;;  %v43_v17 = vld [vmem:[%s11763_s0 + $0x60] sm:$0xff]  ;;  %v44_v18 = vld [vmem:[%s11763_s0 + $0x68] sm:$0xff]  ;;  %v45_v19 = vld [vmem:[%s11763_s0 + $0x70] sm:$0xff]  ;;  %s7560_s17 = smov 120   ;;  %s7562_s19 = smov 124  }
  0x12   :  { %v46_v20 = vld [vmem:[%s11763_s0 + $0x78] sm:$0xff]  ;;  %v47_v21 = vld [vmem:[%s11763_s0 + $0x80] sm:$0xff]  ;;  %v48_v22 = vld [vmem:[%s11763_s0 + $0x88] sm:$0xff]  ;;  %s7563_s20 = smov 123  }
  0x13   :  { %v49_v23 = vld [vmem:[%s11763_s0 + $0x90] sm:$0xff]  ;;  %v50_v24 = vld [vmem:[%s11763_s0 + $0x98] sm:$0xff]  ;;  %v51_v25 = vld [vmem:[%s11763_s0 + $0xa0] sm:$0xff] }
  0x14   :  { %6933 = vmatmul.mubr.msk.f32.gmra.mxu0 %vm107_vm1, %v36_v10  ;;  %v52_v26 = vld [vmem:[%s11763_s0 + $0xa8] sm:$0xff]  ;;  %v53_v27 = vld [vmem:[%s11763_s0 + $0xb0] sm:$0xff]  ;;  %v54_v28 = vld [vmem:[%s11763_s0 + $0xb8] sm:$0xff] }
  0x15   :  { %6935 = vmatprep.mubr.msk.f32.mxu0 %vm107_vm1, %v37_v11  ;;  %v55_v29 = vld [vmem:[%s11763_s0 + $0xc0] sm:$0xff]  ;;  %v56_v30 = vld [vmem:[%s11763_s0 + $0xc8] sm:$0xff]  ;;  %v57_v31 = vld [vmem:[%s11763_s0 + $0xd0] sm:$0xff] }
  0x16   :  { %v58_v32 = vld [vmem:[%s11763_s0 + $0xd8] sm:$0xff]  ;;  %v59_v33 = vld [vmem:[%s11763_s0 + $0xe0] sm:$0xff]  ;;  %v60_v34 = vld [vmem:[%s11763_s0 + $0xe8] sm:$0xff] }
  0x17   :  { %v61_v35 = vld [vmem:[%s11763_s0 + $0xf0] sm:$0xff]  ;;  %v62_v36 = vld [vmem:[%s11763_s0 + $0xf8] sm:$0xff]  ;;  %v63_v37 = vld [vmem:[%s11763_s0 + $0x100] sm:$0xff] }
  0x18   :  { %6936 = vmatmul.mubr.msk.f32.gmra.mxu0 %vm107_vm1, %v38_v12  ;;  %v64_v38 = vld [vmem:[%s11763_s0 + $0x108] sm:$0xff]  ;;  %v65_v39 = vld [vmem:[%s11763_s0 + $0x110] sm:$0xff]  ;;  %v66_v40 = vld [vmem:[%s11763_s0 + $0x118] sm:$0xff] }
  0x19   :  { %6938 = vmatprep.mubr.msk.f32.mxu0 %vm107_vm1, %v39_v13  ;;  %v67_v41 = vld [vmem:[%s11763_s0 + $0x120] sm:$0xff]  ;;  %v68_v42 = vld [vmem:[%s11763_s0 + $0x128] sm:$0xff]  ;;  %v69_v43 = vld [vmem:[%s11763_s0 + $0x130] sm:$0xff] }
  0x1a   :  { %v70_v44 = vld [vmem:[%s11763_s0 + $0x138] sm:$0xff]  ;;  %v71_v45 = vld [vmem:[%s11763_s0 + $0x140] sm:$0xff]  ;;  %v72_v46 = vld [vmem:[%s11763_s0 + $0x148] sm:$0xff] }
  0x1b   :  { %v73_v47 = vld [vmem:[%s11763_s0 + $0x150] sm:$0xff]  ;;  %v74_v48 = vld [vmem:[%s11763_s0 + $0x158] sm:$0xff]  ;;  %v75_v49 = vld [vmem:[%s11763_s0 + $0x160] sm:$0xff] }
  0x1c   :  { %6939 = vmatmul.mubr.msk.f32.gmra.mxu0 %vm107_vm1, %v40_v14  ;;  %v76_v50 = vld [vmem:[%s11763_s0 + $0x168] sm:$0xff]  ;;  %v77_v51 = vld [vmem:[%s11763_s0 + $0x170] sm:$0xff]  ;;  %v78_v52 = vld [vmem:[%s11763_s0 + $0x178] sm:$0xff] }
  0x1d   :  { %6941 = vmatprep.mubr.msk.f32.mxu0 %vm107_vm1, %v41_v15  ;;  %6995 = vmatprep.mubr.msk.f32.mxu1 %vm107_vm1, %v77_v51  ;;  %v79_v53 = vld [vmem:[%s11763_s0 + $0x180] sm:$0xff]  ;;  %v80_v54 = vld [vmem:[%s11763_s0 + $0x188] sm:$0xff]  ;;  %v81_v55 = vld [vmem:[%s11763_s0 + $0x190] sm:$0xff] }
  0x1e   :  { %6996 = vmatmul.mubr.msk.f32.vlgmr.msra.gmra.mxu1 %vm107_vm1, %v78_v52  ;;  %v82_v56 = vld [vmem:[%s11763_s0 + $0x198] sm:$0xff]  ;;  %v83_v57 = vld [vmem:[%s11763_s0 + $0x1a0] sm:$0xff]  ;;  %v84_v58 = vld [vmem:[%s11763_s0 + $0x1a8] sm:$0xff] }
  0x1f   :  { %6998 = vmatprep.mubr.msk.f32.mxu1 %vm107_vm1, %v79_v53  ;;  %v85_v59 = vld [vmem:[%s11763_s0 + $0x1b0] sm:$0xff]  ;;  %v7852_v61 = vld [vmem:[%s11768_s5 + $0x38] sm:$0xff]  ;;  %v87_v63 = vld [vmem:[%s11763_s0 + $0x1c0] sm:$0xff] }
  0x20   :  { %6942 = vmatmul.mubr.msk.f32.gmra.mxu0 %vm107_vm1, %v42_v16  ;;  %v86_v62 = vld [vmem:[%s11763_s0 + $0x1b8] sm:$0xff]  ;;  %7023 = vmatpush3.msra.mxu1 %v7852_v61  ;;  %v7867_v0 = vld [vmem:[%s11768_s5 + $0x30] sm:$0xff]  ;;  %v88_v1 = vld [vmem:[%s11763_s0 + $0x1c8] sm:$0xff] }
  0x21   :  { %6944 = vmatprep.mubr.msk.f32.mxu0 %vm107_vm1, %v43_v17  ;;  %7024 = vmatprep.subr.mxu1 %v11772_v60  ;;  %v89_v2 = vld [vmem:[%s11763_s0 + $0x1d0] sm:$0xff]  ;;  %v7882_v3 = vld [vmem:[%s11768_s5 + $0x28] sm:$0xff]  ;;  %v90_v4 = vld [vmem:[%s11763_s0 + $0x1d8] sm:$0xff] }
  0x22   :  { %6999 = vmatmul.mubr.msk.f32.gmra.mxu1 %vm107_vm1, %v80_v54  ;;  %v91_v5 = vld [vmem:[%s11763_s0 + $0x1e0] sm:$0xff]  ;;  %v92_v6 = vld [vmem:[%s11763_s0 + $0x1e8] sm:$0xff]  ;;  %v93_v7 = vld [vmem:[%s11763_s0 + $0x1f0] sm:$0xff] }
  0x23   :  { %7001 = vmatprep.mubr.msk.f32.mxu1 %vm107_vm1, %v81_v55  ;;  %7025 = vmatpush3.msra.mxu1 %v7867_v0  ;;  %v94_v8 = vld [vmem:[%s11763_s0 + $0x1f8] sm:$0xff]  ;;  %v7910_v9 = vld [vmem:[%s11768_s5 + $0x20] sm:$0xff]  ;;  %v7924_v11 = vld [vmem:[%s11768_s5 + $0x10] sm:$0xff]  ;;  %s7557_s0 = smov 126  }
  0x24   :  { %6945 = vmatmul.mubr.msk.f32.gmra.mxu0 %vm107_vm1, %v44_v18  ;;  %7026 = vmatprep.subr.mxu1 %v11772_v60  ;;  %v7917_v10 = vld [vmem:[%s11768_s5 + $0x18] sm:$0xff]  ;;  %v7931_v12 = vld [vmem:[%s11768_s5 + $0x8] sm:$0xff]  ;;  %v7938_v13 = vld [vmem:[%s11768_s5] sm:$0xff] }
  0x25   :  { %6947 = vmatprep.mubr.msk.f32.mxu0 %vm107_vm1, %v45_v19  ;;  %7027 = vmatpush3.msra.mxu1 %v7882_v3  ;;  %v7947_v14 = vld [vmem:[%s11765_s2] ss:$0 sm:$0xff] }
  0x26   :  { %7002 = vmatmul.mubr.msk.f32.gmra.mxu1 %vm107_vm1, %v82_v56  ;;  %7028 = vmatprep.subr.mxu1 %v11772_v60 }
  0x27   :  { %7004 = vmatprep.mubr.msk.f32.mxu1 %vm107_vm1, %v83_v57  ;;  %7029 = vmatpush3.msra.mxu1 %v7910_v9 }
  0x28   :  { %6948 = vmatmul.mubr.msk.f32.gmra.mxu0 %vm107_vm1, %v46_v20  ;;  %7030 = vmatprep.subr.mxu1 %v11772_v60 }
  0x29   :  { %6950 = vmatprep.mubr.msk.f32.mxu0 %vm107_vm1, %v47_v21  ;;  %7031 = vmatpush3.msra.mxu1 %v7917_v10 }
  0x2a   :  { %7005 = vmatmul.mubr.msk.f32.gmra.mxu1 %vm107_vm1, %v84_v58  ;;  %7032 = vmatprep.subr.mxu1 %v11772_v60 }
  0x2b   :  { %7007 = vmatprep.mubr.msk.f32.mxu1 %vm107_vm1, %v85_v59  ;;  %7033 = vmatpush3.msra.mxu1 %v7924_v11 }
  0x2c   :  { %6951 = vmatmul.mubr.msk.f32.gmra.mxu0 %vm107_vm1, %v48_v22  ;;  %7034 = vmatprep.subr.mxu1 %v11772_v60 }
  0x2d   :  { %6953 = vmatprep.mubr.msk.f32.mxu0 %vm107_vm1, %v49_v23  ;;  %7035 = vmatpush3.msra.mxu1 %v7931_v12 }
  0x2e   :  { %7008 = vmatmul.mubr.msk.f32.gmra.mxu1 %vm107_vm1, %v86_v62  ;;  %7036 = vmatprep.subr.mxu1 %v11772_v60 }
  0x2f   :  { %7010 = vmatprep.mubr.msk.f32.mxu1 %vm107_vm1, %v87_v63  ;;  %7037 = vmatpush3.msra.mxu1 %v7938_v13 }
  0x30   :  { %6954 = vmatmul.mubr.msk.f32.gmra.mxu0 %vm107_vm1, %v50_v24  ;;  %7041 = vmatprep.subr.mxu1 %v11772_v60 }
  0x31   :  { %6956 = vmatprep.mubr.msk.f32.mxu0 %vm107_vm1, %v51_v25 }
  0x32   :  { %7011 = vmatmul.mubr.msk.f32.gmra.mxu1 %vm107_vm1, %v88_v1 }
  0x33   :  { %7013 = vmatprep.mubr.msk.f32.mxu1 %vm107_vm1, %v89_v2 }
  0x34   :  { %6957 = vmatmul.mubr.msk.f32.gmra.mxu0 %vm107_vm1, %v52_v26 }
  0x35   :  { %6959 = vmatprep.mubr.msk.f32.mxu0 %vm107_vm1, %v53_v27 }
  0x36   :  { %7014 = vmatmul.mubr.msk.f32.gmra.mxu1 %vm107_vm1, %v90_v4 }
  0x37   :  { %7016 = vmatprep.mubr.msk.f32.mxu1 %vm107_vm1, %v91_v5 }
  0x38   :  { %6960 = vmatmul.mubr.msk.f32.gmra.mxu0 %vm107_vm1, %v54_v28 }
  0x39   :  { %6962 = vmatprep.mubr.msk.f32.mxu0 %vm107_vm1, %v55_v29 }
  0x3a   :  { %7017 = vmatmul.mubr.msk.f32.gmra.mxu1 %vm107_vm1, %v92_v6 }
  0x3b   :  { %7019 = vmatprep.mubr.msk.f32.mxu1 %vm107_vm1, %v93_v7 }
  0x3c   :  { %6963 = vmatmul.mubr.msk.f32.gmra.mxu0 %vm107_vm1, %v56_v30 }
  0x3d   :  { %6965 = vmatprep.mubr.msk.f32.mxu0 %vm107_vm1, %v57_v31 }
  0x3e   :  { %7020 = vmatmul.mubr.msk.f32.gmra.mxu1 %vm107_vm1, %v94_v8 }
  0x3f   :  { %7038 = vmatprep.mubr.msk.f32.mxu1 %vm7555_vm2, %v11772_v60 }
  0x40   :  { %6966 = vmatmul.mubr.msk.f32.gmra.mxu0 %vm107_vm1, %v58_v32 }
  0x41   :  { %6968 = vmatprep.mubr.msk.f32.mxu0 %vm107_vm1, %v59_v33 }
  0x44   :  { %6969 = vmatmul.mubr.msk.f32.gmra.mxu0 %vm107_vm1, %v60_v34 }
  0x45   :  { %6971 = vmatprep.mubr.msk.f32.mxu0 %vm107_vm1, %v61_v35 }
  0x48   :  { %6972 = vmatmul.mubr.msk.f32.gmra.mxu0 %vm107_vm1, %v62_v36 }
  0x49   :  { %6974 = vmatprep.mubr.msk.f32.mxu0 %vm107_vm1, %v63_v37 }
  0x4c   :  { %6975 = vmatmul.mubr.msk.f32.gmra.mxu0 %vm107_vm1, %v64_v38 }
  0x4d   :  { %6977 = vmatprep.mubr.msk.f32.mxu0 %vm107_vm1, %v65_v39 }
  0x50   :  { %6978 = vmatmul.mubr.msk.f32.gmra.mxu0 %vm107_vm1, %v66_v40 }
  0x51   :  { %6980 = vmatprep.mubr.msk.f32.mxu0 %vm107_vm1, %v67_v41 }
  0x54   :  { %6981 = vmatmul.mubr.msk.f32.gmra.mxu0 %vm107_vm1, %v68_v42 }
  0x55   :  { %6983 = vmatprep.mubr.msk.f32.mxu0 %vm107_vm1, %v69_v43 }
  0x58   :  { %6984 = vmatmul.mubr.msk.f32.gmra.mxu0 %vm107_vm1, %v70_v44 }
  0x59   :  { %6986 = vmatprep.mubr.msk.f32.mxu0 %vm107_vm1, %v71_v45 }
  0x5c   :  { %6987 = vmatmul.mubr.msk.f32.gmra.mxu0 %vm107_vm1, %v72_v46 }
  0x5d   :  { %6989 = vmatprep.mubr.msk.f32.mxu0 %vm107_vm1, %v73_v47 }
  0x60   :  { %6990 = vmatmul.mubr.msk.f32.gmra.mxu0 %vm107_vm1, %v74_v48 }
  0x61   :  { %6992 = vmatprep.mubr.msk.f32.mxu0 %vm107_vm1, %v75_v49 }
  0x64   :  { %6993 = vmatmul.mubr.msk.f32.gmra.mxu0 %vm107_vm1, %v76_v50 }
  0xcc   :  { %v6928_v15 = vpop.f32.mrf.mxu0 }
  0xcd   :  { %v7950_v16 = vadd.f32 %v6928_v15, %v7947_v14 }
  0xce   :  { %v370_v17 = vpop.f32.mrf.mxu0 }
  0xcf   :  { %v7953_v18 = vadd.f32 %v7947_v14, %v370_v17  ;;  %v818_v20 = vmul.f32 %v7950_v16, %v7950_v16  ;;  %v748_v25 = vsel %vm746_vm3, %v7950_v16, 0.0 }
  0xd0   :  { %v6931_v19 = vpop.f32.mrf.mxu0 }
  0xd1   :  { %v747_v21 = vsel %vm746_vm3, %v7953_v18, 0.0  ;;  %v817_v22 = vmul.f32 %v7953_v18, %v7953_v18  ;;  %v7962_v23 = vadd.f32 %v6931_v19, %v7947_v14  ;;  %v850_v31 = vsel %vm746_vm3, %v818_v20, 0.0 }
  0xd2   :  { %v380_v24 = vpop.f32.mrf.mxu0  ;;  %v749_v28 = vadd.f32 %v748_v25, %v747_v21 }
  0xd3   :  { %v849_v26 = vsel %vm746_vm3, %v817_v22, 0.0  ;;  %v7968_v27 = vadd.f32 %v7947_v14, %v380_v24  ;;  %v820_v29 = vmul.f32 %v7962_v23, %v7962_v23  ;;  %v752_v38 = vsel %vm746_vm3, %v7962_v23, 0.0 }
  0xd4   :  { %v6934_v30 = vpop.f32.mrf.mxu0  ;;  %v851_v35 = vadd.f32 %v850_v31, %v849_v26 }
  0xd5   :  { %v750_v32 = vsel %vm746_vm3, %v7968_v27, 0.0  ;;  %v819_v33 = vmul.f32 %v7968_v27, %v7968_v27  ;;  %v7978_v34 = vadd.f32 %v6934_v30, %v7947_v14  ;;  %v854_v41 = vsel %vm746_vm3, %v820_v29, 0.0 }
  0xd6   :  { %v751_v36 = vadd.f32 %v750_v32, %v749_v28  ;;  %v390_v37 = vpop.f32.mrf.mxu0 }
  0xd7   :  { %v852_v39 = vsel %vm746_vm3, %v819_v33, 0.0  ;;  %v7984_v40 = vadd.f32 %v7947_v14, %v390_v37  ;;  %v822_v45 = vmul.f32 %v7978_v34, %v7978_v34  ;;  %v756_v52 = vsel %vm746_vm3, %v7978_v34, 0.0 }
  0xd8   :  { %v853_v42 = vadd.f32 %v852_v39, %v851_v35  ;;  %v753_v43 = vadd.f32 %v752_v38, %v751_v36  ;;  %v6937_v44 = vpop.f32.mrf.mxu0 }
  0xd9   :  { %v754_v46 = vsel %vm746_vm3, %v7984_v40, 0.0  ;;  %v821_v47 = vmul.f32 %v7984_v40, %v7984_v40  ;;  %v7994_v48 = vadd.f32 %v6937_v44, %v7947_v14  ;;  %v858_v59 = vsel %vm746_vm3, %v822_v45, 0.0 }
  0xda   :  { %v755_v49 = vadd.f32 %v754_v46, %v753_v43  ;;  %v855_v50 = vadd.f32 %v854_v41, %v853_v42  ;;  %v400_v51 = vpop.f32.mrf.mxu0 }
  0xdb   :  { %v856_v53 = vsel %vm746_vm3, %v821_v47, 0.0  ;;  %v8000_v54 = vadd.f32 %v7947_v14, %v400_v51  ;;  %v824_v56 = vmul.f32 %v7994_v48, %v7994_v48  ;;  %v760_v6 = vsel %vm746_vm3, %v7994_v48, 0.0 }
  0xdc   :  { %v857_v55 = vadd.f32 %v856_v53, %v855_v50  ;;  %v757_v57 = vadd.f32 %v756_v52, %v755_v49  ;;  %v6940_v58 = vpop.f32.mrf.mxu0 }
  0xdd   :  { %v758_v62 = vsel %vm746_vm3, %v8000_v54, 0.0  ;;  %v823_v63 = vmul.f32 %v8000_v54, %v8000_v54  ;;  %v8010_v1 = vadd.f32 %v6940_v58, %v7947_v14  ;;  %v862_v15 = vsel %vm746_vm3, %v824_v56, 0.0 }
  0xde   :  { %v759_v2 = vadd.f32 %v758_v62, %v757_v57  ;;  %v859_v4 = vadd.f32 %v858_v59, %v857_v55  ;;  %v410_v5 = vpop.f32.mrf.mxu0 }
  0xdf   :  { %v860_v7 = vsel %vm746_vm3, %v823_v63, 0.0  ;;  %v8016_v8 = vadd.f32 %v7947_v14, %v410_v5  ;;  %v826_v21 = vmul.f32 %v8010_v1, %v8010_v1  ;;  %v764_v30 = vsel %vm746_vm3, %v8010_v1, 0.0 }
  0xe0   :  { %v861_v17 = vadd.f32 %v860_v7, %v859_v4  ;;  %v761_v19 = vadd.f32 %v760_v6, %v759_v2  ;;  %v6943_v20 = vpop.f32.mrf.mxu0 }
  0xe1   :  { %v762_v22 = vsel %vm746_vm3, %v8016_v8, 0.0  ;;  %v825_v24 = vmul.f32 %v8016_v8, %v8016_v8  ;;  %v8026_v25 = vadd.f32 %v6943_v20, %v7947_v14  ;;  %v866_v38 = vsel %vm746_vm3, %v826_v21, 0.0 }
  0xe2   :  { %v763_v26 = vadd.f32 %v762_v22, %v761_v19  ;;  %v863_v28 = vadd.f32 %v862_v15, %v861_v17  ;;  %v420_v29 = vpop.f32.mrf.mxu0 }
  0xe3   :  { %v864_v31 = vsel %vm746_vm3, %v825_v24, 0.0  ;;  %v8032_v32 = vadd.f32 %v7947_v14, %v420_v29  ;;  %v828_v35 = vmul.f32 %v8026_v25, %v8026_v25  ;;  %v768_v46 = vsel %vm746_vm3, %v8026_v25, 0.0 }
  0xe4   :  { %v865_v33 = vadd.f32 %v864_v31, %v863_v28  ;;  %v765_v36 = vadd.f32 %v764_v30, %v763_v26  ;;  %v6946_v37 = vpop.f32.mrf.mxu0 }
  0xe5   :  { %v766_v39 = vsel %vm746_vm3, %v8032_v32, 0.0  ;;  %v827_v41 = vmul.f32 %v8032_v32, %v8032_v32  ;;  %v8042_v42 = vadd.f32 %v6946_v37, %v7947_v14  ;;  %v870_v50 = vsel %vm746_vm3, %v828_v35, 0.0 }
  0xe6   :  { %v767_v43 = vadd.f32 %v766_v39, %v765_v36  ;;  %v867_v44 = vadd.f32 %v866_v38, %v865_v33  ;;  %v430_v45 = vpop.f32.mrf.mxu0 }
  0xe7   :  { %v868_v47 = vsel %vm746_vm3, %v827_v41, 0.0  ;;  %v8048_v49 = vadd.f32 %v7947_v14, %v430_v45  ;;  %v830_v55 = vmul.f32 %v8042_v42, %v8042_v42  ;;  %v772_v2 = vsel %vm746_vm3, %v8042_v42, 0.0 }
  0xe8   :  { %v869_v51 = vadd.f32 %v868_v47, %v867_v44  ;;  %v769_v52 = vadd.f32 %v768_v46, %v767_v43  ;;  %v6949_v53 = vpop.f32.mrf.mxu0 }
  0xe9   :  { %v770_v56 = vsel %vm746_vm3, %v8048_v49, 0.0  ;;  %v829_v57 = vmul.f32 %v8048_v49, %v8048_v49  ;;  %v8058_v58 = vadd.f32 %v6949_v53, %v7947_v14  ;;  %v874_v19 = vsel %vm746_vm3, %v830_v55, 0.0 }
  0xea   :  { %v771_v59 = vadd.f32 %v770_v56, %v769_v52  ;;  %v871_v62 = vadd.f32 %v870_v50, %v869_v51  ;;  %v440_v63 = vpop.f32.mrf.mxu0 }
  0xeb   :  { %v872_v4 = vsel %vm746_vm3, %v829_v57, 0.0  ;;  %v8064_v5 = vadd.f32 %v7947_v14, %v440_v63  ;;  %v832_v7 = vmul.f32 %v8058_v58, %v8058_v58  ;;  %v776_v29 = vsel %vm746_vm3, %v8058_v58, 0.0 }
  0xec   :  { %v873_v6 = vadd.f32 %v872_v4, %v871_v62  ;;  %v773_v15 = vadd.f32 %v772_v2, %v771_v59  ;;  %v6952_v17 = vpop.f32.mrf.mxu0 }
  0xed   :  { %v774_v20 = vsel %vm746_vm3, %v8064_v5, 0.0  ;;  %v831_v21 = vmul.f32 %v8064_v5, %v8064_v5  ;;  %v8074_v22 = vadd.f32 %v6952_v17, %v7947_v14  ;;  %v878_v33 = vsel %vm746_vm3, %v832_v7, 0.0 }
  0xee   :  { %v775_v24 = vadd.f32 %v774_v20, %v773_v15  ;;  %v875_v26 = vadd.f32 %v874_v19, %v873_v6  ;;  %v450_v28 = vpop.f32.mrf.mxu0 }
  0xef   :  { %v876_v30 = vsel %vm746_vm3, %v831_v21, 0.0  ;;  %v8080_v31 = vadd.f32 %v7947_v14, %v450_v28  ;;  %v834_v38 = vmul.f32 %v8074_v22, %v8074_v22  ;;  %v780_v47 = vsel %vm746_vm3, %v8074_v22, 0.0 }
  0xf0   :  { %v877_v35 = vadd.f32 %v876_v30, %v875_v26  ;;  %v777_v36 = vadd.f32 %v776_v29, %v775_v24  ;;  %v6955_v37 = vpop.f32.mrf.mxu0 }
  0xf1   :  { %v778_v39 = vsel %vm746_vm3, %v8080_v31, 0.0  ;;  %v833_v41 = vmul.f32 %v8080_v31, %v8080_v31  ;;  %v8090_v43 = vadd.f32 %v6955_v37, %v7947_v14  ;;  %v882_v57 = vsel %vm746_vm3, %v834_v38, 0.0 }
  0xf2   :  { %v779_v44 = vadd.f32 %v778_v39, %v777_v36  ;;  %v879_v45 = vadd.f32 %v878_v33, %v877_v35  ;;  %v460_v46 = vpop.f32.mrf.mxu0 }
  0xf3   :  { %v880_v50 = vsel %vm746_vm3, %v833_v41, 0.0  ;;  %v8096_v51 = vadd.f32 %v7947_v14, %v460_v46  ;;  %v836_v53 = vmul.f32 %v8090_v43, %v8090_v43  ;;  %v784_v7 = vsel %vm746_vm3, %v8090_v43, 0.0 }
  0xf4   :  { %v881_v52 = vadd.f32 %v880_v50, %v879_v45  ;;  %v781_v55 = vadd.f32 %v780_v47, %v779_v44  ;;  %v6958_v56 = vpop.f32.mrf.mxu0 }
  0xf5   :  { %v782_v59 = vsel %vm746_vm3, %v8096_v51, 0.0  ;;  %v835_v62 = vmul.f32 %v8096_v51, %v8096_v51  ;;  %v8106_v63 = vadd.f32 %v6958_v56, %v7947_v14  ;;  %v886_v19 = vsel %vm746_vm3, %v836_v53, 0.0 }
  0xf6   :  { %v783_v2 = vadd.f32 %v782_v59, %v781_v55  ;;  %v883_v4 = vadd.f32 %v882_v57, %v881_v52  ;;  %v470_v6 = vpop.f32.mrf.mxu0 }
  0xf7   :  { %11915 = vst [vmem:[#allocation7_spill] sm:$0xff] %v8106_v63  ;;  %v884_v15 = vsel %vm746_vm3, %v835_v62, 0.0  ;;  %v8112_v17 = vadd.f32 %v7947_v14, %v470_v6  ;;  %v838_v26 = vmul.f32 %v8106_v63, %v8106_v63  ;;  %v788_v37 = vsel %vm746_vm3, %v8106_v63, 0.0 }
  0xf8   :  { %v885_v20 = vadd.f32 %v884_v15, %v883_v4  ;;  %v785_v21 = vadd.f32 %v784_v7, %v783_v2  ;;  %v6961_v24 = vpop.f32.mrf.mxu0 }
  0xf9   :  { %11916 = vst [vmem:[#allocation8_spill] sm:$0xff] %v8112_v17  ;;  %v786_v28 = vsel %vm746_vm3, %v8112_v17, 0.0  ;;  %v837_v29 = vmul.f32 %v8112_v17, %v8112_v17  ;;  %v8122_v30 = vadd.f32 %v6961_v24, %v7947_v14  ;;  %v890_v47 = vsel %vm746_vm3, %v838_v26, 0.0 }
  0xfa   :  { %v787_v33 = vadd.f32 %v786_v28, %v785_v21  ;;  %v887_v35 = vadd.f32 %v886_v19, %v885_v20  ;;  %v480_v36 = vpop.f32.mrf.mxu0 }
  0xfb   :  { %11917 = vst [vmem:[#allocation9_spill] sm:$0xff] %v8122_v30  ;;  %v888_v38 = vsel %vm746_vm3, %v837_v29, 0.0  ;;  %v8128_v39 = vadd.f32 %v7947_v14, %v480_v36  ;;  %v840_v44 = vmul.f32 %v8122_v30, %v8122_v30  ;;  %v792_v59 = vsel %vm746_vm3, %v8122_v30, 0.0 }
  0xfc   :  { %v889_v41 = vadd.f32 %v888_v38, %v887_v35  ;;  %v789_v45 = vadd.f32 %v788_v37, %v787_v33  ;;  %v6964_v46 = vpop.f32.mrf.mxu0 }
  0xfd   :  { %11918 = vst [vmem:[#allocation10_spill] sm:$0xff] %v8128_v39  ;;  %v790_v50 = vsel %vm746_vm3, %v8128_v39, 0.0  ;;  %v839_v52 = vmul.f32 %v8128_v39, %v8128_v39  ;;  %v8138_v53 = vadd.f32 %v6964_v46, %v7947_v14  ;;  %v894_v4 = vsel %vm746_vm3, %v840_v44, 0.0 }
  0xfe   :  { %v791_v55 = vadd.f32 %v790_v50, %v789_v45  ;;  %v891_v56 = vadd.f32 %v890_v47, %v889_v41  ;;  %v490_v57 = vpop.f32.mrf.mxu0 }
  0xff   :  { %11919 = vst [vmem:[#allocation11_spill] sm:$0xff] %v8138_v53  ;;  %v892_v62 = vsel %vm746_vm3, %v839_v52, 0.0  ;;  %v8144_v2 = vadd.f32 %v7947_v14, %v490_v57  ;;  %v842_v19 = vmul.f32 %v8138_v53, %v8138_v53  ;;  %v796_v33 = vsel %vm746_vm3, %v8138_v53, 0.0 }
 0x100   :  { %v893_v6 = vadd.f32 %v892_v62, %v891_v56  ;;  %v793_v7 = vadd.f32 %v792_v59, %v791_v55  ;;  %v6967_v15 = vpop.f32.mrf.mxu0 }
 0x101   :  { %11920 = vst [vmem:[#allocation12_spill] sm:$0xff] %v8144_v2  ;;  %v794_v20 = vsel %vm746_vm3, %v8144_v2, 0.0  ;;  %v841_v21 = vmul.f32 %v8144_v2, %v8144_v2  ;;  %v8154_v24 = vadd.f32 %v6967_v15, %v7947_v14  ;;  %v898_v45 = vsel %vm746_vm3, %v842_v19, 0.0 }
 0x102   :  { %v795_v26 = vadd.f32 %v794_v20, %v793_v7  ;;  %v895_v28 = vadd.f32 %v894_v4, %v893_v6  ;;  %v500_v29 = vpop.f32.mrf.mxu0 }
 0x103   :  { %11921 = vst [vmem:[#allocation13_spill] sm:$0xff] %v8154_v24  ;;  %v896_v35 = vsel %vm746_vm3, %v841_v21, 0.0  ;;  %v8160_v36 = vadd.f32 %v7947_v14, %v500_v29  ;;  %v844_v38 = vmul.f32 %v8154_v24, %v8154_v24  ;;  %v800_v57 = vsel %vm746_vm3, %v8154_v24, 0.0 }
 0x104   :  { %v897_v37 = vadd.f32 %v896_v35, %v895_v28  ;;  %v797_v41 = vadd.f32 %v796_v33, %v795_v26  ;;  %v6970_v44 = vpop.f32.mrf.mxu0 }
 0x105   :  { %11922 = vst [vmem:[#allocation14_spill] sm:$0xff] %v8160_v36  ;;  %v798_v46 = vsel %vm746_vm3, %v8160_v36, 0.0  ;;  %v843_v47 = vmul.f32 %v8160_v36, %v8160_v36  ;;  %v8170_v50 = vadd.f32 %v6970_v44, %v7947_v14  ;;  %v902_v4 = vsel %vm746_vm3, %v844_v38, 0.0 }
 0x106   :  { %v799_v52 = vadd.f32 %v798_v46, %v797_v41  ;;  %v899_v55 = vadd.f32 %v898_v45, %v897_v37  ;;  %v510_v56 = vpop.f32.mrf.mxu0 }
 0x107   :  { %11923 = vst [vmem:[#allocation15_spill] sm:$0xff] %v8170_v50  ;;  %v900_v59 = vsel %vm746_vm3, %v843_v47, 0.0  ;;  %v8176_v62 = vadd.f32 %v7947_v14, %v510_v56  ;;  %v846_v19 = vmul.f32 %v8170_v50, %v8170_v50  ;;  %v804_v35 = vsel %vm746_vm3, %v8170_v50, 0.0 }
 0x108   :  { %v901_v6 = vadd.f32 %v900_v59, %v899_v55  ;;  %v801_v7 = vadd.f32 %v800_v57, %v799_v52  ;;  %v6973_v15 = vpop.f32.mrf.mxu0 }
 0x109   :  { %11924 = vst [vmem:[#allocation16_spill] sm:$0xff] %v8176_v62  ;;  %v802_v20 = vsel %vm746_vm3, %v8176_v62, 0.0  ;;  %v845_v21 = vmul.f32 %v8176_v62, %v8176_v62  ;;  %v8186_v26 = vadd.f32 %v6973_v15, %v7947_v14  ;;  %v906_v45 = vsel %vm746_vm3, %v846_v19, 0.0 }
 0x10a   :  { %v803_v28 = vadd.f32 %v802_v20, %v801_v7  ;;  %v903_v29 = vadd.f32 %v902_v4, %v901_v6  ;;  %v520_v33 = vpop.f32.mrf.mxu0 }
 0x10b   :  { %11925 = vst [vmem:[#allocation17_spill] sm:$0xff] %v8186_v26  ;;  %v904_v37 = vsel %vm746_vm3, %v845_v21, 0.0  ;;  %v8192_v38 = vadd.f32 %v7947_v14, %v520_v33  ;;  %v848_v46 = vmul.f32 %v8186_v26, %v8186_v26  ;;  %v808_v57 = vsel %vm746_vm3, %v8186_v26, 0.0 }
 0x10c   :  { %v905_v41 = vadd.f32 %v904_v37, %v903_v29  ;;  %v805_v44 = vadd.f32 %v804_v35, %v803_v28 }
 0x10d   :  { %11926 = vst [vmem:[#allocation18_spill] sm:$0xff] %v8192_v38  ;;  %v806_v47 = vsel %vm746_vm3, %v8192_v38, 0.0  ;;  %v847_v52 = vmul.f32 %v8192_v38, %v8192_v38  ;;  %v910_v7 = vsel %vm746_vm3, %v848_v46, 0.0 }
 0x10e   :  { %v807_v55 = vadd.f32 %v806_v47, %v805_v44  ;;  %v907_v56 = vadd.f32 %v906_v45, %v905_v41  ;;  %v1158_v47 = vld [vmem:[%s11769_s6 + $0x8] sm:$0xff] }
 0x10f   :  { %v908_v59 = vsel %vm746_vm3, %v847_v52, 0.0  ;;  %v1157_v52 = vld [vmem:[%s11769_s6] sm:$0xff] }
 0x110   :  { %v809_v4 = vadd.f32 %v808_v57, %v807_v55  ;;  %v909_v6 = vadd.f32 %v908_v59, %v907_v56  ;;  %v8248_v55 = vpop.f32.mrf.mxu1 }
 0x112   :  { %v810_v15 = vrot.slane %v809_v4, 4  ;;  %v911_v19 = vadd.f32 %v910_v7, %v909_v6  ;;  %v8251_v56 = vpop.f32.mrf.mxu1  ;;  %v6976_v6 = vpop.f32.mrf.mxu0 }
 0x114   :  { %v811_v20 = vadd.f32 %v810_v15, %v809_v4  ;;  %v912_v28 = vrot.slane %v911_v19, 4  ;;  %v8253_v57 = vpop.f32.mrf.mxu1  ;;  %v530_v15 = vpop.f32.mrf.mxu0 }
 0x116   :  { %v812_v21 = vrot.slane %v811_v20, 2  ;;  %v913_v35 = vadd.f32 %v912_v28, %v911_v19  ;;  %v8255_v59 = vpop.f32.mrf.mxu1  ;;  %v8266_v28 = vadd.f32 %v6976_v6, %v7947_v14 }
 0x118   :  { %v813_v29 = vadd.f32 %v812_v21, %v811_v20  ;;  %v914_v41 = vrot.slane %v913_v35, 2  ;;  %v8257_v4 = vpop.f32.mrf.mxu1  ;;  %v6979_v20 = vpop.f32.mrf.mxu0  ;;  %11927 = vst [vmem:[#allocation19_spill] sm:$0xff] %v8266_v28 }
 0x11a   :  { %v814_v33 = vrot.slane %v813_v29, 1  ;;  %v915_v45 = vadd.f32 %v914_v41, %v913_v35  ;;  %v8259_v7 = vpop.f32.mrf.mxu1 }
 0x11c   :  { %v815_v37 = vadd.f32 %v814_v33, %v813_v29  ;;  %v916_v46 = vrot.slane %v915_v45, 1  ;;  %v8261_v19 = vpop.f32.mrf.mxu1  ;;  %v8269_v29 = vadd.f32 %v7947_v14, %v530_v15  ;;  %v540_v33 = vpop.f32.mrf.mxu0 }
 0x11d   :  { %v8278_v41 = vadd.f32 %v7947_v14, %v540_v33 }
 0x11e   :  { %v816_v44 = vmul.f32 0.00390625, %v815_v37  ;;  %v8263_v21 = vpop.f32.mrf.mxu1  ;;  %11928 = vst [vmem:[#allocation20_spill] sm:$0xff] %v8269_v29  ;;  %v3570_v37 = vsel %vm746_vm3, %v8266_v28, 0.0 }
 0x11f   :  { %11929 = vst [vmem:[#allocation21_spill] sm:$0xff] %v8278_v41 }
 0x120   :  { %7039 = vmatmul.mubr.msk.f32.vlgmr.msra.gmra.mxu1 %vm746_vm3, %v816_v44  ;;  %v8271_v35 = vpop.f32.mrf.mxu1  ;;  %v3569_v44 = vsel %vm746_vm3, %v8269_v29, 0.0 }
 0x121   :  { %7042 = vmatpush3.msra.mxu1 %v7852_v61  ;;  %7057 = vmatprep.mubr.msk.f32.mxu1 %vm7555_vm2, %v11772_v60  ;;  %v917_v61 = vadd.f32 %v916_v46, %v915_v45  ;;  %v6982_v45 = vpop.f32.mrf.mxu0  ;;  %v3571_v46 = vadd.f32 %v3570_v37, %v3569_v44 }
 0x122   :  { %7043 = vmatprep.subr.mxu1 %v11772_v60  ;;  %v8301_v33 = vadd.f32 %v6982_v45, %v7947_v14 }
 0x123   :  { %7044 = vmatpush3.msra.mxu1 %v7867_v0  ;;  %v918_v0 = vmul.f32 0.00390625, %v917_v61  ;;  %v8280_v61 = vpop.f32.mrf.mxu1 }
 0x124   :  { %7045 = vmatprep.subr.mxu1 %v11772_v60  ;;  %11932 = vst [vmem:[#allocation24_spill] sm:$0xff] %v8301_v33 }
 0x125   :  { %7046 = vmatpush3.msra.mxu1 %v7882_v3  ;;  %v1164_v3 = vld [vmem:[%s11769_s6 + $0x38] sm:$0xff] }
 0x126   :  { %7047 = vmatprep.subr.mxu1 %v11772_v60  ;;  %7162 = vmatprep.subr.mxu0 %v1164_v3 }
 0x127   :  { %7048 = vmatpush3.msra.mxu1 %v7910_v9  ;;  %v1163_v9 = vld [vmem:[%s11769_s6 + $0x30] sm:$0xff]  ;;  %7163 = vmatpush3.msra.mxu0 %v1164_v3 }
 0x128   :  { %7049 = vmatprep.subr.mxu1 %v11772_v60  ;;  %7164 = vmatprep.subr.mxu0 %v1163_v9 }
 0x129   :  { %7050 = vmatpush3.msra.mxu1 %v7917_v10  ;;  %v1162_v10 = vld [vmem:[%s11769_s6 + $0x28] sm:$0xff]  ;;  %7165 = vmatpush3.msra.mxu0 %v1163_v9 }
 0x12a   :  { %7051 = vmatprep.subr.mxu1 %v11772_v60  ;;  %7166 = vmatprep.subr.mxu0 %v1162_v10 }
 0x12b   :  { %7052 = vmatpush3.msra.mxu1 %v7924_v11  ;;  %v1161_v11 = vld [vmem:[%s11769_s6 + $0x20] sm:$0xff]  ;;  %7167 = vmatpush3.msra.mxu0 %v1162_v10 }
 0x12c   :  { %7053 = vmatprep.subr.mxu1 %v11772_v60  ;;  %7168 = vmatprep.subr.mxu0 %v1161_v11 }
 0x12d   :  { %7054 = vmatpush3.msra.mxu1 %v7931_v12  ;;  %v1160_v12 = vld [vmem:[%s11769_s6 + $0x18] sm:$0xff]  ;;  %7169 = vmatpush3.msra.mxu0 %v1161_v11 }
 0x12e   :  { %7055 = vmatprep.subr.mxu1 %v11772_v60  ;;  %7170 = vmatprep.subr.mxu0 %v1160_v12 }
 0x12f   :  { %7056 = vmatpush3.msra.mxu1 %v7938_v13  ;;  %v1159_v13 = vld [vmem:[%s11769_s6 + $0x10] sm:$0xff]  ;;  %7171 = vmatpush3.msra.mxu0 %v1160_v12  ;;  %s7556_s6 = smov 127  }
 0x130   :  { %7058 = vmatmul.mubr.msk.f32.vlgmr.msra.gmra.mxu1 %vm746_vm3, %v918_v0  ;;  %7060 = vmatprep.subr.mxu1 %v1164_v3  ;;  %v8283_v0 = vadd.f32 %v6979_v20, %v7947_v14  ;;  %v3639_v20 = vmul.f32 %v8269_v29, %v8269_v29 }
 0x131   :  { %7061 = vmatpush3.msra.mxu1 %v1164_v3  ;;  %7172 = vmatprep.subr.mxu0 %v1159_v13  ;;  %v3572_v3 = vsel %vm746_vm3, %v8278_v41, 0.0 }
 0x132   :  { %7062 = vmatprep.subr.mxu1 %v1163_v9  ;;  %7173 = vmatpush3.msra.mxu0 %v1159_v13  ;;  %11930 = vst [vmem:[#allocation22_spill] sm:$0xff] %v8283_v0 }
 0x133   :  { %7063 = vmatpush3.msra.mxu1 %v1163_v9  ;;  %7174 = vmatprep.subr.mxu0 %v1158_v47  ;;  %v550_v9 = vpop.f32.mrf.mxu0 }
 0x134   :  { %7064 = vmatprep.subr.mxu1 %v1162_v10  ;;  %7175 = vmatpush3.msra.mxu0 %v1158_v47 }
 0x135   :  { %7065 = vmatpush3.msra.mxu1 %v1162_v10  ;;  %7176 = vmatprep.subr.mxu0 %v1157_v52  ;;  %v3573_v10 = vadd.f32 %v3572_v3, %v3571_v46 }
 0x136   :  { %7066 = vmatprep.subr.mxu1 %v1161_v11  ;;  %7177 = vmatpush3.msra.mxu0 %v1157_v52 }
 0x137   :  { %7067 = vmatpush3.msra.mxu1 %v1161_v11  ;;  %v8287_v11 = vpop.f32.mrf.mxu1 }
 0x138   :  { %7068 = vmatprep.subr.mxu1 %v1160_v12 }
 0x139   :  { %7069 = vmatpush3.msra.mxu1 %v1160_v12  ;;  %v3574_v12 = vsel %vm746_vm3, %v8283_v0, 0.0  ;;  %v8296_v15 = vpop.f32.mrf.mxu1 }
 0x13a   :  { %7070 = vmatprep.subr.mxu1 %v1159_v13  ;;  %v3575_v6 = vadd.f32 %v3574_v12, %v3573_v10  ;;  %v3641_v10 = vmul.f32 %v8278_v41, %v8278_v41  ;;  %v3578_v12 = vsel %vm746_vm3, %v8301_v33, 0.0 }
 0x13b   :  { %7071 = vmatpush3.msra.mxu1 %v1159_v13  ;;  %v8292_v13 = vadd.f32 %v7947_v14, %v550_v9  ;;  %v8306_v9 = vpop.f32.mrf.mxu1 }
 0x13c   :  { %7072 = vmatprep.subr.mxu1 %v1158_v47 }
 0x13d   :  { %7073 = vmatpush3.msra.mxu1 %v1158_v47  ;;  %11931 = vst [vmem:[#allocation23_spill] sm:$0xff] %v8292_v13  ;;  %v6985_v47 = vpop.f32.mrf.mxu0  ;;  %v3576_v37 = vsel %vm746_vm3, %v8292_v13, 0.0  ;;  %v8316_v38 = vpop.f32.mrf.mxu1 }
 0x13e   :  { %7074 = vmatprep.subr.mxu1 %v1157_v52  ;;  %v3577_v3 = vadd.f32 %v3576_v37, %v3575_v6  ;;  %v3674_v6 = vsel %vm746_vm3, %v3641_v10, 0.0 }
 0x13f   :  { %7075 = vmatpush3.msra.mxu1 %v1157_v52  ;;  %v3640_v52 = vmul.f32 %v8266_v28, %v8266_v28  ;;  %v560_v44 = vpop.f32.mrf.mxu0  ;;  %v8326_v62 = vpop.f32.mrf.mxu1 }
 0x140   :  { %7124 = vmatprep.subr.mxu1 %v11772_v60  ;;  %v3671_v60 = vsel %vm746_vm3, %v3639_v20, 0.0  ;;  %v8314_v45 = vadd.f32 %v7947_v14, %v560_v44  ;;  %v3579_v26 = vadd.f32 %v3578_v12, %v3577_v3  ;;  %v8322_v20 = vadd.f32 %v6985_v47, %v7947_v14 }
 0x141   :  { %v3672_v46 = vsel %vm746_vm3, %v3640_v52, 0.0  ;;  %v6988_v28 = vpop.f32.mrf.mxu0  ;;  %v3642_v52 = vmul.f32 %v8283_v0, %v8283_v0  ;;  %v8336_v24 = vpop.f32.mrf.mxu1 }
 0x142   :  { %11933 = vst [vmem:[#allocation25_spill] sm:$0xff] %v8314_v45  ;;  %v3673_v29 = vadd.f32 %v3672_v46, %v3671_v60  ;;  %11934 = vst [vmem:[#allocation26_spill] sm:$0xff] %v8322_v20  ;;  %v3580_v37 = vsel %vm746_vm3, %v8314_v45, 0.0  ;;  %v3643_v46 = vmul.f32 %v8292_v13, %v8292_v13  ;;  %v3582_v3 = vsel %vm746_vm3, %v8322_v20, 0.0 }
 0x143   :  { %v570_v41 = vpop.f32.mrf.mxu0  ;;  %v3581_v44 = vadd.f32 %v3580_v37, %v3579_v26  ;;  %v3676_v60 = vsel %vm746_vm3, %v3642_v52, 0.0  ;;  %v3644_v26 = vmul.f32 %v8301_v33, %v8301_v33  ;;  %v8342_v52 = vadd.f32 %v6988_v28, %v7947_v14  ;;  %v8346_v36 = vpop.f32.mrf.mxu1 }
 0x144   :  { %v3675_v50 = vadd.f32 %v3674_v6, %v3673_v29  ;;  %v8334_v10 = vadd.f32 %v7947_v14, %v570_v41  ;;  %v3678_v29 = vsel %vm746_vm3, %v3643_v46, 0.0 }
 0x145   :  { %v6991_v47 = vpop.f32.mrf.mxu0  ;;  %v3583_v0 = vadd.f32 %v3582_v3, %v3581_v44  ;;  %11936 = vst [vmem:[#allocation28_spill] sm:$0xff] %v8342_v52  ;;  %v3645_v44 = vmul.f32 %v8314_v45, %v8314_v45  ;;  %v8358_v53 = vpop.f32.mrf.mxu1 }
 0x146   :  { %11935 = vst [vmem:[#allocation27_spill] sm:$0xff] %v8334_v10  ;;  %v3677_v12 = vadd.f32 %v3676_v60, %v3675_v50  ;;  %v3584_v6 = vsel %vm746_vm3, %v8334_v10, 0.0  ;;  %v3680_v50 = vsel %vm746_vm3, %v3644_v26, 0.0  ;;  %v3586_v60 = vsel %vm746_vm3, %v8342_v52, 0.0 }
 0x147   :  { %v580_v37 = vpop.f32.mrf.mxu0  ;;  %v3585_v41 = vadd.f32 %v3584_v6, %v3583_v0  ;;  %v3646_v0 = vmul.f32 %v8322_v20, %v8322_v20  ;;  %v8364_v26 = vadd.f32 %v6991_v47, %v7947_v14  ;;  %v11939_v20 = vmov 0.0  }
 0x148   :  { %v3679_v13 = vadd.f32 %v3678_v29, %v3677_v12  ;;  %v8354_v46 = vadd.f32 %v7947_v14, %v580_v37  ;;  %v3682_v12 = vsel %vm746_vm3, %v3645_v44, 0.0  ;;  %690 = vst.msk [vmem:[#allocation2] sm:$0xff] %vm689_vm4, %v11939_v20  ;;  %691 = vst.msk [vmem:[#allocation2 + $0x8] sm:$0xff] %vm689_vm4, %v11939_v20 }
 0x149   :  { %v8356_v28 = vpop.f32.mrf.mxu0  ;;  %v3587_v33 = vadd.f32 %v3586_v60, %v3585_v41  ;;  %11938 = vst [vmem:[#allocation30_spill] sm:$0xff] %v8364_v26  ;;  %v3647_v60 = vmul.f32 %v8334_v10, %v8334_v10  ;;  %v3590_v47 = vsel %vm746_vm3, %v8364_v26, 0.0  ;;  %694 = vst.msk [vmem:[#allocation2 + $0x18] sm:$0xff] %vm689_vm4, %v11939_v20 }
 0x14a   :  { %11937 = vst [vmem:[#allocation29_spill] sm:$0xff] %v8354_v46  ;;  %v3681_v3 = vadd.f32 %v3680_v50, %v3679_v13  ;;  %v3588_v29 = vsel %vm746_vm3, %v8354_v46, 0.0  ;;  %v3684_v50 = vsel %vm746_vm3, %v3646_v0, 0.0  ;;  %695 = vst.msk [vmem:[#allocation2 + $0x20] sm:$0xff] %vm689_vm4, %v11939_v20  ;;  %v3648_v0 = vmul.f32 %v8342_v52, %v8342_v52 }
 0x14b   :  { %v590_v6 = vpop.f32.mrf.mxu0  ;;  %v8372_v13 = vadd.f32 %v3588_v29, %v3587_v33  ;;  %697 = vst.msk [vmem:[#allocation2 + $0x30] sm:$0xff] %vm689_vm4, %v11939_v20  ;;  %698 = vst.msk [vmem:[#allocation2 + $0x38] sm:$0xff] %vm689_vm4, %v11939_v20  ;;  %v8497_v29 = vadd.f32 %v8356_v28, %v7947_v14 }
 0x14c   :  { %v8370_v45 = vadd.f32 %v3682_v12, %v3681_v3  ;;  %v8380_v44 = vadd.f32 %v7947_v14, %v590_v6  ;;  %700 = vst.msk [vmem:[#allocation2 + $0x48] sm:$0xff] %vm689_vm4, %v11939_v20  ;;  %701 = vst.msk [vmem:[#allocation2 + $0x50] sm:$0xff] %vm689_vm4, %v11939_v20  ;;  %v3686_v12 = vsel %vm746_vm3, %v3647_v60, 0.0  ;;  %v3688_v2 = vsel %vm746_vm3, %v3648_v0, 0.0 }
 0x14d   :  { %703 = vst.msk [vmem:[#allocation2 + $0x60] sm:$0xff] %vm689_vm4, %v11939_v20  ;;  %704 = vst.msk [vmem:[#allocation2 + $0x68] sm:$0xff] %vm689_vm4, %v11939_v20  ;;  %v3591_v3 = vadd.f32 %v3590_v47, %v8372_v13  ;;  %v3594_v13 = vsel %vm746_vm3, %v8497_v29, 0.0  ;;  %v3650_v47 = vmul.f32 %v8364_v26, %v8364_v26 }
 0x14e   :  { %706 = vst.msk [vmem:[#allocation2 + $0x78] sm:$0xff] %vm689_vm4, %v11939_v20  ;;  %707 = vst.msk [vmem:[#allocation2 + $0x80] sm:$0xff] %vm689_vm4, %v11939_v20  ;;  %v3685_v33 = vadd.f32 %v3684_v50, %v8370_v45  ;;  %v3592_v6 = vsel %vm746_vm3, %v8380_v44, 0.0  ;;  %v3649_v45 = vmul.f32 %v8354_v46, %v8354_v46  ;;  %v8508_v50 = vadd.f32 %v7947_v14, %v8251_v56 }
 0x14f   :  { %709 = vst.msk [vmem:[#allocation2 + $0x90] sm:$0xff] %vm689_vm4, %v11939_v20  ;;  %710 = vst.msk [vmem:[#allocation2 + $0x98] sm:$0xff] %vm689_vm4, %v11939_v20  ;;  %v3593_v10 = vadd.f32 %v3592_v6, %v3591_v3  ;;  %v1583_v60 = vld [vmem:[#allocation2 + $0x1] sm:$0xff]  ;;  %v8524_v6 = vadd.f32 %v8248_v55, %v7947_v14  ;;  %v3651_v39 = vmul.f32 %v8380_v44, %v8380_v44 }
 0x150   :  { %712 = vst.msk [vmem:[#allocation2 + $0xa8] sm:$0xff] %vm689_vm4, %v11939_v20  ;;  %713 = vst.msk [vmem:[#allocation2 + $0xb0] sm:$0xff] %vm689_vm4, %v11939_v20  ;;  %1647 = vrot.lane.b32.xlu0 %v1583_v60, %s7556_s6  ;;  %v3690_v56 = vsel %vm746_vm3, %v3649_v45, 0.0  ;;  %v3596_v46 = vsel %vm746_vm3, %v8508_v50, 0.0  ;;  %v1775_v45 = vld [vmem:[#allocation2 + $0x2] sm:$0xff] }
 0x151   :  { %715 = vst.msk [vmem:[#allocation2 + $0xc0] sm:$0xff] %vm689_vm4, %v11939_v20  ;;  %716 = vst.msk [vmem:[#allocation2 + $0xc8] sm:$0xff] %vm689_vm4, %v11939_v20  ;;  %v3595_v3 = vadd.f32 %v3594_v13, %v3593_v10 }
 0x152   :  { %718 = vst.msk [vmem:[#allocation2 + $0xd8] sm:$0xff] %vm689_vm4, %v11939_v20  ;;  %719 = vst.msk [vmem:[#allocation2 + $0xe0] sm:$0xff] %vm689_vm4, %v11939_v20 }
 0x153   :  { %721 = vst.msk [vmem:[#allocation2 + $0xf0] sm:$0xff] %vm689_vm4, %v11939_v20  ;;  %722 = vst.msk [vmem:[#allocation2 + $0xf8] sm:$0xff] %vm689_vm4, %v11939_v20  ;;  %v3597_v55 = vadd.f32 %v3596_v46, %v3595_v3  ;;  %v3652_v46 = vmul.f32 %v8497_v29, %v8497_v29 }
 0x154   :  { %724 = vst.msk [vmem:[#allocation2 + $0x108] sm:$0xff] %vm689_vm4, %v11939_v20  ;;  %725 = vst.msk [vmem:[#allocation2 + $0x110] sm:$0xff] %vm689_vm4, %v11939_v20 }
 0x155   :  { %727 = vst.msk [vmem:[#allocation2 + $0x120] sm:$0xff] %vm689_vm4, %v11939_v20  ;;  %728 = vst.msk [vmem:[#allocation2 + $0x128] sm:$0xff] %vm689_vm4, %v11939_v20 }
 0x156   :  { %730 = vst.msk [vmem:[#allocation2 + $0x138] sm:$0xff] %vm689_vm4, %v11939_v20  ;;  %731 = vst.msk [vmem:[#allocation2 + $0x140] sm:$0xff] %vm689_vm4, %v11939_v20 }
 0x157   :  { %733 = vst.msk [vmem:[#allocation2 + $0x150] sm:$0xff] %vm689_vm4, %v11939_v20  ;;  %734 = vst.msk [vmem:[#allocation2 + $0x158] sm:$0xff] %vm689_vm4, %v11939_v20 }
 0x158   :  { %736 = vst.msk [vmem:[#allocation2 + $0x168] sm:$0xff] %vm689_vm4, %v11939_v20  ;;  %737 = vst.msk [vmem:[#allocation2 + $0x170] sm:$0xff] %vm689_vm4, %v11939_v20 }
 0x159   :  { %739 = vst.msk [vmem:[#allocation2 + $0x180] sm:$0xff] %vm689_vm4, %v11939_v20  ;;  %740 = vst.msk [vmem:[#allocation2 + $0x188] sm:$0xff] %vm689_vm4, %v11939_v20 }
 0x15a   :  { %742 = vst.msk [vmem:[#allocation2 + $0x198] sm:$0xff] %vm689_vm4, %v11939_v20  ;;  %743 = vst.msk [vmem:[#allocation2 + $0x1a0] sm:$0xff] %vm689_vm4, %v11939_v20 }
 0x15b   :  { %693 = vst.msk [vmem:[#allocation2 + $0x10] sm:$0x3] %vm692_vm5, %v11939_v20  ;;  %696 = vst.msk [vmem:[#allocation2 + $0x28] sm:$0x3] %vm692_vm5, %v11939_v20 }
 0x15c   :  { %699 = vst.msk [vmem:[#allocation2 + $0x40] sm:$0x3] %vm692_vm5, %v11939_v20  ;;  %702 = vst.msk [vmem:[#allocation2 + $0x58] sm:$0x3] %vm692_vm5, %v11939_v20 }
 0x15d   :  { %705 = vst.msk [vmem:[#allocation2 + $0x70] sm:$0x3] %vm692_vm5, %v11939_v20  ;;  %708 = vst.msk [vmem:[#allocation2 + $0x88] sm:$0x3] %vm692_vm5, %v11939_v20 }
 0x15e   :  { %711 = vst.msk [vmem:[#allocation2 + $0xa0] sm:$0x3] %vm692_vm5, %v11939_v20  ;;  %714 = vst.msk [vmem:[#allocation2 + $0xb8] sm:$0x3] %vm692_vm5, %v11939_v20 }
 0x15f   :  { %717 = vst.msk [vmem:[#allocation2 + $0xd0] sm:$0x3] %vm692_vm5, %v11939_v20  ;;  %720 = vst.msk [vmem:[#allocation2 + $0xe8] sm:$0x3] %vm692_vm5, %v11939_v20 }
 0x160   :  { %723 = vst.msk [vmem:[#allocation2 + $0x100] sm:$0x3] %vm692_vm5, %v11939_v20  ;;  %726 = vst.msk [vmem:[#allocation2 + $0x118] sm:$0x3] %vm692_vm5, %v11939_v20 }
 0x161   :  { %729 = vst.msk [vmem:[#allocation2 + $0x130] sm:$0x3] %vm692_vm5, %v11939_v20  ;;  %732 = vst.msk [vmem:[#allocation2 + $0x148] sm:$0x3] %vm692_vm5, %v11939_v20  ;;  %v2574_v3 = vld [vmem:[#allocation2 + $0x198] sm:$0xff] }
 0x162   :  { %735 = vst.msk [vmem:[#allocation2 + $0x160] sm:$0x3] %vm692_vm5, %v11939_v20  ;;  %738 = vst.msk [vmem:[#allocation2 + $0x178] sm:$0x3] %vm692_vm5, %v11939_v20  ;;  %v8510_v28 = vld [vmem:[#allocation2 + $0xa] sm:$0xff] }
 0x163   :  { %741 = vst.msk [vmem:[#allocation2 + $0x190] sm:$0x3] %vm692_vm5, %v11939_v20  ;;  %744 = vst.msk [vmem:[#allocation2 + $0x1a8] sm:$0x3] %vm692_vm5, %v11939_v20  ;;  %1841 = vrot.lane.b32.xlu1 %v8510_v28, %s7557_s0  ;;  %v8517_v0 = vld [vmem:[#allocation2 + $0x9] sm:$0xff] }
 0x164   :  { %1649 = vrot.lane.b32.xlu0 %v8517_v0, %s7556_s6 }
 0x168   :  { %1839 = vrot.lane.b32.xlu0 %v1775_v45, %s7557_s0 }
 0x16a   :  { %v8535_v13 = vld [vmem:[#allocation2 + $0x1a1] sm:$0xff] }
 0x16c   :  { %2668 = vrot.lane.b32.xlu0 %v2574_v3, %s7558_s15 }
 0x1e0   :  { %v8368_v37 = vpop.f32.mrf.mxu1 }
 0x1e1   :  { %v1073_v52 = vmul.f32 %v8368_v37, %v8368_v37 }
 0x1e2   :  { %v7040_v41 = vpop.f32.mrf.mxu1 }
 0x1e3   :  { %v3687_v41 = vadd.f32 %v3686_v12, %v3685_v33  ;;  %v8519_v12 = vld [vmem:[#allocation2 + $0x1a0] sm:$0xff] }
 0x1e4   :  { %2670 = vrot.lane.b32.xlu1 %v8519_v12, %s7558_s15 }
 0x1e5   :  { %v3689_v33 = vadd.f32 %v3688_v2, %v3687_v41  ;;  %v3692_v2 = vsel %vm746_vm3, %v3650_v47, 0.0 }
 0x1e7   :  { %v3691_v10 = vadd.f32 %v3690_v56, %v3689_v33  ;;  %v2959_v56 = vld [vmem:[#allocation2 + $0x1a2] sm:$0xff] }
 0x1e8   :  { %2862 = vrot.lane.b32.xlu1 %v8535_v13, %s7559_s16 }
 0x1e9   :  { %v3693_v47 = vadd.f32 %v3692_v2, %v3691_v10  ;;  %v2766_v10 = vld [vmem:[#allocation2 + $0x199] sm:$0xff] }
 0x1ea   :  { %2860 = vrot.lane.b32.xlu0 %v2766_v10, %s7559_s16 }
 0x1ec   :  { %3054 = vrot.lane.b32.xlu1 %v2959_v56, %s7560_s17 }
 0x1f0   :  { %v1069_v30 = vpop.f32.mrf.mxu1  ;;  %4468 = vrot.lane.b32.xlu1 %v1583_v60, %s7556_s6  ;;  %v1083_v60 = vlaneseq }
 0x1f1   :  { %v1074_v26 = vsub.f32 %v1069_v30, %v1073_v52  ;;  %v3598_v30 = vsel %vm746_vm3, %v8524_v6, 0.0  ;;  %v8543_v52 = vadd.f32 %v7947_v14, %v8255_v59  ;;  %v8553_v59 = vadd.f32 %v8253_v57, %v7947_v14 }
 0x1f2   :  { %v7059_v41 = vpop.f32.mrf.mxu1  ;;  %v3599_v33 = vadd.f32 %v3598_v30, %v3597_v55  ;;  %v3696_v55 = vsel %vm746_vm3, %v3652_v46, 0.0  ;;  %v8566_v30 = vadd.f32 %v7947_v14, %v8259_v7  ;;  %v2958_v46 = vld [vmem:[#allocation2 + $0x19a] sm:$0xff] }
 0x1f3   :  { %v1075_v63 = vmax.f32 %v1074_v26, 0.0  ;;  %v3694_v41 = vsel %vm746_vm3, %v3651_v39, 0.0  ;;  %v3653_v39 = vmul.f32 %v8508_v50, %v8508_v50  ;;  %v3602_v57 = vsel %vm746_vm3, %v8553_v59, 0.0  ;;  %3052 = vrot.lane.b32.xlu0 %v2958_v46, %s7560_s17 }
 0x1f4   :  { %v3695_v26 = vadd.f32 %v3694_v41, %v3693_v47  ;;  %v8576_v41 = vld [vmem:[%s11765_s2] ss:$0 sm:$0xff]  ;;  %v3604_v7 = vsel %vm746_vm3, %v8566_v30, 0.0  ;;  %4660 = vrot.lane.b32.xlu1 %v1775_v45, %s7557_s0  ;;  %v1084_v46 = vshrl.u32 %v1083_v60, 7 }
 0x1f5   :  { %v1076_v17 = vadd.f32 1e-05, %v1075_v63  ;;  %v3600_v63 = vsel %vm746_vm3, %v8543_v52, 0.0  ;;  %v3698_v56 = vsel %vm746_vm3, %v3653_v39, 0.0  ;;  %v8580_v14 = vadd.f32 %v8576_v41, %v8257_v4 }
 0x1f6   :  { %v3601_v2 = vadd.f32 %v3600_v63, %v3599_v33  ;;  %v3697_v47 = vadd.f32 %v3696_v55, %v3695_v26  ;;  %v3655_v26 = vmul.f32 %v8543_v52, %v8543_v52  ;;  %v1078_v55 = vld [vmem:[%s11766_s3] sm:$0x1]  ;;  %v8609_v60 = vadd.f32 %v8576_v41, %v8261_v19 }
 0x1f7   :  { %7253 = vrsqrt.f32 %v1076_v17  ;;  %v3654_v17 = vmul.f32 %v8524_v6, %v8524_v6  ;;  %v3606_v39 = vsel %vm746_vm3, %v8580_v14, 0.0  ;;  %4470 = vrot.lane.b32.xlu0 %v8517_v0, %s7556_s6 }
 0x1f8   :  { %v3603_v33 = vadd.f32 %v3602_v57, %v3601_v2  ;;  %v3699_v63 = vadd.f32 %v3698_v56, %v3697_v47  ;;  %v8596_v57 = vadd.f32 %v8576_v41, %v8263_v21  ;;  %5488 = vrot.lane.b32.xlu1 %v2574_v3, %s7558_s15  ;;  %v1080_v21 = vld [vmem:[%s11767_s4] sm:$0x1] }
 0x1f9   :  { %v3700_v4 = vsel %vm746_vm3, %v3654_v17, 0.0  ;;  %v3702_v17 = vsel %vm746_vm3, %v3655_v26, 0.0  ;;  %v3657_v26 = vmul.f32 %v8566_v30, %v8566_v30 }
 0x1fa   :  { %v3605_v2 = vadd.f32 %v3604_v7, %v3603_v33  ;;  %v3656_v33 = vmul.f32 %v8553_v59, %v8553_v59  ;;  %v3701_v56 = vadd.f32 %v3700_v4, %v3699_v63  ;;  %v3608_v0 = vsel %vm746_vm3, %v8596_v57, 0.0 }
 0x1fb   :  { %4662 = vrot.lane.b32.xlu0 %v8510_v28, %s7557_s0  ;;  %v3610_v4 = vsel %vm746_vm3, %v8609_v60, 0.0 }
 0x1fc   :  { %v3607_v7 = vadd.f32 %v3606_v39, %v3605_v2  ;;  %v3703_v63 = vadd.f32 %v3702_v17, %v3701_v56  ;;  %5680 = vrot.lane.b32.xlu1 %v2766_v10, %s7559_s16  ;;  %v3704_v19 = vsel %vm746_vm3, %v3656_v33, 0.0  ;;  %v3658_v10 = vmul.f32 %v8580_v14, %v8580_v14 }
 0x1fd   :  { %v3706_v33 = vsel %vm746_vm3, %v3657_v26, 0.0 }
 0x1fe   :  { %v3609_v2 = vadd.f32 %v3608_v0, %v3607_v7 }
 0x1ff   :  { %5490 = vrot.lane.b32.xlu0 %v8519_v12, %s7558_s15 }
 0x200   :  { %v3611_v56 = vadd.f32 %v3610_v4, %v3609_v2 }
 0x203   :  { %5682 = vrot.lane.b32.xlu0 %v8535_v13, %s7559_s16 }
 0x204   :  { %v7254_v45 = vpop.eup %7253 }
 0x205   :  { %v1079_v47 = vmul.f32 %v7254_v45, %v1078_v55  ;;  %v8614_v55 = vsub.s32 0, %v1084_v46  ;;  %v3705_v46 = vadd.f32 %v3704_v19, %v3703_v63 }
 0x207   :  { %v1081_v3 = vmul.f32 %v1079_v47, %v8368_v37  ;;  %v8626_v37 = vadd.f32 %v8576_v41, %v8280_v61  ;;  %v8629_v39 = vrot.slane %v1079_v47, %v8614_v55  ;;  %v8641_v61 = vadd.f32 %v8576_v41, %v8271_v35 }
 0x208   :  { %v3708_v35 = vsel %vm746_vm3, %v3658_v10, 0.0  ;;  %v8695_v10 = vadd.f32 %v8576_v41, %v8287_v11  ;;  %v8714_v11 = vld [vmem:[%s11768_s5 + $0x30] sm:$0xff] }
 0x209   :  { %v1082_v45 = vsub.f32 %v1080_v21, %v1081_v3  ;;  %v3612_v47 = vsel %vm746_vm3, %v8626_v37, 0.0  ;;  %v1087_v17 = vmul.f32 %v8629_v39, %v7953_v18  ;;  %v1088_v12 = vmul.f32 %v8629_v39, %v7950_v16 }
 0x20a   :  { %v1089_v7 = vmul.f32 %v8629_v39, %v7968_v27  ;;  %v3707_v3 = vadd.f32 %v3706_v33, %v3705_v46  ;;  %v3659_v18 = vmul.f32 %v8596_v57, %v8596_v57  ;;  %v3614_v16 = vsel %vm746_vm3, %v8641_v61, 0.0 }
 0x20b   :  { %v8632_v28 = vrot.slane %v1082_v45, %v8614_v55  ;;  %v3613_v45 = vadd.f32 %v3612_v47, %v3611_v56  ;;  %v8666_v27 = vadd.f32 %v8576_v41, %v8296_v15  ;;  %v1090_v13 = vmul.f32 %v8629_v39, %v7962_v23  ;;  %v8689_v23 = vld [vmem:[%s11768_s5 + $0x38] sm:$0xff] }
 0x20c   :  { %v1091_v26 = vmul.f32 %v8629_v39, %v7984_v40  ;;  %v3660_v15 = vmul.f32 %v8609_v60, %v8609_v60  ;;  %v3709_v2 = vadd.f32 %v3708_v35, %v3707_v3  ;;  %v3710_v40 = vsel %vm746_vm3, %v3659_v18, 0.0  ;;  %v8736_v18 = vld [vmem:[%s11768_s5 + $0x28] sm:$0xff] }
 0x20d   :  { %v8652_v21 = vadd.f32 %v8632_v28, %v1087_v17  ;;  %v8655_v0 = vadd.f32 %v8632_v28, %v1088_v12  ;;  %v8669_v63 = vadd.f32 %v8632_v28, %v1089_v7  ;;  %v3615_v19 = vadd.f32 %v3614_v16, %v3613_v45 }
 0x20e   :  { %v8684_v4 = vadd.f32 %v8632_v28, %v1090_v13  ;;  %v3616_v46 = vsel %vm746_vm3, %v8666_v27, 0.0  ;;  %v8700_v33 = vadd.f32 %v8632_v28, %v1091_v26  ;;  %v1092_v56 = vmul.f32 %v8629_v39, %v7978_v34  ;;  %v8751_v13 = vld [vmem:[%s11768_s5 + $0x20] sm:$0xff] }
 0x20f   :  { %11940 = vst [vmem:[#allocation31_spill] sm:$0xff] %v8652_v21  ;;  %11941 = vst [vmem:[#allocation32_spill] sm:$0xff] %v8655_v0  ;;  %7076 = vmatprep.mubr.msk.f32.mxu1 %vm746_vm3, %v8652_v21  ;;  %v1093_v47 = vmul.f32 %v8629_v39, %v8000_v54  ;;  %v3712_v17 = vsel %vm746_vm3, %v3660_v15, 0.0  ;;  %v3711_v12 = vadd.f32 %v3710_v40, %v3709_v2  ;;  %v3618_v35 = vsel %vm746_vm3, %v8695_v10, 0.0 }
 0x210   :  { %11942 = vst [vmem:[#allocation33_spill] sm:$0xff] %v8669_v63  ;;  %7077 = vmatmul.mubr.msk.f32.vlgmr.msra.gmra.mxu1 %vm746_vm3, %v8655_v0  ;;  %11943 = vst [vmem:[#allocation34_spill] sm:$0xff] %v8684_v4  ;;  %v3617_v34 = vadd.f32 %v3616_v46, %v3615_v19  ;;  %v8719_v7 = vadd.f32 %v8632_v28, %v1092_v56  ;;  %v3661_v54 = vmul.f32 %v8626_v37, %v8626_v37  ;;  %v8773_v56 = vld [vmem:[%s11768_s5 + $0x18] sm:$0xff] }
 0x211   :  { %7079 = vmatprep.mubr.msk.f32.mxu1 %vm746_vm3, %v8669_v63  ;;  %7125 = vmatpush3.msra.mxu1 %v8689_v23  ;;  %11944 = vst [vmem:[#allocation35_spill] sm:$0xff] %v8700_v33  ;;  %v8728_v3 = vadd.f32 %v8576_v41, %v8316_v38  ;;  %v8731_v45 = vadd.f32 %v8632_v28, %v1093_v47 }
 0x212   :  { %7126 = vmatprep.subr.mxu1 %v11939_v20  ;;  %11945 = vst [vmem:[#allocation36_spill] sm:$0xff] %v8719_v7  ;;  %v1094_v16 = vmul.f32 %v8629_v39, %v7994_v48  ;;  %v1095_v38 = vmul.f32 %v8629_v39, %v8016_v8  ;;  %v3662_v48 = vmul.f32 %v8641_v61, %v8641_v61  ;;  %v3714_v8 = vsel %vm746_vm3, %v3661_v54, 0.0 }
 0x213   :  { %7127 = vmatpush3.msra.mxu1 %v8714_v11  ;;  %11946 = vst [vmem:[#allocation37_spill] sm:$0xff] %v8731_v45  ;;  %v3713_v26 = vadd.f32 %v3712_v17, %v3711_v12  ;;  %v3619_v15 = vadd.f32 %v3618_v35, %v3617_v34  ;;  %v8763_v19 = vadd.f32 %v8576_v41, %v8306_v9  ;;  %v3620_v40 = vsel %vm746_vm3, %v8728_v3, 0.0  ;;  %v8788_v17 = vld [vmem:[%s11768_s5 + $0x10] sm:$0xff] }
 0x214   :  { %7080 = vmatmul.mubr.msk.f32.gmra.mxu1 %vm746_vm3, %v8684_v4  ;;  %7128 = vmatprep.subr.mxu1 %v11939_v20  ;;  %v8757_v2 = vadd.f32 %v8632_v28, %v1094_v16  ;;  %v8768_v46 = vadd.f32 %v8632_v28, %v1095_v38  ;;  %v1096_v47 = vmul.f32 %v8629_v39, %v8010_v1  ;;  %v3716_v1 = vsel %vm746_vm3, %v3662_v48, 0.0  ;;  %v8810_v48 = vld [vmem:[%s11768_s5 + $0x8] sm:$0xff] }
 0x215   :  { %7082 = vmatprep.mubr.msk.f32.mxu1 %vm746_vm3, %v8700_v33  ;;  %7129 = vmatpush3.msra.mxu1 %v8736_v18  ;;  %v1097_v9 = vmul.f32 %v8629_v39, %v8032_v32  ;;  %v3715_v12 = vadd.f32 %v3714_v8, %v3713_v26  ;;  %v3621_v34 = vadd.f32 %v3620_v40, %v3619_v15  ;;  %v3622_v35 = vsel %vm746_vm3, %v8763_v19, 0.0  ;;  %v8825_v15 = vld [vmem:[%s11768_s5] sm:$0xff]  ;;  %s7561_s5 = smov 125  }
 0x216   :  { %7130 = vmatprep.subr.mxu1 %v11939_v20  ;;  %11947 = vst [vmem:[#allocation38_spill] sm:$0xff] %v8757_v2  ;;  %11948 = vst [vmem:[#allocation39_spill] sm:$0xff] %v8768_v46  ;;  %v8793_v54 = vadd.f32 %v8632_v28, %v1096_v47  ;;  %v3663_v32 = vmul.f32 %v8666_v27, %v8666_v27  ;;  %v8802_v16 = vadd.f32 %v8576_v41, %v8336_v24 }
 0x217   :  { %7131 = vmatpush3.msra.mxu1 %v8751_v13  ;;  %v8805_v38 = vadd.f32 %v8632_v28, %v1097_v9  ;;  %v1098_v26 = vmul.f32 %v8629_v39, %v8026_v25  ;;  %v1099_v24 = vmul.f32 %v8629_v39, %v8048_v49  ;;  %v3664_v25 = vmul.f32 %v8695_v10, %v8695_v10 }
 0x218   :  { %7083 = vmatmul.mubr.msk.f32.gmra.mxu1 %vm746_vm3, %v8719_v7  ;;  %7132 = vmatprep.subr.mxu1 %v11939_v20  ;;  %11949 = vst [vmem:[#allocation40_spill] sm:$0xff] %v8793_v54  ;;  %v3717_v8 = vadd.f32 %v3716_v1, %v3715_v12  ;;  %v3623_v40 = vadd.f32 %v3622_v35, %v3621_v34  ;;  %v3718_v49 = vsel %vm746_vm3, %v3663_v32, 0.0 }
 0x219   :  { %7085 = vmatprep.mubr.msk.f32.mxu1 %vm746_vm3, %v8731_v45  ;;  %7133 = vmatpush3.msra.mxu1 %v8773_v56  ;;  %11950 = vst [vmem:[#allocation41_spill] sm:$0xff] %v8805_v38  ;;  %v8831_v47 = vadd.f32 %v8632_v28, %v1098_v26  ;;  %v8837_v9 = vadd.f32 %v8576_v41, %v8326_v62  ;;  %v3720_v62 = vsel %vm746_vm3, %v3664_v25, 0.0 }
 0x21a   :  { %7134 = vmatprep.subr.mxu1 %v11939_v20  ;;  %v1100_v1 = vmul.f32 %v8629_v39, %v8042_v42  ;;  %v1101_v12 = vmul.f32 %v8629_v39, %v8064_v5  ;;  %v3719_v34 = vadd.f32 %v3718_v49, %v3717_v8  ;;  %v3665_v26 = vmul.f32 %v8728_v3, %v8728_v3 }
 0x21b   :  { %7135 = vmatpush3.msra.mxu1 %v8788_v17  ;;  %11951 = vst [vmem:[#allocation42_spill] sm:$0xff] %v8831_v47  ;;  %v3626_v42 = vsel %vm746_vm3, %v8837_v9, 0.0  ;;  %v1102_v25 = vmul.f32 %v8629_v39, %v8058_v58  ;;  %v3666_v8 = vmul.f32 %v8763_v19, %v8763_v19  ;;  %v8883_v58 = vadd.f32 %v8576_v41, %v8346_v36 }
 0x21c   :  { %7086 = vmatmul.mubr.msk.f32.gmra.mxu1 %vm746_vm3, %v8757_v2  ;;  %7136 = vmatprep.subr.mxu1 %v11939_v20  ;;  %v8854_v35 = vadd.f32 %v8632_v28, %v1100_v1  ;;  %v8865_v5 = vadd.f32 %v8632_v28, %v1101_v12  ;;  %v3722_v1 = vsel %vm746_vm3, %v3665_v26, 0.0  ;;  %v3667_v26 = vmul.f32 %v8802_v16, %v8802_v16 }
 0x21d   :  { %7088 = vmatprep.mubr.msk.f32.mxu1 %vm746_vm3, %v8768_v46  ;;  %7137 = vmatpush3.msra.mxu1 %v8810_v48  ;;  %v8842_v46 = vadd.f32 %v8632_v28, %v1099_v24  ;;  %v8862_v24 = vadd.f32 %v8576_v41, %v8358_v53  ;;  %v3721_v53 = vadd.f32 %v3720_v62, %v3719_v34 }
 0x21e   :  { %7138 = vmatprep.subr.mxu1 %v11939_v20  ;;  %11953 = vst [vmem:[#allocation44_spill] sm:$0xff] %v8854_v35  ;;  %11954 = vst [vmem:[#allocation45_spill] sm:$0xff] %v8865_v5  ;;  %v8878_v49 = vadd.f32 %v8632_v28, %v1102_v25  ;;  %v1105_v62 = vmul.f32 %v8629_v39, %v8096_v51  ;;  %v1106_v51 = vmul.f32 %v8629_v39, %v8090_v43  ;;  %v11959_v25 = vld [vmem:[#allocation8_spill] sm:$0xff] }
 0x21f   :  { %7139 = vmatpush3.msra.mxu1 %v8825_v15  ;;  %11952 = vst [vmem:[#allocation43_spill] sm:$0xff] %v8842_v46  ;;  %v3723_v36 = vadd.f32 %v3722_v1, %v3721_v53  ;;  %v3726_v1 = vsel %vm746_vm3, %v3667_v26, 0.0 }
 0x220   :  { %7089 = vmatmul.mubr.msk.f32.gmra.mxu1 %vm746_vm3, %v8793_v54  ;;  %7143 = vmatprep.subr.mxu1 %v11939_v20  ;;  %11955 = vst [vmem:[#allocation46_spill] sm:$0xff] %v8878_v49  ;;  %v8918_v53 = vadd.f32 %v8632_v28, %v1106_v51  ;;  %v3669_v51 = vmul.f32 %v8862_v24, %v8862_v24 }
 0x221   :  { %7091 = vmatprep.mubr.msk.f32.mxu1 %vm746_vm3, %v8805_v38  ;;  %v3624_v38 = vsel %vm746_vm3, %v8802_v16, 0.0 }
 0x222   :  { %v3625_v32 = vadd.f32 %v3624_v38, %v3623_v40  ;;  %v1103_v38 = vmul.f32 %v8629_v39, %v8080_v31  ;;  %v3628_v31 = vsel %vm746_vm3, %v8862_v24, 0.0  ;;  %11960 = vst [vmem:[#allocation8_spill] sm:$0xff] %v8918_v53 }
 0x224   :  { %7092 = vmatmul.mubr.msk.f32.gmra.mxu1 %vm746_vm3, %v8831_v47  ;;  %v3627_v40 = vadd.f32 %v3626_v42, %v3625_v32  ;;  %v8888_v12 = vadd.f32 %v8632_v28, %v1103_v38  ;;  %v3724_v32 = vsel %vm746_vm3, %v3666_v8, 0.0  ;;  %v8907_v42 = vadd.f32 %v8632_v28, %v1105_v62 }
 0x225   :  { %7094 = vmatprep.mubr.msk.f32.mxu1 %vm746_vm3, %v8842_v46  ;;  %v3725_v38 = vadd.f32 %v3724_v32, %v3723_v36 }
 0x226   :  { %11956 = vst [vmem:[#allocation47_spill] sm:$0xff] %v8888_v12  ;;  %v3629_v41 = vadd.f32 %v3628_v31, %v3627_v40  ;;  %11958 = vst [vmem:[#allocation49_spill] sm:$0xff] %v8907_v42  ;;  %v3668_v40 = vmul.f32 %v8837_v9, %v8837_v9  ;;  %v11962_v31 = vld [vmem:[#allocation7_spill] sm:$0xff] }
 0x227   :  { %v1108_v62 = vmul.f32 %v8629_v39, %v11962_v31  ;;  %v11966_v31 = vld [vmem:[#allocation9_spill] sm:$0xff] }
 0x228   :  { %7095 = vmatmul.mubr.msk.f32.gmra.mxu1 %vm746_vm3, %v8854_v35  ;;  %v3728_v26 = vsel %vm746_vm3, %v3668_v40, 0.0 }
 0x229   :  { %7097 = vmatprep.mubr.msk.f32.mxu1 %vm746_vm3, %v8865_v5  ;;  %v1104_v5 = vmul.f32 %v8629_v39, %v8074_v22  ;;  %v3630_v22 = vsel %vm746_vm3, %v8883_v58, 0.0 }
 0x22a   :  { %v3631_v8 = vadd.f32 %v3630_v22, %v3629_v41  ;;  %v3727_v41 = vadd.f32 %v3726_v1, %v3725_v38  ;;  %v8935_v22 = vadd.f32 %v8632_v28, %v1108_v62 }
 0x22b   :  { %v8899_v34 = vadd.f32 %v8632_v28, %v1104_v5  ;;  %v1107_v5 = vmul.f32 %v8629_v39, %v11959_v25  ;;  %v11963_v25 = vld [vmem:[#allocation10_spill] sm:$0xff] }
 0x22c   :  { %7098 = vmatmul.mubr.msk.f32.gmra.mxu1 %vm746_vm3, %v8878_v49  ;;  %v1109_v36 = vmul.f32 %v8629_v39, %v11963_v25  ;;  %v3632_v32 = vrot.slane %v3631_v8, 4  ;;  %11964 = vst [vmem:[#allocation7_spill] sm:$0xff] %v8935_v22  ;;  %v11967_v25 = vld [vmem:[#allocation12_spill] sm:$0xff]  ;;  %v3729_v40 = vadd.f32 %v3728_v26, %v3727_v41  ;;  %v12001_v49 = vld [vmem:[#allocation21_spill] sm:$0xff] }
 0x22d   :  { %7100 = vmatprep.mubr.msk.f32.mxu1 %vm746_vm3, %v8888_v12  ;;  %11957 = vst [vmem:[#allocation48_spill] sm:$0xff] %v8899_v34  ;;  %v8924_v43 = vadd.f32 %v8632_v28, %v1107_v5  ;;  %v1111_v38 = vmul.f32 %v8629_v39, %v11967_v25  ;;  %v11971_v25 = vld [vmem:[#allocation14_spill] sm:$0xff] }
 0x22e   :  { %v8941_v5 = vadd.f32 %v8632_v28, %v1109_v36  ;;  %v3633_v1 = vadd.f32 %v3632_v32, %v3631_v8  ;;  %v3670_v36 = vmul.f32 %v8883_v58, %v8883_v58  ;;  %v1113_v8 = vmul.f32 %v8629_v39, %v11971_v25  ;;  %v11975_v25 = vld [vmem:[#allocation16_spill] sm:$0xff] }
 0x22f   :  { %11961 = vst [vmem:[#allocation50_spill] sm:$0xff] %v8924_v43 }
 0x230   :  { %7101 = vmatmul.mubr.msk.f32.gmra.mxu1 %vm746_vm3, %v8899_v34  ;;  %11965 = vst [vmem:[#allocation10_spill] sm:$0xff] %v8941_v5  ;;  %v3732_v26 = vsel %vm746_vm3, %v3670_v36, 0.0 }
 0x231   :  { %7103 = vmatprep.mubr.msk.f32.mxu1 %vm746_vm3, %v8907_v42  ;;  %v1110_v42 = vmul.f32 %v8629_v39, %v11966_v31  ;;  %v8958_v31 = vadd.f32 %v8632_v28, %v1111_v38 }
 0x233   :  { %v8952_v62 = vadd.f32 %v8632_v28, %v1110_v42  ;;  %11969 = vst [vmem:[#allocation12_spill] sm:$0xff] %v8958_v31  ;;  %v3634_v42 = vrot.slane %v3633_v1, 2 }
 0x234   :  { %7104 = vmatmul.mubr.msk.f32.gmra.mxu1 %vm746_vm3, %v8918_v53 }
 0x235   :  { %7106 = vmatprep.mubr.msk.f32.mxu1 %vm746_vm3, %v8924_v43  ;;  %11968 = vst [vmem:[#allocation9_spill] sm:$0xff] %v8952_v62  ;;  %v3730_v43 = vsel %vm746_vm3, %v3669_v51, 0.0  ;;  %v8973_v51 = vadd.f32 %v8632_v28, %v1113_v8  ;;  %v11978_v8 = vld [vmem:[#allocation15_spill] sm:$0xff] }
 0x236   :  { %v3731_v41 = vadd.f32 %v3730_v43, %v3729_v40  ;;  %v3635_v43 = vadd.f32 %v3634_v42, %v3633_v1 }
 0x237   :  { %11973 = vst [vmem:[#allocation14_spill] sm:$0xff] %v8973_v51 }
 0x238   :  { %7107 = vmatmul.mubr.msk.f32.gmra.mxu1 %vm746_vm3, %v8935_v22  ;;  %v11970_v22 = vld [vmem:[#allocation11_spill] sm:$0xff]  ;;  %v3636_v1 = vrot.slane %v3635_v43, 1 }
 0x239   :  { %7109 = vmatprep.mubr.msk.f32.mxu1 %vm746_vm3, %v8941_v5  ;;  %v1112_v12 = vmul.f32 %v8629_v39, %v11970_v22  ;;  %v11974_v22 = vld [vmem:[#allocation13_spill] sm:$0xff] }
 0x23a   :  { %v1114_v38 = vmul.f32 %v8629_v39, %v11974_v22  ;;  %v1116_v22 = vmul.f32 %v8629_v39, %v11978_v8  ;;  %v3902_v5 = vld [vmem:[%s11767_s4] sm:$0x1] }
 0x23b   :  { %v8969_v32 = vadd.f32 %v8632_v28, %v1112_v12  ;;  %v3733_v12 = vadd.f32 %v3732_v26, %v3731_v41  ;;  %v11982_v26 = vld [vmem:[#allocation17_spill] sm:$0xff] }
 0x23c   :  { %7110 = vmatmul.mubr.msk.f32.gmra.mxu1 %vm746_vm3, %v8952_v62  ;;  %v1115_v62 = vmul.f32 %v8629_v39, %v11975_v25  ;;  %v8984_v40 = vadd.f32 %v8632_v28, %v1114_v38  ;;  %v8998_v41 = vadd.f32 %v8632_v28, %v1116_v22  ;;  %v1118_v38 = vmul.f32 %v8629_v39, %v11982_v26 }
 0x23d   :  { %7112 = vmatprep.mubr.msk.f32.mxu1 %vm746_vm3, %v8958_v31  ;;  %11972 = vst [vmem:[#allocation11_spill] sm:$0xff] %v8969_v32  ;;  %v3734_v42 = vrot.slane %v3733_v12, 4 }
 0x23e   :  { %11976 = vst [vmem:[#allocation13_spill] sm:$0xff] %v8984_v40  ;;  %v8987_v36 = vadd.f32 %v8632_v28, %v1115_v62  ;;  %11980 = vst [vmem:[#allocation15_spill] sm:$0xff] %v8998_v41 }
 0x23f   :  { %v3735_v8 = vadd.f32 %v3734_v42, %v3733_v12 }
 0x240   :  { %7113 = vmatmul.mubr.msk.f32.gmra.mxu1 %vm746_vm3, %v8969_v32  ;;  %11977 = vst [vmem:[#allocation16_spill] sm:$0xff] %v8987_v36  ;;  %v11979_v32 = vld [vmem:[#allocation18_spill] sm:$0xff] }
 0x241   :  { %7115 = vmatprep.mubr.msk.f32.mxu1 %vm746_vm3, %v8973_v51  ;;  %v1117_v25 = vmul.f32 %v8629_v39, %v11979_v32  ;;  %v3637_v32 = vadd.f32 %v3636_v1, %v3635_v43 }
 0x243   :  { %v9001_v62 = vadd.f32 %v8632_v28, %v1117_v25  ;;  %v3638_v22 = vmul.f32 0.00390625, %v3637_v32  ;;  %v3736_v25 = vrot.slane %v3735_v8, 2 }
 0x244   :  { %7116 = vmatmul.mubr.msk.f32.gmra.mxu1 %vm746_vm3, %v8984_v40 }
 0x245   :  { %7118 = vmatprep.mubr.msk.f32.mxu1 %vm746_vm3, %v8987_v36  ;;  %11981 = vst [vmem:[#allocation18_spill] sm:$0xff] %v9001_v62  ;;  %v9010_v36 = vadd.f32 %v8632_v28, %v1118_v38  ;;  %v3737_v39 = vadd.f32 %v3736_v25, %v3735_v8 }
 0x247   :  { %11983 = vst [vmem:[#allocation17_spill] sm:$0xff] %v9010_v36  ;;  %v3738_v28 = vrot.slane %v3737_v39, 1 }
 0x248   :  { %7119 = vmatmul.mubr.msk.f32.gmra.mxu1 %vm746_vm3, %v8998_v41 }
 0x249   :  { %7121 = vmatprep.mubr.msk.f32.mxu1 %vm746_vm3, %v9001_v62 }
 0x24c   :  { %7122 = vmatmul.mubr.msk.f32.gmra.mxu1 %vm746_vm3, %v9010_v36 }
 0x24d   :  { %7140 = vmatprep.mubr.msk.f32.mxu1 %vm7555_vm2, %v11939_v20 }
 0x250   :  { %7141 = vmatmul.mubr.msk.f32.vlgmr.msra.gmra.mxu1 %vm746_vm3, %v3638_v22 }
 0x251   :  { %7144 = vmatpush3.msra.mxu1 %v8689_v23  ;;  %7159 = vmatprep.mubr.msk.f32.mxu1 %vm7555_vm2, %v11939_v20  ;;  %v3739_v23 = vadd.f32 %v3738_v28, %v3737_v39 }
 0x252   :  { %7145 = vmatprep.subr.mxu1 %v11939_v20 }
 0x253   :  { %7146 = vmatpush3.msra.mxu1 %v8714_v11  ;;  %v3740_v11 = vmul.f32 0.00390625, %v3739_v23 }
 0x254   :  { %7147 = vmatprep.subr.mxu1 %v11939_v20 }
 0x255   :  { %7148 = vmatpush3.msra.mxu1 %v8736_v18 }
 0x256   :  { %7149 = vmatprep.subr.mxu1 %v11939_v20 }
 0x257   :  { %7150 = vmatpush3.msra.mxu1 %v8751_v13 }
 0x258   :  { %7151 = vmatprep.subr.mxu1 %v11939_v20 }
 0x259   :  { %7152 = vmatpush3.msra.mxu1 %v8773_v56 }
 0x25a   :  { %7153 = vmatprep.subr.mxu1 %v11939_v20 }
 0x25b   :  { %7154 = vmatpush3.msra.mxu1 %v8788_v17 }
 0x25c   :  { %7155 = vmatprep.subr.mxu1 %v11939_v20 }
 0x25d   :  { %7156 = vmatpush3.msra.mxu1 %v8810_v48 }
 0x25e   :  { %7157 = vmatprep.subr.mxu1 %v11939_v20 }
 0x25f   :  { %7158 = vmatpush3.msra.mxu1 %v8825_v15 }
 0x260   :  { %7160 = vmatmul.mubr.msk.f32.vlgmr.msra.gmra.mxu1 %vm746_vm3, %v3740_v11 }
 0x2d0   :  { %v7078_v18 = vpop.f32.mrf.mxu1 }
 0x2d1   :  { %1488 = vst.msk [vmem:[#allocation2 + $0x21] sm:$0xff] %vm689_vm4, %v7078_v18 }
 0x2d2   :  { %v1327_v13 = vpop.f32.mrf.mxu1 }
 0x2d3   :  { %1487 = vst.msk [vmem:[#allocation2 + $0x19] sm:$0xff] %vm689_vm4, %v1327_v13 }
 0x2d4   :  { %v7081_v56 = vpop.f32.mrf.mxu1 }
 0x2d5   :  { %1490 = vst.msk [vmem:[#allocation2 + $0x39] sm:$0xff] %vm689_vm4, %v7081_v56 }
 0x2d6   :  { %v1337_v17 = vpop.f32.mrf.mxu1 }
 0x2d7   :  { %1489 = vst.msk [vmem:[#allocation2 + $0x31] sm:$0xff] %vm689_vm4, %v1337_v17 }
 0x2d8   :  { %v7084_v48 = vpop.f32.mrf.mxu1  ;;  %v1586_v43 = vld [vmem:[#allocation2 + $0x21] sm:$0xff] }
 0x2d9   :  { %1492 = vst.msk [vmem:[#allocation2 + $0x51] sm:$0xff] %vm689_vm4, %v7084_v48  ;;  %1653 = vrot.lane.b32.xlu1 %v1586_v43, %s7556_s6  ;;  %v1778_v1 = vld [vmem:[#allocation2 + $0x22] sm:$0xff] }
 0x2da   :  { %v1347_v20 = vpop.f32.mrf.mxu1  ;;  %v1777_v15 = vld [vmem:[#allocation2 + $0x1a] sm:$0xff] }
 0x2db   :  { %1491 = vst.msk [vmem:[#allocation2 + $0x49] sm:$0xff] %vm689_vm4, %v1347_v20  ;;  %1843 = vrot.lane.b32.xlu0 %v1777_v15, %s7557_s0  ;;  %v9045_v26 = vld [vmem:[#allocation2 + $0x18] sm:$0xff]  ;;  %v9062_v18 = vld [vmem:[#allocation2 + $0x20] sm:$0xff] }
 0x2dc   :  { %v7087_v12 = vpop.f32.mrf.mxu1  ;;  %v2159_v8 = vld [vmem:[#allocation2 + $0x19] sm:$0xff] }
 0x2dd   :  { %1494 = vst.msk [vmem:[#allocation2 + $0x69] sm:$0xff] %vm689_vm4, %v7087_v12  ;;  %1845 = vrot.lane.b32.xlu1 %v1778_v1, %s7557_s0  ;;  %v1588_v48 = vld [vmem:[#allocation2 + $0x39] sm:$0xff] }
 0x2de   :  { %v1357_v42 = vpop.f32.mrf.mxu1  ;;  %v1587_v23 = vld [vmem:[#allocation2 + $0x31] sm:$0xff]  ;;  %v1780_v12 = vld [vmem:[#allocation2 + $0x3a] sm:$0xff] }
 0x2df   :  { %1493 = vst.msk [vmem:[#allocation2 + $0x61] sm:$0xff] %vm689_vm4, %v1357_v42  ;;  %2031 = vrot.lane.b32.xlu0 %v9045_v26, %s7561_s5  ;;  %v1779_v56 = vld [vmem:[#allocation2 + $0x32] sm:$0xff] }
 0x2e0   :  { %v7090_v38 = vpop.f32.mrf.mxu1  ;;  %v9071_v20 = vld [vmem:[#allocation2 + $0x30] sm:$0xff] }
 0x2e1   :  { %1496 = vst.msk [vmem:[#allocation2 + $0x81] sm:$0xff] %vm689_vm4, %v7090_v38  ;;  %2225 = vrot.lane.b32.xlu1 %v1586_v43, %s7562_s19  ;;  %11984 = vst [vmem:[#allocation51_spill] sm:$0xff] %v9071_v20 }
 0x2e2   :  { %v1367_v32 = vpop.f32.mrf.mxu1  ;;  %v9137_v41 = vld [vmem:[#allocation2 + $0x50] sm:$0xff] }
 0x2e3   :  { %1495 = vst.msk [vmem:[#allocation2 + $0x79] sm:$0xff] %vm689_vm4, %v1367_v32  ;;  %2223 = vrot.lane.b32.xlu0 %v2159_v8, %s7562_s19  ;;  %11988 = vst [vmem:[#allocation55_spill] sm:$0xff] %v9137_v41 }
 0x2e4   :  { %v7093_v22 = vpop.f32.mrf.mxu1  ;;  %v1784_v62 = vld [vmem:[#allocation2 + $0x6a] sm:$0xff] }
 0x2e5   :  { %1498 = vst.msk [vmem:[#allocation2 + $0x99] sm:$0xff] %vm689_vm4, %v7093_v22  ;;  %2417 = vrot.lane.b32.xlu1 %v1778_v1, %s7563_s20 }
 0x2e6   :  { %v1377_v25 = vpop.f32.mrf.mxu1 }
 0x2e7   :  { %1497 = vst.msk [vmem:[#allocation2 + $0x91] sm:$0xff] %vm689_vm4, %v1377_v25  ;;  %2415 = vrot.lane.b32.xlu0 %v1777_v15, %s7563_s20 }
 0x2e8   :  { %v7096_v39 = vpop.f32.mrf.mxu1 }
 0x2e9   :  { %1500 = vst.msk [vmem:[#allocation2 + $0xb1] sm:$0xff] %vm689_vm4, %v7096_v39  ;;  %1651 = vrot.lane.b32.xlu1 %v2159_v8, %s7556_s6 }
 0x2ea   :  { %v1387_v28 = vpop.f32.mrf.mxu1  ;;  %v9303_v47 = vld [vmem:[#allocation2 + $0x78] sm:$0xff] }
 0x2eb   :  { %1499 = vst.msk [vmem:[#allocation2 + $0xa9] sm:$0xff] %vm689_vm4, %v1387_v28  ;;  %1655 = vrot.lane.b32.xlu0 %v1587_v23, %s7556_s6 }
 0x2ec   :  { %v7099_v11 = vpop.f32.mrf.mxu1 }
 0x2ed   :  { %1502 = vst.msk [vmem:[#allocation2 + $0xc9] sm:$0xff] %vm689_vm4, %v7099_v11  ;;  %2033 = vrot.lane.b32.xlu1 %v9062_v18, %s7561_s5 }
 0x2ee   :  { %v1397_v13 = vpop.f32.mrf.mxu1 }
 0x2ef   :  { %1501 = vst.msk [vmem:[#allocation2 + $0xc1] sm:$0xff] %vm689_vm4, %v1397_v13  ;;  %1847 = vrot.lane.b32.xlu0 %v1779_v56, %s7557_s0  ;;  %v9097_v13 = vld [vmem:[#allocation2 + $0x38] sm:$0xff] }
 0x2f0   :  { %v7102_v17 = vpop.f32.mrf.mxu1 }
 0x2f1   :  { %1504 = vst.msk [vmem:[#allocation2 + $0xe1] sm:$0xff] %vm689_vm4, %v7102_v17  ;;  %1657 = vrot.lane.b32.xlu1 %v1588_v48, %s7556_s6 }
 0x2f2   :  { %v1407_v43 = vpop.f32.mrf.mxu1  ;;  %v9562_v4 = vld [vmem:[#allocation2 + $0xa8] sm:$0xff] }
 0x2f3   :  { %1503 = vst.msk [vmem:[#allocation2 + $0xd9] sm:$0xff] %vm689_vm4, %v1407_v43  ;;  %2035 = vrot.lane.b32.xlu0 %v9071_v20, %s7561_s5  ;;  %v1781_v43 = vld [vmem:[#allocation2 + $0x4a] sm:$0xff]  ;;  %12062 = vst [vmem:[#allocation105_spill] sm:$0xff] %v9562_v4 }
 0x2f4   :  { %v7105_v15 = vpop.f32.mrf.mxu1 }
 0x2f5   :  { %1506 = vst.msk [vmem:[#allocation2 + $0xf9] sm:$0xff] %vm689_vm4, %v7105_v15  ;;  %1849 = vrot.lane.b32.xlu1 %v1780_v12, %s7557_s0 }
 0x2f6   :  { %v1417_v1 = vpop.f32.mrf.mxu1 }
 0x2f7   :  { %1505 = vst.msk [vmem:[#allocation2 + $0xf1] sm:$0xff] %vm689_vm4, %v1417_v1  ;;  %2227 = vrot.lane.b32.xlu0 %v1587_v23, %s7562_s19  ;;  %v9110_v1 = vpop.permute.xlu0 %1647 }
 0x2f8   :  { %v7108_v42 = vpop.f32.mrf.mxu1 }
 0x2f9   :  { %1508 = vst.msk [vmem:[#allocation2 + $0x111] sm:$0xff] %vm689_vm4, %v7108_v42  ;;  %2229 = vrot.lane.b32.xlu1 %v1588_v48, %s7562_s19 }
 0x2fa   :  { %v1427_v38 = vpop.f32.mrf.mxu1 }
 0x2fb   :  { %1507 = vst.msk [vmem:[#allocation2 + $0x109] sm:$0xff] %vm689_vm4, %v1427_v38  ;;  %2419 = vrot.lane.b32.xlu0 %v1779_v56, %s7563_s20  ;;  %v9112_v38 = vld [vmem:[#allocation2 + $0x48] sm:$0xff] }
 0x2fc   :  { %v7111_v32 = vpop.f32.mrf.mxu1  ;;  %11985 = vst [vmem:[#allocation52_spill] sm:$0xff] %v9112_v38 }
 0x2fd   :  { %1510 = vst.msk [vmem:[#allocation2 + $0x129] sm:$0xff] %vm689_vm4, %v7111_v32  ;;  %2421 = vrot.lane.b32.xlu1 %v1780_v12, %s7563_s20  ;;  %v1782_v32 = vld [vmem:[#allocation2 + $0x52] sm:$0xff] }
 0x2fe   :  { %v1437_v8 = vpop.f32.mrf.mxu1 }
 0x2ff   :  { %1509 = vst.msk [vmem:[#allocation2 + $0x121] sm:$0xff] %vm689_vm4, %v1437_v8  ;;  %2608 = vrot.lane.b32.xlu0 %v9071_v20, %s7558_s15  ;;  %v9118_v8 = vpop.permute.xlu0 %1649 }
 0x300   :  { %v7114_v22 = vpop.f32.mrf.mxu1 }
 0x301   :  { %1512 = vst.msk [vmem:[#allocation2 + $0x141] sm:$0xff] %vm689_vm4, %v7114_v22  ;;  %2802 = vrot.lane.b32.xlu1 %v1588_v48, %s7559_s16  ;;  %v9123_v22 = vpop.permute.xlu1 %1841 }
 0x302   :  { %v1447_v25 = vpop.f32.mrf.mxu1 }
 0x303   :  { %1511 = vst.msk [vmem:[#allocation2 + $0x139] sm:$0xff] %vm689_vm4, %v1447_v25  ;;  %2800 = vrot.lane.b32.xlu0 %v1587_v23, %s7559_s16  ;;  %v1589_v23 = vld [vmem:[#allocation2 + $0x49] sm:$0xff]  ;;  %v9125_v25 = vpop.permute.xlu0 %1839 }
 0x304   :  { %v7117_v39 = vpop.f32.mrf.mxu1 }
 0x305   :  { %1514 = vst.msk [vmem:[#allocation2 + $0x159] sm:$0xff] %vm689_vm4, %v7117_v39  ;;  %2994 = vrot.lane.b32.xlu1 %v1780_v12, %s7560_s17  ;;  %v1590_v12 = vld [vmem:[#allocation2 + $0x51] sm:$0xff] }
 0x306   :  { %v1457_v28 = vpop.f32.mrf.mxu1 }
 0x307   :  { %1513 = vst.msk [vmem:[#allocation2 + $0x151] sm:$0xff] %vm689_vm4, %v1457_v28  ;;  %2992 = vrot.lane.b32.xlu0 %v1779_v56, %s7560_s17 }
 0x308   :  { %v7120_v11 = vpop.f32.mrf.mxu1 }
 0x309   :  { %1516 = vst.msk [vmem:[#allocation2 + $0x171] sm:$0xff] %vm689_vm4, %v7120_v11  ;;  %2037 = vrot.lane.b32.xlu1 %v9097_v13, %s7561_s5 }
 0x30a   :  { %v1467_v17 = vpop.f32.mrf.mxu1 }
 0x30b   :  { %1515 = vst.msk [vmem:[#allocation2 + $0x169] sm:$0xff] %vm689_vm4, %v1467_v17  ;;  %1659 = vrot.lane.b32.xlu0 %v1589_v23, %s7556_s6 }
 0x30c   :  { %v7123_v48 = vpop.f32.mrf.mxu1 }
 0x30d   :  { %1518 = vst.msk [vmem:[#allocation2 + $0x189] sm:$0xff] %vm689_vm4, %v7123_v48  ;;  %2610 = vrot.lane.b32.xlu1 %v9097_v13, %s7558_s15 }
 0x30e   :  { %v1477_v56 = vpop.f32.mrf.mxu1  ;;  %v9914_v20 = vld [vmem:[#allocation2 + $0x151] sm:$0xff] }
 0x30f   :  { %1517 = vst.msk [vmem:[#allocation2 + $0x181] sm:$0xff] %vm689_vm4, %v1477_v56  ;;  %1851 = vrot.lane.b32.xlu0 %v1781_v43, %s7557_s0  ;;  %v9131_v56 = vpop.permute.xlu1 %2670 }
 0x310   :  { %v3818_v15 = vpop.f32.mrf.mxu1  ;;  %11986 = vst [vmem:[#allocation53_spill] sm:$0xff] %v9131_v56 }
 0x311   :  { %1661 = vrot.lane.b32.xlu1 %v1590_v12, %s7556_s6  ;;  %v3895_v39 = vmul.f32 %v3818_v15, %v3818_v15 }
 0x312   :  { %v7142_v42 = vpop.f32.mrf.mxu1 }
 0x313   :  { %2039 = vrot.lane.b32.xlu0 %v9112_v38, %s7561_s5  ;;  %v9133_v42 = vpop.permute.xlu0 %2668 }
 0x314   :  { %11987 = vst [vmem:[#allocation54_spill] sm:$0xff] %v9133_v42 }
 0x315   :  { %1853 = vrot.lane.b32.xlu1 %v1782_v32, %s7557_s0 }
 0x317   :  { %2231 = vrot.lane.b32.xlu0 %v1589_v23, %s7562_s19 }
 0x319   :  { %2233 = vrot.lane.b32.xlu1 %v1590_v12, %s7562_s19 }
 0x31b   :  { %2423 = vrot.lane.b32.xlu0 %v1781_v43, %s7563_s20 }
 0x31d   :  { %2425 = vrot.lane.b32.xlu1 %v1782_v32, %s7563_s20 }
 0x31f   :  { %2612 = vrot.lane.b32.xlu0 %v9112_v38, %s7558_s15 }
 0x320   :  { %v3891_v28 = vpop.f32.mrf.mxu1 }
 0x321   :  { %v3896_v11 = vsub.f32 %v3891_v28, %v3895_v39  ;;  %2806 = vrot.lane.b32.xlu1 %v1590_v12, %s7559_s16  ;;  %v9141_v12 = vpop.permute.xlu1 %2862  ;;  %v9143_v39 = vpop.permute.xlu0 %2860  ;;  %v1783_v28 = vld [vmem:[#allocation2 + $0x62] sm:$0xff] }
 0x322   :  { %v7161_v17 = vpop.f32.mrf.mxu1  ;;  %11989 = vst [vmem:[#allocation56_spill] sm:$0xff] %v9141_v12  ;;  %11990 = vst [vmem:[#allocation57_spill] sm:$0xff] %v9143_v39 }
 0x323   :  { %v3897_v48 = vmax.f32 %v3896_v11, 0.0  ;;  %2804 = vrot.lane.b32.xlu0 %v1589_v23, %s7559_s16  ;;  %v1591_v23 = vld [vmem:[#allocation2 + $0x61] sm:$0xff]  ;;  %v3900_v11 = vld [vmem:[%s11766_s3] sm:$0x1] }
 0x324   :  { %v9157_v17 = vld [vmem:[#allocation2 + $0x60] sm:$0xff] }
 0x325   :  { %v3898_v36 = vadd.f32 1e-05, %v3897_v48  ;;  %2998 = vrot.lane.b32.xlu1 %v1782_v32, %s7560_s17  ;;  %v1592_v32 = vld [vmem:[#allocation2 + $0x69] sm:$0xff]  ;;  %11993 = vst [vmem:[#allocation60_spill] sm:$0xff] %v9157_v17 }
 0x327   :  { %7255 = vrsqrt.f32 %v3898_v36  ;;  %2996 = vrot.lane.b32.xlu0 %v1781_v43, %s7560_s17  ;;  %v9149_v36 = vpop.permute.xlu1 %3054  ;;  %v9151_v43 = vpop.permute.xlu0 %3052 }
 0x328   :  { %11991 = vst [vmem:[#allocation58_spill] sm:$0xff] %v9149_v36  ;;  %11992 = vst [vmem:[#allocation59_spill] sm:$0xff] %v9151_v43  ;;  %v1790_v36 = vld [vmem:[#allocation2 + $0xb2] sm:$0xff] }
 0x329   :  { %2041 = vrot.lane.b32.xlu1 %v9137_v41, %s7561_s5 }
 0x32b   :  { %1663 = vrot.lane.b32.xlu0 %v1591_v23, %s7556_s6  ;;  %v9162_v51 = vpop.permute.xlu1 %4468  ;;  %v9164_v31 = vpop.permute.xlu0 %4470 }
 0x32c   :  { %11994 = vst [vmem:[#allocation61_spill] sm:$0xff] %v9162_v51  ;;  %11995 = vst [vmem:[#allocation62_spill] sm:$0xff] %v9164_v31 }
 0x32d   :  { %2614 = vrot.lane.b32.xlu1 %v9137_v41, %s7558_s15  ;;  %v9929_v41 = vld [vmem:[#allocation2 + $0x170] sm:$0xff] }
 0x32e   :  { %12160 = vst [vmem:[#allocation203_spill] sm:$0xff] %v9929_v41 }
 0x32f   :  { %1855 = vrot.lane.b32.xlu0 %v1783_v28, %s7557_s0 }
 0x331   :  { %1665 = vrot.lane.b32.xlu1 %v1592_v32, %s7556_s6 }
 0x333   :  { %2043 = vrot.lane.b32.xlu0 %v9157_v17, %s7561_s5 }
 0x334   :  { %v7256_v48 = vpop.eup %7255 }
 0x335   :  { %v3901_v40 = vmul.f32 %v7256_v48, %v3900_v11  ;;  %1857 = vrot.lane.b32.xlu1 %v1784_v62, %s7557_s0  ;;  %v9175_v11 = vpop.permute.xlu1 %4660  ;;  %v9177_v48 = vpop.permute.xlu0 %4662 }
 0x336   :  { %11996 = vst [vmem:[#allocation63_spill] sm:$0xff] %v9175_v11  ;;  %11997 = vst [vmem:[#allocation64_spill] sm:$0xff] %v9177_v48 }
 0x337   :  { %v3903_v53 = vmul.f32 %v3901_v40, %v3818_v15  ;;  %2235 = vrot.lane.b32.xlu0 %v1591_v23, %s7562_s19  ;;  %v9172_v46 = vrot.slane %v3901_v40, %v8614_v55  ;;  %v11998_v15 = vld [vmem:[#allocation20_spill] sm:$0xff] }
 0x339   :  { %v3904_v34 = vsub.f32 %v3902_v5, %v3903_v53  ;;  %2237 = vrot.lane.b32.xlu1 %v1592_v32, %s7562_s19  ;;  %v3909_v31 = vmul.f32 %v9172_v46, %v11998_v15  ;;  %v11999_v53 = vld [vmem:[#allocation19_spill] sm:$0xff]  ;;  %v9189_v40 = vpop.permute.xlu1 %5488  ;;  %v3911_v11 = vmul.f32 %v9172_v46, %v12001_v49 }
 0x33a   :  { %v3910_v5 = vmul.f32 %v9172_v46, %v11999_v53  ;;  %12000 = vst [vmem:[#allocation20_spill] sm:$0xff] %v9189_v40  ;;  %v12006_v53 = vld [vmem:[#allocation22_spill] sm:$0xff]  ;;  %v12007_v49 = vld [vmem:[#allocation23_spill] sm:$0xff] }
 0x33b   :  { %2427 = vrot.lane.b32.xlu0 %v1783_v28, %s7563_s20  ;;  %v9180_v51 = vrot.slane %v3904_v34, %v8614_v55  ;;  %v9200_v34 = vpop.permute.xlu0 %5490  ;;  %v3912_v40 = vmul.f32 %v9172_v46, %v12006_v53 }
 0x33c   :  { %12004 = vst [vmem:[#allocation65_spill] sm:$0xff] %v9200_v34  ;;  %v9280_v34 = vld [vmem:[#allocation2 + $0x7a] sm:$0xff] }
 0x33d   :  { %2429 = vrot.lane.b32.xlu1 %v1784_v62, %s7563_s20  ;;  %v9194_v48 = vadd.f32 %v9180_v51, %v3909_v31  ;;  %v9197_v55 = vadd.f32 %v9180_v51, %v3910_v5  ;;  %v9203_v15 = vadd.f32 %v9180_v51, %v3911_v11  ;;  %v3913_v31 = vmul.f32 %v9172_v46, %v12007_v49 }
 0x33e   :  { %v9218_v11 = vadd.f32 %v9180_v51, %v3912_v40 }
 0x33f   :  { %2616 = vrot.lane.b32.xlu0 %v9157_v17, %s7558_s15  ;;  %12002 = vst [vmem:[#allocation19_spill] sm:$0xff] %v9194_v48  ;;  %12003 = vst [vmem:[#allocation21_spill] sm:$0xff] %v9197_v55  ;;  %7178 = vmatprep.mubr.msk.f32.mxu0 %vm746_vm3, %v9194_v48  ;;  %v9222_v5 = vadd.f32 %v9180_v51, %v3913_v31  ;;  %v9225_v53 = vpop.permute.xlu0 %5682  ;;  %v12017_v31 = vld [vmem:[#allocation26_spill] sm:$0xff] }
 0x340   :  { %12005 = vst [vmem:[#allocation66_spill] sm:$0xff] %v9203_v15  ;;  %7179 = vmatmul.mubr.msk.f32.vlgmr.msra.gmra.mxu0 %vm746_vm3, %v9197_v55  ;;  %12009 = vst [vmem:[#allocation23_spill] sm:$0xff] %v9218_v11  ;;  %v12012_v55 = vld [vmem:[#allocation24_spill] sm:$0xff] }
 0x341   :  { %2810 = vrot.lane.b32.xlu1 %v1592_v32, %s7559_s16  ;;  %7181 = vmatprep.mubr.msk.f32.mxu0 %vm746_vm3, %v9203_v15  ;;  %v9215_v32 = vpop.permute.xlu1 %5680  ;;  %12010 = vst [vmem:[#allocation67_spill] sm:$0xff] %v9222_v5  ;;  %12011 = vst [vmem:[#allocation68_spill] sm:$0xff] %v9225_v53  ;;  %v3914_v49 = vmul.f32 %v9172_v46, %v12012_v55  ;;  %v12013_v15 = vld [vmem:[#allocation25_spill] sm:$0xff] }
 0x342   :  { %12008 = vst [vmem:[#allocation22_spill] sm:$0xff] %v9215_v32  ;;  %v3915_v48 = vmul.f32 %v9172_v46, %v12013_v15  ;;  %v3916_v15 = vmul.f32 %v9172_v46, %v12017_v31  ;;  %v12022_v53 = vld [vmem:[#allocation29_spill] sm:$0xff] }
 0x343   :  { %2808 = vrot.lane.b32.xlu0 %v1591_v23, %s7559_s16  ;;  %v9236_v23 = vadd.f32 %v9180_v51, %v3914_v49  ;;  %v12018_v49 = vld [vmem:[#allocation27_spill] sm:$0xff] }
 0x344   :  { %7182 = vmatmul.mubr.msk.f32.gmra.mxu0 %vm746_vm3, %v9218_v11  ;;  %v9242_v40 = vadd.f32 %v9180_v51, %v3915_v48  ;;  %v3917_v11 = vmul.f32 %v9172_v46, %v12018_v49 }
 0x345   :  { %3002 = vrot.lane.b32.xlu1 %v1784_v62, %s7560_s17  ;;  %7184 = vmatprep.mubr.msk.f32.mxu0 %vm746_vm3, %v9222_v5  ;;  %12014 = vst [vmem:[#allocation24_spill] sm:$0xff] %v9236_v23  ;;  %v9239_v62 = vld [vmem:[#allocation2 + $0x68] sm:$0xff]  ;;  %v9261_v5 = vadd.f32 %v9180_v51, %v3916_v15  ;;  %v3919_v15 = vmul.f32 %v9172_v46, %v12022_v53 }
 0x346   :  { %12015 = vst [vmem:[#allocation25_spill] sm:$0xff] %v9239_v62  ;;  %12016 = vst [vmem:[#allocation69_spill] sm:$0xff] %v9242_v40  ;;  %v9266_v31 = vadd.f32 %v9180_v51, %v3917_v11 }
 0x347   :  { %3000 = vrot.lane.b32.xlu0 %v1783_v28, %s7560_s17  ;;  %v9256_v28 = vld [vmem:[#allocation2 + $0x79] sm:$0xff]  ;;  %12019 = vst [vmem:[#allocation26_spill] sm:$0xff] %v9261_v5  ;;  %v9290_v35 = vadd.f32 %v9180_v51, %v3919_v15 }
 0x348   :  { %7185 = vmatmul.mubr.msk.f32.gmra.mxu0 %vm746_vm3, %v9236_v23  ;;  %12020 = vst [vmem:[#allocation27_spill] sm:$0xff] %v9266_v31  ;;  %v12021_v23 = vld [vmem:[#allocation28_spill] sm:$0xff] }
 0x349   :  { %2045 = vrot.lane.b32.xlu1 %v9239_v62, %s7561_s5  ;;  %7187 = vmatprep.mubr.msk.f32.mxu0 %vm746_vm3, %v9242_v40  ;;  %v3918_v40 = vmul.f32 %v9172_v46, %v12021_v23  ;;  %v1594_v23 = vld [vmem:[#allocation2 + $0x81] sm:$0xff]  ;;  %12024 = vst [vmem:[#allocation29_spill] sm:$0xff] %v9290_v35 }
 0x34b   :  { %v9246_v55 = vpop.permute.xlu1 %1653  ;;  %1667 = vrot.lane.b32.xlu0 %v9256_v28, %s7556_s6  ;;  %v9285_v32 = vadd.f32 %v9180_v51, %v3918_v40  ;;  %v3921_v40 = vmul.f32 %v9172_v46, %v8380_v44 }
 0x34c   :  { %7188 = vmatmul.mubr.msk.f32.gmra.mxu0 %vm746_vm3, %v9261_v5  ;;  %v12025_v5 = vld [vmem:[#allocation30_spill] sm:$0xff] }
 0x34d   :  { %v9258_v48 = vpop.permute.xlu0 %1843  ;;  %2618 = vrot.lane.b32.xlu1 %v9239_v62, %s7558_s15  ;;  %7190 = vmatprep.mubr.msk.f32.mxu0 %vm746_vm3, %v9266_v31  ;;  %12023 = vst [vmem:[#allocation28_spill] sm:$0xff] %v9285_v32  ;;  %v3920_v31 = vmul.f32 %v9172_v46, %v12025_v5  ;;  %12026 = vst [vmem:[#allocation30_spill] sm:$0xff] %v9303_v47  ;;  %v1786_v5 = vld [vmem:[#allocation2 + $0x82] sm:$0xff]  ;;  %v9313_v54 = vadd.f32 %v9180_v51, %v3921_v40 }
 0x34f   :  { %v9270_v49 = vpop.permute.xlu1 %1845  ;;  %1859 = vrot.lane.b32.xlu0 %v9280_v34, %s7557_s0  ;;  %v9308_v45 = vadd.f32 %v9180_v51, %v3920_v31  ;;  %12028 = vst [vmem:[#allocation71_spill] sm:$0xff] %v9313_v54  ;;  %v3923_v31 = vmul.f32 %v9172_v46, %v8508_v50  ;;  %v3924_v50 = vmul.f32 %v9172_v46, %v8524_v6 }
 0x350   :  { %7191 = vmatmul.mubr.msk.f32.gmra.mxu0 %vm746_vm3, %v9285_v32  ;;  %v3922_v32 = vmul.f32 %v9172_v46, %v8497_v29 }
 0x351   :  { %v9282_v11 = vpop.permute.xlu0 %2031  ;;  %1669 = vrot.lane.b32.xlu1 %v1594_v23, %s7556_s6  ;;  %7193 = vmatprep.mubr.msk.f32.mxu0 %vm746_vm3, %v9290_v35  ;;  %12027 = vst [vmem:[#allocation70_spill] sm:$0xff] %v9308_v45  ;;  %v9334_v33 = vadd.f32 %v9180_v51, %v3923_v31  ;;  %v9350_v31 = vadd.f32 %v9180_v51, %v3924_v50 }
 0x352   :  { %v9329_v40 = vadd.f32 %v9180_v51, %v3922_v32  ;;  %v3925_v32 = vmul.f32 %v9172_v46, %v8543_v52  ;;  %v3926_v52 = vmul.f32 %v9172_v46, %v8553_v59  ;;  %v3927_v50 = vmul.f32 %v9172_v46, %v8566_v30 }
 0x353   :  { %v9293_v53 = vpop.permute.xlu1 %2225  ;;  %2047 = vrot.lane.b32.xlu0 %v9303_v47, %s7561_s5  ;;  %12030 = vst [vmem:[#allocation73_spill] sm:$0xff] %v9334_v33  ;;  %12032 = vst [vmem:[#allocation75_spill] sm:$0xff] %v9350_v31  ;;  %v3928_v30 = vmul.f32 %v9172_v46, %v8580_v14 }
 0x354   :  { %7194 = vmatmul.mubr.msk.f32.gmra.mxu0 %vm746_vm3, %v9308_v45  ;;  %12029 = vst [vmem:[#allocation72_spill] sm:$0xff] %v9329_v40 }
 0x355   :  { %v9305_v15 = vpop.permute.xlu0 %2223  ;;  %1861 = vrot.lane.b32.xlu1 %v1786_v5, %s7557_s0  ;;  %7196 = vmatprep.mubr.msk.f32.mxu0 %vm746_vm3, %v9313_v54  ;;  %v9355_v54 = vadd.f32 %v9180_v51, %v3925_v32  ;;  %v9371_v32 = vadd.f32 %v9180_v51, %v3926_v52  ;;  %v3929_v52 = vmul.f32 %v9172_v46, %v8596_v57 }
 0x356   :  { %v3930_v57 = vmul.f32 %v9172_v46, %v8609_v60 }
 0x357   :  { %v9316_v44 = vpop.permute.xlu1 %2417  ;;  %2239 = vrot.lane.b32.xlu0 %v9256_v28, %s7562_s19  ;;  %12033 = vst [vmem:[#allocation76_spill] sm:$0xff] %v9355_v54  ;;  %12035 = vst [vmem:[#allocation78_spill] sm:$0xff] %v9371_v32 }
 0x358   :  { %7197 = vmatmul.mubr.msk.f32.gmra.mxu0 %vm746_vm3, %v9329_v40 }
 0x359   :  { %v9326_v35 = vpop.permute.xlu0 %2415  ;;  %2241 = vrot.lane.b32.xlu1 %v1594_v23, %s7562_s19  ;;  %7199 = vmatprep.mubr.msk.f32.mxu0 %vm746_vm3, %v9334_v33  ;;  %v9376_v33 = vadd.f32 %v9180_v51, %v3927_v50  ;;  %v9392_v50 = vadd.f32 %v9180_v51, %v3928_v30  ;;  %v3931_v30 = vmul.f32 %v9172_v46, %v8626_v37 }
 0x35b   :  { %v9337_v29 = vpop.permute.xlu1 %1651  ;;  %2431 = vrot.lane.b32.xlu0 %v9280_v34, %s7563_s20  ;;  %12036 = vst [vmem:[#allocation79_spill] sm:$0xff] %v9376_v33  ;;  %12037 = vst [vmem:[#allocation80_spill] sm:$0xff] %v9392_v50  ;;  %v9420_v60 = vadd.f32 %v9180_v51, %v3931_v30 }
 0x35c   :  { %7200 = vmatmul.mubr.msk.f32.gmra.mxu0 %vm746_vm3, %v9350_v31 }
 0x35d   :  { %v9347_v45 = vpop.permute.xlu0 %1655  ;;  %2433 = vrot.lane.b32.xlu1 %v1786_v5, %s7563_s20  ;;  %7202 = vmatprep.mubr.msk.f32.mxu0 %vm746_vm3, %v9355_v54  ;;  %12041 = vst [vmem:[#allocation84_spill] sm:$0xff] %v9420_v60 }
 0x35e   :  { %12031 = vst [vmem:[#allocation74_spill] sm:$0xff] %v9347_v45 }
 0x35f   :  { %v9358_v6 = vpop.permute.xlu1 %2033  ;;  %2620 = vrot.lane.b32.xlu0 %v9303_v47, %s7558_s15 }
 0x360   :  { %7203 = vmatmul.mubr.msk.f32.gmra.mxu0 %vm746_vm3, %v9371_v32 }
 0x361   :  { %v9368_v40 = vpop.permute.xlu0 %1847  ;;  %2814 = vrot.lane.b32.xlu1 %v1594_v23, %s7559_s16  ;;  %7205 = vmatprep.mubr.msk.f32.mxu0 %vm746_vm3, %v9376_v33  ;;  %v9397_v23 = vadd.f32 %v9180_v51, %v3929_v52  ;;  %v9413_v52 = vadd.f32 %v9180_v51, %v3930_v57  ;;  %v3933_v57 = vmul.f32 %v9172_v46, %v8666_v27  ;;  %v1596_v33 = vld [vmem:[#allocation2 + $0x99] sm:$0xff] }
 0x362   :  { %12034 = vst [vmem:[#allocation77_spill] sm:$0xff] %v9368_v40  ;;  %v3934_v27 = vmul.f32 %v9172_v46, %v8695_v10 }
 0x363   :  { %v9379_v59 = vpop.permute.xlu1 %1657  ;;  %2812 = vrot.lane.b32.xlu0 %v9256_v28, %s7559_s16  ;;  %12038 = vst [vmem:[#allocation81_spill] sm:$0xff] %v9397_v23  ;;  %12039 = vst [vmem:[#allocation82_spill] sm:$0xff] %v9413_v52 }
 0x364   :  { %7206 = vmatmul.mubr.msk.f32.gmra.mxu0 %vm746_vm3, %v9392_v50  ;;  %v3932_v50 = vmul.f32 %v9172_v46, %v8641_v61 }
 0x365   :  { %v9389_v31 = vpop.permute.xlu0 %2035  ;;  %3006 = vrot.lane.b32.xlu1 %v1786_v5, %s7560_s17  ;;  %7208 = vmatprep.mubr.msk.f32.mxu0 %vm746_vm3, %v9397_v23  ;;  %v9417_v5 = vld [vmem:[#allocation2 + $0x80] sm:$0xff]  ;;  %v9441_v23 = vadd.f32 %v9180_v51, %v3933_v57 }
 0x366   :  { %12040 = vst [vmem:[#allocation83_spill] sm:$0xff] %v9417_v5  ;;  %v9437_v32 = vadd.f32 %v9180_v51, %v3932_v50  ;;  %v3935_v50 = vmul.f32 %v9172_v46, %v8728_v3  ;;  %v3936_v3 = vmul.f32 %v9172_v46, %v8763_v19  ;;  %v1788_v19 = vld [vmem:[#allocation2 + $0x9a] sm:$0xff] }
 0x367   :  { %v9400_v14 = vpop.permute.xlu1 %1849  ;;  %3004 = vrot.lane.b32.xlu0 %v9280_v34, %s7560_s17  ;;  %v1595_v34 = vld [vmem:[#allocation2 + $0x91] sm:$0xff]  ;;  %12043 = vst [vmem:[#allocation86_spill] sm:$0xff] %v9441_v23 }
 0x368   :  { %7209 = vmatmul.mubr.msk.f32.gmra.mxu0 %vm746_vm3, %v9413_v52  ;;  %12042 = vst [vmem:[#allocation85_spill] sm:$0xff] %v9437_v32  ;;  %v1787_v52 = vld [vmem:[#allocation2 + $0x92] sm:$0xff]  ;;  %v9462_v10 = vadd.f32 %v9180_v51, %v3935_v50  ;;  %v9480_v54 = vadd.f32 %v9180_v51, %v3936_v3  ;;  %v3939_v3 = vmul.f32 %v9172_v46, %v8862_v24 }
 0x369   :  { %v9410_v28 = vpop.permute.xlu0 %2227  ;;  %2049 = vrot.lane.b32.xlu1 %v9417_v5, %s7561_s5  ;;  %7211 = vmatprep.mubr.msk.f32.mxu0 %vm746_vm3, %v9420_v60  ;;  %v9458_v60 = vadd.f32 %v9180_v51, %v3934_v27  ;;  %v3937_v27 = vmul.f32 %v9172_v46, %v8802_v16  ;;  %v3940_v24 = vmul.f32 %v9172_v46, %v8883_v58 }
 0x36a   :  { %12045 = vst [vmem:[#allocation88_spill] sm:$0xff] %v9462_v10  ;;  %12047 = vst [vmem:[#allocation90_spill] sm:$0xff] %v9480_v54  ;;  %v9505_v63 = vadd.f32 %v9180_v51, %v3939_v3 }
 0x36b   :  { %v9424_v37 = vpop.permute.xlu1 %2229  ;;  %1671 = vrot.lane.b32.xlu0 %v1595_v34, %s7556_s6  ;;  %12044 = vst [vmem:[#allocation87_spill] sm:$0xff] %v9458_v60  ;;  %v9485_v2 = vadd.f32 %v9180_v51, %v3937_v27 }
 0x36c   :  { %7212 = vmatmul.mubr.msk.f32.gmra.mxu0 %vm746_vm3, %v9437_v32  ;;  %12050 = vst [vmem:[#allocation93_spill] sm:$0xff] %v9505_v63 }
 0x36d   :  { %v9434_v30 = vpop.permute.xlu0 %2419  ;;  %2622 = vrot.lane.b32.xlu1 %v9417_v5, %s7558_s15  ;;  %7214 = vmatprep.mubr.msk.f32.mxu0 %vm746_vm3, %v9441_v23  ;;  %v9475_v23 = vld [vmem:[#allocation2 + $0x90] sm:$0xff]  ;;  %12048 = vst [vmem:[#allocation91_spill] sm:$0xff] %v9485_v2 }
 0x36e   :  { %12046 = vst [vmem:[#allocation89_spill] sm:$0xff] %v9475_v23 }
 0x36f   :  { %v9445_v61 = vpop.permute.xlu1 %2421  ;;  %1863 = vrot.lane.b32.xlu0 %v1787_v52, %s7557_s0 }
 0x370   :  { %7215 = vmatmul.mubr.msk.f32.gmra.mxu0 %vm746_vm3, %v9458_v60 }
 0x371   :  { %v9455_v57 = vpop.permute.xlu0 %2608  ;;  %1673 = vrot.lane.b32.xlu1 %v1596_v33, %s7556_s6  ;;  %7217 = vmatprep.mubr.msk.f32.mxu0 %vm746_vm3, %v9462_v10  ;;  %v3938_v10 = vmul.f32 %v9172_v46, %v8837_v9 }
 0x373   :  { %v9465_v32 = vpop.permute.xlu1 %2802  ;;  %2051 = vrot.lane.b32.xlu0 %v9475_v23, %s7561_s5  ;;  %v9501_v27 = vadd.f32 %v9180_v51, %v3938_v10 }
 0x374   :  { %7218 = vmatmul.mubr.msk.f32.gmra.mxu0 %vm746_vm3, %v9480_v54 }
 0x375   :  { %v9477_v50 = vpop.permute.xlu0 %2800  ;;  %1865 = vrot.lane.b32.xlu1 %v1788_v19, %s7557_s0  ;;  %7220 = vmatprep.mubr.msk.f32.mxu0 %vm746_vm3, %v9485_v2  ;;  %12049 = vst [vmem:[#allocation92_spill] sm:$0xff] %v9501_v27  ;;  %v9519_v2 = vadd.f32 %v9180_v51, %v3940_v24 }
 0x377   :  { %v9488_v16 = vpop.permute.xlu1 %2994  ;;  %2243 = vrot.lane.b32.xlu0 %v1595_v34, %s7562_s19  ;;  %12052 = vst [vmem:[#allocation95_spill] sm:$0xff] %v9519_v2 }
 0x378   :  { %7221 = vmatmul.mubr.msk.f32.gmra.mxu0 %vm746_vm3, %v9501_v27 }
 0x379   :  { %v9498_v60 = vpop.permute.xlu0 %2992  ;;  %2245 = vrot.lane.b32.xlu1 %v1596_v33, %s7562_s19  ;;  %7223 = vmatprep.mubr.msk.f32.mxu0 %vm746_vm3, %v9505_v63  ;;  %v1597_v63 = vld [vmem:[#allocation2 + $0xa9] sm:$0xff] }
 0x37b   :  { %v9508_v9 = vpop.permute.xlu1 %2037  ;;  %2435 = vrot.lane.b32.xlu0 %v1787_v52, %s7563_s20 }
 0x37c   :  { %7224 = vmatmul.mubr.msk.f32.gmra.mxu0 %vm746_vm3, %v9519_v2  ;;  %v9543_v2 = vld [vmem:[#allocation2 + $0x98] sm:$0xff] }
 0x37d   :  { %v9516_v10 = vpop.permute.xlu0 %1659  ;;  %2437 = vrot.lane.b32.xlu1 %v1788_v19, %s7563_s20  ;;  %12058 = vst [vmem:[#allocation101_spill] sm:$0xff] %v9543_v2 }
 0x37e   :  { %12051 = vst [vmem:[#allocation94_spill] sm:$0xff] %v9516_v10 }
 0x37f   :  { %v9523_v3 = vpop.permute.xlu1 %2610  ;;  %2624 = vrot.lane.b32.xlu0 %v9475_v23, %s7558_s15 }
 0x381   :  { %v9527_v46 = vpop.permute.xlu0 %1851  ;;  %2818 = vrot.lane.b32.xlu1 %v1596_v33, %s7559_s16 }
 0x382   :  { %12053 = vst [vmem:[#allocation96_spill] sm:$0xff] %v9527_v46 }
 0x383   :  { %v9532_v58 = vpop.permute.xlu1 %1661  ;;  %2816 = vrot.lane.b32.xlu0 %v1595_v34, %s7559_s16 }
 0x384   :  { %12054 = vst [vmem:[#allocation97_spill] sm:$0xff] %v9532_v58 }
 0x385   :  { %v9534_v51 = vpop.permute.xlu0 %2039  ;;  %3010 = vrot.lane.b32.xlu1 %v1788_v19, %s7560_s17  ;;  %v1789_v19 = vld [vmem:[#allocation2 + $0xaa] sm:$0xff] }
 0x386   :  { %12055 = vst [vmem:[#allocation98_spill] sm:$0xff] %v9534_v51 }
 0x387   :  { %v9538_v24 = vpop.permute.xlu1 %1853  ;;  %3008 = vrot.lane.b32.xlu0 %v1787_v52, %s7560_s17  ;;  %v1598_v52 = vld [vmem:[#allocation2 + $0xb1] sm:$0xff] }
 0x388   :  { %12056 = vst [vmem:[#allocation99_spill] sm:$0xff] %v9538_v24 }
 0x389   :  { %v9540_v27 = vpop.permute.xlu0 %2231  ;;  %2053 = vrot.lane.b32.xlu1 %v9543_v2, %s7561_s5 }
 0x38a   :  { %12057 = vst [vmem:[#allocation100_spill] sm:$0xff] %v9540_v27 }
 0x38b   :  { %v9547_v33 = vpop.permute.xlu1 %2233  ;;  %1675 = vrot.lane.b32.xlu0 %v1597_v63, %s7556_s6 }
 0x38c   :  { %12059 = vst [vmem:[#allocation102_spill] sm:$0xff] %v9547_v33 }
 0x38d   :  { %v9549_v54 = vpop.permute.xlu0 %2423  ;;  %2626 = vrot.lane.b32.xlu1 %v9543_v2, %s7558_s15 }
 0x38e   :  { %12060 = vst [vmem:[#allocation103_spill] sm:$0xff] %v9549_v54 }
 0x38f   :  { %v9554_v34 = vpop.permute.xlu1 %2425  ;;  %1867 = vrot.lane.b32.xlu0 %v1789_v19, %s7557_s0 }
 0x390   :  { %12061 = vst [vmem:[#allocation104_spill] sm:$0xff] %v9554_v34  ;;  %v9892_v34 = vld [vmem:[#allocation2 + $0x139] sm:$0xff] }
 0x391   :  { %v9556_v7 = vpop.permute.xlu0 %2612  ;;  %1677 = vrot.lane.b32.xlu1 %v1598_v52, %s7556_s6 }
 0x393   :  { %v9560_v0 = vpop.permute.xlu1 %2806  ;;  %2055 = vrot.lane.b32.xlu0 %v9562_v4, %s7561_s5 }
 0x395   :  { %v9564_v21 = vpop.permute.xlu0 %2804  ;;  %1869 = vrot.lane.b32.xlu1 %v1790_v36, %s7557_s0 }
 0x397   :  { %v9569_v12 = vpop.permute.xlu1 %2998  ;;  %2247 = vrot.lane.b32.xlu0 %v1597_v63, %s7562_s19 }
 0x399   :  { %v9571_v56 = vpop.permute.xlu0 %2996  ;;  %2249 = vrot.lane.b32.xlu1 %v1598_v52, %s7562_s19 }
 0x39b   :  { %v9575_v43 = vpop.permute.xlu1 %2041  ;;  %2439 = vrot.lane.b32.xlu0 %v1789_v19, %s7563_s20 }
 0x39c   :  { %12063 = vst [vmem:[#allocation106_spill] sm:$0xff] %v9575_v43 }
 0x39d   :  { %v9577_v39 = vpop.permute.xlu0 %1663  ;;  %2441 = vrot.lane.b32.xlu1 %v1790_v36, %s7563_s20 }
 0x39e   :  { %12064 = vst [vmem:[#allocation107_spill] sm:$0xff] %v9577_v39  ;;  %v9618_v39 = vld [vmem:[#allocation2 + $0xc0] sm:$0xff] }
 0x39f   :  { %v9581_v42 = vpop.permute.xlu1 %2614  ;;  %2628 = vrot.lane.b32.xlu0 %v9562_v4, %s7558_s15  ;;  %v1599_v4 = vld [vmem:[#allocation2 + $0xc1] sm:$0xff]  ;;  %12076 = vst [vmem:[#allocation119_spill] sm:$0xff] %v9618_v39 }
 0x3a1   :  { %v9583_v23 = vpop.permute.xlu0 %1855  ;;  %2822 = vrot.lane.b32.xlu1 %v1598_v52, %s7559_s16 }
 0x3a2   :  { %12065 = vst [vmem:[#allocation108_spill] sm:$0xff] %v9583_v23  ;;  %v9599_v23 = vld [vmem:[#allocation2 + $0xb0] sm:$0xff] }
 0x3a3   :  { %v9588_v47 = vpop.permute.xlu1 %1665  ;;  %2820 = vrot.lane.b32.xlu0 %v1597_v63, %s7559_s16  ;;  %12070 = vst [vmem:[#allocation113_spill] sm:$0xff] %v9599_v23 }
 0x3a4   :  { %12066 = vst [vmem:[#allocation109_spill] sm:$0xff] %v9588_v47  ;;  %v9907_v47 = vld [vmem:[#allocation2 + $0x158] sm:$0xff] }
 0x3a5   :  { %v9590_v2 = vpop.permute.xlu0 %2043  ;;  %3014 = vrot.lane.b32.xlu1 %v1790_v36, %s7560_s17  ;;  %v1791_v36 = vld [vmem:[#allocation2 + $0xc2] sm:$0xff]  ;;  %12153 = vst [vmem:[#allocation196_spill] sm:$0xff] %v9907_v47 }
 0x3a6   :  { %12067 = vst [vmem:[#allocation110_spill] sm:$0xff] %v9590_v2 }
 0x3a7   :  { %v9594_v54 = vpop.permute.xlu1 %1857  ;;  %3012 = vrot.lane.b32.xlu0 %v1789_v19, %s7560_s17 }
 0x3a8   :  { %12068 = vst [vmem:[#allocation111_spill] sm:$0xff] %v9594_v54 }
 0x3a9   :  { %v9596_v46 = vpop.permute.xlu0 %2235  ;;  %2057 = vrot.lane.b32.xlu1 %v9599_v23, %s7561_s5 }
 0x3aa   :  { %12069 = vst [vmem:[#allocation112_spill] sm:$0xff] %v9596_v46  ;;  %v1600_v46 = vld [vmem:[#allocation2 + $0xc9] sm:$0xff] }
 0x3ab   :  { %v9603_v52 = vpop.permute.xlu1 %2237  ;;  %1679 = vrot.lane.b32.xlu0 %v1599_v4, %s7556_s6 }
 0x3ac   :  { %12071 = vst [vmem:[#allocation114_spill] sm:$0xff] %v9603_v52 }
 0x3ad   :  { %v9605_v17 = vpop.permute.xlu0 %2427  ;;  %2630 = vrot.lane.b32.xlu1 %v9599_v23, %s7558_s15 }
 0x3ae   :  { %12072 = vst [vmem:[#allocation115_spill] sm:$0xff] %v9605_v17  ;;  %v1792_v17 = vld [vmem:[#allocation2 + $0xca] sm:$0xff] }
 0x3af   :  { %v9610_v63 = vpop.permute.xlu1 %2429  ;;  %1871 = vrot.lane.b32.xlu0 %v1791_v36, %s7557_s0 }
 0x3b0   :  { %12073 = vst [vmem:[#allocation116_spill] sm:$0xff] %v9610_v63 }
 0x3b1   :  { %v9613_v19 = vpop.permute.xlu0 %2616  ;;  %1681 = vrot.lane.b32.xlu1 %v1600_v46, %s7556_s6 }
 0x3b2   :  { %12074 = vst [vmem:[#allocation117_spill] sm:$0xff] %v9613_v19 }
 0x3b3   :  { %v9616_v2 = vpop.permute.xlu1 %2810  ;;  %2059 = vrot.lane.b32.xlu0 %v9618_v39, %s7561_s5 }
 0x3b4   :  { %12075 = vst [vmem:[#allocation118_spill] sm:$0xff] %v9616_v2 }
 0x3b5   :  { %1873 = vrot.lane.b32.xlu1 %v1792_v17, %s7557_s0  ;;  %v9623_v23 = vpop.permute.xlu0 %2808 }
 0x3b6   :  { %12077 = vst [vmem:[#allocation120_spill] sm:$0xff] %v9623_v23 }
 0x3b7   :  { %v9625_v63 = vpop.permute.xlu1 %3002  ;;  %2251 = vrot.lane.b32.xlu0 %v1599_v4, %s7562_s19 }
 0x3b8   :  { %12078 = vst [vmem:[#allocation121_spill] sm:$0xff] %v9625_v63 }
 0x3b9   :  { %2253 = vrot.lane.b32.xlu1 %v1600_v46, %s7562_s19  ;;  %v9629_v19 = vpop.permute.xlu0 %3000 }
 0x3ba   :  { %12079 = vst [vmem:[#allocation122_spill] sm:$0xff] %v9629_v19 }
 0x3bb   :  { %v9631_v52 = vpop.permute.xlu1 %2045  ;;  %2443 = vrot.lane.b32.xlu0 %v1791_v36, %s7563_s20 }
 0x3bc   :  { %12080 = vst [vmem:[#allocation123_spill] sm:$0xff] %v9631_v52 }
 0x3bd   :  { %2445 = vrot.lane.b32.xlu1 %v1792_v17, %s7563_s20  ;;  %v9635_v2 = vpop.permute.xlu0 %1667 }
 0x3be   :  { %12081 = vst [vmem:[#allocation124_spill] sm:$0xff] %v9635_v2  ;;  %v9653_v2 = vld [vmem:[#allocation2 + $0xc8] sm:$0xff] }
 0x3bf   :  { %v9637_v27 = vpop.permute.xlu1 %2618  ;;  %2632 = vrot.lane.b32.xlu0 %v9618_v39, %s7558_s15  ;;  %12087 = vst [vmem:[#allocation130_spill] sm:$0xff] %v9653_v2 }
 0x3c0   :  { %12082 = vst [vmem:[#allocation125_spill] sm:$0xff] %v9637_v27 }
 0x3c1   :  { %2826 = vrot.lane.b32.xlu1 %v1600_v46, %s7559_s16  ;;  %v9642_v63 = vpop.permute.xlu0 %1859 }
 0x3c2   :  { %12083 = vst [vmem:[#allocation126_spill] sm:$0xff] %v9642_v63  ;;  %v1601_v63 = vld [vmem:[#allocation2 + $0xd9] sm:$0xff] }
 0x3c3   :  { %v9644_v23 = vpop.permute.xlu1 %1669  ;;  %2824 = vrot.lane.b32.xlu0 %v1599_v4, %s7559_s16 }
 0x3c4   :  { %12084 = vst [vmem:[#allocation127_spill] sm:$0xff] %v9644_v23 }
 0x3c5   :  { %3018 = vrot.lane.b32.xlu1 %v1792_v17, %s7560_s17  ;;  %v9648_v19 = vpop.permute.xlu0 %2047 }
 0x3c6   :  { %12085 = vst [vmem:[#allocation128_spill] sm:$0xff] %v9648_v19  ;;  %v1602_v19 = vld [vmem:[#allocation2 + $0xe1] sm:$0xff] }
 0x3c7   :  { %v9650_v38 = vpop.permute.xlu1 %1861  ;;  %3016 = vrot.lane.b32.xlu0 %v1791_v36, %s7560_s17  ;;  %v1793_v36 = vld [vmem:[#allocation2 + $0xda] sm:$0xff] }
 0x3c8   :  { %12086 = vst [vmem:[#allocation129_spill] sm:$0xff] %v9650_v38 }
 0x3c9   :  { %2061 = vrot.lane.b32.xlu1 %v9653_v2, %s7561_s5  ;;  %v9657_v46 = vpop.permute.xlu0 %2239 }
 0x3ca   :  { %12088 = vst [vmem:[#allocation131_spill] sm:$0xff] %v9657_v46 }
 0x3cb   :  { %v9659_v39 = vpop.permute.xlu1 %2241  ;;  %1683 = vrot.lane.b32.xlu0 %v1601_v63, %s7556_s6 }
 0x3cc   :  { %12089 = vst [vmem:[#allocation132_spill] sm:$0xff] %v9659_v39  ;;  %v9674_v39 = vld [vmem:[#allocation2 + $0xd8] sm:$0xff] }
 0x3cd   :  { %2634 = vrot.lane.b32.xlu1 %v9653_v2, %s7558_s15  ;;  %v9664_v4 = vpop.permute.xlu0 %2431  ;;  %12094 = vst [vmem:[#allocation137_spill] sm:$0xff] %v9674_v39  ;;  %v1794_v2 = vld [vmem:[#allocation2 + $0xe2] sm:$0xff] }
 0x3ce   :  { %12090 = vst [vmem:[#allocation133_spill] sm:$0xff] %v9664_v4 }
 0x3cf   :  { %v9666_v17 = vpop.permute.xlu1 %2433  ;;  %1875 = vrot.lane.b32.xlu0 %v1793_v36, %s7557_s0 }
 0x3d0   :  { %12091 = vst [vmem:[#allocation134_spill] sm:$0xff] %v9666_v17 }
 0x3d1   :  { %1685 = vrot.lane.b32.xlu1 %v1602_v19, %s7556_s6  ;;  %v9670_v38 = vpop.permute.xlu0 %2620 }
 0x3d2   :  { %12092 = vst [vmem:[#allocation135_spill] sm:$0xff] %v9670_v38 }
 0x3d3   :  { %v9672_v46 = vpop.permute.xlu1 %2814  ;;  %2063 = vrot.lane.b32.xlu0 %v9674_v39, %s7561_s5 }
 0x3d4   :  { %12093 = vst [vmem:[#allocation136_spill] sm:$0xff] %v9672_v46 }
 0x3d5   :  { %1877 = vrot.lane.b32.xlu1 %v1794_v2, %s7557_s0  ;;  %v9679_v4 = vpop.permute.xlu0 %2812 }
 0x3d6   :  { %12095 = vst [vmem:[#allocation138_spill] sm:$0xff] %v9679_v4 }
 0x3d7   :  { %v9681_v17 = vpop.permute.xlu1 %3006  ;;  %2255 = vrot.lane.b32.xlu0 %v1601_v63, %s7562_s19 }
 0x3d8   :  { %12096 = vst [vmem:[#allocation139_spill] sm:$0xff] %v9681_v17 }
 0x3d9   :  { %2257 = vrot.lane.b32.xlu1 %v1602_v19, %s7562_s19  ;;  %v9685_v27 = vpop.permute.xlu0 %3004 }
 0x3da   :  { %12097 = vst [vmem:[#allocation140_spill] sm:$0xff] %v9685_v27 }
 0x3db   :  { %v9687_v38 = vpop.permute.xlu1 %2049  ;;  %2447 = vrot.lane.b32.xlu0 %v1793_v36, %s7563_s20 }
 0x3dc   :  { %12098 = vst [vmem:[#allocation141_spill] sm:$0xff] %v9687_v38 }
 0x3dd   :  { %2449 = vrot.lane.b32.xlu1 %v1794_v2, %s7563_s20  ;;  %v9691_v46 = vpop.permute.xlu0 %1671 }
 0x3de   :  { %12099 = vst [vmem:[#allocation142_spill] sm:$0xff] %v9691_v46  ;;  %v9709_v46 = vld [vmem:[#allocation2 + $0xe0] sm:$0xff] }
 0x3df   :  { %v9693_v10 = vpop.permute.xlu1 %2622  ;;  %2636 = vrot.lane.b32.xlu0 %v9674_v39, %s7558_s15  ;;  %12105 = vst [vmem:[#allocation148_spill] sm:$0xff] %v9709_v46 }
 0x3e0   :  { %12100 = vst [vmem:[#allocation143_spill] sm:$0xff] %v9693_v10 }
 0x3e1   :  { %2830 = vrot.lane.b32.xlu1 %v1602_v19, %s7559_s16  ;;  %v9698_v17 = vpop.permute.xlu0 %1863 }
 0x3e2   :  { %12101 = vst [vmem:[#allocation144_spill] sm:$0xff] %v9698_v17  ;;  %v1603_v17 = vld [vmem:[#allocation2 + $0xf1] sm:$0xff] }
 0x3e3   :  { %v9700_v4 = vpop.permute.xlu1 %1673  ;;  %2828 = vrot.lane.b32.xlu0 %v1601_v63, %s7559_s16 }
 0x3e4   :  { %12102 = vst [vmem:[#allocation145_spill] sm:$0xff] %v9700_v4 }
 0x3e5   :  { %3022 = vrot.lane.b32.xlu1 %v1794_v2, %s7560_s17  ;;  %v9704_v27 = vpop.permute.xlu0 %2051 }
 0x3e6   :  { %12103 = vst [vmem:[#allocation146_spill] sm:$0xff] %v9704_v27  ;;  %v1604_v27 = vld [vmem:[#allocation2 + $0xf9] sm:$0xff] }
 0x3e7   :  { %v9706_v38 = vpop.permute.xlu1 %1865  ;;  %3020 = vrot.lane.b32.xlu0 %v1793_v36, %s7560_s17  ;;  %v1795_v36 = vld [vmem:[#allocation2 + $0xf2] sm:$0xff] }
 0x3e8   :  { %12104 = vst [vmem:[#allocation147_spill] sm:$0xff] %v9706_v38 }
 0x3e9   :  { %2065 = vrot.lane.b32.xlu1 %v9709_v46, %s7561_s5  ;;  %v9713_v19 = vpop.permute.xlu0 %2243 }
 0x3ea   :  { %12106 = vst [vmem:[#allocation149_spill] sm:$0xff] %v9713_v19 }
 0x3eb   :  { %v9715_v39 = vpop.permute.xlu1 %2245  ;;  %1687 = vrot.lane.b32.xlu0 %v1603_v17, %s7556_s6 }
 0x3ec   :  { %12107 = vst [vmem:[#allocation150_spill] sm:$0xff] %v9715_v39  ;;  %v9730_v39 = vld [vmem:[#allocation2 + $0xf0] sm:$0xff] }
 0x3ed   :  { %2638 = vrot.lane.b32.xlu1 %v9709_v46, %s7558_s15  ;;  %v9720_v2 = vpop.permute.xlu0 %2435  ;;  %12112 = vst [vmem:[#allocation155_spill] sm:$0xff] %v9730_v39  ;;  %v1796_v46 = vld [vmem:[#allocation2 + $0xfa] sm:$0xff] }
 0x3ee   :  { %12108 = vst [vmem:[#allocation151_spill] sm:$0xff] %v9720_v2 }
 0x3ef   :  { %v9722_v63 = vpop.permute.xlu1 %2437  ;;  %1879 = vrot.lane.b32.xlu0 %v1795_v36, %s7557_s0 }
 0x3f0   :  { %12109 = vst [vmem:[#allocation152_spill] sm:$0xff] %v9722_v63 }
 0x3f1   :  { %1689 = vrot.lane.b32.xlu1 %v1604_v27, %s7556_s6  ;;  %v9726_v10 = vpop.permute.xlu0 %2624 }
 0x3f2   :  { %12110 = vst [vmem:[#allocation153_spill] sm:$0xff] %v9726_v10 }
 0x3f3   :  { %v9728_v19 = vpop.permute.xlu1 %2818  ;;  %2067 = vrot.lane.b32.xlu0 %v9730_v39, %s7561_s5 }
 0x3f4   :  { %12111 = vst [vmem:[#allocation154_spill] sm:$0xff] %v9728_v19 }
 0x3f5   :  { %1881 = vrot.lane.b32.xlu1 %v1796_v46, %s7557_s0  ;;  %v9735_v2 = vpop.permute.xlu0 %2816 }
 0x3f6   :  { %12113 = vst [vmem:[#allocation156_spill] sm:$0xff] %v9735_v2 }
 0x3f7   :  { %v9737_v63 = vpop.permute.xlu1 %3010  ;;  %2259 = vrot.lane.b32.xlu0 %v1603_v17, %s7562_s19 }
 0x3f8   :  { %12114 = vst [vmem:[#allocation157_spill] sm:$0xff] %v9737_v63 }
 0x3f9   :  { %2261 = vrot.lane.b32.xlu1 %v1604_v27, %s7562_s19  ;;  %v9741_v38 = vpop.permute.xlu0 %3008 }
 0x3fa   :  { %12115 = vst [vmem:[#allocation158_spill] sm:$0xff] %v9741_v38 }
 0x3fb   :  { %v9743_v10 = vpop.permute.xlu1 %2053  ;;  %2451 = vrot.lane.b32.xlu0 %v1795_v36, %s7563_s20 }
 0x3fc   :  { %12116 = vst [vmem:[#allocation159_spill] sm:$0xff] %v9743_v10 }
 0x3fd   :  { %2453 = vrot.lane.b32.xlu1 %v1796_v46, %s7563_s20  ;;  %v9747_v19 = vpop.permute.xlu0 %1675 }
 0x3fe   :  { %12117 = vst [vmem:[#allocation160_spill] sm:$0xff] %v9747_v19 }
 0x3ff   :  { %v9749_v4 = vpop.permute.xlu1 %2626  ;;  %2640 = vrot.lane.b32.xlu0 %v9730_v39, %s7558_s15 }
 0x400   :  { %12118 = vst [vmem:[#allocation161_spill] sm:$0xff] %v9749_v4  ;;  %v7180_v63 = vpop.f32.mrf.mxu0 }
 0x401   :  { %2834 = vrot.lane.b32.xlu1 %v1604_v27, %s7559_s16  ;;  %v9754_v2 = vpop.permute.xlu0 %1867  ;;  %4309 = vst.msk [vmem:[#allocation2 + $0x21] sm:$0xff] %vm689_vm4, %v7180_v63  ;;  %v9768_v63 = vld [vmem:[#allocation2 + $0xf8] sm:$0xff] }
 0x402   :  { %12119 = vst [vmem:[#allocation162_spill] sm:$0xff] %v9754_v2  ;;  %v4149_v10 = vpop.f32.mrf.mxu0  ;;  %12123 = vst [vmem:[#allocation166_spill] sm:$0xff] %v9768_v63 }
 0x403   :  { %v9757_v38 = vpop.permute.xlu1 %1677  ;;  %2832 = vrot.lane.b32.xlu0 %v1603_v17, %s7559_s16  ;;  %4308 = vst.msk [vmem:[#allocation2 + $0x19] sm:$0xff] %vm689_vm4, %v4149_v10 }
 0x404   :  { %12120 = vst [vmem:[#allocation163_spill] sm:$0xff] %v9757_v38  ;;  %v7183_v19 = vpop.f32.mrf.mxu0 }
 0x405   :  { %3026 = vrot.lane.b32.xlu1 %v1796_v46, %s7560_s17  ;;  %v9762_v4 = vpop.permute.xlu0 %2055  ;;  %4311 = vst.msk [vmem:[#allocation2 + $0x39] sm:$0xff] %vm689_vm4, %v7183_v19  ;;  %v1605_v19 = vld [vmem:[#allocation2 + $0x109] sm:$0xff] }
 0x406   :  { %12121 = vst [vmem:[#allocation164_spill] sm:$0xff] %v9762_v4  ;;  %v4159_v39 = vpop.f32.mrf.mxu0 }
 0x407   :  { %v9765_v27 = vpop.permute.xlu1 %1869  ;;  %3024 = vrot.lane.b32.xlu0 %v1795_v36, %s7560_s17  ;;  %4310 = vst.msk [vmem:[#allocation2 + $0x31] sm:$0xff] %vm689_vm4, %v4159_v39 }
 0x408   :  { %12122 = vst [vmem:[#allocation165_spill] sm:$0xff] %v9765_v27  ;;  %v7186_v10 = vpop.f32.mrf.mxu0 }
 0x409   :  { %2069 = vrot.lane.b32.xlu1 %v9768_v63, %s7561_s5  ;;  %v9773_v17 = vpop.permute.xlu0 %2247  ;;  %4313 = vst.msk [vmem:[#allocation2 + $0x51] sm:$0xff] %vm689_vm4, %v7186_v10 }
 0x40a   :  { %12124 = vst [vmem:[#allocation167_spill] sm:$0xff] %v9773_v17  ;;  %v4169_v2 = vpop.f32.mrf.mxu0  ;;  %v1797_v17 = vld [vmem:[#allocation2 + $0x10a] sm:$0xff] }
 0x40b   :  { %v9776_v46 = vpop.permute.xlu1 %2249  ;;  %1691 = vrot.lane.b32.xlu0 %v1605_v19, %s7556_s6  ;;  %4312 = vst.msk [vmem:[#allocation2 + $0x49] sm:$0xff] %vm689_vm4, %v4169_v2 }
 0x40c   :  { %12125 = vst [vmem:[#allocation168_spill] sm:$0xff] %v9776_v46  ;;  %v7189_v39 = vpop.f32.mrf.mxu0  ;;  %v1606_v46 = vld [vmem:[#allocation2 + $0x111] sm:$0xff] }
 0x40d   :  { %2642 = vrot.lane.b32.xlu1 %v9768_v63, %s7558_s15  ;;  %v9782_v36 = vpop.permute.xlu0 %2439  ;;  %4315 = vst.msk [vmem:[#allocation2 + $0x69] sm:$0xff] %vm689_vm4, %v7189_v39 }
 0x40e   :  { %12126 = vst [vmem:[#allocation169_spill] sm:$0xff] %v9782_v36  ;;  %v4179_v10 = vpop.f32.mrf.mxu0  ;;  %v9795_v36 = vld [vmem:[#allocation2 + $0x108] sm:$0xff] }
 0x40f   :  { %v9785_v4 = vpop.permute.xlu1 %2441  ;;  %1883 = vrot.lane.b32.xlu0 %v1797_v17, %s7557_s0  ;;  %4314 = vst.msk [vmem:[#allocation2 + $0x61] sm:$0xff] %vm689_vm4, %v4179_v10  ;;  %12130 = vst [vmem:[#allocation173_spill] sm:$0xff] %v9795_v36 }
 0x410   :  { %12127 = vst [vmem:[#allocation170_spill] sm:$0xff] %v9785_v4  ;;  %v7192_v2 = vpop.f32.mrf.mxu0  ;;  %v1798_v4 = vld [vmem:[#allocation2 + $0x112] sm:$0xff] }
 0x411   :  { %1693 = vrot.lane.b32.xlu1 %v1606_v46, %s7556_s6  ;;  %v9790_v27 = vpop.permute.xlu0 %2628  ;;  %4317 = vst.msk [vmem:[#allocation2 + $0x81] sm:$0xff] %vm689_vm4, %v7192_v2 }
 0x412   :  { %12128 = vst [vmem:[#allocation171_spill] sm:$0xff] %v9790_v27  ;;  %v4189_v39 = vpop.f32.mrf.mxu0 }
 0x413   :  { %v9793_v63 = vpop.permute.xlu1 %2822  ;;  %2071 = vrot.lane.b32.xlu0 %v9795_v36, %s7561_s5  ;;  %4316 = vst.msk [vmem:[#allocation2 + $0x79] sm:$0xff] %vm689_vm4, %v4189_v39 }
 0x414   :  { %12129 = vst [vmem:[#allocation172_spill] sm:$0xff] %v9793_v63  ;;  %v7195_v10 = vpop.f32.mrf.mxu0 }
 0x415   :  { %1885 = vrot.lane.b32.xlu1 %v1798_v4, %s7557_s0  ;;  %v9801_v38 = vpop.permute.xlu0 %2820  ;;  %4319 = vst.msk [vmem:[#allocation2 + $0x99] sm:$0xff] %vm689_vm4, %v7195_v10 }
 0x416   :  { %12131 = vst [vmem:[#allocation174_spill] sm:$0xff] %v9801_v38  ;;  %v4199_v2 = vpop.f32.mrf.mxu0 }
 0x417   :  { %v9804_v27 = vpop.permute.xlu1 %3014  ;;  %2263 = vrot.lane.b32.xlu0 %v1605_v19, %s7562_s19  ;;  %4318 = vst.msk [vmem:[#allocation2 + $0x91] sm:$0xff] %vm689_vm4, %v4199_v2 }
 0x418   :  { %12132 = vst [vmem:[#allocation175_spill] sm:$0xff] %v9804_v27  ;;  %v7198_v63 = vpop.f32.mrf.mxu0 }
 0x419   :  { %2265 = vrot.lane.b32.xlu1 %v1606_v46, %s7562_s19  ;;  %v9809_v5 = vpop.permute.xlu0 %3012  ;;  %4321 = vst.msk [vmem:[#allocation2 + $0xb1] sm:$0xff] %vm689_vm4, %v7198_v63 }
 0x41a   :  { %12133 = vst [vmem:[#allocation176_spill] sm:$0xff] %v9809_v5  ;;  %v4209_v23 = vpop.f32.mrf.mxu0 }
 0x41b   :  { %v9812_v39 = vpop.permute.xlu1 %2057  ;;  %2455 = vrot.lane.b32.xlu0 %v1797_v17, %s7563_s20  ;;  %4320 = vst.msk [vmem:[#allocation2 + $0xa9] sm:$0xff] %vm689_vm4, %v4209_v23 }
 0x41c   :  { %12134 = vst [vmem:[#allocation177_spill] sm:$0xff] %v9812_v39  ;;  %v7201_v10 = vpop.f32.mrf.mxu0  ;;  %v9881_v39 = vld [vmem:[#allocation2 + $0x13a] sm:$0xff] }
 0x41d   :  { %2457 = vrot.lane.b32.xlu1 %v1798_v4, %s7563_s20  ;;  %v9817_v38 = vpop.permute.xlu0 %1679  ;;  %4323 = vst.msk [vmem:[#allocation2 + $0xc9] sm:$0xff] %vm689_vm4, %v7201_v10 }
 0x41e   :  { %12135 = vst [vmem:[#allocation178_spill] sm:$0xff] %v9817_v38  ;;  %v4219_v27 = vpop.f32.mrf.mxu0 }
 0x41f   :  { %v9819_v2 = vpop.permute.xlu1 %2630  ;;  %2644 = vrot.lane.b32.xlu0 %v9795_v36, %s7558_s15  ;;  %4322 = vst.msk [vmem:[#allocation2 + $0xc1] sm:$0xff] %vm689_vm4, %v4219_v27 }
 0x420   :  { %12136 = vst [vmem:[#allocation179_spill] sm:$0xff] %v9819_v2  ;;  %v7204_v63 = vpop.f32.mrf.mxu0 }
 0x421   :  { %2838 = vrot.lane.b32.xlu1 %v1606_v46, %s7559_s16  ;;  %v9826_v5 = vpop.permute.xlu0 %1871  ;;  %4325 = vst.msk [vmem:[#allocation2 + $0xe1] sm:$0xff] %vm689_vm4, %v7204_v63  ;;  %v9849_v63 = vld [vmem:[#allocation2 + $0x121] sm:$0xff] }
 0x422   :  { %12137 = vst [vmem:[#allocation180_spill] sm:$0xff] %v9826_v5  ;;  %v4229_v38 = vpop.f32.mrf.mxu0  ;;  %v9840_v5 = vld [vmem:[#allocation2 + $0x110] sm:$0xff] }
 0x423   :  { %v9828_v23 = vpop.permute.xlu1 %1681  ;;  %2836 = vrot.lane.b32.xlu0 %v1605_v19, %s7559_s16  ;;  %4324 = vst.msk [vmem:[#allocation2 + $0xd9] sm:$0xff] %vm689_vm4, %v4229_v38  ;;  %12141 = vst [vmem:[#allocation184_spill] sm:$0xff] %v9840_v5 }
 0x424   :  { %12138 = vst [vmem:[#allocation181_spill] sm:$0xff] %v9828_v23  ;;  %v7207_v10 = vpop.f32.mrf.mxu0 }
 0x425   :  { %3030 = vrot.lane.b32.xlu1 %v1798_v4, %s7560_s17  ;;  %v9834_v36 = vpop.permute.xlu0 %2059  ;;  %4327 = vst.msk [vmem:[#allocation2 + $0xf9] sm:$0xff] %vm689_vm4, %v7207_v10 }
 0x426   :  { %12139 = vst [vmem:[#allocation182_spill] sm:$0xff] %v9834_v36  ;;  %v4239_v27 = vpop.f32.mrf.mxu0 }
 0x427   :  { %v9836_v46 = vpop.permute.xlu1 %1873  ;;  %3028 = vrot.lane.b32.xlu0 %v1797_v17, %s7560_s17  ;;  %4326 = vst.msk [vmem:[#allocation2 + $0xf1] sm:$0xff] %vm689_vm4, %v4239_v27  ;;  %v9856_v17 = vld [vmem:[#allocation2 + $0x129] sm:$0xff] }
 0x428   :  { %12140 = vst [vmem:[#allocation183_spill] sm:$0xff] %v9836_v46  ;;  %v7210_v4 = vpop.f32.mrf.mxu0  ;;  %v9865_v46 = vld [vmem:[#allocation2 + $0x128] sm:$0xff] }
 0x429   :  { %2073 = vrot.lane.b32.xlu1 %v9840_v5, %s7561_s5  ;;  %v9845_v19 = vpop.permute.xlu0 %2251  ;;  %4329 = vst.msk [vmem:[#allocation2 + $0x111] sm:$0xff] %vm689_vm4, %v7210_v4  ;;  %12145 = vst [vmem:[#allocation188_spill] sm:$0xff] %v9865_v46 }
 0x42a   :  { %12142 = vst [vmem:[#allocation185_spill] sm:$0xff] %v9845_v19  ;;  %v4249_v10 = vpop.f32.mrf.mxu0  ;;  %v9861_v19 = vld [vmem:[#allocation2 + $0x122] sm:$0xff] }
 0x42b   :  { %v9847_v38 = vpop.permute.xlu1 %2253  ;;  %1695 = vrot.lane.b32.xlu0 %v9849_v63, %s7556_s6  ;;  %4328 = vst.msk [vmem:[#allocation2 + $0x109] sm:$0xff] %vm689_vm4, %v4249_v10  ;;  %v9876_v10 = vld [vmem:[#allocation2 + $0x141] sm:$0xff] }
 0x42c   :  { %12143 = vst [vmem:[#allocation186_spill] sm:$0xff] %v9847_v38  ;;  %v7213_v27 = vpop.f32.mrf.mxu0  ;;  %v9863_v38 = vld [vmem:[#allocation2 + $0x12a] sm:$0xff] }
 0x42d   :  { %2646 = vrot.lane.b32.xlu1 %v9840_v5, %s7558_s15  ;;  %v9859_v36 = vpop.permute.xlu0 %2443  ;;  %4331 = vst.msk [vmem:[#allocation2 + $0x129] sm:$0xff] %vm689_vm4, %v7213_v27  ;;  %v9872_v5 = vld [vmem:[#allocation2 + $0x120] sm:$0xff] }
 0x42e   :  { %12144 = vst [vmem:[#allocation187_spill] sm:$0xff] %v9859_v36  ;;  %v4259_v23 = vpop.f32.mrf.mxu0  ;;  %12147 = vst [vmem:[#allocation190_spill] sm:$0xff] %v9872_v5  ;;  %v9885_v27 = vld [vmem:[#allocation2 + $0x140] sm:$0xff] }
 0x42f   :  { %v9867_v4 = vpop.permute.xlu1 %2445  ;;  %1887 = vrot.lane.b32.xlu0 %v9861_v19, %s7557_s0  ;;  %4330 = vst.msk [vmem:[#allocation2 + $0x121] sm:$0xff] %vm689_vm4, %v4259_v23  ;;  %12149 = vst [vmem:[#allocation192_spill] sm:$0xff] %v9885_v27  ;;  %v9894_v23 = vld [vmem:[#allocation2 + $0x138] sm:$0xff] }
 0x430   :  { %12146 = vst [vmem:[#allocation189_spill] sm:$0xff] %v9867_v4  ;;  %v7216_v36 = vpop.f32.mrf.mxu0  ;;  %v9883_v4 = vld [vmem:[#allocation2 + $0x142] sm:$0xff]  ;;  %12151 = vst [vmem:[#allocation194_spill] sm:$0xff] %v9894_v23 }
 0x431   :  { %1697 = vrot.lane.b32.xlu1 %v9856_v17, %s7556_s6  ;;  %v9879_v2 = vpop.permute.xlu0 %2632  ;;  %4333 = vst.msk [vmem:[#allocation2 + $0x141] sm:$0xff] %vm689_vm4, %v7216_v36  ;;  %v9905_v36 = vld [vmem:[#allocation2 + $0x15a] sm:$0xff] }
 0x432   :  { %12148 = vst [vmem:[#allocation191_spill] sm:$0xff] %v9879_v2  ;;  %v4269_v51 = vpop.f32.mrf.mxu0  ;;  %v9898_v2 = vld [vmem:[#allocation2 + $0x159] sm:$0xff] }
 0x433   :  { %v9887_v54 = vpop.permute.xlu1 %2826  ;;  %2075 = vrot.lane.b32.xlu0 %v9872_v5, %s7561_s5  ;;  %4332 = vst.msk [vmem:[#allocation2 + $0x139] sm:$0xff] %vm689_vm4, %v4269_v51  ;;  %v9916_v51 = vld [vmem:[#allocation2 + $0x150] sm:$0xff] }
 0x434   :  { %12150 = vst [vmem:[#allocation193_spill] sm:$0xff] %v9887_v54  ;;  %v7219_v52 = vpop.f32.mrf.mxu0  ;;  %v9903_v54 = vld [vmem:[#allocation2 + $0x152] sm:$0xff]  ;;  %12155 = vst [vmem:[#allocation198_spill] sm:$0xff] %v9916_v51 }
 0x435   :  { %1889 = vrot.lane.b32.xlu1 %v9863_v38, %s7557_s0  ;;  %v9901_v62 = vpop.permute.xlu0 %2824  ;;  %4335 = vst.msk [vmem:[#allocation2 + $0x159] sm:$0xff] %vm689_vm4, %v7219_v52  ;;  %v9927_v52 = vld [vmem:[#allocation2 + $0x172] sm:$0xff] }
 0x436   :  { %12152 = vst [vmem:[#allocation195_spill] sm:$0xff] %v9901_v62  ;;  %v4279_v24 = vpop.f32.mrf.mxu0  ;;  %v9920_v62 = vld [vmem:[#allocation2 + $0x171] sm:$0xff]  ;;  %12159 = vst [vmem:[#allocation202_spill] sm:$0xff] %v9927_v52 }
 0x437   :  { %v9909_v40 = vpop.permute.xlu1 %3018  ;;  %2267 = vrot.lane.b32.xlu0 %v9849_v63, %s7562_s19  ;;  %12156 = vst [vmem:[#allocation199_spill] sm:$0xff] %v9920_v62  ;;  %4334 = vst.msk [vmem:[#allocation2 + $0x151] sm:$0xff] %vm689_vm4, %v4279_v24  ;;  %v9936_v62 = vld [vmem:[#allocation2 + $0x169] sm:$0xff] }
 0x438   :  { %12154 = vst [vmem:[#allocation197_spill] sm:$0xff] %v9909_v40  ;;  %v7222_v45 = vpop.f32.mrf.mxu0  ;;  %v9925_v40 = vld [vmem:[#allocation2 + $0x16a] sm:$0xff] }
 0x439   :  { %2269 = vrot.lane.b32.xlu1 %v9856_v17, %s7562_s19  ;;  %v9923_v33 = vpop.permute.xlu0 %3016  ;;  %12158 = vst [vmem:[#allocation201_spill] sm:$0xff] %v9925_v40  ;;  %4337 = vst.msk [vmem:[#allocation2 + $0x171] sm:$0xff] %vm689_vm4, %v7222_v45  ;;  %v9938_v24 = vld [vmem:[#allocation2 + $0x168] sm:$0xff] }
 0x43a   :  { %12157 = vst [vmem:[#allocation200_spill] sm:$0xff] %v9923_v33  ;;  %v4289_v47 = vpop.f32.mrf.mxu0  ;;  %12162 = vst [vmem:[#allocation205_spill] sm:$0xff] %v9938_v24  ;;  %v9942_v33 = vld [vmem:[#allocation2 + $0x189] sm:$0xff] }
 0x43b   :  { %v9931_v58 = vpop.permute.xlu1 %2061  ;;  %2459 = vrot.lane.b32.xlu0 %v9861_v19, %s7563_s20  ;;  %12163 = vst [vmem:[#allocation206_spill] sm:$0xff] %v9942_v33  ;;  %4336 = vst.msk [vmem:[#allocation2 + $0x169] sm:$0xff] %vm689_vm4, %v4289_v47  ;;  %v9949_v45 = vld [vmem:[#allocation2 + $0x18a] sm:$0xff]  ;;  %v9958_v33 = vld [vmem:[#allocation2 + $0x180] sm:$0xff] }
 0x43c   :  { %12161 = vst [vmem:[#allocation204_spill] sm:$0xff] %v9931_v58  ;;  %v7225_v41 = vpop.f32.mrf.mxu0  ;;  %v9947_v58 = vld [vmem:[#allocation2 + $0x182] sm:$0xff]  ;;  %12166 = vst [vmem:[#allocation209_spill] sm:$0xff] %v9949_v45 }
 0x43d   :  { %2461 = vrot.lane.b32.xlu1 %v9863_v38, %s7563_s20  ;;  %v9945_v52 = vpop.permute.xlu0 %1683  ;;  %12165 = vst [vmem:[#allocation208_spill] sm:$0xff] %v9947_v58  ;;  %v9951_v40 = vld [vmem:[#allocation2 + $0x188] sm:$0xff] }
 0x43e   :  { %12164 = vst [vmem:[#allocation207_spill] sm:$0xff] %v9945_v52  ;;  %12167 = vst [vmem:[#allocation210_spill] sm:$0xff] %v9951_v40  ;;  %v4299_v24 = vpop.f32.mrf.mxu0  ;;  %v9960_v47 = vld [vmem:[#allocation2 + $0x181] sm:$0xff] }
 0x43f   :  { %v9953_v43 = vpop.permute.xlu1 %2634  ;;  %4339 = vst.msk [vmem:[#allocation2 + $0x189] sm:$0xff] %vm689_vm4, %v7225_v41  ;;  %2648 = vrot.lane.b32.xlu0 %v9872_v5, %s7558_s15  ;;  %12168 = vst [vmem:[#allocation211_spill] sm:$0xff] %v9960_v47  ;;  %v1519_v47 = vld [vmem:[#allocation2] sm:$0xff] }
 0x440   :  { %4338 = vst.msk [vmem:[#allocation2 + $0x181] sm:$0xff] %vm689_vm4, %v4299_v24 }
 0x441   :  { %2842 = vrot.lane.b32.xlu1 %v9856_v17, %s7559_s16  ;;  %v9965_v45 = vpop.permute.xlu0 %1875 }
 0x442   :  { %12169 = vst [vmem:[#allocation212_spill] sm:$0xff] %v9965_v45 }
 0x443   :  { %v9967_v40 = vpop.permute.xlu1 %1685  ;;  %2840 = vrot.lane.b32.xlu0 %v9849_v63, %s7559_s16 }
 0x445   :  { %3034 = vrot.lane.b32.xlu1 %v9863_v38, %s7560_s17  ;;  %v9973_v41 = vpop.permute.xlu0 %2063  ;;  %v7564_v38 = vmov 0  }
 0x446   :  { %12170 = vst [vmem:[#allocation213_spill] sm:$0xff] %v9973_v41  ;;  %7251 = vset.pattern.permute.xlu0 %v7564_v38  ;;  %7252 = vset.pattern.permute.xlu1 %v7564_v38 }
 0x447   :  { %v9975_v5 = vpop.permute.xlu1 %1877  ;;  %3032 = vrot.lane.b32.xlu0 %v9861_v19, %s7560_s17 }
 0x449   :  { %2077 = vrot.lane.b32.xlu1 %v9865_v46, %s7561_s5  ;;  %v9981_v17 = vpop.permute.xlu0 %2255 }
 0x44a   :  { %12171 = vst [vmem:[#allocation214_spill] sm:$0xff] %v9981_v17 }
 0x44b   :  { %v9983_v24 = vpop.permute.xlu1 %2257  ;;  %1699 = vrot.lane.b32.xlu0 %v9892_v34, %s7556_s6 }
 0x44d   :  { %2650 = vrot.lane.b32.xlu1 %v9865_v46, %s7558_s15  ;;  %v9989_v63 = vpop.permute.xlu0 %2447 }
 0x44e   :  { %12172 = vst [vmem:[#allocation215_spill] sm:$0xff] %v9989_v63 }
 0x44f   :  { %v9991_v58 = vpop.permute.xlu1 %2449  ;;  %1891 = vrot.lane.b32.xlu0 %v9881_v39, %s7557_s0 }
 0x451   :  { %1701 = vrot.lane.b32.xlu1 %v9876_v10, %s7556_s6  ;;  %v9997_v19 = vpop.permute.xlu0 %2636 }
 0x452   :  { %12173 = vst [vmem:[#allocation216_spill] sm:$0xff] %v9997_v19 }
 0x453   :  { %v9999_v17 = vpop.permute.xlu1 %2830  ;;  %2079 = vrot.lane.b32.xlu0 %v9894_v23, %s7561_s5 }
 0x454   :  { %12174 = vst [vmem:[#allocation217_spill] sm:$0xff] %v9999_v17 }
 0x455   :  { %1893 = vrot.lane.b32.xlu1 %v9883_v4, %s7557_s0  ;;  %v10005_v46 = vpop.permute.xlu0 %2828 }
 0x456   :  { %12175 = vst [vmem:[#allocation218_spill] sm:$0xff] %v10005_v46  ;;  %v1520_v46 = vld [vmem:[#allocation2 + $0x8] sm:$0xff] }
 0x457   :  { %v10007_v38 = vpop.permute.xlu1 %3022  ;;  %2271 = vrot.lane.b32.xlu0 %v9892_v34, %s7562_s19 }
 0x458   :  { %12176 = vst [vmem:[#allocation219_spill] sm:$0xff] %v10007_v38 }
 0x459   :  { %2273 = vrot.lane.b32.xlu1 %v9876_v10, %s7562_s19  ;;  %v10013_v63 = vpop.permute.xlu0 %3020 }
 0x45a   :  { %12177 = vst [vmem:[#allocation220_spill] sm:$0xff] %v10013_v63  ;;  %v1744_v63 = vadd.f32 %v9118_v8, %v1520_v46  ;;  %v1743_v8 = vadd.f32 %v9110_v1, %v1519_v47 }
 0x45b   :  { %v10015_v19 = vpop.permute.xlu1 %2065  ;;  %2463 = vrot.lane.b32.xlu0 %v9881_v39, %s7563_s20 }
 0x45c   :  { %v1935_v1 = vadd.f32 %v9125_v25, %v1743_v8 }
 0x45d   :  { %2465 = vrot.lane.b32.xlu1 %v9883_v4, %s7563_s20  ;;  %v10021_v45 = vpop.permute.xlu0 %1687 }
 0x45e   :  { %12178 = vst [vmem:[#allocation221_spill] sm:$0xff] %v10021_v45  ;;  %v1746_v45 = vadd.f32 %v9062_v18, %v9246_v55 }
 0x45f   :  { %v10023_v38 = vpop.permute.xlu1 %2638  ;;  %2652 = vrot.lane.b32.xlu0 %v9894_v23, %s7558_s15  ;;  %v1936_v23 = vadd.f32 %v9123_v22, %v1744_v63  ;;  %v1745_v22 = vadd.f32 %v9045_v26, %v9337_v29 }
 0x460   :  { %v1938_v46 = vadd.f32 %v9270_v49, %v1746_v45 }
 0x461   :  { %2846 = vrot.lane.b32.xlu1 %v9876_v10, %s7559_s16  ;;  %v10030_v41 = vpop.permute.xlu0 %1879  ;;  %v1937_v26 = vadd.f32 %v9258_v48, %v1745_v22 }
 0x462   :  { %12179 = vst [vmem:[#allocation222_spill] sm:$0xff] %v10030_v41  ;;  %v2128_v41 = vadd.f32 %v9358_v6, %v1936_v23  ;;  %v2130_v18 = vadd.f32 %v9508_v9, %v1938_v46  ;;  %v2127_v6 = vadd.f32 %v9282_v11, %v1935_v1 }
 0x463   :  { %v10032_v52 = vpop.permute.xlu1 %1689  ;;  %2844 = vrot.lane.b32.xlu0 %v9892_v34, %s7559_s16 }
 0x464   :  { %v2320_v49 = vadd.f32 %v9293_v53, %v2128_v41  ;;  %v2322_v9 = vadd.f32 %v9424_v37, %v2130_v18  ;;  %v2319_v25 = vadd.f32 %v9305_v15, %v2127_v6 }
 0x465   :  { %3038 = vrot.lane.b32.xlu1 %v9883_v4, %s7560_s17  ;;  %v10041_v17 = vpop.permute.xlu0 %2067  ;;  %v2129_v4 = vadd.f32 %v9389_v31, %v1937_v26 }
 0x466   :  { %v2512_v53 = vadd.f32 %v9316_v44, %v2320_v49  ;;  %v2511_v11 = vadd.f32 %v9326_v35, %v2319_v25  ;;  %v2514_v48 = vadd.f32 %v9445_v61, %v2322_v9  ;;  %v1748_v9 = vadd.f32 %v9097_v13, %v9379_v59  ;;  %v12185_v13 = vld [vmem:[#allocation196_spill] sm:$0xff]  ;;  %v12186_v59 = vld [vmem:[#allocation97_spill] sm:$0xff] }
 0x467   :  { %v10043_v10 = vpop.permute.xlu1 %1881  ;;  %3036 = vrot.lane.b32.xlu0 %v9881_v39, %s7560_s17  ;;  %v2321_v15 = vadd.f32 %v9410_v28, %v2129_v4  ;;  %v12184_v4 = vld [vmem:[#allocation106_spill] sm:$0xff] }
 0x468   :  { %v2705_v37 = vadd.f32 %v9523_v3, %v2512_v53  ;;  %v2704_v44 = vadd.f32 %v9455_v57, %v2511_v11  ;;  %v2707_v47 = vadd.f32 %v9581_v42, %v2514_v48  ;;  %v1940_v25 = vadd.f32 %v9400_v14, %v1748_v9  ;;  %v12188_v48 = vld [vmem:[#allocation102_spill] sm:$0xff]  ;;  %v12201_v9 = vld [vmem:[#allocation111_spill] sm:$0xff] }
 0x469   :  { %2081 = vrot.lane.b32.xlu1 %v9885_v27, %s7561_s5  ;;  %v10053_v55 = vpop.permute.xlu0 %2259  ;;  %v2513_v31 = vadd.f32 %v9434_v30, %v2321_v15  ;;  %v10108_v30 = vstv %s11770_s7  ;;  %s7565_s7 = smov 64  }
 0x46a   :  { %v2896_v35 = vadd.f32 %v9477_v50, %v2704_v44  ;;  %v2897_v61 = vadd.f32 %v9465_v32, %v2705_v37  ;;  %v2899_v57 = vadd.f32 %v9560_v0, %v2707_v47  ;;  %v2132_v11 = vadd.f32 %v12184_v4, %v1940_v25  ;;  %v12189_v44 = vld [vmem:[#allocation74_spill] sm:$0xff]  ;;  %v12190_v47 = vld [vmem:[#allocation51_spill] sm:$0xff] }
 0x46b   :  { %v10057_v34 = vpop.permute.xlu1 %2261  ;;  %1703 = vrot.lane.b32.xlu0 %v9914_v20, %s7556_s6  ;;  %v2706_v28 = vadd.f32 %v9556_v7, %v2513_v31  ;;  %v1747_v31 = vadd.f32 %v12190_v47, %v12189_v44  ;;  %v12202_v25 = vld [vmem:[#allocation127_spill] sm:$0xff]  ;;  %v12207_v44 = vld [vmem:[#allocation125_spill] sm:$0xff] }
 0x46c   :  { %v3088_v42 = vadd.f32 %v9498_v60, %v2896_v35  ;;  %v3089_v7 = vadd.f32 %v9488_v16, %v2897_v61  ;;  %v3091_v8 = vadd.f32 %v9569_v12, %v2899_v57  ;;  %v2324_v15 = vadd.f32 %v12188_v48, %v2132_v11  ;;  %v12191_v35 = vld [vmem:[#allocation99_spill] sm:$0xff]  ;;  %v12194_v57 = vld [vmem:[#allocation109_spill] sm:$0xff] }
 0x46d   :  { %2654 = vrot.lane.b32.xlu1 %v9885_v27, %s7558_s15  ;;  %v10067_v39 = vpop.permute.xlu0 %2451  ;;  %v2898_v32 = vadd.f32 %v9564_v21, %v2706_v28  ;;  %v12193_v28 = vld [vmem:[#allocation77_spill] sm:$0xff]  ;;  %v12203_v4 = vld [vmem:[#allocation83_spill] sm:$0xff] }
 0x46e   :  { %v3121_v63 = vadd.f32 %v10108_v30, %v3088_v42  ;;  %v3122_v21 = vadd.f32 %v10108_v30, %v3089_v7  ;;  %v3124_v22 = vadd.f32 %v10108_v30, %v3091_v8  ;;  %v1939_v42 = vadd.f32 %v12193_v28, %v1747_v31  ;;  %v12209_v28 = vld [vmem:[#allocation114_spill] sm:$0xff]  ;;  %v12221_v27 = vld [vmem:[#allocation145_spill] sm:$0xff] }
 0x46f   :  { %v10070_v29 = vpop.permute.xlu1 %2453  ;;  %1895 = vrot.lane.b32.xlu0 %v9903_v54, %s7557_s0  ;;  %v3090_v60 = vadd.f32 %v9571_v56, %v2898_v32  ;;  %v12195_v32 = vld [vmem:[#allocation25_spill] sm:$0xff]  ;;  %v1754_v11 = vadd.f32 %v12203_v4, %v12202_v25  ;;  %v12212_v25 = vld [vmem:[#allocation107_spill] sm:$0xff]  ;;  %v12213_v4 = vld [vmem:[#allocation60_spill] sm:$0xff] }
 0x470   :  { %v6633_v56 = vmul.f32 -1.442695, %v3121_v63  ;;  %v6634_v12 = vmul.f32 -1.442695, %v3122_v21  ;;  %v6636_v26 = vmul.f32 -1.442695, %v3124_v22  ;;  %v1752_v7 = vadd.f32 %v12195_v32, %v12194_v57 }
 0x471   :  { %1705 = vrot.lane.b32.xlu1 %v9898_v2, %s7556_s6  ;;  %v10082_v23 = vpop.permute.xlu0 %2640  ;;  %v3123_v16 = vadd.f32 %v10108_v30, %v3090_v60  ;;  %v12196_v60 = vld [vmem:[#allocation123_spill] sm:$0xff]  ;;  %v12198_v21 = vld [vmem:[#allocation104_spill] sm:$0xff]  ;;  %v12210_v57 = vld [vmem:[#allocation129_spill] sm:$0xff] }
 0x472   :  { %7257 = vpow2.f32 %v6633_v56  ;;  %v12199_v56 = vld [vmem:[#allocation201_spill] sm:$0xff]  ;;  %v1946_v32 = vadd.f32 %v12210_v57, %v1754_v11  ;;  %v12218_v11 = vld [vmem:[#allocation202_spill] sm:$0xff]  ;;  %v12219_v57 = vld [vmem:[#allocation108_spill] sm:$0xff] }
 0x473   :  { %v10085_v45 = vpop.permute.xlu1 %2834  ;;  %2083 = vrot.lane.b32.xlu0 %v9916_v51, %s7561_s5  ;;  %v6635_v49 = vmul.f32 -1.442695, %v3123_v16  ;;  %7259 = vpow2.f32 %v6634_v12  ;;  %v2516_v16 = vadd.f32 %v12198_v21, %v2324_v15  ;;  %v12200_v12 = vld [vmem:[#allocation98_spill] sm:$0xff] }
 0x475   :  { %1897 = vrot.lane.b32.xlu1 %v9905_v36, %s7557_s0  ;;  %v10096_v3 = vpop.permute.xlu0 %2832  ;;  %7261 = vpow2.f32 %v6635_v49  ;;  %v2131_v49 = vadd.f32 %v12200_v12, %v1939_v42  ;;  %v2709_v47 = vadd.f32 %v12207_v44, %v2516_v16  ;;  %v12214_v16 = vld [vmem:[#allocation205_spill] sm:$0xff]  ;;  %v12215_v44 = vld [vmem:[#allocation96_spill] sm:$0xff] }
 0x476   :  { %7263 = vpow2.f32 %v6636_v26  ;;  %v1944_v26 = vadd.f32 %v12201_v9, %v1752_v7  ;;  %v12211_v7 = vld [vmem:[#allocation141_spill] sm:$0xff] }
 0x477   :  { %v10099_v41 = vpop.permute.xlu1 %3026  ;;  %2275 = vrot.lane.b32.xlu0 %v9914_v20, %s7562_s19 }
 0x479   :  { %2277 = vrot.lane.b32.xlu1 %v9898_v2, %s7562_s19  ;;  %v10114_v50 = vpop.permute.xlu0 %3024 }
 0x47b   :  { %v10117_v0 = vpop.permute.xlu1 %2069  ;;  %2467 = vrot.lane.b32.xlu0 %v9903_v54, %s7563_s20 }
 0x47d   :  { %2469 = vrot.lane.b32.xlu1 %v9905_v36, %s7563_s20  ;;  %v10126_v46 = vpop.permute.xlu0 %1691 }
 0x47e   :  { %12180 = vst [vmem:[#allocation223_spill] sm:$0xff] %v10126_v46  ;;  %v12227_v46 = vld [vmem:[#allocation110_spill] sm:$0xff] }
 0x47f   :  { %v10129_v18 = vpop.permute.xlu1 %2642  ;;  %2656 = vrot.lane.b32.xlu0 %v9916_v51, %s7558_s15  ;;  %v7258_v22 = vpop.eup %7257 }
 0x480   :  { %v7260_v31 = vpop.eup %7259  ;;  %v3249_v9 = vadd.f32 1.0, %v7258_v22  ;;  %v12220_v22 = vld [vmem:[#allocation118_spill] sm:$0xff] }
 0x481   :  { %2850 = vrot.lane.b32.xlu1 %v9898_v2, %s7559_s16  ;;  %v10136_v1 = vpop.permute.xlu0 %1883  ;;  %v2901_v51 = vadd.f32 %v12220_v22, %v2709_v47 }
 0x482   :  { %12181 = vst [vmem:[#allocation224_spill] sm:$0xff] %v10136_v1  ;;  %v7262_v12 = vpop.eup %7261  ;;  %v12224_v1 = vld [vmem:[#allocation117_spill] sm:$0xff]  ;;  %7265 = vrcp.f32 %v3249_v9 }
 0x483   :  { %v10138_v6 = vpop.permute.xlu1 %1693  ;;  %2848 = vrot.lane.b32.xlu0 %v9914_v20, %s7559_s16 }
 0x484   :  { %12182 = vst [vmem:[#allocation225_spill] sm:$0xff] %v10138_v6  ;;  %v3251_v6 = vadd.f32 1.0, %v7262_v12  ;;  %v12230_v12 = vld [vmem:[#allocation128_spill] sm:$0xff] }
 0x485   :  { %3042 = vrot.lane.b32.xlu1 %v9905_v36, %s7560_s17  ;;  %v10147_v2 = vpop.permute.xlu0 %2071  ;;  %v12187_v36 = vld [vmem:[#allocation55_spill] sm:$0xff] }
 0x486   :  { %v1750_v14 = vadd.f32 %v12187_v36, %v12186_v59  ;;  %v12204_v59 = vld [vmem:[#allocation199_spill] sm:$0xff]  ;;  %v12205_v36 = vld [vmem:[#allocation94_spill] sm:$0xff] }
 0x487   :  { %v10149_v53 = vpop.permute.xlu1 %1885  ;;  %3040 = vrot.lane.b32.xlu0 %v9903_v54, %s7560_s17 }
 0x488   :  { %12183 = vst [vmem:[#allocation226_spill] sm:$0xff] %v10149_v53  ;;  %v1942_v54 = vadd.f32 %v12191_v35, %v1750_v14  ;;  %v12206_v14 = vld [vmem:[#allocation52_spill] sm:$0xff] }
 0x489   :  { %2085 = vrot.lane.b32.xlu1 %v12185_v13, %s7561_s5  ;;  %v10156_v20 = vpop.permute.xlu0 %2263  ;;  %v1749_v48 = vadd.f32 %v12206_v14, %v12205_v36  ;;  %v12208_v35 = vld [vmem:[#allocation100_spill] sm:$0xff]  ;;  %v1751_v36 = vadd.f32 %v12213_v4, %v12212_v25  ;;  %v7264_v14 = vpop.eup %7263  ;;  %v12222_v25 = vld [vmem:[#allocation101_spill] sm:$0xff] }
 0x48a   :  { %v2134_v63 = vadd.f32 %v12196_v60, %v1942_v54  ;;  %v2323_v54 = vadd.f32 %v12208_v35, %v2131_v49  ;;  %v2136_v60 = vadd.f32 %v12211_v7, %v1944_v26  ;;  %v12216_v49 = vld [vmem:[#allocation103_spill] sm:$0xff]  ;;  %v3250_v26 = vadd.f32 1.0, %v7260_v31 }
 0x48b   :  { %v10160_v37 = vpop.permute.xlu1 %2265  ;;  %1707 = vrot.lane.b32.xlu0 %v9936_v62, %s7556_s6  ;;  %v1943_v7 = vadd.f32 %v12219_v57, %v1751_v36  ;;  %v1756_v4 = vadd.f32 %v12222_v25, %v12221_v27  ;;  %v3252_v31 = vadd.f32 1.0, %v7264_v14  ;;  %v12228_v57 = vld [vmem:[#allocation147_spill] sm:$0xff]  ;;  %v12229_v27 = vld [vmem:[#allocation120_spill] sm:$0xff]  ;;  %v12235_v14 = vld [vmem:[#allocation177_spill] sm:$0xff] }
 0x48c   :  { %v2326_v42 = vadd.f32 %v12209_v28, %v2134_v63  ;;  %v2515_v35 = vadd.f32 %v12216_v49, %v2323_v54  ;;  %v12217_v63 = vld [vmem:[#allocation159_spill] sm:$0xff]  ;;  %v12226_v49 = vld [vmem:[#allocation116_spill] sm:$0xff]  ;;  %7267 = vrcp.f32 %v3250_v26 }
 0x48d   :  { %2658 = vrot.lane.b32.xlu1 %v12185_v13, %s7558_s15  ;;  %v10170_v61 = vpop.permute.xlu0 %2455  ;;  %v1941_v13 = vadd.f32 %v12215_v44, %v1749_v48  ;;  %v2138_v28 = vadd.f32 %v12217_v63, %v1946_v32  ;;  %v12225_v44 = vld [vmem:[#allocation132_spill] sm:$0xff]  ;;  %v1948_v47 = vadd.f32 %v12228_v57, %v1756_v4  ;;  %v2135_v25 = vadd.f32 %v12230_v12, %v1943_v7  ;;  %v12238_v7 = vld [vmem:[#allocation131_spill] sm:$0xff] }
 0x48e   :  { %12192 = vst [vmem:[#allocation106_spill] sm:$0xff] %v10170_v61  ;;  %v2708_v48 = vadd.f32 %v12224_v1, %v2515_v35  ;;  %v2328_v54 = vadd.f32 %v12225_v44, %v2136_v60  ;;  %v2518_v32 = vadd.f32 %v12226_v49, %v2326_v42  ;;  %v12231_v1 = vld [vmem:[#allocation143_spill] sm:$0xff]  ;;  %v12232_v60 = vld [vmem:[#allocation150_spill] sm:$0xff]  ;;  %v12233_v42 = vld [vmem:[#allocation112_spill] sm:$0xff]  ;;  %7269 = vrcp.f32 %v3251_v6 }
 0x48f   :  { %v10176_v8 = vpop.permute.xlu1 %2457  ;;  %1899 = vrot.lane.b32.xlu0 %v12199_v56, %s7557_s0  ;;  %v2133_v36 = vadd.f32 %v12227_v46, %v1941_v13  ;;  %v2330_v44 = vadd.f32 %v12232_v60, %v2138_v28  ;;  %v12234_v46 = vld [vmem:[#allocation121_spill] sm:$0xff]  ;;  %v2140_v4 = vadd.f32 %v12235_v14, %v1948_v47  ;;  %7271 = vrcp.f32 %v3252_v31  ;;  %v12241_v60 = vld [vmem:[#allocation124_spill] sm:$0xff] }
 0x490   :  { %12197 = vst [vmem:[#allocation97_spill] sm:$0xff] %v10176_v8  ;;  %v2900_v22 = vadd.f32 %v12229_v27, %v2708_v48  ;;  %v2711_v35 = vadd.f32 %v12231_v1, %v2518_v32  ;;  %v3093_v13 = vadd.f32 %v12234_v46, %v2901_v51  ;;  %v12237_v48 = vld [vmem:[#allocation122_spill] sm:$0xff]  ;;  %v2327_v27 = vadd.f32 %v12238_v7, %v2135_v25  ;;  %v12240_v1 = vld [vmem:[#allocation115_spill] sm:$0xff]  ;;  %v12244_v46 = vld [vmem:[#allocation113_spill] sm:$0xff] }
 0x491   :  { %1709 = vrot.lane.b32.xlu1 %v12204_v59, %s7556_s6  ;;  %v10190_v15 = vpop.permute.xlu0 %2644  ;;  %v2325_v9 = vadd.f32 %v12233_v42, %v2133_v36  ;;  %v12239_v32 = vld [vmem:[#allocation134_spill] sm:$0xff]  ;;  %v12243_v51 = vld [vmem:[#allocation163_spill] sm:$0xff]  ;;  %v12245_v6 = vld [vmem:[#allocation133_spill] sm:$0xff] }
 0x492   :  { %v3092_v57 = vadd.f32 %v12237_v48, %v2900_v22  ;;  %v2520_v12 = vadd.f32 %v12239_v32, %v2328_v54  ;;  %v12242_v36 = vld [vmem:[#allocation30_spill] sm:$0xff]  ;;  %v1758_v47 = vadd.f32 %v12244_v46, %v12243_v51  ;;  %v2519_v22 = vadd.f32 %v12245_v6, %v2327_v27  ;;  %v12246_v14 = vld [vmem:[#allocation136_spill] sm:$0xff]  ;;  %v12247_v48 = vld [vmem:[#allocation161_spill] sm:$0xff] }
 0x493   :  { %v10196_v21 = vpop.permute.xlu1 %2838  ;;  %2087 = vrot.lane.b32.xlu0 %v12214_v16, %s7561_s5  ;;  %v2517_v26 = vadd.f32 %v12240_v1, %v2325_v9  ;;  %v1753_v42 = vadd.f32 %v12242_v36, %v12241_v60  ;;  %v2903_v25 = vadd.f32 %v12246_v14, %v2711_v35  ;;  %v12248_v7 = vld [vmem:[#allocation152_spill] sm:$0xff]  ;;  %v3126_v31 = vadd.f32 %v10108_v30, %v3093_v13  ;;  %v12249_v9 = vld [vmem:[#allocation135_spill] sm:$0xff]  ;;  %v12250_v60 = vld [vmem:[#allocation165_spill] sm:$0xff] }
 0x494   :  { %v2713_v54 = vadd.f32 %v12247_v48, %v2520_v12  ;;  %v2522_v32 = vadd.f32 %v12248_v7, %v2330_v44  ;;  %v1950_v36 = vadd.f32 %v12250_v60, %v1758_v47  ;;  %v12251_v51 = vld [vmem:[#allocation168_spill] sm:$0xff]  ;;  %v3125_v27 = vadd.f32 %v10108_v30, %v3092_v57  ;;  %v12253_v35 = vld [vmem:[#allocation126_spill] sm:$0xff]  ;;  %v12254_v12 = vld [vmem:[#allocation153_spill] sm:$0xff] }
 0x495   :  { %1901 = vrot.lane.b32.xlu1 %v12218_v11, %s7557_s0  ;;  %v10211_v53 = vpop.permute.xlu0 %2836  ;;  %v2710_v1 = vadd.f32 %v12249_v9, %v2517_v26  ;;  %v2332_v46 = vadd.f32 %v12251_v51, %v2140_v4  ;;  %v1945_v6 = vadd.f32 %v12253_v35, %v1753_v42  ;;  %v2712_v14 = vadd.f32 %v12254_v12, %v2519_v22  ;;  %v12255_v44 = vld [vmem:[#allocation179_spill] sm:$0xff]  ;;  %v12256_v8 = vld [vmem:[#allocation138_spill] sm:$0xff]  ;;  %v12258_v26 = vld [vmem:[#allocation89_spill] sm:$0xff] }
 0x496   :  { %12223 = vst [vmem:[#allocation55_spill] sm:$0xff] %v10211_v53  ;;  %v2715_v48 = vadd.f32 %v12255_v44, %v2522_v32  ;;  %v12257_v53 = vld [vmem:[#allocation142_spill] sm:$0xff]  ;;  %v12259_v47 = vld [vmem:[#allocation181_spill] sm:$0xff]  ;;  %v12261_v51 = vld [vmem:[#allocation204_spill] sm:$0xff] }
 0x497   :  { %v10216_v63 = vpop.permute.xlu1 %3030  ;;  %2279 = vrot.lane.b32.xlu0 %v9936_v62, %s7562_s19  ;;  %v2902_v13 = vadd.f32 %v12256_v8, %v2710_v1  ;;  %v1755_v9 = vadd.f32 %v12258_v26, %v12257_v53  ;;  %v12260_v60 = vld [vmem:[#allocation130_spill] sm:$0xff]  ;;  %v12262_v57 = vld [vmem:[#allocation139_spill] sm:$0xff]  ;;  %v12264_v32 = vld [vmem:[#allocation156_spill] sm:$0xff]  ;;  %v6638_v53 = vmul.f32 -1.442695, %v3126_v31 }
 0x498   :  { %v1760_v4 = vadd.f32 %v12260_v60, %v12259_v47  ;;  %v3095_v42 = vadd.f32 %v12262_v57, %v2903_v25  ;;  %v12263_v22 = vld [vmem:[#allocation146_spill] sm:$0xff]  ;;  %v2904_v12 = vadd.f32 %v12264_v32, %v2712_v14  ;;  %v12266_v8 = vld [vmem:[#allocation140_spill] sm:$0xff]  ;;  %v12267_v26 = vld [vmem:[#allocation183_spill] sm:$0xff] }
 0x499   :  { %2281 = vrot.lane.b32.xlu1 %v12204_v59, %s7562_s19  ;;  %v10231_v49 = vpop.permute.xlu0 %3028  ;;  %v2137_v35 = vadd.f32 %v12263_v22, %v1945_v6  ;;  %v12265_v44 = vld [vmem:[#allocation154_spill] sm:$0xff]  ;;  %v3094_v1 = vadd.f32 %v12266_v8, %v2902_v13  ;;  %v12270_v57 = vld [vmem:[#allocation149_spill] sm:$0xff]  ;;  %v12272_v32 = vld [vmem:[#allocation172_spill] sm:$0xff]  ;;  %7273 = vpow2.f32 %v6638_v53 }
 0x49a   :  { %12236 = vst [vmem:[#allocation102_spill] sm:$0xff] %v10231_v49  ;;  %v2905_v61 = vadd.f32 %v12265_v44, %v2713_v54  ;;  %v1952_v47 = vadd.f32 %v12267_v26, %v1760_v4  ;;  %v12271_v22 = vld [vmem:[#allocation158_spill] sm:$0xff]  ;;  %v2907_v54 = vadd.f32 %v12272_v32, %v2715_v48  ;;  %v12274_v4 = vld [vmem:[#allocation148_spill] sm:$0xff] }
 0x49b   :  { %v10236_v28 = vpop.permute.xlu1 %2073  ;;  %2471 = vrot.lane.b32.xlu0 %v12199_v56, %s7563_s20  ;;  %v2329_v6 = vadd.f32 %v12270_v57, %v2137_v35  ;;  %v3096_v14 = vadd.f32 %v12271_v22, %v2904_v12  ;;  %v1762_v8 = vadd.f32 %v12274_v4, %v9967_v40  ;;  %v12275_v35 = vld [vmem:[#allocation151_spill] sm:$0xff]  ;;  %v12276_v12 = vld [vmem:[#allocation157_spill] sm:$0xff]  ;;  %v3127_v40 = vadd.f32 %v10108_v30, %v3094_v1 }
 0x49c   :  { %v3097_v26 = vadd.f32 %v12276_v12, %v2905_v61  ;;  %v12279_v61 = vld [vmem:[#allocation171_spill] sm:$0xff]  ;;  %v12282_v1 = vld [vmem:[#allocation189_spill] sm:$0xff] }
 0x49d   :  { %2473 = vrot.lane.b32.xlu1 %v12218_v11, %s7563_s20  ;;  %v10255_v49 = vpop.permute.xlu0 %1695  ;;  %v2521_v48 = vadd.f32 %v12275_v35, %v2329_v6  ;;  %v12283_v35 = vld [vmem:[#allocation160_spill] sm:$0xff] }
 0x49e   :  { %12252 = vst [vmem:[#allocation74_spill] sm:$0xff] %v10255_v49  ;;  %v2142_v49 = vadd.f32 %v12261_v51, %v1950_v36  ;;  %v12268_v36 = vld [vmem:[#allocation170_spill] sm:$0xff]  ;;  %v3130_v12 = vadd.f32 %v10108_v30, %v3097_v26 }
 0x49f   :  { %v10261_v7 = vpop.permute.xlu1 %2646  ;;  %2660 = vrot.lane.b32.xlu0 %v12214_v16, %s7558_s15  ;;  %v2524_v60 = vadd.f32 %v12268_v36, %v2332_v46  ;;  %v12269_v16 = vld [vmem:[#allocation144_spill] sm:$0xff]  ;;  %v2144_v46 = vadd.f32 %v10015_v19, %v1952_v47  ;;  %v1954_v19 = vadd.f32 %v9975_v5, %v1762_v8  ;;  %v2714_v6 = vadd.f32 %v12279_v61, %v2521_v48 }
 0x4a0   :  { %v1947_v25 = vadd.f32 %v12269_v16, %v1755_v9  ;;  %v10295_v16 = vpop.eup %7265  ;;  %v3128_v9 = vadd.f32 %v10108_v30, %v3095_v42  ;;  %v12277_v36 = vld [vmem:[#allocation164_spill] sm:$0xff]  ;;  %v3129_v42 = vadd.f32 %v10108_v30, %v3096_v14 }
 0x4a1   :  { %2854 = vrot.lane.b32.xlu1 %v12204_v59, %s7559_s16  ;;  %v10280_v51 = vpop.permute.xlu0 %1887  ;;  %v12273_v59 = vld [vmem:[#allocation186_spill] sm:$0xff]  ;;  %v2717_v13 = vadd.f32 %v9953_v43, %v2524_v60  ;;  %v6637_v43 = vmul.f32 -1.442695, %v3125_v27  ;;  %v10307_v47 = vpop.eup %7267  ;;  %v12278_v60 = vld [vmem:[#allocation167_spill] sm:$0xff]  ;;  %v12281_v27 = vld [vmem:[#allocation193_spill] sm:$0xff]  ;;  %v2336_v5 = vadd.f32 %v9983_v24, %v2144_v46  ;;  %v2146_v4 = vadd.f32 %v10117_v0, %v1954_v19 }
 0x4a2   :  { %v2334_v31 = vadd.f32 %v12273_v59, %v2142_v49  ;;  %v2139_v49 = vadd.f32 %v12277_v36, %v1947_v25  ;;  %v12280_v25 = vld [vmem:[#allocation175_spill] sm:$0xff]  ;;  %v6640_v8 = vmul.f32 -1.442695, %v3128_v9  ;;  %v12285_v36 = vld [vmem:[#allocation174_spill] sm:$0xff]  ;;  %v6639_v24 = vmul.f32 -1.442695, %v3127_v40 }
 0x4a3   :  { %v10286_v44 = vpop.permute.xlu1 %1697  ;;  %2852 = vrot.lane.b32.xlu0 %v9936_v62, %s7559_s16  ;;  %v3099_v22 = vadd.f32 %v12280_v25, %v2907_v54  ;;  %v2909_v53 = vadd.f32 %v12281_v27, %v2717_v13  ;;  %v12284_v54 = vld [vmem:[#allocation105_spill] sm:$0xff]  ;;  %v12286_v13 = vld [vmem:[#allocation203_spill] sm:$0xff]  ;;  %7275 = vpow2.f32 %v6637_v43  ;;  %v6641_v19 = vmul.f32 -1.442695, %v3129_v42  ;;  %v12288_v9 = vld [vmem:[#allocation162_spill] sm:$0xff] }
 0x4a4   :  { %v2331_v57 = vadd.f32 %v12278_v60, %v2139_v49  ;;  %v2526_v59 = vadd.f32 %v12282_v1, %v2334_v31  ;;  %v1757_v48 = vadd.f32 %v12284_v54, %v12283_v35  ;;  %v2906_v49 = vadd.f32 %v12285_v36, %v2714_v6  ;;  %v12287_v31 = vld [vmem:[#allocation169_spill] sm:$0xff]  ;;  %v12289_v61 = vld [vmem:[#allocation176_spill] sm:$0xff]  ;;  %v12290_v6 = vld [vmem:[#allocation191_spill] sm:$0xff] }
 0x4a5   :  { %3046 = vrot.lane.b32.xlu1 %v12218_v11, %s7560_s17  ;;  %v10305_v62 = vpop.permute.xlu0 %2075  ;;  %v10315_v11 = vpop.eup %7269  ;;  %v3132_v26 = vadd.f32 %v10108_v30, %v3099_v22  ;;  %v12291_v35 = vld [vmem:[#allocation197_spill] sm:$0xff]  ;;  %v2338_v40 = vadd.f32 %v10057_v34, %v2146_v4  ;;  %7277 = vpow2.f32 %v6640_v8  ;;  %v12292_v42 = vld [vmem:[#allocation178_spill] sm:$0xff]  ;;  %v12295_v36 = vld [vmem:[#allocation195_spill] sm:$0xff] }
 0x4a6   :  { %v10323_v14 = vpop.eup %7271  ;;  %v2523_v0 = vadd.f32 %v12287_v31, %v2331_v57  ;;  %v2719_v46 = vadd.f32 %v10023_v38, %v2526_v59  ;;  %v1949_v60 = vadd.f32 %v12288_v9, %v1757_v48  ;;  %v3098_v25 = vadd.f32 %v12289_v61, %v2906_v49  ;;  %v12293_v59 = vld [vmem:[#allocation119_spill] sm:$0xff]  ;;  %v12294_v48 = vld [vmem:[#allocation182_spill] sm:$0xff]  ;;  %v12296_v49 = vld [vmem:[#allocation217_spill] sm:$0xff] }
 0x4a7   :  { %v10313_v32 = vpop.permute.xlu1 %1889  ;;  %3044 = vrot.lane.b32.xlu0 %v12199_v56, %s7560_s17  ;;  %v3101_v43 = vadd.f32 %v12291_v35, %v2909_v53  ;;  %v2528_v57 = vadd.f32 %v9991_v58, %v2336_v5  ;;  %v6642_v38 = vmul.f32 -1.442695, %v3130_v12  ;;  %v1759_v54 = vadd.f32 %v12293_v59, %v12292_v42  ;;  %v12297_v8 = vld [vmem:[#allocation180_spill] sm:$0xff]  ;;  %v12298_v31 = vld [vmem:[#allocation185_spill] sm:$0xff] }
 0x4a8   :  { %v2716_v1 = vadd.f32 %v12290_v6, %v2523_v0  ;;  %v2141_v22 = vadd.f32 %v12294_v48, %v1949_v60  ;;  %7279 = vpow2.f32 %v6639_v24  ;;  %v2911_v34 = vadd.f32 %v12296_v49, %v2719_v46  ;;  %v12299_v61 = vld [vmem:[#allocation200_spill] sm:$0xff]  ;;  %v12303_v35 = vld [vmem:[#allocation137_spill] sm:$0xff] }
 0x4a9   :  { %2089 = vrot.lane.b32.xlu1 %v12286_v13, %s7561_s5  ;;  %v10333_v56 = vpop.permute.xlu0 %2267  ;;  %v2721_v58 = vadd.f32 %v10129_v18, %v2528_v57  ;;  %7281 = vpow2.f32 %v6641_v19  ;;  %v3131_v4 = vadd.f32 %v10108_v30, %v3098_v25  ;;  %v1951_v12 = vadd.f32 %v12297_v8, %v1759_v54  ;;  %v12300_v18 = vld [vmem:[#allocation211_spill] sm:$0xff]  ;;  %v12304_v42 = vld [vmem:[#allocation213_spill] sm:$0xff]  ;;  %v12305_v54 = vld [vmem:[#allocation206_spill] sm:$0xff] }
 0x4aa   :  { %v2908_v53 = vadd.f32 %v12295_v36, %v2716_v1  ;;  %v2333_v0 = vadd.f32 %v12298_v31, %v2141_v22  ;;  %v6644_v60 = vmul.f32 -1.442695, %v3132_v26  ;;  %v3134_v6 = vadd.f32 %v10108_v30, %v3101_v43  ;;  %v12301_v19 = vld [vmem:[#allocation187_spill] sm:$0xff]  ;;  %v12307_v43 = vld [vmem:[#allocation166_spill] sm:$0xff]  ;;  %v7274_v36 = vpop.eup %7273  ;;  %v12308_v49 = vld [vmem:[#allocation212_spill] sm:$0xff] }
 0x4ab   :  { %v10338_v27 = vpop.permute.xlu1 %2269  ;;  %2091 = vrot.lane.b32.xlu0 %v9958_v33, %s7561_s5  ;;  %v2530_v46 = vadd.f32 %v10070_v29, %v2338_v40  ;;  %7283 = vpow2.f32 %v6642_v38  ;;  %v12302_v25 = vld [vmem:[#allocation207_spill] sm:$0xff]  ;;  %v2143_v59 = vadd.f32 %v12304_v42, %v1951_v12  ;;  %v1764_v22 = vadd.f32 %v12307_v43, %v10032_v52  ;;  %v12309_v31 = vld [vmem:[#allocation214_spill] sm:$0xff] }
 0x4ac   :  { %v3100_v24 = vadd.f32 %v12299_v61, %v2908_v53  ;;  %v2525_v1 = vadd.f32 %v12301_v19, %v2333_v0  ;;  %v1761_v57 = vadd.f32 %v12303_v35, %v12302_v25  ;;  %v12306_v26 = vld [vmem:[#allocation219_spill] sm:$0xff]  ;;  %v2913_v29 = vadd.f32 %v10085_v45, %v2721_v58  ;;  %v12310_v0 = vld [vmem:[#allocation216_spill] sm:$0xff]  ;;  %v12314_v35 = vld [vmem:[#allocation221_spill] sm:$0xff] }
 0x4ad   :  { %2662 = vrot.lane.b32.xlu1 %v12286_v13, %s7558_s15  ;;  %v10354_v5 = vpop.permute.xlu0 %2459  ;;  %v3103_v48 = vadd.f32 %v12306_v26, %v2911_v34  ;;  %v2723_v40 = vadd.f32 %v10261_v7, %v2530_v46  ;;  %v6643_v53 = vmul.f32 -1.442695, %v3131_v4  ;;  %v2335_v12 = vadd.f32 %v12309_v31, %v2143_v59  ;;  %v12311_v7 = vld [vmem:[#allocation208_spill] sm:$0xff]  ;;  %v12312_v58 = vld [vmem:[#allocation215_spill] sm:$0xff]  ;;  %v12313_v4 = vld [vmem:[#allocation218_spill] sm:$0xff] }
 0x4ae   :  { %v1953_v8 = vadd.f32 %v12308_v49, %v1761_v57  ;;  %v2718_v61 = vadd.f32 %v12310_v0, %v2525_v1  ;;  %7285 = vpow2.f32 %v6644_v60  ;;  %v3133_v34 = vadd.f32 %v10108_v30, %v3100_v24  ;;  %v12315_v57 = vld [vmem:[#allocation155_spill] sm:$0xff]  ;;  %v12316_v59 = vld [vmem:[#allocation209_spill] sm:$0xff]  ;;  %v12318_v31 = vld [vmem:[#allocation222_spill] sm:$0xff] }
 0x4af   :  { %v10359_v9 = vpop.permute.xlu1 %2461  ;;  %2283 = vrot.lane.b32.xlu0 %v12300_v18, %s7562_s19  ;;  %v6646_v52 = vmul.f32 -1.442695, %v3134_v6  ;;  %v1956_v45 = vadd.f32 %v10043_v10, %v1764_v22  ;;  %v2527_v46 = vadd.f32 %v12312_v58, %v2335_v12  ;;  %v1763_v42 = vadd.f32 %v12315_v57, %v12314_v35  ;;  %v12317_v22 = vld [vmem:[#allocation220_spill] sm:$0xff]  ;;  %v12321_v35 = vld [vmem:[#allocation97_spill] sm:$0xff] }
 0x4b0   :  { %v2910_v25 = vadd.f32 %v12313_v4, %v2718_v61  ;;  %v2145_v1 = vadd.f32 %v10041_v17, %v1953_v8  ;;  %v3136_v60 = vadd.f32 %v10108_v30, %v3103_v48  ;;  %v3105_v24 = vadd.f32 %v10099_v41, %v2913_v29  ;;  %v7276_v43 = vpop.eup %7275 }
 0x4b1   :  { %2285 = vrot.lane.b32.xlu1 %v12305_v54, %s7562_s19  ;;  %v10377_v38 = vpop.permute.xlu0 %2648  ;;  %v2148_v10 = vadd.f32 %v10236_v28, %v1956_v45  ;;  %v2915_v6 = vadd.f32 %v10196_v21, %v2723_v40  ;;  %v1955_v12 = vadd.f32 %v12318_v31, %v1763_v42  ;;  %v2720_v17 = vadd.f32 %v10082_v23, %v2527_v46  ;;  %v12320_v46 = vld [vmem:[#allocation55_spill] sm:$0xff]  ;;  %v12323_v31 = vld [vmem:[#allocation210_spill] sm:$0xff] }
 0x4b2   :  { %v3102_v49 = vadd.f32 %v12317_v22, %v2910_v25  ;;  %v2337_v0 = vadd.f32 %v10053_v55, %v2145_v1  ;;  %v3254_v61 = vadd.f32 1.0, %v7274_v36  ;;  %7287 = vpow2.f32 %v6643_v53  ;;  %v7278_v55 = vpop.eup %7277  ;;  %v12322_v1 = vld [vmem:[#allocation102_spill] sm:$0xff] }
 0x4b3   :  { %v10382_v19 = vpop.permute.xlu1 %2842  ;;  %2475 = vrot.lane.b32.xlu0 %v12311_v7, %s7563_s20  ;;  %v6645_v48 = vmul.f32 -1.442695, %v3133_v34  ;;  %7289 = vpow2.f32 %v6646_v52  ;;  %v2912_v21 = vadd.f32 %v10096_v3, %v2720_v17  ;;  %v2147_v28 = vadd.f32 %v10147_v2, %v1955_v12 }
 0x4b4   :  { %v2529_v41 = vadd.f32 %v10067_v39, %v2337_v0  ;;  %v6648_v29 = vmul.f32 -1.442695, %v3136_v60  ;;  %v3138_v23 = vadd.f32 %v10108_v30, %v3105_v24  ;;  %v2340_v40 = vadd.f32 %v10160_v37, %v2148_v10 }
 0x4b5   :  { %2477 = vrot.lane.b32.xlu1 %v12316_v59, %s7563_s20  ;;  %v2841_v26 = vpop.permute.xlu0 %2840  ;;  %v3107_v36 = vadd.f32 %v10216_v63, %v2915_v6  ;;  %v3135_v34 = vadd.f32 %v10108_v30, %v3102_v49  ;;  %v3104_v39 = vadd.f32 %v10114_v50, %v2912_v21  ;;  %v2339_v3 = vadd.f32 %v10156_v20, %v2147_v28  ;;  %v12319_v63 = vld [vmem:[#allocation106_spill] sm:$0xff] }
 0x4b6   :  { %v2722_v2 = vadd.f32 %v10190_v15, %v2529_v41  ;;  %v3253_v45 = vadd.f32 1.0, %v7276_v43  ;;  %7291 = vrcp.f32 %v3254_v61  ;;  %v3256_v37 = vadd.f32 1.0, %v7278_v55 }
 0x4b7   :  { %v3035_v8 = vpop.permute.xlu1 %3034  ;;  %2664 = vrot.lane.b32.xlu0 %v9958_v33, %s7558_s15  ;;  %v7280_v33 = vpop.eup %7279  ;;  %7293 = vpow2.f32 %v6645_v48  ;;  %v2531_v58 = vadd.f32 %v12319_v63, %v2339_v3  ;;  %v6650_v20 = vmul.f32 -1.442695, %v3138_v23  ;;  %v3140_v15 = vadd.f32 %v10108_v30, %v3107_v36 }
 0x4b8   :  { %v2914_v4 = vadd.f32 %v12320_v46, %v2722_v2  ;;  %7295 = vpow2.f32 %v6648_v29  ;;  %v2532_v57 = vadd.f32 %v12321_v35, %v2340_v40  ;;  %v6647_v42 = vmul.f32 -1.442695, %v3135_v34 }
 0x4b9   :  { %2858 = vrot.lane.b32.xlu1 %v12305_v54, %s7559_s16  ;;  %v3033_v53 = vpop.permute.xlu0 %3032  ;;  %v7282_v54 = vpop.eup %7281  ;;  %v2724_v24 = vadd.f32 %v10377_v38, %v2531_v58  ;;  %7297 = vrcp.f32 %v3253_v45  ;;  %v3255_v6 = vadd.f32 1.0, %v7280_v33  ;;  %v6652_v12 = vmul.f32 -1.442695, %v3140_v15 }
 0x4ba   :  { %v7284_v50 = vpop.eup %7283  ;;  %v3106_v60 = vadd.f32 %v12322_v1, %v2914_v4  ;;  %7299 = vrcp.f32 %v3256_v37  ;;  %v12324_v37 = vld [vmem:[#allocation223_spill] sm:$0xff] }
 0x4bb   :  { %v10417_v52 = vpop.permute.xlu1 %2077  ;;  %2856 = vrot.lane.b32.xlu0 %v12300_v18, %s7559_s16  ;;  %v3137_v18 = vadd.f32 %v10108_v30, %v3104_v39  ;;  %v7286_v43 = vpop.eup %7285  ;;  %v3258_v22 = vadd.f32 1.0, %v7284_v50  ;;  %v2916_v49 = vadd.f32 %v2841_v26, %v2724_v24  ;;  %7301 = vpow2.f32 %v6650_v20  ;;  %v12326_v20 = vld [vmem:[#allocation224_spill] sm:$0xff] }
 0x4bc   :  { %7303 = vpow2.f32 %v6647_v42  ;;  %v3139_v61 = vadd.f32 %v10108_v30, %v3106_v60  ;;  %v3260_v28 = vadd.f32 1.0, %v7286_v43  ;;  %v12327_v60 = vld [vmem:[#allocation225_spill] sm:$0xff]  ;;  %v12328_v24 = vld [vmem:[#allocation184_spill] sm:$0xff] }
 0x4bd   :  { %3050 = vrot.lane.b32.xlu1 %v12316_v59, %s7560_s17  ;;  %v10426_v25 = vpop.permute.xlu0 %1699  ;;  %v6649_v38 = vmul.f32 -1.442695, %v3137_v18  ;;  %v3108_v48 = vadd.f32 %v3033_v53, %v2916_v49  ;;  %7305 = vrcp.f32 %v3255_v6 }
 0x4be   :  { %7307 = vrcp.f32 %v3258_v22  ;;  %v6651_v23 = vmul.f32 -1.442695, %v3139_v61 }
 0x4bf   :  { %v2651_v10 = vpop.permute.xlu1 %2650  ;;  %3048 = vrot.lane.b32.xlu0 %v12311_v7, %s7560_s17  ;;  %v3257_v7 = vadd.f32 1.0, %v7282_v54  ;;  %v7288_v26 = vpop.eup %7287  ;;  %7309 = vpow2.f32 %v6652_v12  ;;  %v3141_v40 = vadd.f32 %v10108_v30, %v3108_v48  ;;  %v12329_v12 = vld [vmem:[#allocation226_spill] sm:$0xff] }
 0x4c0   :  { %v2725_v59 = vadd.f32 %v2651_v10, %v2532_v57  ;;  %7311 = vpow2.f32 %v6649_v38  ;;  %v3259_v53 = vadd.f32 1.0, %v7288_v26  ;;  %v1766_v10 = vadd.f32 %v12328_v24, %v12327_v60 }
 0x4c1   :  { %2093 = vrot.lane.b32.xlu1 %v12323_v31, %s7561_s5  ;;  %v10437_v17 = vpop.permute.xlu0 %1891  ;;  %7313 = vrcp.f32 %v3257_v7  ;;  %v6653_v2 = vmul.f32 -1.442695, %v3141_v40 }
 0x4c2   :  { %v2917_v0 = vadd.f32 %v10382_v19, %v2725_v59  ;;  %v7290_v19 = vpop.eup %7289  ;;  %7315 = vrcp.f32 %v3260_v28 }
 0x4c3   :  { %v10440_v41 = vpop.permute.xlu1 %1701  ;;  %3347 = vperm.xlu0 %7251, %v10295_v16   ;;  %v3262_v34 = vadd.f32 1.0, %v7290_v19 }
 0x4c4   :  { %v3109_v21 = vadd.f32 %v3035_v8, %v2917_v0  ;;  %v7292_v8 = vpop.eup %7291  ;;  %v1958_v0 = vadd.f32 %v12329_v12, %v1766_v10 }
 0x4c5   :  { %2666 = vrot.lane.b32.xlu1 %v12323_v31, %s7558_s15  ;;  %v10446_v29 = vpop.permute.xlu0 %2079  ;;  %v7294_v33 = vpop.eup %7293 }
 0x4c6   :  { %v3142_v55 = vadd.f32 %v10108_v30, %v3109_v21  ;;  %v7296_v3 = vpop.eup %7295  ;;  %v3261_v50 = vadd.f32 1.0, %v7294_v33  ;;  %v2150_v7 = vadd.f32 %v10417_v52, %v1958_v0 }
 0x4c7   :  { %v10449_v36 = vpop.permute.xlu1 %1893  ;;  %3362 = vperm.xlu0 %7251, %v10323_v14   ;;  %v7298_v45 = vpop.eup %7297  ;;  %v12325_v14 = vld [vmem:[#allocation173_spill] sm:$0xff] }
 0x4c8   :  { %v6654_v16 = vmul.f32 -1.442695, %v3142_v55  ;;  %v1765_v63 = vadd.f32 %v12325_v14, %v12324_v37  ;;  %v7300_v58 = vpop.eup %7299 }
 0x4c9   :  { %3352 = vperm.xlu1 %7252, %v10307_v47   ;;  %v10453_v39 = vpop.permute.xlu0 %2271  ;;  %v3264_v47 = vadd.f32 1.0, %v7296_v3  ;;  %v7302_v4 = vpop.eup %7301 }
 0x4ca   :  { %7317 = vpow2.f32 %v6654_v16  ;;  %v1957_v15 = vadd.f32 %v12326_v20, %v1765_v63  ;;  %v7304_v57 = vpop.eup %7303 }
 0x4cb   :  { %7319 = vpow2.f32 %v6651_v23  ;;  %v10455_v54 = vpop.permute.xlu1 %2273  ;;  %3372 = vperm.xlu0 %7251, %v7292_v8   ;;  %v7306_v42 = vpop.eup %7305  ;;  %v3263_v43 = vadd.f32 1.0, %v7304_v57 }
 0x4cc   :  { %7321 = vrcp.f32 %v3259_v53  ;;  %v2149_v18 = vadd.f32 %v10305_v62, %v1957_v15  ;;  %v7308_v1 = vpop.eup %7307 }
 0x4cd   :  { %3357 = vperm.xlu1 %7252, %v10315_v11   ;;  %7323 = vrcp.f32 %v3262_v34  ;;  %v10460_v46 = vpop.permute.xlu0 %2463  ;;  %v3266_v11 = vadd.f32 1.0, %v7302_v4  ;;  %v7310_v59 = vpop.eup %7309 }
 0x4ce   :  { %7325 = vpow2.f32 %v6653_v2  ;;  %v2341_v22 = vadd.f32 %v10333_v56, %v2149_v18  ;;  %v7312_v31 = vpop.eup %7311  ;;  %v3268_v48 = vadd.f32 1.0, %v7310_v59 }
 0x4cf   :  { %v10463_v35 = vpop.permute.xlu1 %2465  ;;  %3382 = vperm.xlu0 %7251, %v7300_v58   ;;  %7327 = vrcp.f32 %v3264_v47  ;;  %v7314_v38 = vpop.eup %7313  ;;  %v3265_v28 = vadd.f32 1.0, %v7312_v31  ;;  %v12331_v31 = vld [vmem:[#allocation190_spill] sm:$0xff] }
 0x4d0   :  { %7329 = vrcp.f32 %v3261_v50  ;;  %v2533_v62 = vadd.f32 %v10354_v5, %v2341_v22  ;;  %v7316_v61 = vpop.eup %7315  ;;  %v2342_v5 = vadd.f32 %v10338_v27, %v2150_v7 }
 0x4d1   :  { %3367 = vperm.xlu1 %7252, %v7298_v45   ;;  %v2653_v6 = vpop.permute.xlu0 %2652  ;;  %7331 = vrcp.f32 %v3266_v11 }
 0x4d2   :  { %7333 = vrcp.f32 %v3263_v43  ;;  %v2726_v19 = vadd.f32 %v2653_v6, %v2533_v62  ;;  %v2534_v37 = vadd.f32 %v10359_v9, %v2342_v5 }
 0x4d3   :  { %v2847_v49 = vpop.permute.xlu1 %2846  ;;  %3392 = vperm.xlu0 %7251, %v7308_v1   ;;  %7335 = vrcp.f32 %v3268_v48 }
 0x4d4   :  { %7337 = vrcp.f32 %v3265_v28 }
 0x4d5   :  { %3377 = vperm.xlu1 %7252, %v7306_v42   ;;  %v2845_v21 = vpop.permute.xlu0 %2844 }
 0x4d6   :  { %v2918_v23 = vadd.f32 %v2845_v21, %v2726_v19 }
 0x4d7   :  { %v7318_v26 = vpop.eup %7317  ;;  %v3039_v56 = vpop.permute.xlu1 %3038  ;;  %3402 = vperm.xlu0 %7251, %v7316_v61  }
 0x4d8   :  { %v7320_v55 = vpop.eup %7319  ;;  %v3270_v16 = vadd.f32 1.0, %v7318_v26  ;;  %v12332_v26 = vld [vmem:[#allocation188_spill] sm:$0xff] }
 0x4d9   :  { %3387 = vperm.xlu1 %7252, %v7314_v38   ;;  %v7322_v40 = vpop.eup %7321  ;;  %v3037_v8 = vpop.permute.xlu0 %3036  ;;  %v3267_v33 = vadd.f32 1.0, %v7320_v55  ;;  %v1768_v28 = vadd.f32 %v12332_v26, %v10286_v44 }
 0x4da   :  { %v7324_v53 = vpop.eup %7323  ;;  %v3110_v52 = vadd.f32 %v3037_v8, %v2918_v23  ;;  %7339 = vrcp.f32 %v3270_v16 }
 0x4db   :  { %v2082_v34 = vpop.permute.xlu1 %2081  ;;  %v7326_v3 = vpop.eup %7325  ;;  %3412 = vperm.xlu0 %7251, %v7324_v53   ;;  %7341 = vrcp.f32 %v3267_v33  ;;  %v1960_v23 = vadd.f32 %v10313_v32, %v1768_v28 }
 0x4dc   :  { %v3143_v2 = vadd.f32 %v10108_v30, %v3110_v52  ;;  %v7328_v14 = vpop.eup %7327  ;;  %v3269_v27 = vadd.f32 1.0, %v7326_v3 }
 0x4dd   :  { %3397 = vperm.xlu1 %7252, %v7322_v40   ;;  %v10474_v45 = vpop.permute.xlu0 %1703  ;;  %v7330_v47 = vpop.eup %7329 }
 0x4de   :  { %v6655_v63 = vmul.f32 -1.442695, %v3143_v2  ;;  %v7332_v15 = vpop.eup %7331 }
 0x4df   :  { %v2655_v58 = vpop.permute.xlu1 %2654  ;;  %3422 = vperm.xlu0 %7251, %v7328_v14   ;;  %v7334_v42 = vpop.eup %7333 }
 0x4e0   :  { %v2727_v4 = vadd.f32 %v2655_v58, %v2534_v37  ;;  %7343 = vpow2.f32 %v6655_v63  ;;  %v7336_v11 = vpop.eup %7335 }
 0x4e1   :  { %3407 = vperm.xlu1 %7252, %v7330_v47   ;;  %v10477_v20 = vpop.permute.xlu0 %1895  ;;  %7345 = vrcp.f32 %v3269_v27  ;;  %v7338_v24 = vpop.eup %7337 }
 0x4e2   :  { %v2919_v50 = vadd.f32 %v2847_v49, %v2727_v4  ;;  %v12330_v49 = vld [vmem:[#allocation74_spill] sm:$0xff] }
 0x4e3   :  { %v10479_v57 = vpop.permute.xlu1 %1705  ;;  %3432 = vperm.xlu0 %7251, %v7332_v15   ;;  %v1767_v12 = vadd.f32 %v12331_v31, %v12330_v49 }
 0x4e4   :  { %v3111_v18 = vadd.f32 %v3039_v56, %v2919_v50 }
 0x4e5   :  { %3417 = vperm.xlu1 %7252, %v7334_v42   ;;  %v10482_v1 = vpop.permute.xlu0 %2083  ;;  %v1959_v62 = vadd.f32 %v10280_v51, %v1767_v12  ;;  %v2152_v51 = vadd.f32 %v2082_v34, %v1960_v23 }
 0x4e6   :  { %v3144_v9 = vadd.f32 %v10108_v30, %v3111_v18 }
 0x4e7   :  { %v10484_v60 = vpop.permute.xlu1 %1897  ;;  %3442 = vperm.xlu0 %7251, %v7336_v11   ;;  %v7340_v59 = vpop.eup %7339  ;;  %v2151_v21 = vadd.f32 %v10446_v29, %v1959_v62  ;;  %v2344_v52 = vadd.f32 %v10455_v54, %v2152_v51  ;;  %v12333_v11 = vld [vmem:[#allocation194_spill] sm:$0xff] }
 0x4e8   :  { %v6656_v10 = vmul.f32 -1.442695, %v3144_v9  ;;  %v7342_v22 = vpop.eup %7341 }
 0x4e9   :  { %3427 = vperm.xlu1 %7252, %v7338_v24   ;;  %v10486_v6 = vpop.permute.xlu0 %2275  ;;  %v2343_v56 = vadd.f32 %v10453_v39, %v2151_v21  ;;  %v2536_v32 = vadd.f32 %v10463_v35, %v2344_v52  ;;  %v1769_v24 = vadd.f32 %v12333_v11, %v10426_v25 }
 0x4ea   :  { %7347 = vpow2.f32 %v6656_v10 }
 0x4eb   :  { %v10488_v43 = vpop.permute.xlu1 %2277  ;;  %3452 = vperm.xlu0 %7251, %v7340_v59   ;;  %v2535_v40 = vadd.f32 %v10460_v46, %v2343_v56 }
 0x4ed   :  { %3437 = vperm.xlu1 %7252, %v7342_v22   ;;  %v7344_v0 = vpop.eup %7343  ;;  %v2468_v38 = vpop.permute.xlu0 %2467  ;;  %v1961_v22 = vadd.f32 %v10437_v17, %v1769_v24  ;;  %v12338_v24 = vld [vmem:[#allocation196_spill] sm:$0xff] }
 0x4ee   :  { %v3271_v61 = vadd.f32 1.0, %v7344_v0  ;;  %v7346_v7 = vpop.eup %7345  ;;  %v12334_v0 = vld [vmem:[#allocation192_spill] sm:$0xff] }
 0x4ef   :  { %v10493_v48 = vpop.permute.xlu1 %2469  ;;  %v2153_v12 = vadd.f32 %v10482_v1, %v1961_v22  ;;  %v1770_v62 = vadd.f32 %v12334_v0, %v10440_v41 }
 0x4f0   :  { %7349 = vrcp.f32 %v3271_v61 }
 0x4f1   :  { %3447 = vperm.xlu1 %7252, %v7346_v7   ;;  %v2657_v19 = vpop.permute.xlu0 %2656  ;;  %v2345_v7 = vadd.f32 %v10486_v6, %v2153_v12  ;;  %v1962_v26 = vadd.f32 %v10449_v36, %v1770_v62 }
 0x4f2   :  { %v2728_v8 = vadd.f32 %v2657_v19, %v2535_v40 }
 0x4f3   :  { %v2851_v55 = vpop.permute.xlu1 %2850  ;;  %v2537_v25 = vadd.f32 %v2468_v38, %v2345_v7  ;;  %v12335_v38 = vld [vmem:[#allocation205_spill] sm:$0xff] }
 0x4f5   :  { %v2849_v5 = vpop.permute.xlu0 %2848 }
 0x4f6   :  { %v2920_v29 = vadd.f32 %v2849_v5, %v2728_v8 }
 0x4f7   :  { %v7348_v16 = vpop.eup %7347  ;;  %v3043_v53 = vpop.permute.xlu1 %3042 }
 0x4f8   :  { %v3272_v33 = vadd.f32 1.0, %v7348_v16 }
 0x4f9   :  { %v3041_v3 = vpop.permute.xlu0 %3040 }
 0x4fa   :  { %7351 = vrcp.f32 %v3272_v33  ;;  %v3112_v44 = vadd.f32 %v3041_v3, %v2920_v29 }
 0x4fb   :  { %v2086_v2 = vpop.permute.xlu1 %2085 }
 0x4fc   :  { %v3145_v39 = vadd.f32 %v10108_v30, %v3112_v44  ;;  %v2154_v28 = vadd.f32 %v2086_v2, %v1962_v26 }
 0x4fd   :  { %v7350_v37 = vpop.eup %7349  ;;  %v1708_v14 = vpop.permute.xlu0 %1707 }
 0x4fe   :  { %v6657_v46 = vmul.f32 -1.442695, %v3145_v39  ;;  %3457 = vperm.xlu1 %7252, %v7350_v37   ;;  %v2346_v1 = vadd.f32 %v10488_v43, %v2154_v28 }
 0x4ff   :  { %v2659_v34 = vpop.permute.xlu1 %2658 }
 0x500   :  { %v2729_v27 = vadd.f32 %v2659_v34, %v2536_v32  ;;  %7353 = vpow2.f32 %v6657_v46  ;;  %v2538_v36 = vadd.f32 %v10493_v48, %v2346_v1  ;;  %v12336_v32 = vld [vmem:[#allocation198_spill] sm:$0xff] }
 0x501   :  { %v1900_v58 = vpop.permute.xlu0 %1899  ;;  %v1771_v46 = vadd.f32 %v12336_v32, %v10474_v45 }
 0x502   :  { %v2921_v63 = vadd.f32 %v2851_v55, %v2729_v27 }
 0x503   :  { %v10504_v47 = vpop.permute.xlu1 %1709 }
 0x504   :  { %v3113_v54 = vadd.f32 %v3043_v53, %v2921_v63  ;;  %v1773_v53 = vadd.f32 %v12335_v38, %v1708_v14  ;;  %v1963_v14 = vadd.f32 %v10477_v20, %v1771_v46  ;;  %v12340_v20 = vld [vmem:[#allocation59_spill] sm:$0xff] }
 0x505   :  { %v2088_v50 = vpop.permute.xlu0 %2087 }
 0x506   :  { %v3146_v4 = vadd.f32 %v10108_v30, %v3113_v54  ;;  %v1965_v3 = vadd.f32 %v1900_v58, %v1773_v53  ;;  %v2155_v58 = vadd.f32 %v2088_v50, %v1963_v14  ;;  %v12342_v53 = vld [vmem:[#allocation56_spill] sm:$0xff] }
 0x507   :  { %v7352_v15 = vpop.eup %7351  ;;  %v10507_v42 = vpop.permute.xlu1 %1901 }
 0x508   :  { %v6658_v18 = vmul.f32 -1.442695, %v3146_v4  ;;  %3462 = vperm.xlu0 %7251, %v7352_v15  }
 0x509   :  { %v2280_v35 = vpop.permute.xlu0 %2279 }
 0x50a   :  { %7355 = vpow2.f32 %v6658_v18  ;;  %v12337_v18 = vld [vmem:[#allocation54_spill] sm:$0xff]  ;;  %v2347_v45 = vadd.f32 %v2280_v35, %v2155_v58 }
 0x50b   :  { %v10509_v9 = vpop.permute.xlu1 %2281 }
 0x50d   :  { %v7354_v10 = vpop.eup %7353  ;;  %v2472_v59 = vpop.permute.xlu0 %2471 }
 0x50e   :  { %v3273_v49 = vadd.f32 1.0, %v7354_v10  ;;  %v1772_v10 = vadd.f32 %v12338_v24, %v10479_v57  ;;  %v1774_v57 = vadd.f32 %v12286_v13, %v10504_v47  ;;  %v12347_v24 = vld [vmem:[#allocation36_spill] sm:$0xff] }
 0x50f   :  { %v10514_v31 = vpop.permute.xlu1 %2473 }
 0x510   :  { %7357 = vrcp.f32 %v3273_v49  ;;  %v12339_v49 = vld [vmem:[#allocation57_spill] sm:$0xff]  ;;  %v1964_v62 = vadd.f32 %v10484_v60, %v1772_v10 }
 0x511   :  { %v2661_v61 = vpop.permute.xlu0 %2660 }
 0x512   :  { %v2730_v17 = vadd.f32 %v2661_v61, %v2537_v25  ;;  %v2539_v61 = vadd.f32 %v2472_v59, %v2347_v45 }
 0x513   :  { %v2855_v21 = vpop.permute.xlu1 %2854 }
 0x515   :  { %v2853_v19 = vpop.permute.xlu0 %2852 }
 0x516   :  { %v2922_v40 = vadd.f32 %v2853_v19, %v2730_v17  ;;  %v1966_v17 = vadd.f32 %v10507_v42, %v1774_v57  ;;  %v12341_v42 = vld [vmem:[#allocation53_spill] sm:$0xff] }
 0x517   :  { %v7356_v56 = vpop.eup %7355  ;;  %v3047_v55 = vpop.permute.xlu1 %3046 }
 0x518   :  { %v3274_v23 = vadd.f32 1.0, %v7356_v56 }
 0x519   :  { %v3045_v51 = vpop.permute.xlu0 %3044 }
 0x51a   :  { %7359 = vrcp.f32 %v3274_v23  ;;  %v3114_v5 = vadd.f32 %v3045_v51, %v2922_v40 }
 0x51b   :  { %v2090_v41 = vpop.permute.xlu1 %2089 }
 0x51c   :  { %v3147_v16 = vadd.f32 %v10108_v30, %v3114_v5  ;;  %v2156_v26 = vadd.f32 %v2090_v41, %v1964_v62  ;;  %v12349_v62 = vld [vmem:[#allocation38_spill] sm:$0xff] }
 0x51d   :  { %v7358_v6 = vpop.eup %7357  ;;  %v2092_v8 = vpop.permute.xlu0 %2091 }
 0x51e   :  { %v6659_v33 = vmul.f32 -1.442695, %v3147_v16  ;;  %3467 = vperm.xlu1 %7252, %v7358_v6   ;;  %v2157_v2 = vadd.f32 %v2092_v8, %v1965_v3  ;;  %v2348_v60 = vadd.f32 %v10509_v9, %v2156_v26  ;;  %v12343_v3 = vld [vmem:[#allocation58_spill] sm:$0xff] }
 0x51f   :  { %v2663_v29 = vpop.permute.xlu1 %2662 }
 0x520   :  { %v2731_v52 = vadd.f32 %v2663_v29, %v2538_v36  ;;  %7361 = vpow2.f32 %v6659_v33  ;;  %v2540_v41 = vadd.f32 %v10514_v31, %v2348_v60 }
 0x521   :  { %v2284_v43 = vpop.permute.xlu0 %2283 }
 0x522   :  { %v2923_v44 = vadd.f32 %v2855_v21, %v2731_v52  ;;  %v2349_v34 = vadd.f32 %v2284_v43, %v2157_v2 }
 0x523   :  { %v2286_v39 = vpop.permute.xlu1 %2285 }
 0x524   :  { %v3115_v37 = vadd.f32 %v3047_v55, %v2923_v44 }
 0x525   :  { %v2476_v48 = vpop.permute.xlu0 %2475 }
 0x526   :  { %v3148_v27 = vadd.f32 %v10108_v30, %v3115_v37  ;;  %v2541_v54 = vadd.f32 %v2476_v48, %v2349_v34  ;;  %v12344_v37 = vld [vmem:[#allocation31_spill] sm:$0xff] }
 0x527   :  { %v7360_v63 = vpop.eup %7359  ;;  %v2478_v4 = vpop.permute.xlu1 %2477 }
 0x528   :  { %v6660_v15 = vmul.f32 -1.442695, %v3148_v27  ;;  %3472 = vperm.xlu0 %7251, %v7360_v63   ;;  %v2734_v11 = vadd.f32 %v12337_v18, %v2541_v54  ;;  %v12345_v27 = vld [vmem:[#allocation34_spill] sm:$0xff]  ;;  %v12346_v54 = vld [vmem:[#allocation32_spill] sm:$0xff] }
 0x529   :  { %v2665_v22 = vpop.permute.xlu0 %2664 }
 0x52a   :  { %7363 = vpow2.f32 %v6660_v15  ;;  %v2926_v12 = vadd.f32 %v12339_v49, %v2734_v11  ;;  %v2732_v28 = vadd.f32 %v2665_v22, %v2539_v61  ;;  %v12348_v49 = vld [vmem:[#allocation33_spill] sm:$0xff] }
 0x52b   :  { %v2859_v0 = vpop.permute.xlu1 %2858 }
 0x52c   :  { %v3118_v7 = vadd.f32 %v12340_v20, %v2926_v12 }
 0x52d   :  { %v7362_v21 = vpop.eup %7361  ;;  %v2857_v25 = vpop.permute.xlu0 %2856 }
 0x52e   :  { %v3275_v50 = vadd.f32 1.0, %v7362_v21  ;;  %v3151_v56 = vadd.f32 %v10108_v30, %v3118_v7  ;;  %v2924_v35 = vadd.f32 %v2857_v25, %v2732_v28  ;;  %v12350_v7 = vld [vmem:[#allocation35_spill] sm:$0xff]  ;;  %v12351_v28 = vld [vmem:[#allocation40_spill] sm:$0xff] }
 0x52f   :  { %v3051_v19 = vpop.permute.xlu1 %3050 }
 0x530   :  { %7365 = vrcp.f32 %v3275_v50  ;;  %v6663_v40 = vmul.f32 -1.442695, %v3151_v56 }
 0x531   :  { %v3049_v59 = vpop.permute.xlu0 %3048 }
 0x532   :  { %v3116_v55 = vadd.f32 %v3049_v59, %v2924_v35  ;;  %7367 = vpow2.f32 %v6663_v40  ;;  %v12352_v35 = vld [vmem:[#allocation37_spill] sm:$0xff] }
 0x533   :  { %v2094_v23 = vpop.permute.xlu1 %2093 }
 0x534   :  { %v2158_v1 = vadd.f32 %v2094_v23, %v1966_v17  ;;  %v3149_v51 = vadd.f32 %v10108_v30, %v3116_v55  ;;  %v12353_v55 = vld [vmem:[#allocation42_spill] sm:$0xff] }
 0x536   :  { %v2350_v5 = vadd.f32 %v2286_v39, %v2158_v1  ;;  %v6661_v13 = vmul.f32 -1.442695, %v3149_v51  ;;  %v12354_v1 = vld [vmem:[#allocation39_spill] sm:$0xff] }
 0x537   :  { %v7364_v16 = vpop.eup %7363  ;;  %v2667_v47 = vpop.permute.xlu1 %2666 }
 0x538   :  { %v3276_v6 = vadd.f32 1.0, %v7364_v16  ;;  %v2542_v8 = vadd.f32 %v2478_v4, %v2350_v5  ;;  %v2733_v36 = vadd.f32 %v2667_v47, %v2540_v41  ;;  %7369 = vpow2.f32 %v6661_v13  ;;  %v12355_v16 = vld [vmem:[#allocation44_spill] sm:$0xff] }
 0x53a   :  { %7371 = vrcp.f32 %v3276_v6  ;;  %v2735_v9 = vadd.f32 %v12341_v42, %v2542_v8  ;;  %v2925_v38 = vadd.f32 %v2859_v0, %v2733_v36  ;;  %v12356_v6 = vld [vmem:[#allocation41_spill] sm:$0xff] }
 0x53c   :  { %v2927_v33 = vadd.f32 %v12342_v53, %v2735_v9  ;;  %v3117_v29 = vadd.f32 %v3051_v19, %v2925_v38  ;;  %v12357_v9 = vld [vmem:[#allocation46_spill] sm:$0xff] }
 0x53d   :  { %v7366_v52 = vpop.eup %7365 }
 0x53e   :  { %v3119_v44 = vadd.f32 %v12343_v3, %v2927_v33  ;;  %v3150_v31 = vadd.f32 %v10108_v30, %v3117_v29  ;;  %3477 = vperm.xlu1 %7252, %v7366_v52   ;;  %v3348_v43 = vpop.permute.xlu0 %3347  ;;  %v12358_v33 = vld [vmem:[#allocation43_spill] sm:$0xff]  ;;  %v4406_v52 = vld [vmem:[#allocation2 + $0x19] sm:$0xff] }
 0x53f   :  { %v3505_v32 = vmul.f32 %v3348_v43, %v12344_v37  ;;  %v7368_v14 = vpop.eup %7367 }
 0x540   :  { %v3152_v2 = vadd.f32 %v10108_v30, %v3119_v44  ;;  %v6662_v39 = vmul.f32 -1.442695, %v3150_v31  ;;  %v3279_v45 = vadd.f32 1.0, %v7368_v14  ;;  %v12359_v31 = vld [vmem:[#allocation48_spill] sm:$0xff]  ;;  %v12362_v14 = vld [vmem:[#allocation47_spill] sm:$0xff] }
 0x541   :  { %3537 = vst.msk [vmem:[#allocation4] sm:$0xff] %vm746_vm3, %v3505_v32  ;;  %v4598_v32 = vld [vmem:[#allocation2 + $0x1a] sm:$0xff] }
 0x542   :  { %v6664_v46 = vmul.f32 -1.442695, %v3152_v2  ;;  %7373 = vpow2.f32 %v6662_v39  ;;  %v3363_v34 = vpop.permute.xlu0 %3362  ;;  %v12360_v39 = vld [vmem:[#allocation45_spill] sm:$0xff] }
 0x543   :  { %v3508_v48 = vmul.f32 %v3363_v34, %v12345_v27  ;;  %v12361_v27 = vld [vmem:[#allocation8_spill] sm:$0xff] }
 0x544   :  { %7375 = vpow2.f32 %v6664_v46  ;;  %v3353_v63 = vpop.permute.xlu1 %3352 }
 0x545   :  { %v3506_v4 = vmul.f32 %v3353_v63, %v12346_v54  ;;  %v7370_v15 = vpop.eup %7369  ;;  %3540 = vst.msk [vmem:[#allocation4 + $0x18] sm:$0xff] %vm746_vm3, %v3508_v48 }
 0x546   :  { %v3277_v18 = vadd.f32 1.0, %v7370_v15  ;;  %v3373_v11 = vpop.permute.xlu0 %3372 }
 0x547   :  { %v7372_v58 = vpop.eup %7371  ;;  %3538 = vst.msk [vmem:[#allocation4 + $0x8] sm:$0xff] %vm746_vm3, %v3506_v4  ;;  %v3510_v10 = vmul.f32 %v3373_v11, %v12347_v24  ;;  %v10586_v4 = vld [vmem:[#allocation2 + $0x18] sm:$0xff] }
 0x548   :  { %v3358_v22 = vpop.permute.xlu1 %3357  ;;  %3482 = vperm.xlu0 %7251, %v7372_v58   ;;  %7377 = vrcp.f32 %v3277_v18  ;;  %v4407_v58 = vld [vmem:[#allocation2 + $0x21] sm:$0xff]  ;;  %v12363_v18 = vld [vmem:[#allocation7_spill] sm:$0xff] }
 0x549   :  { %v3507_v12 = vmul.f32 %v3358_v22, %v12348_v49  ;;  %3542 = vst.msk [vmem:[#allocation4 + $0x28] sm:$0xff] %vm746_vm3, %v3510_v10  ;;  %7379 = vrcp.f32 %v3279_v45  ;;  %v12364_v10 = vld [vmem:[#allocation49_spill] sm:$0xff] }
 0x54a   :  { %v3383_v0 = vpop.permute.xlu0 %3382  ;;  %v4599_v45 = vld [vmem:[#allocation2 + $0x22] sm:$0xff] }
 0x54b   :  { %3539 = vst.msk [vmem:[#allocation4 + $0x10] sm:$0xff] %vm746_vm3, %v3507_v12  ;;  %v3512_v61 = vmul.f32 %v3383_v0, %v12349_v62  ;;  %v12365_v12 = vld [vmem:[#allocation50_spill] sm:$0xff]  ;;  %v4408_v62 = vld [vmem:[#allocation2 + $0x31] sm:$0xff] }
 0x54c   :  { %v3368_v20 = vpop.permute.xlu1 %3367 }
 0x54d   :  { %v3509_v21 = vmul.f32 %v3368_v20, %v12350_v7  ;;  %3544 = vst.msk [vmem:[#allocation4 + $0x38] sm:$0xff] %vm746_vm3, %v3512_v61  ;;  %v4600_v61 = vld [vmem:[#allocation2 + $0x32] sm:$0xff]  ;;  %v10605_v20 = vld [vmem:[#allocation2 + $0x20] sm:$0xff] }
 0x54e   :  { %v3393_v25 = vpop.permute.xlu0 %3392 }
 0x54f   :  { %v7374_v26 = vpop.eup %7373  ;;  %3541 = vst.msk [vmem:[#allocation4 + $0x20] sm:$0xff] %vm746_vm3, %v3509_v21  ;;  %v3514_v19 = vmul.f32 %v3393_v25, %v12351_v28  ;;  %v10609_v21 = vld [vmem:[#allocation2 + $0x30] sm:$0xff]  ;;  %v4601_v28 = vld [vmem:[#allocation2 + $0x3a] sm:$0xff] }
 0x550   :  { %v3278_v50 = vadd.f32 1.0, %v7374_v26  ;;  %v3378_v57 = vpop.permute.xlu1 %3377  ;;  %v12366_v26 = vld [vmem:[#allocation10_spill] sm:$0xff] }
 0x551   :  { %v7376_v56 = vpop.eup %7375  ;;  %v3511_v17 = vmul.f32 %v3378_v57, %v12352_v35  ;;  %3546 = vst.msk [vmem:[#allocation4 + $0x48] sm:$0xff] %vm746_vm3, %v3514_v19  ;;  %v12367_v57 = vld [vmem:[#allocation9_spill] sm:$0xff]  ;;  %v4410_v35 = vld [vmem:[#allocation2 + $0x49] sm:$0xff] }
 0x552   :  { %v3280_v60 = vadd.f32 1.0, %v7376_v56  ;;  %7381 = vrcp.f32 %v3278_v50  ;;  %v3403_v59 = vpop.permute.xlu0 %3402  ;;  %v4409_v50 = vld [vmem:[#allocation2 + $0x39] sm:$0xff] }
 0x553   :  { %3543 = vst.msk [vmem:[#allocation4 + $0x30] sm:$0xff] %vm746_vm3, %v3511_v17  ;;  %v3516_v23 = vmul.f32 %v3403_v59, %v12353_v55  ;;  %v10630_v17 = vld [vmem:[#allocation2 + $0x38] sm:$0xff]  ;;  %v10637_v55 = vld [vmem:[#allocation2 + $0x48] sm:$0xff] }
 0x554   :  { %v3388_v40 = vpop.permute.xlu1 %3387  ;;  %7383 = vrcp.f32 %v3280_v60  ;;  %v4602_v60 = vld [vmem:[#allocation2 + $0x4a] sm:$0xff] }
 0x555   :  { %v3513_v51 = vmul.f32 %v3388_v40, %v12354_v1  ;;  %v7378_v5 = vpop.eup %7377  ;;  %3548 = vst.msk [vmem:[#allocation4 + $0x58] sm:$0xff] %vm746_vm3, %v3516_v23  ;;  %v12368_v23 = vld [vmem:[#allocation12_spill] sm:$0xff] }
 0x556   :  { %3487 = vperm.xlu1 %7252, %v7378_v5   ;;  %v3413_v41 = vpop.permute.xlu0 %3412  ;;  %v7380_v36 = vpop.eup %7379  ;;  %v4411_v1 = vld [vmem:[#allocation2 + $0x51] sm:$0xff] }
 0x557   :  { %3545 = vst.msk [vmem:[#allocation4 + $0x40] sm:$0xff] %vm746_vm3, %v3513_v51  ;;  %v3518_v13 = vmul.f32 %v3413_v41, %v12355_v16  ;;  %v4603_v51 = vld [vmem:[#allocation2 + $0x52] sm:$0xff] }
 0x558   :  { %v3398_v47 = vpop.permute.xlu1 %3397  ;;  %v12369_v41 = vld [vmem:[#allocation11_spill] sm:$0xff] }
 0x559   :  { %v3515_v8 = vmul.f32 %v3398_v47, %v12356_v6  ;;  %3550 = vst.msk [vmem:[#allocation4 + $0x68] sm:$0xff] %vm746_vm3, %v3518_v13  ;;  %v4412_v13 = vld [vmem:[#allocation2 + $0x61] sm:$0xff]  ;;  %v10658_v47 = vld [vmem:[#allocation2 + $0x50] sm:$0xff] }
 0x55a   :  { %3497 = vperm.xlu1 %7252, %v7380_v36   ;;  %v3423_v42 = vpop.permute.xlu0 %3422  ;;  %v4604_v6 = vld [vmem:[#allocation2 + $0x62] sm:$0xff] }
 0x55b   :  { %3547 = vst.msk [vmem:[#allocation4 + $0x50] sm:$0xff] %vm746_vm3, %v3515_v8  ;;  %v3520_v38 = vmul.f32 %v3423_v42, %v12357_v9  ;;  %v10665_v36 = vld [vmem:[#allocation2 + $0x60] sm:$0xff]  ;;  %v12371_v42 = vld [vmem:[#allocation14_spill] sm:$0xff] }
 0x55c   :  { %v3408_v53 = vpop.permute.xlu1 %3407  ;;  %12370 = vst [vmem:[#allocation51_spill] sm:$0xff] %v10665_v36 }
 0x55d   :  { %v3517_v29 = vmul.f32 %v3408_v53, %v12358_v33  ;;  %3552 = vst.msk [vmem:[#allocation4 + $0x78] sm:$0xff] %vm746_vm3, %v3520_v38  ;;  %v4413_v38 = vld [vmem:[#allocation2 + $0x69] sm:$0xff] }
 0x55e   :  { %4472 = vrot.lane.b32.xlu1 %v4406_v52, %s7556_s6  ;;  %v3433_v44 = vpop.permute.xlu0 %3432  ;;  %v4605_v53 = vld [vmem:[#allocation2 + $0x6a] sm:$0xff] }
 0x55f   :  { %v7382_v3 = vpop.eup %7381  ;;  %3549 = vst.msk [vmem:[#allocation4 + $0x60] sm:$0xff] %vm746_vm3, %v3517_v29  ;;  %v3522_v43 = vmul.f32 %v3433_v44, %v12359_v31  ;;  %v12372_v29 = vld [vmem:[#allocation13_spill] sm:$0xff]  ;;  %v12373_v31 = vld [vmem:[#allocation16_spill] sm:$0xff] }
 0x560   :  { %v3418_v2 = vpop.permute.xlu1 %3417  ;;  %3492 = vperm.xlu0 %7251, %v7382_v3   ;;  %v4414_v44 = vld [vmem:[#allocation2 + $0x79] sm:$0xff] }
 0x561   :  { %v3519_v37 = vmul.f32 %v3418_v2, %v12360_v39  ;;  %3554 = vst.msk [vmem:[#allocation4 + $0x88] sm:$0xff] %vm746_vm3, %v3522_v43  ;;  %v7384_v46 = vpop.eup %7383  ;;  %v10687_v2 = vld [vmem:[#allocation2 + $0x68] sm:$0xff] }
 0x562   :  { %4664 = vrot.lane.b32.xlu1 %v4598_v32, %s7557_s0  ;;  %v3443_v34 = vpop.permute.xlu0 %3442  ;;  %12374 = vst [vmem:[#allocation99_spill] sm:$0xff] %v10687_v2 }
 0x563   :  { %3551 = vst.msk [vmem:[#allocation4 + $0x70] sm:$0xff] %vm746_vm3, %v3519_v37  ;;  %v3524_v48 = vmul.f32 %v3443_v34, %v12361_v27  ;;  %v4606_v37 = vld [vmem:[#allocation2 + $0x7a] sm:$0xff] }
 0x564   :  { %v3428_v63 = vpop.permute.xlu1 %3427  ;;  %3502 = vperm.xlu0 %7251, %v7384_v46   ;;  %v10699_v27 = vld [vmem:[#allocation2 + $0x78] sm:$0xff] }
 0x565   :  { %v3521_v54 = vmul.f32 %v3428_v63, %v12362_v14  ;;  %3556 = vst.msk [vmem:[#allocation4 + $0x98] sm:$0xff] %vm746_vm3, %v3524_v48  ;;  %12376 = vst [vmem:[#allocation77_spill] sm:$0xff] %v10699_v27  ;;  %v4415_v63 = vld [vmem:[#allocation2 + $0x81] sm:$0xff]  ;;  %v12377_v14 = vld [vmem:[#allocation15_spill] sm:$0xff] }
 0x566   :  { %4852 = vrot.lane.b32.xlu1 %v10586_v4, %s7561_s5  ;;  %v3453_v15 = vpop.permute.xlu0 %3452 }
 0x567   :  { %3553 = vst.msk [vmem:[#allocation4 + $0x80] sm:$0xff] %vm746_vm3, %v3521_v54  ;;  %v3526_v11 = vmul.f32 %v3453_v15, %v12363_v18  ;;  %v4607_v18 = vld [vmem:[#allocation2 + $0x82] sm:$0xff] }
 0x568   :  { %v3438_v24 = vpop.permute.xlu1 %3437  ;;  %4474 = vrot.lane.b32.xlu0 %v4407_v58, %s7556_s6 }
 0x569   :  { %v3523_v22 = vmul.f32 %v3438_v24, %v12364_v10  ;;  %3558 = vst.msk [vmem:[#allocation4 + $0xa8] sm:$0xff] %vm746_vm3, %v3526_v11  ;;  %v12378_v11 = vld [vmem:[#allocation17_spill] sm:$0xff] }
 0x56a   :  { %5044 = vrot.lane.b32.xlu1 %v4406_v52, %s7562_s19 }
 0x56b   :  { %3555 = vst.msk [vmem:[#allocation4 + $0x90] sm:$0xff] %vm746_vm3, %v3523_v22 }
 0x56c   :  { %v3448_v49 = vpop.permute.xlu1 %3447  ;;  %4666 = vrot.lane.b32.xlu0 %v4599_v45, %s7557_s0 }
 0x56d   :  { %v3525_v0 = vmul.f32 %v3448_v49, %v12365_v12 }
 0x56e   :  { %5236 = vrot.lane.b32.xlu1 %v4598_v32, %s7563_s20  ;;  %v12375_v32 = vld [vmem:[#allocation18_spill] sm:$0xff] }
 0x56f   :  { %3557 = vst.msk [vmem:[#allocation4 + $0xa0] sm:$0xff] %vm746_vm3, %v3525_v0 }
 0x570   :  { %5046 = vrot.lane.b32.xlu0 %v4407_v58, %s7562_s19 }
 0x572   :  { %4476 = vrot.lane.b32.xlu1 %v4408_v62, %s7556_s6 }
 0x574   :  { %5238 = vrot.lane.b32.xlu0 %v4599_v45, %s7563_s20 }
 0x576   :  { %4668 = vrot.lane.b32.xlu1 %v4600_v61, %s7557_s0 }
 0x578   :  { %4854 = vrot.lane.b32.xlu0 %v10605_v20, %s7561_s5 }
 0x579   :  { %v3458_v7 = vpop.permute.xlu1 %3457 }
 0x57a   :  { %v3527_v25 = vmul.f32 %v3458_v7, %v12366_v26  ;;  %4856 = vrot.lane.b32.xlu1 %v10609_v21, %s7561_s5  ;;  %v4416_v26 = vld [vmem:[#allocation2 + $0x91] sm:$0xff] }
 0x57c   :  { %4478 = vrot.lane.b32.xlu0 %v4409_v50, %s7556_s6  ;;  %3559 = vst.msk [vmem:[#allocation4 + $0xb0] sm:$0xff] %vm746_vm3, %v3527_v25 }
 0x57e   :  { %5048 = vrot.lane.b32.xlu1 %v4408_v62, %s7562_s19 }
 0x580   :  { %4670 = vrot.lane.b32.xlu0 %v4601_v28, %s7557_s0 }
 0x582   :  { %5240 = vrot.lane.b32.xlu1 %v4600_v61, %s7563_s20 }
 0x583   :  { %v3463_v19 = vpop.permute.xlu0 %3462 }
 0x584   :  { %v3528_v56 = vmul.f32 %v3463_v19, %v12367_v57  ;;  %5050 = vrot.lane.b32.xlu0 %v4409_v50, %s7562_s19  ;;  %v4608_v19 = vld [vmem:[#allocation2 + $0x92] sm:$0xff] }
 0x586   :  { %3560 = vst.msk [vmem:[#allocation4 + $0xb8] sm:$0xff] %vm746_vm3, %v3528_v56  ;;  %5428 = vrot.lane.b32.xlu1 %v10609_v21, %s7558_s15 }
 0x588   :  { %5242 = vrot.lane.b32.xlu0 %v4601_v28, %s7563_s20 }
 0x58a   :  { %5620 = vrot.lane.b32.xlu1 %v4408_v62, %s7559_s16 }
 0x58c   :  { %5622 = vrot.lane.b32.xlu0 %v4409_v50, %s7559_s16  ;;  %v10742_v50 = vld [vmem:[#allocation2 + $0x80] sm:$0xff] }
 0x58d   :  { %12379 = vst [vmem:[#allocation109_spill] sm:$0xff] %v10742_v50 }
 0x58e   :  { %5812 = vrot.lane.b32.xlu1 %v4600_v61, %s7560_s17 }
 0x590   :  { %5814 = vrot.lane.b32.xlu0 %v4601_v28, %s7560_s17 }
 0x592   :  { %4480 = vrot.lane.b32.xlu1 %v4410_v35, %s7556_s6 }
 0x594   :  { %4858 = vrot.lane.b32.xlu0 %v10630_v17, %s7561_s5 }
 0x596   :  { %4672 = vrot.lane.b32.xlu1 %v4602_v60, %s7557_s0 }
 0x598   :  { %5430 = vrot.lane.b32.xlu0 %v10630_v17, %s7558_s15 }
 0x599   :  { %v3468_v59 = vpop.permute.xlu1 %3467 }
 0x59a   :  { %v3529_v40 = vmul.f32 %v3468_v59, %v12368_v23  ;;  %4860 = vrot.lane.b32.xlu1 %v10637_v55, %s7561_s5  ;;  %v4417_v59 = vld [vmem:[#allocation2 + $0x99] sm:$0xff] }
 0x59c   :  { %4482 = vrot.lane.b32.xlu0 %v4411_v1, %s7556_s6  ;;  %3561 = vst.msk [vmem:[#allocation4 + $0xc0] sm:$0xff] %vm746_vm3, %v3529_v40 }
 0x59e   :  { %5052 = vrot.lane.b32.xlu1 %v4410_v35, %s7562_s19 }
 0x5a0   :  { %4674 = vrot.lane.b32.xlu0 %v4603_v51, %s7557_s0 }
 0x5a2   :  { %5244 = vrot.lane.b32.xlu1 %v4602_v60, %s7563_s20 }
 0x5a3   :  { %v3473_v5 = vpop.permute.xlu0 %3472 }
 0x5a4   :  { %v3530_v16 = vmul.f32 %v3473_v5, %v12369_v41  ;;  %5054 = vrot.lane.b32.xlu0 %v4411_v1, %s7562_s19 }
 0x5a6   :  { %3562 = vst.msk [vmem:[#allocation4 + $0xc8] sm:$0xff] %vm746_vm3, %v3530_v16  ;;  %5432 = vrot.lane.b32.xlu1 %v10637_v55, %s7558_s15 }
 0x5a8   :  { %5246 = vrot.lane.b32.xlu0 %v4603_v51, %s7563_s20 }
 0x5aa   :  { %5624 = vrot.lane.b32.xlu1 %v4410_v35, %s7559_s16  ;;  %v10755_v35 = vld [vmem:[#allocation2 + $0x90] sm:$0xff] }
 0x5ab   :  { %12380 = vst [vmem:[#allocation25_spill] sm:$0xff] %v10755_v35 }
 0x5ac   :  { %5626 = vrot.lane.b32.xlu0 %v4411_v1, %s7559_s16  ;;  %v4609_v1 = vld [vmem:[#allocation2 + $0x9a] sm:$0xff] }
 0x5ae   :  { %5816 = vrot.lane.b32.xlu1 %v4602_v60, %s7560_s17 }
 0x5b0   :  { %5818 = vrot.lane.b32.xlu0 %v4603_v51, %s7560_s17 }
 0x5b2   :  { %4484 = vrot.lane.b32.xlu1 %v4412_v13, %s7556_s6 }
 0x5b4   :  { %4862 = vrot.lane.b32.xlu0 %v10658_v47, %s7561_s5 }
 0x5b6   :  { %4676 = vrot.lane.b32.xlu1 %v4604_v6, %s7557_s0 }
 0x5b8   :  { %5434 = vrot.lane.b32.xlu0 %v10658_v47, %s7558_s15 }
 0x5b9   :  { %v3478_v8 = vpop.permute.xlu1 %3477 }
 0x5ba   :  { %v3531_v9 = vmul.f32 %v3478_v8, %v12371_v42  ;;  %4864 = vrot.lane.b32.xlu1 %v10665_v36, %s7561_s5 }
 0x5bc   :  { %4486 = vrot.lane.b32.xlu0 %v4413_v38, %s7556_s6  ;;  %3563 = vst.msk [vmem:[#allocation4 + $0xd0] sm:$0xff] %vm746_vm3, %v3531_v9 }
 0x5be   :  { %5056 = vrot.lane.b32.xlu1 %v4412_v13, %s7562_s19 }
 0x5c0   :  { %4678 = vrot.lane.b32.xlu0 %v4605_v53, %s7557_s0 }
 0x5c2   :  { %5248 = vrot.lane.b32.xlu1 %v4604_v6, %s7563_s20 }
 0x5c3   :  { %v3483_v33 = vpop.permute.xlu0 %3482 }
 0x5c4   :  { %v3532_v52 = vmul.f32 %v3483_v33, %v12372_v29  ;;  %5058 = vrot.lane.b32.xlu0 %v4413_v38, %s7562_s19  ;;  %v10798_v33 = vld [vmem:[#allocation2 + $0x98] sm:$0xff] }
 0x5c5   :  { %12381 = vst [vmem:[#allocation123_spill] sm:$0xff] %v10798_v33 }
 0x5c6   :  { %3564 = vst.msk [vmem:[#allocation4 + $0xd8] sm:$0xff] %vm746_vm3, %v3532_v52  ;;  %5436 = vrot.lane.b32.xlu1 %v10665_v36, %s7558_s15  ;;  %v4610_v52 = vld [vmem:[#allocation2 + $0xaa] sm:$0xff]  ;;  %v4423_v36 = vld [vmem:[#allocation2 + $0xe1] sm:$0xff] }
 0x5c8   :  { %5250 = vrot.lane.b32.xlu0 %v4605_v53, %s7563_s20 }
 0x5ca   :  { %5628 = vrot.lane.b32.xlu1 %v4412_v13, %s7559_s16 }
 0x5cc   :  { %5630 = vrot.lane.b32.xlu0 %v4413_v38, %s7559_s16  ;;  %v4418_v38 = vld [vmem:[#allocation2 + $0xa9] sm:$0xff] }
 0x5ce   :  { %5820 = vrot.lane.b32.xlu1 %v4604_v6, %s7560_s17 }
 0x5d0   :  { %5822 = vrot.lane.b32.xlu0 %v4605_v53, %s7560_s17 }
 0x5d1   :  { %v3488_v3 = vpop.permute.xlu1 %3487 }
 0x5d2   :  { %v3533_v43 = vmul.f32 %v3488_v3, %v12373_v31  ;;  %4488 = vrot.lane.b32.xlu1 %v4414_v44, %s7556_s6  ;;  %v10811_v31 = vld [vmem:[#allocation2 + $0xa8] sm:$0xff] }
 0x5d3   :  { %12382 = vst [vmem:[#allocation104_spill] sm:$0xff] %v10811_v31 }
 0x5d4   :  { %4866 = vrot.lane.b32.xlu0 %v10687_v2, %s7561_s5  ;;  %3565 = vst.msk [vmem:[#allocation4 + $0xe0] sm:$0xff] %vm746_vm3, %v3533_v43 }
 0x5d5   :  { %v3498_v39 = vpop.permute.xlu1 %3497 }
 0x5d6   :  { %v3535_v46 = vmul.f32 %v3498_v39, %v12375_v32  ;;  %4680 = vrot.lane.b32.xlu1 %v4606_v37, %s7557_s0  ;;  %v4419_v39 = vld [vmem:[#allocation2 + $0xb1] sm:$0xff] }
 0x5d8   :  { %5438 = vrot.lane.b32.xlu0 %v10687_v2, %s7558_s15  ;;  %3567 = vst.msk [vmem:[#allocation4 + $0xf0] sm:$0xff] %vm746_vm3, %v3535_v46  ;;  %v4611_v46 = vld [vmem:[#allocation2 + $0xb2] sm:$0xff] }
 0x5d9   :  { %v10697_v34 = vpop.permute.xlu1 %4472 }
 0x5da   :  { %4868 = vrot.lane.b32.xlu1 %v10699_v27, %s7561_s5 }
 0x5db   :  { %v3493_v48 = vpop.permute.xlu0 %3492 }
 0x5dc   :  { %v3534_v54 = vmul.f32 %v3493_v48, %v12377_v14  ;;  %4490 = vrot.lane.b32.xlu0 %v4415_v63, %s7556_s6 }
 0x5dd   :  { %v10706_v15 = vpop.permute.xlu1 %4664 }
 0x5de   :  { %3566 = vst.msk [vmem:[#allocation4 + $0xe8] sm:$0xff] %vm746_vm3, %v3534_v54  ;;  %5060 = vrot.lane.b32.xlu1 %v4414_v44, %s7562_s19 }
 0x5df   :  { %v3503_v58 = vpop.permute.xlu0 %3502 }
 0x5e0   :  { %v3536_v24 = vmul.f32 %v3503_v58, %v12378_v11  ;;  %4682 = vrot.lane.b32.xlu0 %v4607_v18, %s7557_s0 }
 0x5e1   :  { %v10712_v10 = vpop.permute.xlu1 %4852 }
 0x5e2   :  { %3568 = vst.msk [vmem:[#allocation4 + $0xf8] sm:$0xff] %vm746_vm3, %v3536_v24  ;;  %5252 = vrot.lane.b32.xlu1 %v4606_v37, %s7563_s20 }
 0x5e3   :  { %v10715_v22 = vpop.permute.xlu0 %4474 }
 0x5e4   :  { %5062 = vrot.lane.b32.xlu0 %v4415_v63, %s7562_s19 }
 0x5e5   :  { %v10718_v45 = vpop.permute.xlu1 %5044 }
 0x5e6   :  { %5440 = vrot.lane.b32.xlu1 %v10699_v27, %s7558_s15 }
 0x5e7   :  { %v10722_v49 = vpop.permute.xlu0 %4666 }
 0x5e8   :  { %5254 = vrot.lane.b32.xlu0 %v4607_v18, %s7563_s20 }
 0x5e9   :  { %v10725_v12 = vpop.permute.xlu1 %5236 }
 0x5ea   :  { %5632 = vrot.lane.b32.xlu1 %v4414_v44, %s7559_s16 }
 0x5eb   :  { %v10728_v0 = vpop.permute.xlu0 %5046 }
 0x5ec   :  { %5634 = vrot.lane.b32.xlu0 %v4415_v63, %s7559_s16 }
 0x5ed   :  { %v10731_v62 = vpop.permute.xlu1 %4476 }
 0x5ee   :  { %5824 = vrot.lane.b32.xlu1 %v4606_v37, %s7560_s17 }
 0x5ef   :  { %v10734_v61 = vpop.permute.xlu0 %5238 }
 0x5f0   :  { %5826 = vrot.lane.b32.xlu0 %v4607_v18, %s7560_s17 }
 0x5f1   :  { %v10737_v7 = vpop.permute.xlu1 %4668 }
 0x5f2   :  { %4492 = vrot.lane.b32.xlu1 %v4416_v26, %s7556_s6 }
 0x5f3   :  { %v10740_v25 = vpop.permute.xlu0 %4854 }
 0x5f4   :  { %4870 = vrot.lane.b32.xlu0 %v10742_v50, %s7561_s5 }
 0x5f5   :  { %v10746_v28 = vpop.permute.xlu1 %4856 }
 0x5f6   :  { %4684 = vrot.lane.b32.xlu1 %v4608_v19, %s7557_s0 }
 0x5f7   :  { %v10749_v57 = vpop.permute.xlu0 %4478 }
 0x5f8   :  { %5442 = vrot.lane.b32.xlu0 %v10742_v50, %s7558_s15 }
 0x5f9   :  { %v10753_v56 = vpop.permute.xlu1 %5048 }
 0x5fa   :  { %4872 = vrot.lane.b32.xlu1 %v10755_v35, %s7561_s5 }
 0x5fb   :  { %v10759_v60 = vpop.permute.xlu0 %4670 }
 0x5fc   :  { %4494 = vrot.lane.b32.xlu0 %v4417_v59, %s7556_s6 }
 0x5fd   :  { %v10762_v23 = vpop.permute.xlu1 %5240 }
 0x5fe   :  { %5064 = vrot.lane.b32.xlu1 %v4416_v26, %s7562_s19 }
 0x5ff   :  { %v10765_v40 = vpop.permute.xlu0 %5050 }
 0x600   :  { %4686 = vrot.lane.b32.xlu0 %v4609_v1, %s7557_s0 }
 0x601   :  { %v10768_v51 = vpop.permute.xlu1 %5428 }
 0x602   :  { %5256 = vrot.lane.b32.xlu1 %v4608_v19, %s7563_s20 }
 0x603   :  { %v10771_v5 = vpop.permute.xlu0 %5242 }
 0x604   :  { %5066 = vrot.lane.b32.xlu0 %v4417_v59, %s7562_s19 }
 0x605   :  { %v10774_v41 = vpop.permute.xlu1 %5620 }
 0x606   :  { %5444 = vrot.lane.b32.xlu1 %v10755_v35, %s7558_s15  ;;  %v4421_v35 = vld [vmem:[#allocation2 + $0xc9] sm:$0xff] }
 0x607   :  { %v10778_v16 = vpop.permute.xlu0 %5622 }
 0x608   :  { %5258 = vrot.lane.b32.xlu0 %v4609_v1, %s7563_s20 }
 0x609   :  { %v10781_v13 = vpop.permute.xlu1 %5812 }
 0x60a   :  { %5636 = vrot.lane.b32.xlu1 %v4416_v26, %s7559_s16 }
 0x60b   :  { %v10784_v6 = vpop.permute.xlu0 %5814 }
 0x60c   :  { %5638 = vrot.lane.b32.xlu0 %v4417_v59, %s7559_s16 }
 0x60d   :  { %v10787_v8 = vpop.permute.xlu1 %4480 }
 0x60e   :  { %5828 = vrot.lane.b32.xlu1 %v4608_v19, %s7560_s17  ;;  %v4420_v19 = vld [vmem:[#allocation2 + $0xc1] sm:$0xff] }
 0x60f   :  { %v10790_v42 = vpop.permute.xlu0 %4858 }
 0x610   :  { %5830 = vrot.lane.b32.xlu0 %v4609_v1, %s7560_s17  ;;  %v10854_v1 = vld [vmem:[#allocation2 + $0xb0] sm:$0xff] }
 0x611   :  { %v10793_v9 = vpop.permute.xlu1 %4672  ;;  %12387 = vst [vmem:[#allocation83_spill] sm:$0xff] %v10854_v1 }
 0x612   :  { %4496 = vrot.lane.b32.xlu1 %v4418_v38, %s7556_s6 }
 0x613   :  { %v10796_v53 = vpop.permute.xlu0 %5430 }
 0x614   :  { %4874 = vrot.lane.b32.xlu0 %v10798_v33, %s7561_s5 }
 0x615   :  { %v10802_v29 = vpop.permute.xlu1 %4860 }
 0x616   :  { %4688 = vrot.lane.b32.xlu1 %v4610_v52, %s7557_s0 }
 0x617   :  { %v10805_v3 = vpop.permute.xlu0 %4482 }
 0x618   :  { %5446 = vrot.lane.b32.xlu0 %v10798_v33, %s7558_s15 }
 0x619   :  { %v10809_v44 = vpop.permute.xlu1 %5052 }
 0x61a   :  { %4876 = vrot.lane.b32.xlu1 %v10811_v31, %s7561_s5 }
 0x61b   :  { %v10815_v43 = vpop.permute.xlu0 %4674 }
 0x61c   :  { %4498 = vrot.lane.b32.xlu0 %v4419_v39, %s7556_s6 }
 0x61d   :  { %v10818_v37 = vpop.permute.xlu1 %5244 }
 0x61e   :  { %12383 = vst [vmem:[#allocation201_spill] sm:$0xff] %v10818_v37  ;;  %5068 = vrot.lane.b32.xlu1 %v4418_v38, %s7562_s19 }
 0x61f   :  { %v10821_v32 = vpop.permute.xlu0 %5054 }
 0x620   :  { %4690 = vrot.lane.b32.xlu0 %v4611_v46, %s7557_s0 }
 0x621   :  { %v10824_v48 = vpop.permute.xlu1 %5432 }
 0x622   :  { %5260 = vrot.lane.b32.xlu1 %v4610_v52, %s7563_s20 }
 0x623   :  { %v10827_v63 = vpop.permute.xlu0 %5246 }
 0x624   :  { %5070 = vrot.lane.b32.xlu0 %v4419_v39, %s7562_s19 }
 0x625   :  { %v10830_v14 = vpop.permute.xlu1 %5624 }
 0x626   :  { %5448 = vrot.lane.b32.xlu1 %v10811_v31, %s7558_s15  ;;  %v10867_v31 = vld [vmem:[#allocation2 + $0xc0] sm:$0xff] }
 0x627   :  { %v10834_v54 = vpop.permute.xlu0 %5626  ;;  %12391 = vst [vmem:[#allocation125_spill] sm:$0xff] %v10867_v31 }
 0x628   :  { %5262 = vrot.lane.b32.xlu0 %v4611_v46, %s7563_s20 }
 0x629   :  { %v10837_v58 = vpop.permute.xlu1 %5816 }
 0x62a   :  { %5640 = vrot.lane.b32.xlu1 %v4418_v38, %s7559_s16 }
 0x62b   :  { %v10840_v18 = vpop.permute.xlu0 %5818 }
 0x62c   :  { %12384 = vst [vmem:[#allocation98_spill] sm:$0xff] %v10840_v18  ;;  %5642 = vrot.lane.b32.xlu0 %v4419_v39, %s7559_s16  ;;  %v4612_v39 = vld [vmem:[#allocation2 + $0xc2] sm:$0xff] }
 0x62d   :  { %v10843_v11 = vpop.permute.xlu1 %4484 }
 0x62e   :  { %12385 = vst [vmem:[#allocation111_spill] sm:$0xff] %v10843_v11  ;;  %5832 = vrot.lane.b32.xlu1 %v4610_v52, %s7560_s17  ;;  %v4615_v11 = vld [vmem:[#allocation2 + $0xe2] sm:$0xff] }
 0x62f   :  { %v10846_v24 = vpop.permute.xlu0 %4862 }
 0x630   :  { %5834 = vrot.lane.b32.xlu0 %v4611_v46, %s7560_s17 }
 0x631   :  { %v10849_v26 = vpop.permute.xlu1 %4676 }
 0x632   :  { %12386 = vst [vmem:[#allocation127_spill] sm:$0xff] %v10849_v26  ;;  %4500 = vrot.lane.b32.xlu1 %v4420_v19, %s7556_s6  ;;  %v4613_v26 = vld [vmem:[#allocation2 + $0xca] sm:$0xff] }
 0x633   :  { %v10852_v59 = vpop.permute.xlu0 %5434 }
 0x634   :  { %4878 = vrot.lane.b32.xlu0 %v10854_v1, %s7561_s5 }
 0x635   :  { %v10858_v38 = vpop.permute.xlu1 %4864 }
 0x636   :  { %12388 = vst [vmem:[#allocation199_spill] sm:$0xff] %v10858_v38  ;;  %4692 = vrot.lane.b32.xlu1 %v4612_v39, %s7557_s0 }
 0x637   :  { %v10861_v52 = vpop.permute.xlu0 %4486 }
 0x638   :  { %12389 = vst [vmem:[#allocation94_spill] sm:$0xff] %v10861_v52  ;;  %5450 = vrot.lane.b32.xlu0 %v10854_v1, %s7558_s15 }
 0x639   :  { %v10865_v46 = vpop.permute.xlu1 %5056 }
 0x63a   :  { %12390 = vst [vmem:[#allocation52_spill] sm:$0xff] %v10865_v46  ;;  %4880 = vrot.lane.b32.xlu1 %v10867_v31, %s7561_s5 }
 0x63b   :  { %v10871_v33 = vpop.permute.xlu0 %4678 }
 0x63c   :  { %12392 = vst [vmem:[#allocation100_spill] sm:$0xff] %v10871_v33  ;;  %4502 = vrot.lane.b32.xlu0 %v4421_v35, %s7556_s6 }
 0x63d   :  { %v10874_v50 = vpop.permute.xlu1 %5248 }
 0x63e   :  { %12393 = vst [vmem:[#allocation114_spill] sm:$0xff] %v10874_v50  ;;  %5072 = vrot.lane.b32.xlu1 %v4420_v19, %s7562_s19 }
 0x63f   :  { %v10877_v27 = vpop.permute.xlu0 %5058 }
 0x640   :  { %4694 = vrot.lane.b32.xlu0 %v4613_v26, %s7557_s0 }
 0x641   :  { %v10880_v1 = vpop.permute.xlu1 %5436 }
 0x642   :  { %12394 = vst [vmem:[#allocation129_spill] sm:$0xff] %v10880_v1  ;;  %5264 = vrot.lane.b32.xlu1 %v4612_v39, %s7563_s20 }
 0x643   :  { %v10883_v46 = vpop.permute.xlu0 %5250 }
 0x644   :  { %12395 = vst [vmem:[#allocation141_spill] sm:$0xff] %v10883_v46  ;;  %5074 = vrot.lane.b32.xlu0 %v4421_v35, %s7562_s19 }
 0x645   :  { %v10886_v33 = vpop.permute.xlu1 %5628 }
 0x646   :  { %12396 = vst [vmem:[#allocation107_spill] sm:$0xff] %v10886_v33  ;;  %5452 = vrot.lane.b32.xlu1 %v10867_v31, %s7558_s15 }
 0x647   :  { %v10890_v50 = vpop.permute.xlu0 %5630 }
 0x648   :  { %12397 = vst [vmem:[#allocation60_spill] sm:$0xff] %v10890_v50  ;;  %5266 = vrot.lane.b32.xlu0 %v4613_v26, %s7563_s20  ;;  %v4422_v50 = vld [vmem:[#allocation2 + $0xd9] sm:$0xff] }
 0x649   :  { %v10893_v2 = vpop.permute.xlu1 %5820 }
 0x64a   :  { %12398 = vst [vmem:[#allocation96_spill] sm:$0xff] %v10893_v2  ;;  %5644 = vrot.lane.b32.xlu1 %v4420_v19, %s7559_s16  ;;  %v10910_v19 = vld [vmem:[#allocation2 + $0xc8] sm:$0xff] }
 0x64b   :  { %v10896_v52 = vpop.permute.xlu0 %5822  ;;  %12403 = vst [vmem:[#allocation118_spill] sm:$0xff] %v10910_v19 }
 0x64c   :  { %12399 = vst [vmem:[#allocation103_spill] sm:$0xff] %v10896_v52  ;;  %5646 = vrot.lane.b32.xlu0 %v4421_v35, %s7559_s16  ;;  %v4614_v52 = vld [vmem:[#allocation2 + $0xda] sm:$0xff] }
 0x64d   :  { %v10899_v1 = vpop.permute.xlu1 %4488 }
 0x64e   :  { %12400 = vst [vmem:[#allocation159_spill] sm:$0xff] %v10899_v1  ;;  %5836 = vrot.lane.b32.xlu1 %v4612_v39, %s7560_s17 }
 0x64f   :  { %v10902_v33 = vpop.permute.xlu0 %4866 }
 0x650   :  { %5838 = vrot.lane.b32.xlu0 %v4613_v26, %s7560_s17 }
 0x651   :  { %v10905_v31 = vpop.permute.xlu1 %4680 }
 0x652   :  { %12401 = vst [vmem:[#allocation202_spill] sm:$0xff] %v10905_v31  ;;  %4504 = vrot.lane.b32.xlu1 %v4422_v50, %s7556_s6  ;;  %v10923_v31 = vld [vmem:[#allocation2 + $0xd8] sm:$0xff] }
 0x653   :  { %v10908_v2 = vpop.permute.xlu0 %5438  ;;  %12407 = vst [vmem:[#allocation132_spill] sm:$0xff] %v10923_v31 }
 0x654   :  { %12402 = vst [vmem:[#allocation108_spill] sm:$0xff] %v10908_v2  ;;  %4882 = vrot.lane.b32.xlu0 %v10910_v19, %s7561_s5 }
 0x655   :  { %v10914_v35 = vpop.permute.xlu1 %4868 }
 0x656   :  { %12404 = vst [vmem:[#allocation145_spill] sm:$0xff] %v10914_v35  ;;  %4696 = vrot.lane.b32.xlu1 %v4614_v52, %s7557_s0 }
 0x657   :  { %v10917_v39 = vpop.permute.xlu0 %4490 }
 0x658   :  { %12405 = vst [vmem:[#allocation101_spill] sm:$0xff] %v10917_v39  ;;  %5454 = vrot.lane.b32.xlu0 %v10910_v19, %s7558_s15 }
 0x659   :  { %v10921_v26 = vpop.permute.xlu1 %5060 }
 0x65a   :  { %12406 = vst [vmem:[#allocation117_spill] sm:$0xff] %v10921_v26  ;;  %4884 = vrot.lane.b32.xlu1 %v10923_v31, %s7561_s5 }
 0x65b   :  { %v10927_v1 = vpop.permute.xlu0 %4682 }
 0x65c   :  { %12408 = vst [vmem:[#allocation116_spill] sm:$0xff] %v10927_v1  ;;  %4506 = vrot.lane.b32.xlu0 %v4423_v36, %s7556_s6 }
 0x65d   :  { %v10930_v35 = vpop.permute.xlu1 %5252 }
 0x65e   :  { %12409 = vst [vmem:[#allocation110_spill] sm:$0xff] %v10930_v35  ;;  %5076 = vrot.lane.b32.xlu1 %v4422_v50, %s7562_s19 }
 0x65f   :  { %v10933_v39 = vpop.permute.xlu0 %5062 }
 0x660   :  { %12410 = vst [vmem:[#allocation147_spill] sm:$0xff] %v10933_v39  ;;  %4698 = vrot.lane.b32.xlu0 %v4615_v11, %s7557_s0 }
 0x661   :  { %v10936_v19 = vpop.permute.xlu1 %5440 }
 0x662   :  { %12411 = vst [vmem:[#allocation120_spill] sm:$0xff] %v10936_v19  ;;  %5268 = vrot.lane.b32.xlu1 %v4614_v52, %s7563_s20 }
 0x663   :  { %v10939_v26 = vpop.permute.xlu0 %5254 }
 0x664   :  { %12412 = vst [vmem:[#allocation128_spill] sm:$0xff] %v10939_v26  ;;  %5078 = vrot.lane.b32.xlu0 %v4423_v36, %s7562_s19 }
 0x665   :  { %v10942_v1 = vpop.permute.xlu1 %5632 }
 0x666   :  { %12413 = vst [vmem:[#allocation143_spill] sm:$0xff] %v10942_v1  ;;  %5456 = vrot.lane.b32.xlu1 %v10923_v31, %s7558_s15 }
 0x667   :  { %v10946_v35 = vpop.permute.xlu0 %5634 }
 0x668   :  { %12414 = vst [vmem:[#allocation150_spill] sm:$0xff] %v10946_v35  ;;  %5270 = vrot.lane.b32.xlu0 %v4615_v11, %s7563_s20  ;;  %v4424_v35 = vld [vmem:[#allocation2 + $0xf1] sm:$0xff] }
 0x669   :  { %v10949_v39 = vpop.permute.xlu1 %5824 }
 0x66a   :  { %12415 = vst [vmem:[#allocation112_spill] sm:$0xff] %v10949_v39  ;;  %5648 = vrot.lane.b32.xlu1 %v4422_v50, %s7559_s16  ;;  %v10966_v50 = vld [vmem:[#allocation2 + $0xe0] sm:$0xff] }
 0x66b   :  { %v10952_v19 = vpop.permute.xlu0 %5826  ;;  %12421 = vst [vmem:[#allocation115_spill] sm:$0xff] %v10966_v50 }
 0x66c   :  { %12416 = vst [vmem:[#allocation121_spill] sm:$0xff] %v10952_v19  ;;  %5650 = vrot.lane.b32.xlu0 %v4423_v36, %s7559_s16 }
 0x66d   :  { %v10955_v26 = vpop.permute.xlu1 %4492 }
 0x66e   :  { %12417 = vst [vmem:[#allocation177_spill] sm:$0xff] %v10955_v26  ;;  %5840 = vrot.lane.b32.xlu1 %v4614_v52, %s7560_s17  ;;  %v4616_v26 = vld [vmem:[#allocation2 + $0xf2] sm:$0xff] }
 0x66f   :  { %v10958_v1 = vpop.permute.xlu0 %4870 }
 0x670   :  { %12418 = vst [vmem:[#allocation122_spill] sm:$0xff] %v10958_v1  ;;  %5842 = vrot.lane.b32.xlu0 %v4615_v11, %s7560_s17  ;;  %v4425_v1 = vld [vmem:[#allocation2 + $0xf9] sm:$0xff] }
 0x671   :  { %v10961_v31 = vpop.permute.xlu1 %4684 }
 0x672   :  { %12419 = vst [vmem:[#allocation131_spill] sm:$0xff] %v10961_v31  ;;  %4508 = vrot.lane.b32.xlu1 %v4424_v35, %s7556_s6  ;;  %v10979_v31 = vld [vmem:[#allocation2 + $0xf0] sm:$0xff] }
 0x673   :  { %v10964_v39 = vpop.permute.xlu0 %5442  ;;  %12425 = vst [vmem:[#allocation113_spill] sm:$0xff] %v10979_v31 }
 0x674   :  { %12420 = vst [vmem:[#allocation134_spill] sm:$0xff] %v10964_v39  ;;  %4886 = vrot.lane.b32.xlu0 %v10966_v50, %s7561_s5  ;;  %v4617_v39 = vld [vmem:[#allocation2 + $0xfa] sm:$0xff] }
 0x675   :  { %v10970_v36 = vpop.permute.xlu1 %4872 }
 0x676   :  { %12422 = vst [vmem:[#allocation124_spill] sm:$0xff] %v10970_v36  ;;  %4700 = vrot.lane.b32.xlu1 %v4616_v26, %s7557_s0 }
 0x677   :  { %v10973_v52 = vpop.permute.xlu0 %4494 }
 0x678   :  { %12423 = vst [vmem:[#allocation30_spill] sm:$0xff] %v10973_v52  ;;  %5458 = vrot.lane.b32.xlu0 %v10966_v50, %s7558_s15 }
 0x679   :  { %v10977_v11 = vpop.permute.xlu1 %5064 }
 0x67a   :  { %12424 = vst [vmem:[#allocation163_spill] sm:$0xff] %v10977_v11  ;;  %4888 = vrot.lane.b32.xlu1 %v10979_v31, %s7561_s5 }
 0x67b   :  { %v10983_v19 = vpop.permute.xlu0 %4686 }
 0x67c   :  { %12426 = vst [vmem:[#allocation133_spill] sm:$0xff] %v10983_v19  ;;  %4510 = vrot.lane.b32.xlu0 %v4425_v1, %s7556_s6 }
 0x67d   :  { %v10986_v36 = vpop.permute.xlu1 %5256 }
 0x67e   :  { %12427 = vst [vmem:[#allocation136_spill] sm:$0xff] %v10986_v36  ;;  %5080 = vrot.lane.b32.xlu1 %v4424_v35, %s7562_s19 }
 0x67f   :  { %v10989_v52 = vpop.permute.xlu0 %5066 }
 0x680   :  { %12428 = vst [vmem:[#allocation161_spill] sm:$0xff] %v10989_v52  ;;  %4702 = vrot.lane.b32.xlu0 %v4617_v39, %s7557_s0 }
 0x681   :  { %v10992_v50 = vpop.permute.xlu1 %5444 }
 0x682   :  { %12429 = vst [vmem:[#allocation152_spill] sm:$0xff] %v10992_v50  ;;  %5272 = vrot.lane.b32.xlu1 %v4616_v26, %s7563_s20 }
 0x683   :  { %v10995_v11 = vpop.permute.xlu0 %5258 }
 0x684   :  { %12430 = vst [vmem:[#allocation135_spill] sm:$0xff] %v10995_v11  ;;  %5082 = vrot.lane.b32.xlu0 %v4425_v1, %s7562_s19 }
 0x685   :  { %v10998_v19 = vpop.permute.xlu1 %5636 }
 0x686   :  { %12431 = vst [vmem:[#allocation165_spill] sm:$0xff] %v10998_v19  ;;  %5460 = vrot.lane.b32.xlu1 %v10979_v31, %s7558_s15 }
 0x687   :  { %v11002_v36 = vpop.permute.xlu0 %5638 }
 0x688   :  { %12432 = vst [vmem:[#allocation168_spill] sm:$0xff] %v11002_v36  ;;  %5274 = vrot.lane.b32.xlu0 %v4617_v39, %s7563_s20  ;;  %v4426_v36 = vld [vmem:[#allocation2 + $0x109] sm:$0xff] }
 0x689   :  { %v11005_v52 = vpop.permute.xlu1 %5828 }
 0x68a   :  { %12433 = vst [vmem:[#allocation126_spill] sm:$0xff] %v11005_v52  ;;  %5652 = vrot.lane.b32.xlu1 %v4424_v35, %s7559_s16  ;;  %v11022_v35 = vld [vmem:[#allocation2 + $0xf8] sm:$0xff] }
 0x68b   :  { %v11008_v50 = vpop.permute.xlu0 %5830  ;;  %12439 = vst [vmem:[#allocation181_spill] sm:$0xff] %v11022_v35 }
 0x68c   :  { %12434 = vst [vmem:[#allocation153_spill] sm:$0xff] %v11008_v50  ;;  %5654 = vrot.lane.b32.xlu0 %v4425_v1, %s7559_s16  ;;  %v4618_v50 = vld [vmem:[#allocation2 + $0x10a] sm:$0xff] }
 0x68d   :  { %v11011_v11 = vpop.permute.xlu1 %4496 }
 0x68e   :  { %12435 = vst [vmem:[#allocation179_spill] sm:$0xff] %v11011_v11  ;;  %5844 = vrot.lane.b32.xlu1 %v4616_v26, %s7560_s17 }
 0x68f   :  { %v11014_v19 = vpop.permute.xlu0 %4874 }
 0x690   :  { %12436 = vst [vmem:[#allocation138_spill] sm:$0xff] %v11014_v19  ;;  %5846 = vrot.lane.b32.xlu0 %v4617_v39, %s7560_s17 }
 0x691   :  { %v11017_v31 = vpop.permute.xlu1 %4688 }
 0x692   :  { %12437 = vst [vmem:[#allocation142_spill] sm:$0xff] %v11017_v31  ;;  %4512 = vrot.lane.b32.xlu1 %v4426_v36, %s7556_s6  ;;  %v4808_v31 = vld [vmem:[#allocation2 + $0x108] sm:$0xff] }
 0x693   :  { %v11020_v52 = vpop.permute.xlu0 %5446 }
 0x694   :  { %12438 = vst [vmem:[#allocation89_spill] sm:$0xff] %v11020_v52  ;;  %4890 = vrot.lane.b32.xlu0 %v11022_v35, %s7561_s5  ;;  %v4427_v52 = vld [vmem:[#allocation2 + $0x111] sm:$0xff] }
 0x695   :  { %v11026_v1 = vpop.permute.xlu1 %4876 }
 0x696   :  { %12440 = vst [vmem:[#allocation130_spill] sm:$0xff] %v11026_v1  ;;  %4704 = vrot.lane.b32.xlu1 %v4618_v50, %s7557_s0 }
 0x697   :  { %v11029_v26 = vpop.permute.xlu0 %4498 }
 0x698   :  { %12441 = vst [vmem:[#allocation204_spill] sm:$0xff] %v11029_v26  ;;  %5462 = vrot.lane.b32.xlu0 %v11022_v35, %s7558_s15  ;;  %v4619_v26 = vld [vmem:[#allocation2 + $0x112] sm:$0xff] }
 0x699   :  { %v11033_v39 = vpop.permute.xlu1 %5068 }
 0x69a   :  { %12442 = vst [vmem:[#allocation139_spill] sm:$0xff] %v11033_v39  ;;  %4892 = vrot.lane.b32.xlu1 %v4808_v31, %s7561_s5 }
 0x69b   :  { %v11036_v11 = vpop.permute.xlu0 %4690 }
 0x69c   :  { %12443 = vst [vmem:[#allocation146_spill] sm:$0xff] %v11036_v11  ;;  %4514 = vrot.lane.b32.xlu0 %v4427_v52, %s7556_s6 }
 0x69d   :  { %v11039_v19 = vpop.permute.xlu1 %5260 }
 0x69e   :  { %12444 = vst [vmem:[#allocation156_spill] sm:$0xff] %v11039_v19  ;;  %5084 = vrot.lane.b32.xlu1 %v4426_v36, %s7562_s19 }
 0x69f   :  { %v11042_v1 = vpop.permute.xlu0 %5070 }
 0x6a0   :  { %12445 = vst [vmem:[#allocation154_spill] sm:$0xff] %v11042_v1  ;;  %4706 = vrot.lane.b32.xlu0 %v4619_v26, %s7557_s0 }
 0x6a1   :  { %v11045_v35 = vpop.permute.xlu1 %5448 }
 0x6a2   :  { %12446 = vst [vmem:[#allocation140_spill] sm:$0xff] %v11045_v35  ;;  %5276 = vrot.lane.b32.xlu1 %v4618_v50, %s7563_s20 }
 0x6a3   :  { %v11048_v39 = vpop.permute.xlu0 %5262 }
 0x6a4   :  { %12447 = vst [vmem:[#allocation183_spill] sm:$0xff] %v11048_v39  ;;  %5086 = vrot.lane.b32.xlu0 %v4427_v52, %s7562_s19 }
 0x6a5   :  { %v11051_v11 = vpop.permute.xlu1 %5640 }
 0x6a6   :  { %12448 = vst [vmem:[#allocation170_spill] sm:$0xff] %v11051_v11  ;;  %5464 = vrot.lane.b32.xlu1 %v4808_v31, %s7558_s15 }
 0x6a7   :  { %v11054_v19 = vpop.permute.xlu0 %5642 }
 0x6a8   :  { %12449 = vst [vmem:[#allocation144_spill] sm:$0xff] %v11054_v19  ;;  %5278 = vrot.lane.b32.xlu0 %v4619_v26, %s7563_s20  ;;  %v4428_v19 = vld [vmem:[#allocation2 + $0x121] sm:$0xff] }
 0x6a9   :  { %v11057_v1 = vpop.permute.xlu1 %5832 }
 0x6aa   :  { %12450 = vst [vmem:[#allocation149_spill] sm:$0xff] %v11057_v1  ;;  %5656 = vrot.lane.b32.xlu1 %v4426_v36, %s7559_s16  ;;  %v4809_v36 = vld [vmem:[#allocation2 + $0x110] sm:$0xff] }
 0x6ab   :  { %v11060_v46 = vpop.permute.xlu0 %5834 }
 0x6ac   :  { %12451 = vst [vmem:[#allocation158_spill] sm:$0xff] %v11060_v46  ;;  %5658 = vrot.lane.b32.xlu0 %v4427_v52, %s7559_s16  ;;  %v4620_v52 = vld [vmem:[#allocation2 + $0x122] sm:$0xff] }
 0x6ad   :  { %v11063_v35 = vpop.permute.xlu1 %4500 }
 0x6ae   :  { %12452 = vst [vmem:[#allocation172_spill] sm:$0xff] %v11063_v35  ;;  %5848 = vrot.lane.b32.xlu1 %v4618_v50, %s7560_s17 }
 0x6af   :  { %v11066_v39 = vpop.permute.xlu0 %4878 }
 0x6b0   :  { %12453 = vst [vmem:[#allocation186_spill] sm:$0xff] %v11066_v39  ;;  %5850 = vrot.lane.b32.xlu0 %v4619_v26, %s7560_s17  ;;  %v4621_v39 = vld [vmem:[#allocation2 + $0x12a] sm:$0xff] }
 0x6b1   :  { %v11069_v31 = vpop.permute.xlu1 %4692 }
 0x6b2   :  { %12454 = vst [vmem:[#allocation148_spill] sm:$0xff] %v11069_v31  ;;  %4516 = vrot.lane.b32.xlu1 %v4428_v19, %s7556_s6  ;;  %v4810_v31 = vld [vmem:[#allocation2 + $0x120] sm:$0xff] }
 0x6b3   :  { %v11072_v1 = vpop.permute.xlu0 %5450 }
 0x6b4   :  { %12455 = vst [vmem:[#allocation151_spill] sm:$0xff] %v11072_v1  ;;  %4894 = vrot.lane.b32.xlu0 %v4809_v36, %s7561_s5  ;;  %v4429_v1 = vld [vmem:[#allocation2 + $0x129] sm:$0xff] }
 0x6b5   :  { %v11075_v46 = vpop.permute.xlu1 %4880 }
 0x6b6   :  { %12456 = vst [vmem:[#allocation157_spill] sm:$0xff] %v11075_v46  ;;  %4708 = vrot.lane.b32.xlu1 %v4620_v52, %s7557_s0 }
 0x6b7   :  { %v11078_v50 = vpop.permute.xlu0 %4502 }
 0x6b8   :  { %12457 = vst [vmem:[#allocation164_spill] sm:$0xff] %v11078_v50  ;;  %5466 = vrot.lane.b32.xlu0 %v4809_v36, %s7558_s15 }
 0x6b9   :  { %v11081_v26 = vpop.permute.xlu1 %5072 }
 0x6ba   :  { %12458 = vst [vmem:[#allocation167_spill] sm:$0xff] %v11081_v26  ;;  %4896 = vrot.lane.b32.xlu1 %v4810_v31, %s7561_s5 }
 0x6bb   :  { %v11084_v35 = vpop.permute.xlu0 %4694 }
 0x6bc   :  { %12459 = vst [vmem:[#allocation171_spill] sm:$0xff] %v11084_v35  ;;  %4518 = vrot.lane.b32.xlu0 %v4429_v1, %s7556_s6 }
 0x6bd   :  { %v11087_v11 = vpop.permute.xlu1 %5264 }
 0x6be   :  { %12460 = vst [vmem:[#allocation175_spill] sm:$0xff] %v11087_v11  ;;  %5088 = vrot.lane.b32.xlu1 %v4428_v19, %s7562_s19 }
 0x6bf   :  { %v11090_v46 = vpop.permute.xlu0 %5074 }
 0x6c0   :  { %12461 = vst [vmem:[#allocation193_spill] sm:$0xff] %v11090_v46  ;;  %4710 = vrot.lane.b32.xlu0 %v4621_v39, %s7557_s0 }
 0x6c1   :  { %v11093_v36 = vpop.permute.xlu1 %5452 }
 0x6c2   :  { %12462 = vst [vmem:[#allocation189_spill] sm:$0xff] %v11093_v36  ;;  %5280 = vrot.lane.b32.xlu1 %v4620_v52, %s7563_s20 }
 0x6c3   :  { %v11096_v26 = vpop.permute.xlu0 %5266 }
 0x6c4   :  { %12463 = vst [vmem:[#allocation160_spill] sm:$0xff] %v11096_v26  ;;  %5090 = vrot.lane.b32.xlu0 %v4429_v1, %s7562_s19 }
 0x6c5   :  { %v11099_v35 = vpop.permute.xlu1 %5644 }
 0x6c6   :  { %12464 = vst [vmem:[#allocation105_spill] sm:$0xff] %v11099_v35  ;;  %5468 = vrot.lane.b32.xlu1 %v4810_v31, %s7558_s15 }
 0x6c7   :  { %v11102_v11 = vpop.permute.xlu0 %5646 }
 0x6c8   :  { %12465 = vst [vmem:[#allocation174_spill] sm:$0xff] %v11102_v11  ;;  %5282 = vrot.lane.b32.xlu0 %v4621_v39, %s7563_s20  ;;  %v4430_v11 = vld [vmem:[#allocation2 + $0x139] sm:$0xff] }
 0x6c9   :  { %v11105_v46 = vpop.permute.xlu1 %5836 }
 0x6ca   :  { %12466 = vst [vmem:[#allocation203_spill] sm:$0xff] %v11105_v46  ;;  %5660 = vrot.lane.b32.xlu1 %v4428_v19, %s7559_s16  ;;  %v4811_v19 = vld [vmem:[#allocation2 + $0x128] sm:$0xff] }
 0x6cb   :  { %v11108_v50 = vpop.permute.xlu0 %5838 }
 0x6cc   :  { %12467 = vst [vmem:[#allocation169_spill] sm:$0xff] %v11108_v50  ;;  %5662 = vrot.lane.b32.xlu0 %v4429_v1, %s7559_s16  ;;  %v4622_v1 = vld [vmem:[#allocation2 + $0x13a] sm:$0xff] }
 0x6cd   :  { %v11111_v36 = vpop.permute.xlu1 %4504 }
 0x6ce   :  { %12468 = vst [vmem:[#allocation162_spill] sm:$0xff] %v11111_v36  ;;  %5852 = vrot.lane.b32.xlu1 %v4620_v52, %s7560_s17 }
 0x6cf   :  { %v11114_v26 = vpop.permute.xlu0 %4882 }
 0x6d0   :  { %12469 = vst [vmem:[#allocation176_spill] sm:$0xff] %v11114_v26  ;;  %5854 = vrot.lane.b32.xlu0 %v4621_v39, %s7560_s17  ;;  %v4623_v26 = vld [vmem:[#allocation2 + $0x142] sm:$0xff] }
 0x6d1   :  { %v11117_v31 = vpop.permute.xlu1 %4696 }
 0x6d2   :  { %12470 = vst [vmem:[#allocation191_spill] sm:$0xff] %v11117_v31  ;;  %4520 = vrot.lane.b32.xlu1 %v4430_v11, %s7556_s6  ;;  %v4812_v31 = vld [vmem:[#allocation2 + $0x138] sm:$0xff] }
 0x6d3   :  { %v11120_v46 = vpop.permute.xlu0 %5454 }
 0x6d4   :  { %12471 = vst [vmem:[#allocation197_spill] sm:$0xff] %v11120_v46  ;;  %4898 = vrot.lane.b32.xlu0 %v4811_v19, %s7561_s5  ;;  %v4431_v46 = vld [vmem:[#allocation2 + $0x141] sm:$0xff] }
 0x6d5   :  { %v11123_v50 = vpop.permute.xlu1 %4884 }
 0x6d6   :  { %12472 = vst [vmem:[#allocation178_spill] sm:$0xff] %v11123_v50  ;;  %4712 = vrot.lane.b32.xlu1 %v4622_v1, %s7557_s0 }
 0x6d7   :  { %v11126_v52 = vpop.permute.xlu0 %4506 }
 0x6d8   :  { %12473 = vst [vmem:[#allocation119_spill] sm:$0xff] %v11126_v52  ;;  %5470 = vrot.lane.b32.xlu0 %v4811_v19, %s7558_s15 }
 0x6d9   :  { %v11129_v39 = vpop.permute.xlu1 %5076 }
 0x6da   :  { %12474 = vst [vmem:[#allocation182_spill] sm:$0xff] %v11129_v39  ;;  %4900 = vrot.lane.b32.xlu1 %v4812_v31, %s7561_s5 }
 0x6db   :  { %v11132_v36 = vpop.permute.xlu0 %4698 }
 0x6dc   :  { %12475 = vst [vmem:[#allocation195_spill] sm:$0xff] %v11132_v36  ;;  %4522 = vrot.lane.b32.xlu0 %v4431_v46, %s7556_s6 }
 0x6dd   :  { %v11135_v35 = vpop.permute.xlu1 %5268 }
 0x6de   :  { %12476 = vst [vmem:[#allocation217_spill] sm:$0xff] %v11135_v35  ;;  %5092 = vrot.lane.b32.xlu1 %v4430_v11, %s7562_s19 }
 0x6df   :  { %v11138_v50 = vpop.permute.xlu0 %5078 }
 0x6e0   :  { %12477 = vst [vmem:[#allocation180_spill] sm:$0xff] %v11138_v50  ;;  %4714 = vrot.lane.b32.xlu0 %v4623_v26, %s7557_s0 }
 0x6e1   :  { %v11141_v19 = vpop.permute.xlu1 %5456 }
 0x6e2   :  { %12478 = vst [vmem:[#allocation185_spill] sm:$0xff] %v11141_v19  ;;  %5284 = vrot.lane.b32.xlu1 %v4622_v1, %s7563_s20 }
 0x6e3   :  { %v11144_v39 = vpop.permute.xlu0 %5270 }
 0x6e4   :  { %12479 = vst [vmem:[#allocation200_spill] sm:$0xff] %v11144_v39  ;;  %5094 = vrot.lane.b32.xlu0 %v4431_v46, %s7562_s19 }
 0x6e5   :  { %v11147_v36 = vpop.permute.xlu1 %5648 }
 0x6e6   :  { %12480 = vst [vmem:[#allocation211_spill] sm:$0xff] %v11147_v36  ;;  %5472 = vrot.lane.b32.xlu1 %v4812_v31, %s7558_s15  ;;  %v7522_v36 = vld [vmem:[#allocation2 + $0x8] sm:$0xff] }
 0x6e7   :  { %v11150_v35 = vpop.permute.xlu0 %5650  ;;  %v12486_v31 = vld [vmem:[#allocation62_spill] sm:$0xff] }
 0x6e8   :  { %12481 = vst [vmem:[#allocation187_spill] sm:$0xff] %v11150_v35  ;;  %5286 = vrot.lane.b32.xlu0 %v4623_v26, %s7563_s20  ;;  %v4565_v2 = vadd.f32 %v7522_v36, %v12486_v31  ;;  %v7523_v36 = vld [vmem:[#allocation2] sm:$0xff] }
 0x6e9   :  { %v11153_v50 = vpop.permute.xlu1 %5840  ;;  %v12490_v31 = vld [vmem:[#allocation61_spill] sm:$0xff] }
 0x6ea   :  { %12482 = vst [vmem:[#allocation207_spill] sm:$0xff] %v11153_v50  ;;  %5664 = vrot.lane.b32.xlu1 %v4430_v11, %s7559_s16  ;;  %v4432_v50 = vld [vmem:[#allocation2 + $0x151] sm:$0xff] }
 0x6eb   :  { %v11156_v52 = vpop.permute.xlu0 %5842 }
 0x6ec   :  { %12483 = vst [vmem:[#allocation137_spill] sm:$0xff] %v11156_v52  ;;  %5666 = vrot.lane.b32.xlu0 %v4431_v46, %s7559_s16  ;;  %v4813_v52 = vld [vmem:[#allocation2 + $0x140] sm:$0xff]  ;;  %v12489_v46 = vld [vmem:[#allocation64_spill] sm:$0xff] }
 0x6ed   :  { %v11159_v19 = vpop.permute.xlu1 %4508  ;;  %v4757_v38 = vadd.f32 %v12489_v46, %v4565_v2  ;;  %v4814_v2 = vld [vmem:[#allocation2 + $0x150] sm:$0xff] }
 0x6ee   :  { %12484 = vst [vmem:[#allocation213_spill] sm:$0xff] %v11159_v19  ;;  %5856 = vrot.lane.b32.xlu1 %v4622_v1, %s7560_s17  ;;  %v12492_v46 = vld [vmem:[#allocation63_spill] sm:$0xff] }
 0x6ef   :  { %v11162_v39 = vpop.permute.xlu0 %4886  ;;  %v4949_v1 = vadd.f32 %v10740_v25, %v4757_v38  ;;  %v4433_v38 = vld [vmem:[#allocation2 + $0x159] sm:$0xff] }
 0x6f0   :  { %12485 = vst [vmem:[#allocation206_spill] sm:$0xff] %v11162_v39  ;;  %5858 = vrot.lane.b32.xlu0 %v4623_v26, %s7560_s17  ;;  %v4624_v39 = vld [vmem:[#allocation2 + $0x152] sm:$0xff]  ;;  %v4564_v26 = vadd.f32 %v7523_v36, %v12490_v31 }
 0x6f1   :  { %v11166_v35 = vpop.permute.xlu1 %4700 }
 0x6f2   :  { %12487 = vst [vmem:[#allocation219_spill] sm:$0xff] %v11166_v35  ;;  %4524 = vrot.lane.b32.xlu1 %v4432_v50, %s7556_s6  ;;  %v4756_v37 = vadd.f32 %v12492_v46, %v4564_v26  ;;  %v4625_v26 = vld [vmem:[#allocation2 + $0x15a] sm:$0xff] }
 0x6f3   :  { %v11169_v11 = vpop.permute.xlu0 %5458 }
 0x6f4   :  { %12488 = vst [vmem:[#allocation166_spill] sm:$0xff] %v11169_v11  ;;  %4902 = vrot.lane.b32.xlu0 %v4813_v52, %s7561_s5  ;;  %v5141_v11 = vadd.f32 %v10728_v0, %v4949_v1  ;;  %v4948_v36 = vadd.f32 %v10712_v10, %v4756_v37  ;;  %v4566_v0 = vadd.f32 %v10586_v4, %v10697_v34 }
 0x6f5   :  { %v11174_v19 = vpop.permute.xlu1 %4888 }
 0x6f6   :  { %4716 = vrot.lane.b32.xlu1 %v4624_v39, %s7557_s0  ;;  %v5333_v31 = vadd.f32 %v10734_v61, %v5141_v11  ;;  %v4758_v10 = vadd.f32 %v10706_v15, %v4566_v0 }
 0x6f7   :  { %v11178_v35 = vpop.permute.xlu0 %4510 }
 0x6f8   :  { %12491 = vst [vmem:[#allocation212_spill] sm:$0xff] %v11178_v35  ;;  %5474 = vrot.lane.b32.xlu0 %v4813_v52, %s7558_s15  ;;  %v5140_v52 = vadd.f32 %v10718_v45, %v4948_v36  ;;  %v5525_v46 = vadd.f32 %v10796_v53, %v5333_v31  ;;  %v4950_v11 = vadd.f32 %v10746_v28, %v4758_v10 }
 0x6f9   :  { %v11182_v18 = vpop.permute.xlu1 %5080 }
 0x6fa   :  { %4904 = vrot.lane.b32.xlu1 %v4814_v2, %s7561_s5  ;;  %v5332_v61 = vadd.f32 %v10725_v12, %v5140_v52  ;;  %v5717_v45 = vadd.f32 %v10778_v16, %v5525_v46  ;;  %v5142_v53 = vadd.f32 %v10753_v56, %v4950_v11  ;;  %v4567_v12 = vadd.f32 %v10605_v20, %v10715_v22  ;;  %v11270_v11 = vld [vmem:[#allocation2 + $0x16a] sm:$0xff] }
 0x6fb   :  { %v11186_v25 = vpop.permute.xlu0 %4702 }
 0x6fc   :  { %4526 = vrot.lane.b32.xlu0 %v4433_v38, %s7556_s6  ;;  %v5524_v4 = vadd.f32 %v10768_v51, %v5332_v61  ;;  %v5334_v28 = vadd.f32 %v10762_v23, %v5142_v53  ;;  %v5909_v16 = vadd.f32 %v10784_v6, %v5717_v45  ;;  %v4759_v56 = vadd.f32 %v10722_v49, %v4567_v12  ;;  %v11286_v53 = vld [vmem:[#allocation2 + $0x168] sm:$0xff] }
 0x6fd   :  { %v11191_v35 = vpop.permute.xlu1 %5272  ;;  %12494 = vst [vmem:[#allocation216_spill] sm:$0xff] %v11286_v53 }
 0x6fe   :  { %5096 = vrot.lane.b32.xlu1 %v4432_v50, %s7562_s19  ;;  %v5716_v15 = vadd.f32 %v10774_v41, %v5524_v4  ;;  %v5526_v41 = vadd.f32 %v10824_v48, %v5334_v28  ;;  %v4951_v22 = vadd.f32 %v10790_v42, %v4759_v56  ;;  %v5941_v6 = vadd.f32 %v5909_v16, %v10108_v30  ;;  %v12498_v28 = vld [vmem:[#allocation199_spill] sm:$0xff]  ;;  %v12499_v16 = vld [vmem:[#allocation108_spill] sm:$0xff]  ;;  %v12500_v56 = vld [vmem:[#allocation141_spill] sm:$0xff] }
 0x6ff   :  { %v11197_v1 = vpop.permute.xlu0 %5082  ;;  %v4569_v48 = vadd.f32 %v10630_v17, %v10749_v57  ;;  %v11253_v17 = vld [vmem:[#allocation2 + $0x169] sm:$0xff] }
 0x700   :  { %4718 = vrot.lane.b32.xlu0 %v4625_v26, %s7557_s0  ;;  %v5908_v51 = vadd.f32 %v10781_v13, %v5716_v15  ;;  %v5718_v23 = vadd.f32 %v10830_v14, %v5526_v41  ;;  %v5143_v42 = vadd.f32 %v10765_v40, %v4951_v22  ;;  %v12501_v41 = vld [vmem:[#allocation111_spill] sm:$0xff] }
 0x701   :  { %v11203_v37 = vpop.permute.xlu1 %5460  ;;  %v4761_v46 = vadd.f32 %v10759_v60, %v4569_v48  ;;  %v12504_v48 = vld [vmem:[#allocation94_spill] sm:$0xff] }
 0x702   :  { %5288 = vrot.lane.b32.xlu1 %v4624_v39, %s7563_s20  ;;  %v5940_v20 = vadd.f32 %v5908_v51, %v10108_v30  ;;  %v5910_v49 = vadd.f32 %v10837_v58, %v5718_v23  ;;  %v4571_v58 = vadd.f32 %v10658_v47, %v10805_v3  ;;  %v4568_v47 = vadd.f32 %v10609_v21, %v10731_v62  ;;  %v12503_v23 = vld [vmem:[#allocation129_spill] sm:$0xff] }
 0x703   :  { %v11208_v34 = vpop.permute.xlu0 %5274  ;;  %v4953_v40 = vadd.f32 %v10846_v24, %v4761_v46 }
 0x704   :  { %5098 = vrot.lane.b32.xlu0 %v4433_v38, %s7562_s19  ;;  %v6699_v52 = vmul.f32 -1.442695, %v5940_v20  ;;  %v4763_v57 = vadd.f32 %v10815_v43, %v4571_v58  ;;  %v4760_v24 = vadd.f32 %v10737_v7, %v4568_v47  ;;  %v12502_v20 = vld [vmem:[#allocation51_spill] sm:$0xff]  ;;  %v12507_v58 = vld [vmem:[#allocation134_spill] sm:$0xff] }
 0x705   :  { %v11214_v36 = vpop.permute.xlu1 %5652  ;;  %v5145_v4 = vadd.f32 %v10821_v32, %v4953_v40  ;;  %v4572_v22 = vadd.f32 %v12502_v20, %v12501_v41  ;;  %v11316_v40 = vld [vmem:[#allocation2 + $0x172] sm:$0xff]  ;;  %v12517_v41 = vld [vmem:[#allocation150_spill] sm:$0xff] }
 0x706   :  { %5476 = vrot.lane.b32.xlu1 %v4814_v2, %s7558_s15  ;;  %7385 = vpow2.f32 %v6699_v52  ;;  %v4955_v43 = vadd.f32 %v10902_v33, %v4763_v57  ;;  %v4952_v62 = vadd.f32 %v10802_v29, %v4760_v24  ;;  %v4570_v33 = vadd.f32 %v10637_v55, %v10787_v8  ;;  %v11294_v55 = vld [vmem:[#allocation2 + $0x171] sm:$0xff]  ;;  %v12496_v8 = vld [vmem:[#allocation201_spill] sm:$0xff] }
 0x707   :  { %v11221_v31 = vpop.permute.xlu0 %5654  ;;  %v5337_v29 = vadd.f32 %v10827_v63, %v5145_v4  ;;  %v12505_v52 = vld [vmem:[#allocation99_spill] sm:$0xff]  ;;  %v12510_v4 = vld [vmem:[#allocation100_spill] sm:$0xff] }
 0x708   :  { %5290 = vrot.lane.b32.xlu0 %v4625_v26, %s7563_s20  ;;  %v5144_v45 = vadd.f32 %v10809_v44, %v4952_v62  ;;  %v4762_v15 = vadd.f32 %v10793_v9, %v4570_v33  ;;  %v12511_v33 = vld [vmem:[#allocation114_spill] sm:$0xff] }
 0x709   :  { %v11227_v0 = vpop.permute.xlu1 %5844  ;;  %v5529_v9 = vadd.f32 %v12499_v16, %v5337_v29 }
 0x70a   :  { %5668 = vrot.lane.b32.xlu1 %v4432_v50, %s7559_s16  ;;  %v6700_v50 = vmul.f32 -1.442695, %v5941_v6  ;;  %v4954_v51 = vadd.f32 %v12498_v28, %v4762_v15  ;;  %v12513_v15 = vld [vmem:[#allocation96_spill] sm:$0xff] }
 0x70b   :  { %v11233_v13 = vpop.permute.xlu0 %5846 }
 0x70c   :  { %5670 = vrot.lane.b32.xlu0 %v4433_v38, %s7559_s16  ;;  %v5942_v38 = vadd.f32 %v5910_v49, %v10108_v30  ;;  %7387 = vpow2.f32 %v6700_v50  ;;  %v12506_v50 = vld [vmem:[#allocation52_spill] sm:$0xff] }
 0x70d   :  { %v11238_v2 = vpop.permute.xlu1 %4512  ;;  %v5146_v46 = vadd.f32 %v12506_v50, %v4954_v51  ;;  %v12515_v51 = vld [vmem:[#allocation120_spill] sm:$0xff]  ;;  %v12522_v50 = vld [vmem:[#allocation117_spill] sm:$0xff] }
 0x70e   :  { %5860 = vrot.lane.b32.xlu1 %v4624_v39, %s7560_s17  ;;  %v5335_v39 = vadd.f32 %v10771_v5, %v5143_v42  ;;  %v6701_v3 = vmul.f32 -1.442695, %v5942_v38  ;;  %v4573_v42 = vadd.f32 %v12505_v52, %v12504_v48  ;;  %v12520_v48 = vld [vmem:[#allocation101_spill] sm:$0xff] }
 0x70f   :  { %v11244_v14 = vpop.permute.xlu0 %4890  ;;  %v12521_v52 = vld [vmem:[#allocation109_spill] sm:$0xff] }
 0x710   :  { %5862 = vrot.lane.b32.xlu0 %v4625_v26, %s7560_s17  ;;  %v4815_v26 = vld [vmem:[#allocation2 + $0x158] sm:$0xff]  ;;  %v5527_v61 = vadd.f32 %v10852_v59, %v5335_v39  ;;  %7389 = vpow2.f32 %v6701_v3  ;;  %v5147_v59 = vadd.f32 %v10877_v27, %v4955_v43  ;;  %v12497_v27 = vld [vmem:[#allocation98_spill] sm:$0xff]  ;;  %v12509_v3 = vld [vmem:[#allocation107_spill] sm:$0xff]  ;;  %v4765_v62 = vadd.f32 %v12510_v4, %v4573_v42 }
 0x711   :  { %v11251_v10 = vpop.permute.xlu1 %4704  ;;  %v4575_v42 = vadd.f32 %v12521_v52, %v12520_v48  ;;  %v12535_v52 = vld [vmem:[#allocation25_spill] sm:$0xff] }
 0x712   :  { %4528 = vrot.lane.b32.xlu1 %v11253_v17, %s7556_s6  ;;  %v5719_v7 = vadd.f32 %v10834_v54, %v5527_v61  ;;  %v5336_v54 = vadd.f32 %v12496_v8, %v5144_v45  ;;  %v5339_v63 = vadd.f32 %v12500_v56, %v5147_v59  ;;  %v12512_v59 = vld [vmem:[#allocation60_spill] sm:$0xff]  ;;  %v12514_v8 = vld [vmem:[#allocation145_spill] sm:$0xff]  ;;  %v12516_v56 = vld [vmem:[#allocation122_spill] sm:$0xff] }
 0x713   :  { %v11260_v60 = vpop.permute.xlu0 %5462  ;;  %v7386_v39 = vpop.eup %7385  ;;  %v5721_v45 = vadd.f32 %v12512_v59, %v5529_v9  ;;  %v12518_v9 = vld [vmem:[#allocation159_spill] sm:$0xff] }
 0x714   :  { %4906 = vrot.lane.b32.xlu0 %v4815_v26, %s7561_s5  ;;  %v5911_v44 = vadd.f32 %v12497_v27, %v5719_v7  ;;  %v5528_v6 = vadd.f32 %v12503_v23, %v5336_v54  ;;  %v5531_v38 = vadd.f32 %v12507_v58, %v5339_v63  ;;  %v5338_v7 = vadd.f32 %v12511_v33, %v5146_v46  ;;  %v12519_v23 = vld [vmem:[#allocation77_spill] sm:$0xff] }
 0x715   :  { %v11268_v5 = vpop.permute.xlu1 %4892  ;;  %v6068_v28 = vadd.f32 1.0, %v7386_v39  ;;  %v4957_v63 = vadd.f32 %v12516_v56, %v4765_v62  ;;  %v12523_v39 = vld [vmem:[#allocation103_spill] sm:$0xff]  ;;  %v12526_v62 = vld [vmem:[#allocation116_spill] sm:$0xff]  ;;  %v12530_v56 = vld [vmem:[#allocation121_spill] sm:$0xff] }
 0x716   :  { %4720 = vrot.lane.b32.xlu1 %v11270_v11, %s7557_s0  ;;  %v5720_v61 = vadd.f32 %v12509_v3, %v5528_v6  ;;  %v5943_v24 = vadd.f32 %v5911_v44, %v10108_v30  ;;  %v5530_v16 = vadd.f32 %v12515_v51, %v5338_v7  ;;  %v5723_v20 = vadd.f32 %v12517_v41, %v5531_v38  ;;  %v12527_v7 = vld [vmem:[#allocation110_spill] sm:$0xff]  ;;  %v12529_v51 = vld [vmem:[#allocation147_spill] sm:$0xff] }
 0x717   :  { %v11275_v21 = vpop.permute.xlu0 %4514  ;;  %v4574_v6 = vadd.f32 %v12519_v23, %v12518_v9  ;;  %v5913_v38 = vadd.f32 %v12523_v39, %v5721_v45  ;;  %v4767_v33 = vadd.f32 %v12526_v62, %v4575_v42  ;;  %7391 = vrcp.f32 %v6068_v28  ;;  %v12532_v9 = vld [vmem:[#allocation152_spill] sm:$0xff]  ;;  %v12537_v39 = vld [vmem:[#allocation123_spill] sm:$0xff] }
 0x718   :  { %12493 = vst [vmem:[#allocation214_spill] sm:$0xff] %v11275_v21  ;;  %5478 = vrot.lane.b32.xlu0 %v4815_v26, %s7558_s15  ;;  %v12508_v26 = vld [vmem:[#allocation127_spill] sm:$0xff]  ;;  %v5912_v29 = vadd.f32 %v12513_v15, %v5720_v61  ;;  %v6702_v58 = vmul.f32 -1.442695, %v5943_v24  ;;  %v5149_v24 = vadd.f32 %v12529_v51, %v4957_v63  ;;  %v5915_v45 = vadd.f32 %v12530_v56, %v5723_v20  ;;  %v12534_v20 = vld [vmem:[#allocation177_spill] sm:$0xff]  ;;  %v12543_v56 = vld [vmem:[#allocation136_spill] sm:$0xff] }
 0x719   :  { %v11284_v32 = vpop.permute.xlu1 %5084  ;;  %v4764_v47 = vadd.f32 %v12508_v26, %v4572_v22  ;;  %v7388_v43 = vpop.eup %7387  ;;  %v12524_v26 = vld [vmem:[#allocation143_spill] sm:$0xff]  ;;  %v5945_v63 = vadd.f32 %v5913_v38, %v10108_v30  ;;  %v4576_v42 = vadd.f32 %v12535_v52, %v12534_v20  ;;  %v12541_v38 = vld [vmem:[#allocation128_spill] sm:$0xff]  ;;  %v12547_v20 = vld [vmem:[#allocation130_spill] sm:$0xff] }
 0x71a   :  { %4908 = vrot.lane.b32.xlu1 %v11286_v53, %s7561_s5  ;;  %v6069_v22 = vadd.f32 1.0, %v7388_v43  ;;  %v5944_v61 = vadd.f32 %v5912_v29, %v10108_v30  ;;  %v12525_v43 = vld [vmem:[#allocation202_spill] sm:$0xff]  ;;  %v12531_v29 = vld [vmem:[#allocation124_spill] sm:$0xff] }
 0x71b   :  { %v11292_v12 = vpop.permute.xlu0 %4706  ;;  %v4956_v54 = vadd.f32 %v12514_v8, %v4764_v47  ;;  %v5722_v47 = vadd.f32 %v12524_v26, %v5530_v16  ;;  %v4766_v4 = vadd.f32 %v12525_v43, %v4574_v6  ;;  %v12528_v8 = vld [vmem:[#allocation112_spill] sm:$0xff]  ;;  %v12533_v6 = vld [vmem:[#allocation138_spill] sm:$0xff]  ;;  %v12538_v26 = vld [vmem:[#allocation163_spill] sm:$0xff] }
 0x71c   :  { %12495 = vst [vmem:[#allocation208_spill] sm:$0xff] %v11292_v12  ;;  %4530 = vrot.lane.b32.xlu0 %v11294_v55, %s7556_s6  ;;  %7393 = vrcp.f32 %v6069_v22  ;;  %v4959_v48 = vadd.f32 %v12533_v6, %v4767_v33  ;;  %v12539_v43 = vld [vmem:[#allocation165_spill] sm:$0xff]  ;;  %s7566_s6 = smov [#allocation4]  }
 0x71d   :  { %v11306_v49 = vpop.permute.xlu1 %5276  ;;  %v5148_v46 = vadd.f32 %v12522_v50, %v4956_v54  ;;  %v7390_v3 = vpop.eup %7389  ;;  %v5914_v54 = vadd.f32 %v12528_v8, %v5722_v47  ;;  %v4958_v41 = vadd.f32 %v12531_v29, %v4766_v4  ;;  %7395 = vpow2.f32 %v6702_v58  ;;  %v12542_v8 = vld [vmem:[#allocation133_spill] sm:$0xff] }
 0x71e   :  { %5100 = vrot.lane.b32.xlu1 %v11253_v17, %s7562_s19  ;;  %v6070_v28 = vadd.f32 1.0, %v7390_v3  ;;  %v6703_v50 = vmul.f32 -1.442695, %v5944_v61  ;;  %v5947_v58 = vadd.f32 %v5915_v45, %v10108_v30  ;;  %v12546_v45 = vld [vmem:[#allocation89_spill] sm:$0xff] }
 0x71f   :  { %v11314_v57 = vpop.permute.xlu0 %5086  ;;  %v5340_v59 = vadd.f32 %v12527_v7, %v5148_v46  ;;  %v12536_v46 = vld [vmem:[#allocation30_spill] sm:$0xff]  ;;  %v5150_v47 = vadd.f32 %v12538_v26, %v4958_v41  ;;  %v5946_v33 = vadd.f32 %v5914_v54, %v10108_v30  ;;  %v12540_v7 = vld [vmem:[#allocation131_spill] sm:$0xff]  ;;  %v6704_v54 = vmul.f32 -1.442695, %v5945_v63 }
 0x720   :  { %4722 = vrot.lane.b32.xlu0 %v11316_v40, %s7557_s0  ;;  %v4577_v22 = vadd.f32 %v12537_v39, %v12536_v46  ;;  %v4768_v3 = vadd.f32 %v12540_v7, %v4576_v42  ;;  %v12544_v41 = vld [vmem:[#allocation126_spill] sm:$0xff]  ;;  %7397 = vrcp.f32 %v6070_v28  ;;  %v12553_v7 = vld [vmem:[#allocation139_spill] sm:$0xff]  ;;  %s6522_s0 = sshll.u32 %s7566_s6, 4  ;;  %s6523_s0 = int_to_ptr.vmem [resolvable:$true] %s6522_s0 }
 0x721   :  { %v11328_v27 = vpop.permute.xlu1 %5464  ;;  %v5532_v23 = vadd.f32 %v12532_v9, %v5340_v59  ;;  %v5341_v59 = vadd.f32 %v12541_v38, %v5149_v24  ;;  %v5342_v29 = vadd.f32 %v12543_v56, %v5150_v47  ;;  %7399 = vpow2.f32 %v6703_v50  ;;  %v12549_v46 = vld [vmem:[#allocation186_spill] sm:$0xff]  ;;  %v12554_v50 = vld [vmem:[#allocation204_spill] sm:$0xff]  ;;  %p7537_p1 = scmp.lt.s32.totalorder %s6523_s0, %s6523_s0 }
 0x722   :  { %5292 = vrot.lane.b32.xlu1 %v11270_v11, %s7563_s20  ;;  %v4769_v51 = vadd.f32 %v12542_v8, %v4577_v22  ;;  %v4960_v52 = vadd.f32 %v12547_v20, %v4768_v3  ;;  %v6705_v26 = vmul.f32 -1.442695, %v5946_v33  ;;  %v6706_v47 = vmul.f32 -1.442695, %v5947_v58  ;;  %v12555_v3 = vld [vmem:[#allocation83_spill] sm:$0xff]  ;;  %v12558_v58 = vld [vmem:[#allocation142_spill] sm:$0xff] }
 0x723   :  { %v11335_v44 = vpop.permute.xlu0 %5278  ;;  %v5724_v4 = vadd.f32 %v12539_v43, %v5532_v23  ;;  %v12545_v23 = vld [vmem:[#allocation161_spill] sm:$0xff]  ;;  %v5533_v24 = vadd.f32 %v12546_v45, %v5341_v59  ;;  %v12551_v43 = vld [vmem:[#allocation179_spill] sm:$0xff]  ;;  %v4579_v38 = vadd.f32 %v12555_v3, %v12554_v50  ;;  %v12556_v59 = vld [vmem:[#allocation170_spill] sm:$0xff]  ;;  %7401 = vpow2.f32 %v6704_v54 }
 0x724   :  { %5102 = vrot.lane.b32.xlu0 %v11294_v55, %s7562_s19  ;;  %v5151_v6 = vadd.f32 %v12545_v23, %v4959_v48  ;;  %v4961_v39 = vadd.f32 %v12549_v46, %v4769_v51  ;;  %v12552_v48 = vld [vmem:[#allocation104_spill] sm:$0xff]  ;;  %v12557_v51 = vld [vmem:[#allocation135_spill] sm:$0xff]  ;;  %v12561_v45 = vld [vmem:[#allocation146_spill] sm:$0xff]  ;;  %7403 = vpow2.f32 %v6705_v26 }
 0x725   :  { %v11350_v15 = vpop.permute.xlu1 %5656  ;;  %v5916_v9 = vadd.f32 %v12544_v41, %v5724_v4  ;;  %v4578_v4 = vadd.f32 %v12552_v48, %v12551_v43  ;;  %v4771_v20 = vadd.f32 %v12561_v45, %v4579_v38  ;;  %v12564_v43 = vld [vmem:[#allocation151_spill] sm:$0xff]  ;;  %v12567_v54 = vld [vmem:[#allocation125_spill] sm:$0xff]  ;;  %v11428_v38 = vpop.eup %7391  ;;  %7405 = vpow2.f32 %v6706_v47  ;;  %v12572_v26 = vld [vmem:[#allocation118_spill] sm:$0xff] }
 0x726   :  { %5480 = vrot.lane.b32.xlu1 %v11286_v53, %s7558_s15  ;;  %v5343_v33 = vadd.f32 %v12557_v51, %v5151_v6  ;;  %v11416_v6 = vld [vmem:[#allocation2 + $0x180] sm:$0xff] }
 0x727   :  { %v11357_v16 = vpop.permute.xlu0 %5658  ;;  %v5948_v63 = vadd.f32 %v5916_v9, %v10108_v30  ;;  %v4770_v56 = vadd.f32 %v12558_v58, %v4578_v4  ;;  %v12562_v9 = vld [vmem:[#allocation149_spill] sm:$0xff] }
 0x728   :  { %5294 = vrot.lane.b32.xlu0 %v11316_v40, %s7563_s20  ;;  %v12569_v50 = vld [vmem:[#allocation189_spill] sm:$0xff] }
 0x729   :  { %v11371_v62 = vpop.permute.xlu1 %5848  ;;  %v11447_v53 = vld [vmem:[#allocation2 + $0x181] sm:$0xff] }
 0x72a   :  { %5672 = vrot.lane.b32.xlu1 %v11253_v17, %s7559_s16  ;;  %v12548_v17 = vld [vmem:[#allocation140_spill] sm:$0xff] }
 0x72b   :  { %v11379_v61 = vpop.permute.xlu0 %5850  ;;  %v5534_v42 = vadd.f32 %v12548_v17, %v5342_v29  ;;  %v12559_v29 = vld [vmem:[#allocation168_spill] sm:$0xff]  ;;  %v12563_v17 = vld [vmem:[#allocation154_spill] sm:$0xff] }
 0x72c   :  { %5674 = vrot.lane.b32.xlu0 %v11294_v55, %s7559_s16  ;;  %v5152_v55 = vadd.f32 %v12553_v7, %v4960_v52  ;;  %v5725_v41 = vadd.f32 %v12559_v29, %v5533_v24  ;;  %v5153_v46 = vadd.f32 %v12563_v17, %v4961_v39  ;;  %v12568_v7 = vld [vmem:[#allocation157_spill] sm:$0xff]  ;;  %v11426_v39 = vld [vmem:[#allocation2 + $0x170] sm:$0xff] }
 0x72d   :  { %v11391_v22 = vpop.permute.xlu1 %4516  ;;  %v5726_v8 = vadd.f32 %v12556_v59, %v5534_v42  ;;  %v5535_v42 = vadd.f32 %v12564_v43, %v5343_v33  ;;  %v4962_v24 = vadd.f32 %v12568_v7, %v4770_v56  ;;  %12570 = vst [vmem:[#allocation221_spill] sm:$0xff] %v11426_v39  ;;  %v6707_v59 = vmul.f32 -1.442695, %v5948_v63  ;;  %v12573_v33 = vld [vmem:[#allocation176_spill] sm:$0xff]  ;;  %v11435_v56 = vpop.eup %7393  ;;  %v12574_v29 = vld [vmem:[#allocation153_spill] sm:$0xff] }
 0x72e   :  { %12550 = vst [vmem:[#allocation215_spill] sm:$0xff] %v11391_v22  ;;  %5864 = vrot.lane.b32.xlu1 %v11270_v11, %s7560_s17  ;;  %v12560_v11 = vld [vmem:[#allocation156_spill] sm:$0xff]  ;;  %v4963_v58 = vadd.f32 %v12573_v33, %v4771_v20  ;;  %v12577_v43 = vld [vmem:[#allocation105_spill] sm:$0xff]  ;;  %v7396_v47 = vpop.eup %7395 }
 0x72f   :  { %v11398_v28 = vpop.permute.xlu0 %4894  ;;  %v5344_v23 = vadd.f32 %v12560_v11, %v5152_v55  ;;  %v5918_v52 = vadd.f32 %v12562_v9, %v5726_v8  ;;  %v12571_v8 = vld [vmem:[#allocation164_spill] sm:$0xff]  ;;  %v5917_v11 = vadd.f32 %v12574_v29, %v5725_v41  ;;  %v12576_v9 = vld [vmem:[#allocation167_spill] sm:$0xff]  ;;  %7407 = vpow2.f32 %v6707_v59 }
 0x730   :  { %5866 = vrot.lane.b32.xlu0 %v11316_v40, %s7560_s17  ;;  %v12566_v40 = vld [vmem:[#allocation172_spill] sm:$0xff]  ;;  %v4581_v51 = vadd.f32 %v12572_v26, %v12571_v8  ;;  %v5154_v17 = vadd.f32 %v12576_v9, %v4962_v24  ;;  %v12580_v8 = vld [vmem:[#allocation183_spill] sm:$0xff]  ;;  %v12583_v24 = vld [vmem:[#allocation162_spill] sm:$0xff] }
 0x731   :  { %v11414_v48 = vpop.permute.xlu1 %4708  ;;  %v4580_v4 = vadd.f32 %v12567_v54, %v12566_v40  ;;  %v5536_v55 = vadd.f32 %v12569_v50, %v5344_v23  ;;  %v12575_v23 = vld [vmem:[#allocation148_spill] sm:$0xff]  ;;  %v5950_v63 = vadd.f32 %v5918_v52, %v10108_v30  ;;  %v12579_v50 = vld [vmem:[#allocation171_spill] sm:$0xff]  ;;  %v5345_v26 = vadd.f32 %v12580_v8, %v5153_v46 }
 0x732   :  { %12565 = vst [vmem:[#allocation218_spill] sm:$0xff] %v11414_v48  ;;  %4912 = vrot.lane.b32.xlu1 %v11416_v6, %s7561_s5  ;;  %v12578_v54 = vld [vmem:[#allocation144_spill] sm:$0xff]  ;;  %v4773_v20 = vadd.f32 %v12579_v50, %v4581_v51  ;;  %v12581_v41 = vld [vmem:[#allocation175_spill] sm:$0xff]  ;;  %v12588_v51 = vld [vmem:[#allocation197_spill] sm:$0xff] }
 0x733   :  { %v11424_v3 = vpop.permute.xlu0 %5466  ;;  %v4772_v45 = vadd.f32 %v12575_v23, %v4580_v4  ;;  %v5728_v40 = vadd.f32 %v12577_v43, %v5536_v55  ;;  %v5727_v7 = vadd.f32 %v12578_v54, %v5535_v42  ;;  %v5346_v29 = vadd.f32 %v12581_v41, %v5154_v17  ;;  %v12582_v4 = vld [vmem:[#allocation203_spill] sm:$0xff]  ;;  %v12584_v9 = vld [vmem:[#allocation132_spill] sm:$0xff]  ;;  %v12585_v43 = vld [vmem:[#allocation178_spill] sm:$0xff] }
 0x734   :  { %4910 = vrot.lane.b32.xlu0 %v11426_v39, %s7561_s5  ;;  %v4582_v55 = vadd.f32 %v12584_v9, %v12583_v24  ;;  %v12587_v42 = vld [vmem:[#allocation193_spill] sm:$0xff]  ;;  %v5537_v54 = vadd.f32 %v12588_v51, %v5345_v26  ;;  %v12589_v50 = vld [vmem:[#allocation119_spill] sm:$0xff]  ;;  %v12591_v17 = vld [vmem:[#allocation206_spill] sm:$0xff]  ;;  %v6709_v26 = vmul.f32 -1.442695, %v5950_v63 }
 0x735   :  { %v11445_v33 = vpop.permute.xlu1 %4896  ;;  %v5920_v23 = vadd.f32 %v12582_v4, %v5728_v40  ;;  %v4964_v48 = vadd.f32 %v12585_v43, %v4772_v45  ;;  %v5155_v46 = vadd.f32 %v12587_v42, %v4963_v58  ;;  %v12590_v8 = vld [vmem:[#allocation115_spill] sm:$0xff]  ;;  %v4965_v41 = vadd.f32 %v12591_v17, %v4773_v20  ;;  %v12593_v4 = vld [vmem:[#allocation182_spill] sm:$0xff]  ;;  %v12594_v9 = vld [vmem:[#allocation185_spill] sm:$0xff] }
 0x736   :  { %5104 = vrot.lane.b32.xlu1 %v11447_v53, %s7562_s19  ;;  %v4583_v22 = vadd.f32 %v12590_v8, %v12589_v50  ;;  %v12592_v40 = vld [vmem:[#allocation191_spill] sm:$0xff]  ;;  %v5538_v43 = vadd.f32 %v12594_v9, %v5346_v29  ;;  %v5949_v58 = vadd.f32 %v5917_v11, %v10108_v30  ;;  %v12595_v42 = vld [vmem:[#allocation158_spill] sm:$0xff]  ;;  %7409 = vpow2.f32 %v6709_v26 }
 0x737   :  { %v11456_v52 = vpop.permute.xlu0 %4518  ;;  %v4774_v45 = vadd.f32 %v12592_v40, %v4582_v55  ;;  %v5156_v24 = vadd.f32 %v12593_v4, %v4964_v48  ;;  %v5919_v51 = vadd.f32 %v12595_v42, %v5727_v7  ;;  %v12596_v50 = vld [vmem:[#allocation195_spill] sm:$0xff]  ;;  %v11475_v17 = vld [vmem:[#allocation2 + $0x182] sm:$0xff]  ;;  %v5952_v55 = vadd.f32 %v5920_v23, %v10108_v30  ;;  %v12601_v42 = vld [vmem:[#allocation180_spill] sm:$0xff] }
 0x738   :  { %12586 = vst [vmem:[#allocation155_spill] sm:$0xff] %v11456_v52  ;;  %5482 = vrot.lane.b32.xlu0 %v11426_v39, %s7558_s15  ;;  %v11468_v52 = vpop.eup %7397  ;;  %v4775_v8 = vadd.f32 %v12596_v50, %v4583_v22  ;;  %v12597_v40 = vld [vmem:[#allocation217_spill] sm:$0xff]  ;;  %v12598_v4 = vld [vmem:[#allocation211_spill] sm:$0xff]  ;;  %v12600_v22 = vld [vmem:[#allocation174_spill] sm:$0xff]  ;;  %v5157_v50 = vadd.f32 %v12601_v42, %v4965_v41 }
 0x739   :  { %v11473_v20 = vpop.permute.xlu1 %5088  ;;  %v7400_v59 = vpop.eup %7399  ;;  %v5348_v48 = vadd.f32 %v12597_v40, %v5156_v24  ;;  %v5730_v29 = vadd.f32 %v12598_v4, %v5538_v43  ;;  %v4966_v9 = vadd.f32 %v11174_v19, %v4774_v45  ;;  %v5011_v63 = vld [vmem:[#allocation2 + $0x189] sm:$0xff]  ;;  %v5729_v7 = vadd.f32 %v12600_v22, %v5537_v54  ;;  %v12602_v39 = vld [vmem:[#allocation160_spill] sm:$0xff]  ;;  %v12604_v40 = vld [vmem:[#allocation213_spill] sm:$0xff] }
 0x73a   :  { %5296 = vrot.lane.b32.xlu1 %v11475_v17, %s7563_s20  ;;  %v5347_v12 = vadd.f32 %v12602_v39, %v5155_v46  ;;  %v4967_v23 = vadd.f32 %v11244_v14, %v4775_v8  ;;  %v12603_v24 = vld [vmem:[#allocation207_spill] sm:$0xff]  ;;  %v12605_v19 = vld [vmem:[#allocation113_spill] sm:$0xff]  ;;  %v11495_v21 = vpop.eup %7401  ;;  %v6071_v54 = vadd.f32 1.0, %v7396_v47  ;;  %v6708_v22 = vmul.f32 -1.442695, %v5949_v58  ;;  %v12606_v41 = vld [vmem:[#allocation166_spill] sm:$0xff] }
 0x73b   :  { %v11483_v11 = vpop.permute.xlu0 %4710  ;;  %v5922_v43 = vadd.f32 %v12603_v24, %v5730_v29  ;;  %v4584_v45 = vadd.f32 %v12605_v19, %v12604_v40  ;;  %v5158_v4 = vadd.f32 %v11182_v18, %v4966_v9  ;;  %v5951_v14 = vadd.f32 %v5919_v51, %v10108_v30  ;;  %v12607_v8 = vld [vmem:[#allocation219_spill] sm:$0xff]  ;;  %v7404_v47 = vpop.eup %7403  ;;  %v12609_v51 = vld [vmem:[#allocation200_spill] sm:$0xff] }
 0x73c   :  { %12599 = vst [vmem:[#allocation209_spill] sm:$0xff] %v11483_v11  ;;  %5106 = vrot.lane.b32.xlu0 %v5011_v63, %s7562_s19  ;;  %v5540_v11 = vadd.f32 %v11203_v37, %v5348_v48  ;;  %v5539_v39 = vadd.f32 %v12606_v41, %v5347_v12  ;;  %v11508_v37 = vld [vmem:[#allocation2 + $0x18a] sm:$0xff]  ;;  %v6711_v58 = vmul.f32 -1.442695, %v5952_v55  ;;  %v12608_v12 = vld [vmem:[#allocation169_spill] sm:$0xff]  ;;  %v5159_v48 = vadd.f32 %v11197_v1, %v4967_v23 }
 0x73d   :  { %v11498_v46 = vpop.permute.xlu1 %5280  ;;  %v4776_v29 = vadd.f32 %v12607_v8, %v4584_v45  ;;  %v5350_v42 = vadd.f32 %v11191_v35, %v5158_v4  ;;  %v5921_v26 = vadd.f32 %v12608_v12, %v5729_v7  ;;  %v5349_v9 = vadd.f32 %v12609_v51, %v5157_v50  ;;  %v11515_v35 = vpop.eup %7405  ;;  %v12610_v55 = vld [vmem:[#allocation187_spill] sm:$0xff]  ;;  %v12613_v41 = vld [vmem:[#allocation181_spill] sm:$0xff] }
 0x73e   :  { %v5732_v24 = vadd.f32 %v11214_v36, %v5540_v11  ;;  %5484 = vrot.lane.b32.xlu1 %v11416_v6, %s7558_s15  ;;  %v5954_v36 = vadd.f32 %v5922_v43, %v10108_v30  ;;  %7411 = vrcp.f32 %v6071_v54  ;;  %v5731_v7 = vadd.f32 %v12610_v55, %v5539_v39  ;;  %v7408_v4 = vpop.eup %7407  ;;  %v12611_v54 = vld [vmem:[#allocation137_spill] sm:$0xff] }
 0x73f   :  { %v11506_v18 = vpop.permute.xlu0 %5090  ;;  %v4968_v11 = vadd.f32 %v11268_v5, %v4776_v29  ;;  %v5542_v40 = vadd.f32 %v11328_v27, %v5350_v42  ;;  %v5541_v1 = vadd.f32 %v11260_v60, %v5349_v9  ;;  %v6072_v50 = vadd.f32 1.0, %v7400_v59 }
 0x740   :  { %5298 = vrot.lane.b32.xlu0 %v11508_v37, %s7563_s20  ;;  %v5924_v6 = vadd.f32 %v11227_v0, %v5732_v24  ;;  %7413 = vpow2.f32 %v6708_v22  ;;  %v6710_v5 = vmul.f32 -1.442695, %v5951_v14  ;;  %v5953_v27 = vadd.f32 %v5921_v26, %v10108_v30  ;;  %v12612_v22 = vld [vmem:[#allocation212_spill] sm:$0xff] }
 0x741   :  { %v5469_v23 = vpop.permute.xlu1 %5468  ;;  %v5160_v19 = vadd.f32 %v11284_v32, %v4968_v11  ;;  %v5734_v45 = vadd.f32 %v11350_v15, %v5542_v40  ;;  %7415 = vpow2.f32 %v6711_v58  ;;  %v5351_v43 = vadd.f32 %v11208_v34, %v5159_v48  ;;  %v5778_v58 = vld [vmem:[#allocation2 + $0x19a] sm:$0xff] }
 0x742   :  { %5676 = vrot.lane.b32.xlu1 %v11447_v53, %s7559_s16  ;;  %v6713_v60 = vmul.f32 -1.442695, %v5954_v36  ;;  %v5956_v59 = vadd.f32 %v5924_v6, %v10108_v30  ;;  %v5923_v53 = vadd.f32 %v12611_v54, %v5731_v7  ;;  %v4585_v39 = vadd.f32 %v12613_v41, %v12612_v22 }
 0x743   :  { %v11527_v0 = vpop.permute.xlu0 %5282  ;;  %v5352_v32 = vadd.f32 %v11306_v49, %v5160_v19  ;;  %v5926_v15 = vadd.f32 %v11371_v62, %v5734_v45  ;;  %v5733_v14 = vadd.f32 %v11221_v31, %v5541_v1  ;;  %v5543_v8 = vadd.f32 %v11424_v3, %v5351_v43  ;;  %v4819_v62 = vld [vmem:[#allocation2 + $0x188] sm:$0xff]  ;;  %v7410_v9 = vpop.eup %7409 }
 0x744   :  { %5678 = vrot.lane.b32.xlu0 %v5011_v63, %s7559_s16  ;;  %7417 = vrcp.f32 %v6072_v50  ;;  %v6074_v63 = vadd.f32 1.0, %v7404_v47  ;;  %v6712_v42 = vmul.f32 -1.442695, %v5953_v27  ;;  %v4777_v24 = vadd.f32 %v11186_v25, %v4585_v39 }
 0x745   :  { %v5661_v34 = vpop.permute.xlu1 %5660  ;;  %v5544_v29 = vadd.f32 %v5469_v23, %v5352_v32  ;;  %7419 = vpow2.f32 %v6710_v5  ;;  %v6715_v31 = vmul.f32 -1.442695, %v5956_v59  ;;  %v5958_v3 = vadd.f32 %v5926_v15, %v10108_v30  ;;  %v5779_v5 = vld [vmem:[#allocation2 + $0x1a2] sm:$0xff] }
 0x746   :  { %5868 = vrot.lane.b32.xlu1 %v11475_v17, %s7560_s17  ;;  %7421 = vpow2.f32 %v6713_v60  ;;  %v5955_v47 = vadd.f32 %v5923_v53, %v10108_v30  ;;  %v5925_v26 = vadd.f32 %v11233_v13, %v5733_v14  ;;  %v4969_v17 = vadd.f32 %v11398_v28, %v4777_v24 }
 0x747   :  { %v11542_v49 = vpop.permute.xlu0 %5662  ;;  %v5736_v12 = vadd.f32 %v5661_v34, %v5544_v29  ;;  %v5735_v48 = vadd.f32 %v11357_v16, %v5543_v8  ;;  %v6073_v25 = vadd.f32 1.0, %v11495_v21  ;;  %7423 = vrcp.f32 %v6074_v63 }
 0x748   :  { %4914 = vrot.lane.b32.xlu0 %v4819_v62, %s7561_s5  ;;  %v6076_v11 = vadd.f32 1.0, %v7408_v4  ;;  %7425 = vpow2.f32 %v6712_v42  ;;  %v6717_v13 = vmul.f32 -1.442695, %v5958_v3  ;;  %v6714_v40 = vmul.f32 -1.442695, %v5955_v47 }
 0x749   :  { %v5853_v51 = vpop.permute.xlu1 %5852  ;;  %7427 = vpow2.f32 %v6715_v31  ;;  %v5957_v16 = vadd.f32 %v5925_v26, %v10108_v30  ;;  %v5161_v55 = vadd.f32 %v11314_v57, %v4969_v17  ;;  %v5927_v21 = vadd.f32 %v11379_v61, %v5735_v48 }
 0x74a   :  { %v5928_v36 = vadd.f32 %v5853_v51, %v5736_v12  ;;  %5872 = vrot.lane.b32.xlu1 %v5778_v58, %s7560_s17  ;;  %7429 = vrcp.f32 %v6073_v25  ;;  %v6075_v23 = vadd.f32 1.0, %v11515_v35  ;;  %v6078_v19 = vadd.f32 1.0, %v7410_v9 }
 0x74b   :  { %v5855_v6 = vpop.permute.xlu0 %5854  ;;  %v7412_v1 = vpop.eup %7411  ;;  %7431 = vrcp.f32 %v6076_v11  ;;  %v6716_v61 = vmul.f32 -1.442695, %v5957_v16  ;;  %v5959_v27 = vadd.f32 %v5927_v21, %v10108_v30  ;;  %v5353_v35 = vadd.f32 %v11335_v44, %v5161_v55 }
 0x74c   :  { %5870 = vrot.lane.b32.xlu0 %v11508_v37, %s7560_s17  ;;  %v5960_v28 = vadd.f32 %v5928_v36, %v10108_v30  ;;  %7433 = vpow2.f32 %v6717_v13 }
 0x74d   :  { %v11559_v7 = vpop.permute.xlu1 %4520  ;;  %v7414_v50 = vpop.eup %7413  ;;  %7435 = vpow2.f32 %v6714_v40  ;;  %v6718_v53 = vmul.f32 -1.442695, %v5959_v27 }
 0x74e   :  { %6166 = vperm.xlu1 %7252, %v11428_v38   ;;  %v7416_v45 = vpop.eup %7415  ;;  %v6719_v57 = vmul.f32 -1.442695, %v5960_v28  ;;  %7437 = vrcp.f32 %v6075_v23  ;;  %v6077_v59 = vadd.f32 1.0, %v7414_v50  ;;  %v12614_v50 = vld [vmem:[#allocation214_spill] sm:$0xff] }
 0x74f   :  { %v11563_v37 = vpop.permute.xlu0 %4898  ;;  %7439 = vrcp.f32 %v6078_v19  ;;  %v6080_v4 = vadd.f32 1.0, %v7416_v45 }
 0x750   :  { %5486 = vrot.lane.b32.xlu0 %v4819_v62, %s7558_s15  ;;  %7441 = vpow2.f32 %v6719_v57  ;;  %s7532_s15 = scalar_lea.vmem %s6523_s0, 4096 }
 0x751   :  { %v11567_v43 = vpop.permute.xlu1 %4712  ;;  %v7418_v60 = vpop.eup %7417  ;;  %7443 = vpow2.f32 %v6716_v61  ;;  %v12615_v61 = vld [vmem:[#allocation208_spill] sm:$0xff]  ;;  %p7533_p0 = scmp.ne.s32.totalorder %s6523_s0, %s7532_s15  ;;  %p7538_p2 = scmp.lt.s32.totalorder %s7532_s15, %s7532_s15 }
 0x752   :  { %6176 = vperm.xlu1 %7252, %v11468_v52   ;;  %v7420_v15 = vpop.eup %7419  ;;  %7445 = vrcp.f32 %v6077_v59 }
 0x753   :  { %v5471_v38 = vpop.permute.xlu0 %5470  ;;  %v7422_v54 = vpop.eup %7421  ;;  %v6079_v39 = vadd.f32 1.0, %v7420_v15  ;;  %7447 = vrcp.f32 %v6080_v4  ;;  %p7539_p3 = por %p7538_p2, %p7537_p1 }
 0x754   :  { %v5545_v32 = vadd.f32 %v5471_v38, %v5353_v35  ;;  %5874 = vrot.lane.b32.xlu0 %v5779_v5, %s7560_s17  ;;  %v7424_v52 = vpop.eup %7423  ;;  %v6082_v34 = vadd.f32 1.0, %v7422_v54  ;;  %7449 = vpow2.f32 %v6718_v53 }
 0x755   :  { %v11573_v41 = vpop.permute.xlu1 %4900  ;;  %v7426_v8 = vpop.eup %7425  ;;  %7451 = vrcp.f32 %v6079_v39  ;;  %p7540_p4 = pnand %p7539_p3, %p7533_p0 }
 0x756   :  { %v5737_v22 = vadd.f32 %v11542_v49, %v5545_v32  ;;  %6186 = vperm.xlu1 %7252, %v7418_v60   ;;  %v7428_v63 = vpop.eup %7427  ;;  %7453 = vrcp.f32 %v6082_v34  ;;  %v6081_v47 = vadd.f32 1.0, %v7426_v8 }
 0x757   :  { %v11575_v44 = vpop.permute.xlu0 %4522  ;;  %v7430_v42 = vpop.eup %7429  ;;  %v6084_v31 = vadd.f32 1.0, %v7428_v63 }
 0x758   :  { %v5929_v14 = vadd.f32 %v5855_v6, %v5737_v22  ;;  %6171 = vperm.xlu0 %7251, %v11435_v56   ;;  %v7432_v58 = vpop.eup %7431  ;;  %v7524_v56 = vld [vmem:[#allocation2 + $0x108] sm:$0xff] }
 0x759   :  { %v11579_v62 = vpop.permute.xlu1 %5092  ;;  %v4586_v3 = vadd.f32 %v7524_v56, %v11238_v2  ;;  %v7434_v12 = vpop.eup %7433 }
 0x75a   :  { %v5961_v29 = vadd.f32 %v5929_v14, %v10108_v30  ;;  %6196 = vperm.xlu1 %7252, %v7424_v52   ;;  %v7436_v17 = vpop.eup %7435  ;;  %v6086_v36 = vadd.f32 1.0, %v7434_v12 }
 0x75b   :  { %v11581_v49 = vpop.permute.xlu0 %4714  ;;  %v4778_v48 = vadd.f32 %v11251_v10, %v4586_v3  ;;  %v7438_v9 = vpop.eup %7437  ;;  %v6083_v2 = vadd.f32 1.0, %v7436_v17 }
 0x75c   :  { %v6720_v24 = vmul.f32 -1.442695, %v5961_v29  ;;  %6181 = vperm.xlu0 %7251, %v7412_v1   ;;  %v7440_v25 = vpop.eup %7439 }
 0x75d   :  { %v11584_v26 = vpop.permute.xlu1 %5284  ;;  %v4970_v6 = vadd.f32 %v11445_v33, %v4778_v48  ;;  %v7442_v11 = vpop.eup %7441  ;;  %v7525_v33 = vld [vmem:[#allocation2 + $0x110] sm:$0xff] }
 0x75e   :  { %7455 = vpow2.f32 %v6720_v24  ;;  %6206 = vperm.xlu1 %7252, %v7432_v58   ;;  %v7444_v28 = vpop.eup %7443  ;;  %v6088_v21 = vadd.f32 1.0, %v7442_v11  ;;  %v4587_v19 = vadd.f32 %v7525_v33, %v12614_v50  ;;  %v12616_v11 = vld [vmem:[#allocation215_spill] sm:$0xff] }
 0x75f   :  { %v11587_v51 = vpop.permute.xlu0 %5094  ;;  %7457 = vrcp.f32 %v6084_v31  ;;  %v5162_v40 = vadd.f32 %v11473_v20, %v4970_v6  ;;  %v7446_v10 = vpop.eup %7445  ;;  %v6085_v23 = vadd.f32 1.0, %v7444_v28  ;;  %v7526_v6 = vld [vmem:[#allocation2 + $0x120] sm:$0xff] }
 0x760   :  { %6191 = vperm.xlu0 %7251, %v7430_v42   ;;  %7459 = vrcp.f32 %v6081_v47  ;;  %v7448_v1 = vpop.eup %7447  ;;  %v4779_v27 = vadd.f32 %v12615_v61, %v4587_v19 }
 0x761   :  { %v5473_v13 = vpop.permute.xlu1 %5472  ;;  %7461 = vrcp.f32 %v6086_v36  ;;  %v5354_v55 = vadd.f32 %v11498_v46, %v5162_v40  ;;  %v7450_v57 = vpop.eup %7449 }
 0x762   :  { %6216 = vperm.xlu1 %7252, %v7440_v25   ;;  %7463 = vrcp.f32 %v6083_v2  ;;  %v7452_v35 = vpop.eup %7451  ;;  %v6087_v46 = vadd.f32 1.0, %v7450_v57  ;;  %v4971_v59 = vadd.f32 %v11563_v37, %v4779_v27  ;;  %v4588_v2 = vadd.f32 %v7526_v6, %v12616_v11  ;;  %v7527_v57 = vld [vmem:[#allocation2 + $0x128] sm:$0xff] }
 0x763   :  { %v11591_v16 = vpop.permute.xlu0 %5286  ;;  %v5546_v5 = vadd.f32 %v5473_v13, %v5354_v55  ;;  %7465 = vrcp.f32 %v6088_v21  ;;  %v7454_v60 = vpop.eup %7453 }
 0x764   :  { %6201 = vperm.xlu0 %7251, %v7438_v9   ;;  %7467 = vrcp.f32 %v6085_v23  ;;  %v5163_v52 = vadd.f32 %v11506_v18, %v4971_v59 }
 0x765   :  { %v5665_v45 = vpop.permute.xlu1 %5664  ;;  %7469 = vrcp.f32 %v6087_v46 }
 0x766   :  { %6226 = vperm.xlu1 %7252, %v7448_v1   ;;  %v5738_v38 = vadd.f32 %v5665_v45, %v5546_v5  ;;  %v5355_v42 = vadd.f32 %v11527_v0, %v5163_v52  ;;  %v12618_v5 = vld [vmem:[#allocation155_spill] sm:$0xff] }
 0x767   :  { %v5667_v20 = vpop.permute.xlu0 %5666 }
 0x768   :  { %6211 = vperm.xlu0 %7251, %v7446_v10   ;;  %v12617_v10 = vld [vmem:[#allocation218_spill] sm:$0xff] }
 0x769   :  { %v5857_v32 = vpop.permute.xlu1 %5856  ;;  %v4780_v55 = vadd.f32 %v12617_v10, %v4588_v2 }
 0x76a   :  { %v5930_v4 = vadd.f32 %v5857_v32, %v5738_v38  ;;  %6236 = vperm.xlu1 %7252, %v7454_v60   ;;  %v12619_v38 = vld [vmem:[#allocation209_spill] sm:$0xff] }
 0x76b   :  { %v7456_v15 = vpop.eup %7455  ;;  %v5859_v54 = vpop.permute.xlu0 %5858  ;;  %v4972_v23 = vadd.f32 %v11573_v41, %v4780_v55 }
 0x76c   :  { %6221 = vperm.xlu0 %7251, %v7452_v35   ;;  %v5962_v53 = vadd.f32 %v5930_v4, %v10108_v30  ;;  %v7458_v22 = vpop.eup %7457  ;;  %v6089_v39 = vadd.f32 1.0, %v7456_v15 }
 0x76d   :  { %v11599_v14 = vpop.permute.xlu1 %4524  ;;  %v7460_v8 = vpop.eup %7459  ;;  %v5164_v50 = vadd.f32 %v11579_v62, %v4972_v23  ;;  %v7529_v23 = vld [vmem:[#allocation2 + $0x140] sm:$0xff] }
 0x76e   :  { %v6721_v34 = vmul.f32 -1.442695, %v5962_v53  ;;  %6246 = vperm.xlu1 %7252, %v7458_v22   ;;  %v7462_v37 = vpop.eup %7461 }
 0x76f   :  { %v4903_v63 = vpop.permute.xlu0 %4902  ;;  %v7464_v24 = vpop.eup %7463  ;;  %v5356_v45 = vadd.f32 %v11584_v26, %v5164_v50 }
 0x770   :  { %6231 = vperm.xlu0 %7251, %v7460_v8   ;;  %7471 = vpow2.f32 %v6721_v34  ;;  %v7466_v18 = vpop.eup %7465 }
 0x771   :  { %7473 = vrcp.f32 %v6089_v39  ;;  %v11601_v29 = vpop.permute.xlu1 %4716  ;;  %v7468_v12 = vpop.eup %7467 }
 0x772   :  { %6256 = vperm.xlu1 %7252, %v7462_v37   ;;  %v7470_v0 = vpop.eup %7469 }
 0x773   :  { %v5475_v58 = vpop.permute.xlu0 %5474 }
 0x774   :  { %v5547_v31 = vadd.f32 %v5475_v58, %v5355_v42  ;;  %6241 = vperm.xlu0 %7251, %v7464_v24  }
 0x775   :  { %v11604_v3 = vpop.permute.xlu1 %4904 }
 0x776   :  { %v5739_v56 = vadd.f32 %v5667_v20, %v5547_v31  ;;  %6266 = vperm.xlu1 %7252, %v7466_v18   ;;  %v4589_v20 = vadd.f32 %v7527_v57, %v12618_v5 }
 0x777   :  { %v11606_v47 = vpop.permute.xlu0 %4526 }
 0x778   :  { %v5931_v17 = vadd.f32 %v5859_v54, %v5739_v56  ;;  %6251 = vperm.xlu0 %7251, %v7468_v12   ;;  %v4781_v60 = vadd.f32 %v12619_v38, %v4589_v20 }
 0x779   :  { %v11609_v9 = vpop.permute.xlu1 %5096 }
 0x77a   :  { %v5963_v48 = vadd.f32 %v5931_v17, %v10108_v30  ;;  %v4973_v59 = vadd.f32 %v4903_v63, %v4781_v60 }
 0x77b   :  { %v11611_v25 = vpop.permute.xlu0 %4718 }
 0x77c   :  { %v6722_v36 = vmul.f32 -1.442695, %v5963_v48  ;;  %6261 = vperm.xlu0 %7251, %v7470_v0   ;;  %v5165_v26 = vadd.f32 %v11587_v51, %v4973_v59  ;;  %v7528_v48 = vld [vmem:[#allocation2 + $0x138] sm:$0xff] }
 0x77d   :  { %v7472_v13 = vpop.eup %7471  ;;  %v5289_v28 = vpop.permute.xlu1 %5288  ;;  %v4590_v0 = vadd.f32 %v7528_v48, %v11559_v7  ;;  %v4591_v7 = vadd.f32 %v7529_v23, %v11575_v44 }
 0x77e   :  { %7475 = vpow2.f32 %v6722_v36  ;;  %v7474_v40 = vpop.eup %7473  ;;  %v6090_v21 = vadd.f32 1.0, %v7472_v13  ;;  %v5357_v34 = vadd.f32 %v11591_v16, %v5165_v26 }
 0x77f   :  { %v11615_v1 = vpop.permute.xlu0 %5098  ;;  %v4782_v6 = vadd.f32 %v11567_v43, %v4590_v0  ;;  %v4783_v43 = vadd.f32 %v11581_v49, %v4591_v7 }
 0x780   :  { %6271 = vperm.xlu0 %7251, %v7474_v40   ;;  %7477 = vrcp.f32 %v6090_v21 }
 0x781   :  { %v5477_v33 = vpop.permute.xlu1 %5476  ;;  %v4974_v13 = vadd.f32 %v11604_v3, %v4782_v6 }
 0x782   :  { %v5548_v27 = vadd.f32 %v5477_v33, %v5356_v45 }
 0x783   :  { %v11619_v19 = vpop.permute.xlu0 %5290  ;;  %v5166_v10 = vadd.f32 %v11609_v9, %v4974_v13 }
 0x785   :  { %v5669_v61 = vpop.permute.xlu1 %5668  ;;  %v5358_v21 = vadd.f32 %v5289_v28, %v5166_v10  ;;  %v12622_v10 = vld [vmem:[#allocation20_spill] sm:$0xff] }
 0x786   :  { %v5740_v46 = vadd.f32 %v5669_v61, %v5548_v27 }
 0x787   :  { %v5671_v35 = vpop.permute.xlu0 %5670 }
 0x789   :  { %v5861_v32 = vpop.permute.xlu1 %5860 }
 0x78a   :  { %v5932_v15 = vadd.f32 %v5861_v32, %v5740_v46 }
 0x78b   :  { %v7476_v41 = vpop.eup %7475  ;;  %v5863_v4 = vpop.permute.xlu0 %5862 }
 0x78c   :  { %v6091_v54 = vadd.f32 1.0, %v7476_v41  ;;  %v5964_v62 = vadd.f32 %v5932_v15, %v10108_v30  ;;  %v7530_v15 = vld [vmem:[#allocation2 + $0x150] sm:$0xff] }
 0x78d   :  { %v7478_v53 = vpop.eup %7477  ;;  %v4529_v22 = vpop.permute.xlu1 %4528 }
 0x78e   :  { %7479 = vrcp.f32 %v6091_v54  ;;  %v6723_v52 = vmul.f32 -1.442695, %v5964_v62  ;;  %6276 = vperm.xlu1 %7252, %v7478_v53   ;;  %v12620_v54 = vld [vmem:[#allocation216_spill] sm:$0xff] }
 0x78f   :  { %v4907_v39 = vpop.permute.xlu0 %4906  ;;  %v4594_v62 = vadd.f32 %v12620_v54, %v4529_v22 }
 0x790   :  { %7481 = vpow2.f32 %v6723_v52  ;;  %v4975_v5 = vadd.f32 %v4907_v39, %v4783_v43 }
 0x791   :  { %v4721_v8 = vpop.permute.xlu1 %4720 }
 0x792   :  { %v5167_v28 = vadd.f32 %v11615_v1, %v4975_v5  ;;  %v4786_v52 = vadd.f32 %v4721_v8, %v4594_v62 }
 0x793   :  { %v5479_v63 = vpop.permute.xlu0 %5478 }
 0x794   :  { %v5549_v37 = vadd.f32 %v5479_v63, %v5357_v34  ;;  %v5359_v49 = vadd.f32 %v11619_v19, %v5167_v28 }
 0x795   :  { %v4909_v24 = vpop.permute.xlu1 %4908 }
 0x796   :  { %v5741_v42 = vadd.f32 %v5671_v35, %v5549_v37 }
 0x797   :  { %v11627_v58 = vpop.permute.xlu0 %4530 }
 0x798   :  { %v5933_v31 = vadd.f32 %v5863_v4, %v5741_v42  ;;  %v4592_v4 = vadd.f32 %v7530_v15, %v11599_v14 }
 0x799   :  { %v5101_v56 = vpop.permute.xlu1 %5100 }
 0x79a   :  { %v5965_v18 = vadd.f32 %v5933_v31, %v10108_v30  ;;  %v4784_v1 = vadd.f32 %v11601_v29, %v4592_v4 }
 0x79b   :  { %v7480_v51 = vpop.eup %7479  ;;  %v11630_v12 = vpop.permute.xlu0 %4722 }
 0x79c   :  { %v6724_v17 = vmul.f32 -1.442695, %v5965_v18  ;;  %6281 = vperm.xlu0 %7251, %v7480_v51   ;;  %v4976_v63 = vadd.f32 %v4909_v24, %v4784_v1 }
 0x79d   :  { %v7482_v36 = vpop.eup %7481  ;;  %v5293_v16 = vpop.permute.xlu1 %5292 }
 0x79e   :  { %7483 = vpow2.f32 %v6724_v17  ;;  %v6092_v11 = vadd.f32 1.0, %v7482_v36  ;;  %v5168_v18 = vadd.f32 %v5101_v56, %v4976_v63  ;;  %v7531_v36 = vld [vmem:[#allocation2 + $0x158] sm:$0xff] }
 0x79f   :  { %v11634_v2 = vpop.permute.xlu0 %5102  ;;  %v4593_v29 = vadd.f32 %v7531_v36, %v11606_v47 }
 0x7a0   :  { %7485 = vrcp.f32 %v6092_v11  ;;  %v5360_v14 = vadd.f32 %v5293_v16, %v5168_v18 }
 0x7a1   :  { %v5481_v40 = vpop.permute.xlu1 %5480  ;;  %v4785_v13 = vadd.f32 %v11611_v25, %v4593_v29  ;;  %v12626_v29 = vld [vmem:[#allocation19_spill] sm:$0xff] }
 0x7a2   :  { %v5550_v50 = vadd.f32 %v5481_v40, %v5358_v21  ;;  %v12621_v40 = vld [vmem:[#allocation221_spill] sm:$0xff] }
 0x7a3   :  { %v11638_v55 = vpop.permute.xlu0 %5294  ;;  %v4595_v56 = vadd.f32 %v12621_v40, %v11627_v58 }
 0x7a5   :  { %v5673_v33 = vpop.permute.xlu1 %5672  ;;  %v4787_v16 = vadd.f32 %v11630_v12, %v4595_v56 }
 0x7a6   :  { %v5742_v57 = vadd.f32 %v5673_v33, %v5550_v50 }
 0x7a7   :  { %v5675_v45 = vpop.permute.xlu0 %5674 }
 0x7a9   :  { %v5865_v20 = vpop.permute.xlu1 %5864 }
 0x7aa   :  { %v5934_v3 = vadd.f32 %v5865_v20, %v5742_v57  ;;  %v12623_v57 = vld [vmem:[#allocation22_spill] sm:$0xff] }
 0x7ab   :  { %v7484_v61 = vpop.eup %7483  ;;  %v5867_v27 = vpop.permute.xlu0 %5866 }
 0x7ac   :  { %v6093_v35 = vadd.f32 1.0, %v7484_v61  ;;  %v5966_v9 = vadd.f32 %v5934_v3, %v10108_v30 }
 0x7ad   :  { %v7486_v38 = vpop.eup %7485  ;;  %v4913_v60 = vpop.permute.xlu1 %4912 }
 0x7ae   :  { %7487 = vrcp.f32 %v6093_v35  ;;  %v6725_v44 = vmul.f32 -1.442695, %v5966_v9  ;;  %6286 = vperm.xlu1 %7252, %v7486_v38   ;;  %v4978_v37 = vadd.f32 %v4913_v60, %v4786_v52  ;;  %v12624_v38 = vld [vmem:[#allocation65_spill] sm:$0xff] }
 0x7af   :  { %v4911_v46 = vpop.permute.xlu0 %4910 }
 0x7b0   :  { %7489 = vpow2.f32 %v6725_v44  ;;  %v4977_v7 = vadd.f32 %v4911_v46, %v4785_v13 }
 0x7b1   :  { %v5105_v59 = vpop.permute.xlu1 %5104 }
 0x7b2   :  { %v5170_v51 = vadd.f32 %v5105_v59, %v4978_v37  ;;  %v5169_v25 = vadd.f32 %v11634_v2, %v4977_v7  ;;  %v12629_v7 = vld [vmem:[#allocation69_spill] sm:$0xff] }
 0x7b3   :  { %v5483_v32 = vpop.permute.xlu0 %5482 }
 0x7b4   :  { %v5551_v41 = vadd.f32 %v5483_v32, %v5359_v49  ;;  %v5361_v9 = vadd.f32 %v11638_v55, %v5169_v25  ;;  %v12632_v25 = vld [vmem:[#allocation23_spill] sm:$0xff] }
 0x7b5   :  { %v5297_v26 = vpop.permute.xlu1 %5296 }
 0x7b6   :  { %v5743_v53 = vadd.f32 %v5675_v45, %v5551_v41  ;;  %v5362_v22 = vadd.f32 %v5297_v26, %v5170_v51  ;;  %v12625_v41 = vld [vmem:[#allocation68_spill] sm:$0xff] }
 0x7b7   :  { %v5107_v39 = vpop.permute.xlu0 %5106 }
 0x7b8   :  { %v5935_v34 = vadd.f32 %v5867_v27, %v5743_v53  ;;  %v5554_v21 = vadd.f32 %v12622_v10, %v5362_v22  ;;  %v12628_v10 = vld [vmem:[#allocation67_spill] sm:$0xff] }
 0x7b9   :  { %v5485_v31 = vpop.permute.xlu1 %5484 }
 0x7ba   :  { %v5967_v42 = vadd.f32 %v5935_v34, %v10108_v30  ;;  %v5552_v24 = vadd.f32 %v5485_v31, %v5360_v14  ;;  %v5746_v5 = vadd.f32 %v12623_v57, %v5554_v21  ;;  %v12631_v57 = vld [vmem:[#allocation27_spill] sm:$0xff] }
 0x7bb   :  { %v7488_v19 = vpop.eup %7487  ;;  %v5299_v17 = vpop.permute.xlu0 %5298 }
 0x7bc   :  { %v6726_v48 = vmul.f32 -1.442695, %v5967_v42  ;;  %6291 = vperm.xlu0 %7251, %v7488_v19  }
 0x7bd   :  { %v7490_v0 = vpop.eup %7489  ;;  %v5677_v8 = vpop.permute.xlu1 %5676 }
 0x7be   :  { %7491 = vpow2.f32 %v6726_v48  ;;  %v6094_v6 = vadd.f32 1.0, %v7490_v0  ;;  %v5744_v23 = vadd.f32 %v5677_v8, %v5552_v24 }
 0x7bf   :  { %v5679_v11 = vpop.permute.xlu0 %5678 }
 0x7c0   :  { %7493 = vrcp.f32 %v6094_v6 }
 0x7c1   :  { %v5869_v33 = vpop.permute.xlu1 %5868 }
 0x7c2   :  { %v5936_v50 = vadd.f32 %v5869_v33, %v5744_v23 }
 0x7c3   :  { %v4915_v47 = vpop.permute.xlu0 %4914 }
 0x7c4   :  { %v4979_v45 = vadd.f32 %v4915_v47, %v4787_v16  ;;  %v5968_v43 = vadd.f32 %v5936_v50, %v10108_v30  ;;  %v12630_v50 = vld [vmem:[#allocation21_spill] sm:$0xff] }
 0x7c5   :  { %v5873_v61 = vpop.permute.xlu1 %5872 }
 0x7c6   :  { %v5171_v20 = vadd.f32 %v5107_v39, %v4979_v45  ;;  %v6727_v58 = vmul.f32 -1.442695, %v5968_v43  ;;  %v5938_v3 = vadd.f32 %v5873_v61, %v5746_v5 }
 0x7c7   :  { %v5871_v27 = vpop.permute.xlu0 %5870 }
 0x7c8   :  { %v5363_v35 = vadd.f32 %v5299_v17, %v5171_v20  ;;  %7495 = vpow2.f32 %v6727_v58  ;;  %v5970_v12 = vadd.f32 %v5938_v3, %v10108_v30  ;;  %v12633_v58 = vld [vmem:[#allocation29_spill] sm:$0xff] }
 0x7c9   :  { %v6167_v39 = vpop.permute.xlu1 %6166 }
 0x7ca   :  { %v5555_v28 = vadd.f32 %v12624_v38, %v5363_v35  ;;  %v6729_v44 = vmul.f32 -1.442695, %v5970_v12  ;;  %v6324_v8 = vmul.f32 %v6167_v39, %v12626_v29  ;;  %v12634_v35 = vld [vmem:[#allocation24_spill] sm:$0xff] }
 0x7cb   :  { %v7492_v60 = vpop.eup %7491  ;;  %v5487_v46 = vpop.permute.xlu0 %5486 }
 0x7cc   :  { %v6095_v59 = vadd.f32 1.0, %v7492_v60  ;;  %v5553_v49 = vadd.f32 %v5487_v46, %v5361_v9  ;;  %7497 = vpow2.f32 %v6729_v44  ;;  %v5747_v15 = vadd.f32 %v12625_v41, %v5555_v28  ;;  %v12635_v9 = vld [vmem:[#allocation71_spill] sm:$0xff]  ;;  %v12636_v28 = vld [vmem:[#allocation26_spill] sm:$0xff] }
 0x7cd   :  { %v7494_v2 = vpop.eup %7493  ;;  %v6177_v31 = vpop.permute.xlu1 %6176 }
 0x7ce   :  { %7499 = vrcp.f32 %v6095_v59  ;;  %v5745_v32 = vadd.f32 %v5679_v11, %v5553_v49  ;;  %6296 = vperm.xlu1 %7252, %v7494_v2   ;;  %v12627_v11 = vld [vmem:[#allocation66_spill] sm:$0xff]  ;;  %v12637_v59 = vld [vmem:[#allocation73_spill] sm:$0xff]  ;;  %v12638_v2 = vld [vmem:[#allocation28_spill] sm:$0xff] }
 0x7cf   :  { %v5875_v4 = vpop.permute.xlu0 %5874  ;;  %v6326_v13 = vmul.f32 %v6177_v31, %v12627_v11 }
 0x7d0   :  { %v5937_v54 = vadd.f32 %v5871_v27, %v5745_v32  ;;  %v5939_v62 = vadd.f32 %v5875_v4, %v5747_v15  ;;  %v12639_v15 = vld [vmem:[#allocation76_spill] sm:$0xff] }
 0x7d1   :  { %v6187_v19 = vpop.permute.xlu1 %6186 }
 0x7d2   :  { %v5969_v53 = vadd.f32 %v5937_v54, %v10108_v30  ;;  %v5971_v55 = vadd.f32 %v5939_v62, %v10108_v30  ;;  %v6328_v21 = vmul.f32 %v6187_v19, %v12628_v10  ;;  %v12640_v62 = vld [vmem:[#allocation70_spill] sm:$0xff]  ;;  %v12651_v10 = vld [vmem:[#allocation87_spill] sm:$0xff] }
 0x7d3   :  { %v6172_v51 = vpop.permute.xlu0 %6171 }
 0x7d4   :  { %v6728_v26 = vmul.f32 -1.442695, %v5969_v53  ;;  %v6730_v1 = vmul.f32 -1.442695, %v5971_v55  ;;  %v6325_v47 = vmul.f32 %v6172_v51, %v12630_v50  ;;  %v12641_v55 = vld [vmem:[#allocation79_spill] sm:$0xff]  ;;  %v12645_v51 = vld [vmem:[#allocation84_spill] sm:$0xff] }
 0x7d5   :  { %v7496_v52 = vpop.eup %7495  ;;  %v6197_v22 = vpop.permute.xlu1 %6196  ;;  %v12653_v50 = vld [vmem:[#allocation90_spill] sm:$0xff] }
 0x7d6   :  { %7501 = vpow2.f32 %v6728_v26  ;;  %v6096_v34 = vadd.f32 1.0, %v7496_v52  ;;  %v6330_v33 = vmul.f32 %v6197_v22, %v12629_v7 }
 0x7d7   :  { %7503 = vpow2.f32 %v6730_v1  ;;  %v6182_v0 = vpop.permute.xlu0 %6181  ;;  %v12642_v1 = vld [vmem:[#allocation72_spill] sm:$0xff] }
 0x7d8   :  { %7505 = vrcp.f32 %v6096_v34  ;;  %v6327_v20 = vmul.f32 %v6182_v0, %v12632_v25  ;;  %v12655_v25 = vld [vmem:[#allocation93_spill] sm:$0xff] }
 0x7d9   :  { %v7498_v63 = vpop.eup %7497  ;;  %v6207_v6 = vpop.permute.xlu1 %6206 }
 0x7da   :  { %v6098_v42 = vadd.f32 1.0, %v7498_v63  ;;  %v6332_v5 = vmul.f32 %v6207_v6, %v12631_v57  ;;  %v12643_v63 = vld [vmem:[#allocation81_spill] sm:$0xff] }
 0x7db   :  { %v7500_v37 = vpop.eup %7499  ;;  %v6192_v24 = vpop.permute.xlu0 %6191  ;;  %v12649_v6 = vld [vmem:[#allocation85_spill] sm:$0xff] }
 0x7dc   :  { %6301 = vperm.xlu0 %7251, %v7500_v37   ;;  %7507 = vrcp.f32 %v6098_v42  ;;  %v6329_v12 = vmul.f32 %v6192_v24, %v12634_v35  ;;  %v12644_v42 = vld [vmem:[#allocation75_spill] sm:$0xff] }
 0x7dd   :  { %v6217_v56 = vpop.permute.xlu1 %6216 }
 0x7de   :  { %v6334_v3 = vmul.f32 %v6217_v56, %v12633_v58 }
 0x7df   :  { %v6202_v23 = vpop.permute.xlu0 %6201 }
 0x7e0   :  { %v6331_v60 = vmul.f32 %v6202_v23, %v12636_v28 }
 0x7e1   :  { %v6227_v45 = vpop.permute.xlu1 %6226 }
 0x7e2   :  { %v6336_v38 = vmul.f32 %v6227_v45, %v12635_v9 }
 0x7e3   :  { %v7502_v18 = vpop.eup %7501  ;;  %v6212_v43 = vpop.permute.xlu0 %6211 }
 0x7e4   :  { %v7504_v17 = vpop.eup %7503  ;;  %v6097_v48 = vadd.f32 1.0, %v7502_v18  ;;  %v6333_v32 = vmul.f32 %v6212_v43, %v12638_v2  ;;  %v12654_v43 = vld [vmem:[#allocation91_spill] sm:$0xff] }
 0x7e5   :  { %v7506_v30 = vpop.eup %7505  ;;  %v6099_v14 = vadd.f32 1.0, %v7504_v17  ;;  %v6237_v61 = vpop.permute.xlu1 %6236 }
 0x7e6   :  { %7509 = vrcp.f32 %v6097_v48  ;;  %6306 = vperm.xlu1 %7252, %v7506_v30   ;;  %v6338_v49 = vmul.f32 %v6237_v61, %v12637_v59  ;;  %v12646_v48 = vld [vmem:[#allocation78_spill] sm:$0xff] }
 0x7e7   :  { %7511 = vrcp.f32 %v6099_v14  ;;  %v6222_v27 = vpop.permute.xlu0 %6221  ;;  %v12647_v14 = vld [vmem:[#allocation80_spill] sm:$0xff] }
 0x7e8   :  { %v6335_v53 = vmul.f32 %v6222_v27, %v12640_v62  ;;  %v12656_v27 = vld [vmem:[#allocation92_spill] sm:$0xff] }
 0x7e9   :  { %v7508_v36 = vpop.eup %7507  ;;  %v6247_v44 = vpop.permute.xlu1 %6246 }
 0x7ea   :  { %6316 = vperm.xlu1 %7252, %v7508_v36   ;;  %v6340_v4 = vmul.f32 %v6247_v44, %v12639_v15  ;;  %v12648_v36 = vld [vmem:[#allocation82_spill] sm:$0xff] }
 0x7eb   :  { %v6232_v46 = vpop.permute.xlu0 %6231 }
 0x7ec   :  { %v6337_v52 = vmul.f32 %v6232_v46, %v12642_v1 }
 0x7ed   :  { %v6257_v41 = vpop.permute.xlu1 %6256 }
 0x7ee   :  { %6388 = vrot.lane.b32.xlu1 %v6324_v8, %s7565_s7  ;;  %v6342_v26 = vmul.f32 %v6257_v41, %v12641_v55 }
 0x7ef   :  { %v6242_v54 = vpop.permute.xlu0 %6241 }
 0x7f0   :  { %v6339_v31 = vmul.f32 %v6242_v54, %v12644_v42 }
 0x7f1   :  { %v6267_v39 = vpop.permute.xlu1 %6266 }
 0x7f2   :  { %6392 = vrot.lane.b32.xlu1 %v6326_v13, %s7565_s7  ;;  %v6344_v37 = vmul.f32 %v6267_v39, %v12643_v63  ;;  %v12650_v13 = vld [vmem:[#allocation86_spill] sm:$0xff] }
 0x7f3   :  { %v7510_v40 = vpop.eup %7509  ;;  %v6252_v34 = vpop.permute.xlu0 %6251 }
 0x7f4   :  { %6311 = vperm.xlu0 %7251, %v7510_v40   ;;  %v7512_v16 = vpop.eup %7511  ;;  %v6341_v30 = vmul.f32 %v6252_v34, %v12646_v48 }
 0x7f6   :  { %6396 = vrot.lane.b32.xlu1 %v6328_v21, %s7565_s7 }
 0x7f7   :  { %v6262_v18 = vpop.permute.xlu0 %6261 }
 0x7f8   :  { %6321 = vperm.xlu0 %7251, %v7512_v16   ;;  %v6343_v22 = vmul.f32 %v6262_v18, %v12647_v14  ;;  %v12652_v16 = vld [vmem:[#allocation88_spill] sm:$0xff] }
 0x7fa   :  { %6400 = vrot.lane.b32.xlu1 %v6330_v33, %s7565_s7 }
 0x7fb   :  { %v6272_v0 = vpop.permute.xlu0 %6271 }
 0x7fc   :  { %6390 = vrot.lane.b32.xlu0 %v6325_v47, %s7565_s7  ;;  %v6345_v29 = vmul.f32 %v6272_v0, %v12648_v36 }
 0x7fe   :  { %6404 = vrot.lane.b32.xlu1 %v6332_v5, %s7565_s7 }
 0x800   :  { %6394 = vrot.lane.b32.xlu0 %v6327_v20, %s7565_s7 }
 0x802   :  { %6408 = vrot.lane.b32.xlu1 %v6334_v3, %s7565_s7 }
 0x804   :  { %6398 = vrot.lane.b32.xlu0 %v6329_v12, %s7565_s7 }
 0x806   :  { %6412 = vrot.lane.b32.xlu1 %v6336_v38, %s7565_s7  ;;  %v12657_v38 = vld [vmem:[#allocation95_spill] sm:$0xff] }
 0x808   :  { %6402 = vrot.lane.b32.xlu0 %v6331_v60, %s7565_s7 }
 0x809   :  { %v6277_v19 = vpop.permute.xlu1 %6276 }
 0x80a   :  { %6416 = vrot.lane.b32.xlu1 %v6338_v49, %s7565_s7  ;;  %v6346_v17 = vmul.f32 %v6277_v19, %v12645_v51 }
 0x80c   :  { %6406 = vrot.lane.b32.xlu0 %v6333_v32, %s7565_s7 }
 0x80e   :  { %6420 = vrot.lane.b32.xlu1 %v6340_v4, %s7565_s7 }
 0x810   :  { %6410 = vrot.lane.b32.xlu0 %v6335_v53, %s7565_s7 }
 0x812   :  { %6424 = vrot.lane.b32.xlu1 %v6342_v26, %s7565_s7 }
 0x814   :  { %6414 = vrot.lane.b32.xlu0 %v6337_v52, %s7565_s7 }
 0x816   :  { %6428 = vrot.lane.b32.xlu1 %v6344_v37, %s7565_s7 }
 0x817   :  { %v6282_v8 = vpop.permute.xlu0 %6281 }
 0x818   :  { %6418 = vrot.lane.b32.xlu0 %v6339_v31, %s7565_s7  ;;  %v6347_v24 = vmul.f32 %v6282_v8, %v12649_v6 }
 0x81a   :  { %6432 = vrot.lane.b32.xlu1 %v6346_v17, %s7565_s7 }
 0x81c   :  { %6422 = vrot.lane.b32.xlu0 %v6341_v30, %s7565_s7 }
 0x820   :  { %6426 = vrot.lane.b32.xlu0 %v6343_v22, %s7565_s7 }
 0x824   :  { %6430 = vrot.lane.b32.xlu0 %v6345_v29, %s7565_s7 }
 0x828   :  { %6434 = vrot.lane.b32.xlu0 %v6347_v24, %s7565_s7 }
 0x829   :  { %v6287_v11 = vpop.permute.xlu1 %6286 }
 0x82a   :  { %v6348_v40 = vmul.f32 %v6287_v11, %v12650_v13 }
 0x82c   :  { %6436 = vrot.lane.b32.xlu1 %v6348_v40, %s7565_s7 }
 0x837   :  { %v6292_v56 = vpop.permute.xlu0 %6291 }
 0x838   :  { %v6349_v21 = vmul.f32 %v6292_v56, %v12651_v10 }
 0x83a   :  { %6438 = vrot.lane.b32.xlu0 %v6349_v21, %s7565_s7 }
 0x849   :  { %v6297_v23 = vpop.permute.xlu1 %6296 }
 0x84a   :  { %v6350_v7 = vmul.f32 %v6297_v23, %v12652_v16 }
 0x84c   :  { %6440 = vrot.lane.b32.xlu1 %v6350_v7, %s7565_s7 }
 0x857   :  { %v6302_v33 = vpop.permute.xlu0 %6301 }
 0x858   :  { %v6351_v47 = vmul.f32 %v6302_v33, %v12653_v50 }
 0x85a   :  { %6442 = vrot.lane.b32.xlu0 %v6351_v47, %s7565_s7 }
 0x861   :  { %v6307_v45 = vpop.permute.xlu1 %6306 }
 0x862   :  { %v6352_v57 = vmul.f32 %v6307_v45, %v12654_v43 }
 0x864   :  { %6444 = vrot.lane.b32.xlu1 %v6352_v57, %s7565_s7 }
 0x865   :  { %v6317_v5 = vpop.permute.xlu1 %6316 }
 0x866   :  { %v6354_v20 = vmul.f32 %v6317_v5, %v12655_v25 }
 0x868   :  { %6448 = vrot.lane.b32.xlu1 %v6354_v20, %s7565_s7 }
 0x869   :  { %v6389_v61 = vpop.permute.xlu1 %6388 }
 0x86a   :  { %6485 = vst.msk [vmem:[#allocation4] sm:$0xff] %vm6484_vm6, %v6389_v61 }
 0x86d   :  { %v6393_v58 = vpop.permute.xlu1 %6392 }
 0x86e   :  { %6487 = vst.msk [vmem:[#allocation4 + $0x10] sm:$0xff] %vm6484_vm6, %v6393_v58 }
 0x86f   :  { %v6312_v3 = vpop.permute.xlu0 %6311 }
 0x870   :  { %v6353_v35 = vmul.f32 %v6312_v3, %v12656_v27 }
 0x871   :  { %v6397_v12 = vpop.permute.xlu1 %6396 }
 0x872   :  { %6446 = vrot.lane.b32.xlu0 %v6353_v35, %s7565_s7  ;;  %6489 = vst.msk [vmem:[#allocation4 + $0x20] sm:$0xff] %vm6484_vm6, %v6397_v12 }
 0x873   :  { %v6322_v9 = vpop.permute.xlu0 %6321 }
 0x874   :  { %v6355_v28 = vmul.f32 %v6322_v9, %v12657_v38 }
 0x875   :  { %v6401_v60 = vpop.permute.xlu1 %6400 }
 0x876   :  { %6450 = vrot.lane.b32.xlu0 %v6355_v28, %s7565_s7  ;;  %6491 = vst.msk [vmem:[#allocation4 + $0x30] sm:$0xff] %vm6484_vm6, %v6401_v60 }
 0x877   :  { %v6391_v44 = vpop.permute.xlu0 %6390 }
 0x878   :  { %6486 = vst.msk [vmem:[#allocation4 + $0x8] sm:$0xff] %vm6484_vm6, %v6391_v44 }
 0x879   :  { %v6405_v46 = vpop.permute.xlu1 %6404 }
 0x87a   :  { %6493 = vst.msk [vmem:[#allocation4 + $0x40] sm:$0xff] %vm6484_vm6, %v6405_v46 }
 0x87b   :  { %v6395_v59 = vpop.permute.xlu0 %6394 }
 0x87c   :  { %6488 = vst.msk [vmem:[#allocation4 + $0x18] sm:$0xff] %vm6484_vm6, %v6395_v59 }
 0x87d   :  { %v6409_v49 = vpop.permute.xlu1 %6408 }
 0x87e   :  { %6495 = vst.msk [vmem:[#allocation4 + $0x50] sm:$0xff] %vm6484_vm6, %v6409_v49 }
 0x87f   :  { %v6399_v2 = vpop.permute.xlu0 %6398 }
 0x880   :  { %6490 = vst.msk [vmem:[#allocation4 + $0x28] sm:$0xff] %vm6484_vm6, %v6399_v2 }
 0x881   :  { %v6413_v32 = vpop.permute.xlu1 %6412 }
 0x882   :  { %6497 = vst.msk [vmem:[#allocation4 + $0x60] sm:$0xff] %vm6484_vm6, %v6413_v32 }
 0x883   :  { %v6403_v41 = vpop.permute.xlu0 %6402 }
 0x884   :  { %6492 = vst.msk [vmem:[#allocation4 + $0x38] sm:$0xff] %vm6484_vm6, %v6403_v41 }
 0x885   :  { %v6417_v15 = vpop.permute.xlu1 %6416 }
 0x886   :  { %6499 = vst.msk [vmem:[#allocation4 + $0x70] sm:$0xff] %vm6484_vm6, %v6417_v15 }
 0x887   :  { %v6407_v4 = vpop.permute.xlu0 %6406 }
 0x888   :  { %6494 = vst.msk [vmem:[#allocation4 + $0x48] sm:$0xff] %vm6484_vm6, %v6407_v4 }
 0x889   :  { %v6421_v54 = vpop.permute.xlu1 %6420 }
 0x88a   :  { %6501 = vst.msk [vmem:[#allocation4 + $0x80] sm:$0xff] %vm6484_vm6, %v6421_v54 }
 0x88b   :  { %v6411_v62 = vpop.permute.xlu0 %6410 }
 0x88c   :  { %6496 = vst.msk [vmem:[#allocation4 + $0x58] sm:$0xff] %vm6484_vm6, %v6411_v62 }
 0x88d   :  { %v6425_v53 = vpop.permute.xlu1 %6424 }
 0x88e   :  { %6503 = vst.msk [vmem:[#allocation4 + $0x90] sm:$0xff] %vm6484_vm6, %v6425_v53 }
 0x88f   :  { %v6415_v55 = vpop.permute.xlu0 %6414 }
 0x890   :  { %6498 = vst.msk [vmem:[#allocation4 + $0x68] sm:$0xff] %vm6484_vm6, %v6415_v55 }
 0x891   :  { %v6429_v26 = vpop.permute.xlu1 %6428 }
 0x892   :  { %6505 = vst.msk [vmem:[#allocation4 + $0xa0] sm:$0xff] %vm6484_vm6, %v6429_v26 }
 0x893   :  { %v6419_v1 = vpop.permute.xlu0 %6418 }
 0x894   :  { %6500 = vst.msk [vmem:[#allocation4 + $0x78] sm:$0xff] %vm6484_vm6, %v6419_v1 }
 0x895   :  { %v6433_v52 = vpop.permute.xlu1 %6432 }
 0x896   :  { %6507 = vst.msk [vmem:[#allocation4 + $0xb0] sm:$0xff] %vm6484_vm6, %v6433_v52 }
 0x897   :  { %v6423_v39 = vpop.permute.xlu0 %6422 }
 0x898   :  { %6502 = vst.msk [vmem:[#allocation4 + $0x88] sm:$0xff] %vm6484_vm6, %v6423_v39 }
 0x89b   :  { %v6427_v34 = vpop.permute.xlu0 %6426 }
 0x89c   :  { %6504 = vst.msk [vmem:[#allocation4 + $0x98] sm:$0xff] %vm6484_vm6, %v6427_v34 }
 0x89e   :  { %v6437_v63 = vpop.permute.xlu1 %6436 }
 0x89f   :  { %v6431_v37 = vpop.permute.xlu0 %6430  ;;  %6509 = vst.msk [vmem:[#allocation4 + $0xc0] sm:$0xff] %vm6484_vm6, %v6437_v63 }
 0x8a0   :  { %6506 = vst.msk [vmem:[#allocation4 + $0xa8] sm:$0xff] %vm6484_vm6, %v6431_v37 }
 0x8a3   :  { %v6435_v42 = vpop.permute.xlu0 %6434 }
 0x8a4   :  { %6508 = vst.msk [vmem:[#allocation4 + $0xb8] sm:$0xff] %vm6484_vm6, %v6435_v42 }
 0x8ac   :  { %v6439_v31 = vpop.permute.xlu0 %6438 }
 0x8ad   :  { %6510 = vst.msk [vmem:[#allocation4 + $0xc8] sm:$0xff] %vm6484_vm6, %v6439_v31 }
 0x8be   :  { %v6441_v19 = vpop.permute.xlu1 %6440 }
 0x8bf   :  { %6511 = vst.msk [vmem:[#allocation4 + $0xd0] sm:$0xff] %vm6484_vm6, %v6441_v19 }
 0x8cc   :  { %v6443_v18 = vpop.permute.xlu0 %6442 }
 0x8cd   :  { %6512 = vst.msk [vmem:[#allocation4 + $0xd8] sm:$0xff] %vm6484_vm6, %v6443_v18 }
 0x8d6   :  { %v6445_v51 = vpop.permute.xlu1 %6444 }
 0x8d7   :  { %6513 = vst.msk [vmem:[#allocation4 + $0xe0] sm:$0xff] %vm6484_vm6, %v6445_v51 }
 0x8da   :  { %v6449_v17 = vpop.permute.xlu1 %6448 }
 0x8db   :  { %6515 = vst.msk [vmem:[#allocation4 + $0xf0] sm:$0xff] %vm6484_vm6, %v6449_v17 }
 0x8e4   :  { %v6447_v48 = vpop.permute.xlu0 %6446 }
 0x8e5   :  { %6514 = vst.msk [vmem:[#allocation4 + $0xe8] sm:$0xff] %vm6484_vm6, %v6447_v48 }
 0x8e8   :  { %v6451_v30 = vpop.permute.xlu0 %6450 }
 0x8e9   :  { %6516 = vst.msk [vmem:[#allocation4 + $0xf8] sm:$0xff] %vm6484_vm6, %v6451_v30 }
 0x8ea   :  { %7543 = shalt.err (!%p7540_p4)
}
 0x8eb   :  { %s7567_s16 = smov 128   ;;  %s7568_s17 = smov 8  }
 0x8ec   :  { %6528 = dma.vmem_to_hbm [thread:$0]  %s6523_s0, 4096, %s11771_s8, [#allocation5], %s7567_s16, %s7567_s16, %s7568_s17  }
 0x8ed   :  { %7552 = dma.done.wait [#allocation5], 4096  }
 0x8ee   :  { %7553 = vsyncadd [#allocation5], 4294963200 }
 0x8ef   :  { %6532 = vsyncpa [#allocation5], 1 }

</bundles_post_ra>
